<compile_context>
chip_gen: v5e
topology: v5e:2x2
jax: 0.10.0
libtpu: 0.0.40
codegen_flags: <defaults>
</compile_context>

<pallas_src>
import math

import jax
import jax.numpy as jnp
from jax.experimental import pallas as pl
from jax.experimental.pallas import tpu as pltpu  # noqa: F401  (TPU backend)

# ----------------------------- model constants -----------------------------
HID = 6
HEADS = 8
KH = HID * HEADS                       # 48 (hid * head, concat heads)
RAISED = 8                             # raised_dimension
CONCAT_LAYER = 64
NUM_GENE = 32
NUM_MIRNA = 0
NUM_NODE = NUM_GENE + NUM_MIRNA        # 32
NUM_CLASSES = 3
POOLSIZE = 2
NUM_FEATURES = 1                       # omic_mode < 3
M_POOL = NUM_NODE // POOLSIZE          # 16
LINEAR_INPUT = M_POOL * KH             # 768
D1 = LINEAR_INPUT // 4                 # 192
ATTN_NEG_SLOPE = 0.2                   # GATConv default negative_slope
LEAKY_SLOPE = 0.01                     # F.leaky_relu default


# ------------------------------ fused kernel ------------------------------
def fused_gat_kernel(x_ref, mask_ref,
                     pre_w_ref, pre_b_ref,
                     w1_ref, asrc1_ref, adst1_ref, b1_ref,
                     w2_ref, asrc2_ref, adst2_ref, b2_ref,
                     hmask_ref,
                     l1w_ref, l1b_ref, l2w_ref, l2b_ref,
                     clsw_ref, clsb_ref,
                     o_ref):
    B = x_ref.shape[0]
    N = x_ref.shape[1]
    K = HEADS
    G = B * K

    # additive adjacency mask (0 / -1e9), shared by both conv layers
    mask = mask_ref[...][None]                                      # (1, N, N)

    # --- pre_conv_linear_gene + ReLU (num_features == 1 -> broadcast multiply)
    h0 = jnp.maximum(x_ref[...] * pre_w_ref[...] + pre_b_ref[...], 0.0)   # (B, N, 8)

    # per-head channel mask, replicated over the batch, heads folded into G
    hmask_g = jnp.broadcast_to(hmask_ref[...][None],
                               (B, K, 1, KH)).reshape(G, 1, KH)     # (G, 1, KH)

    def gat_conv(x_in, w_ref, asrc_ref, adst_ref, b_ref):
        fin = w_ref.shape[0]
        # shared linear projection: fold (B, N) into rows -> ONE MXU matmul
        # (B*N, fin) @ (fin, KH); leading-dim collapse/split is layout-free.
        h_flat = jnp.dot(x_in.reshape(B * N, fin), w_ref[...],
                         preferred_element_type=jnp.float32)        # (B*N, KH)
        h_nm = h_flat.reshape(B, N, KH)                             # (B, N, KH)
        # head-replicated view: heads folded into the leading (batch*head) axis;
        # needed anyway for the head-masked aggregation below.
        h_rep = jnp.broadcast_to(h_nm[:, None],
                                 (B, K, N, KH)).reshape(G, N, KH)   # (G, N, KH)
        asrc_g = jnp.broadcast_to(asrc_ref[...][None],
                                  (B, K, 1, KH)).reshape(G, 1, KH)
        adst_g = jnp.broadcast_to(adst_ref[...][None],
                                  (B, K, 1, KH)).reshape(G, 1, KH)
        # Per-head attention logits.  Block attention rows are zero outside their
        # own head segment; both results land directly in the layout the softmax
        # needs ((G,1,N) and (G,N,1)) so no transposes / relayouts occur.
        a_src = jnp.einsum('gac,gjc->gaj', asrc_g, h_rep,
                           preferred_element_type=jnp.float32)      # (G, 1, N)
        a_dst = jnp.einsum('gic,gac->gia', h_rep, adst_g,
                           preferred_element_type=jnp.float32)      # (G, N, 1)
        e = a_dst + a_src                                           # (G, N, N)
        e = jnp.where(e >= 0, e, ATTN_NEG_SLOPE * e)                # leaky_relu(0.2)
        e = e + mask                                                # adjacency mask
        e = e - jnp.max(e, axis=-1, keepdims=True)                  # masked softmax
        p = jnp.exp(e)
        p = p * pl.reciprocal(jnp.sum(p, axis=-1, keepdims=True), approx=True)
        # Aggregate all heads in one batched matmul; foreign-head channels are
        # zeroed so summing over heads reconstructs the concatenated output.
        # (Push-count equivalent to per-head 6-wide matmuls, but no lane concat.)
        hm_rep = h_rep * hmask_g                                    # (G, N, KH)
        out_g = jnp.einsum('gij,gjc->gic', p, hm_rep,
                           preferred_element_type=jnp.float32)      # (G, N, KH)
        out_h = out_g.reshape(B, K, N, KH)                          # leading split (free)
        out = out_h[:, 0]
        for k in range(1, K):                                       # major-axis sum (cheap adds)
            out = out + out_h[:, k]
        out = out + b_ref[...]                                      # GATConv bias
        return jnp.where(out >= 0, out, LEAKY_SLOPE * out)          # F.leaky_relu

    h1 = gat_conv(h0, w1_ref, asrc1_ref, adst1_ref, b1_ref)         # (B, N, KH)
    h2 = gat_conv(h1, w2_ref, asrc2_ref, adst2_ref, b2_ref)         # (B, N, KH)

    # graph_max_pool(2) + node-major flatten + linear1, fused: each pooled node
    # row is a sublane slice hitting its own (KH, D1) weight slab, so the
    # (B, 16, 48) -> (B, 768) flatten never materializes.
    acc = jnp.zeros((B, D1), jnp.float32)
    for m in range(M_POOL):
        pooled_m = jnp.max(h2[:, POOLSIZE * m:POOLSIZE * (m + 1), :], axis=1)   # (B, KH)
        acc = acc + jnp.dot(pooled_m, l1w_ref[m],
                            preferred_element_type=jnp.float32)
    z1 = jnp.maximum(acc + l1b_ref[...], 0.0)                       # (B, 192)
    z2 = jnp.maximum(jnp.dot(z1, l2w_ref[...],
                             preferred_element_type=jnp.float32) + l2b_ref[...],
                     0.0)                                           # (B, 64)
    # F.dropout with training=False -> identity (eval mode)
    logits = jnp.dot(z2, clsw_ref[...],
                     preferred_element_type=jnp.float32) + clsb_ref[...]
    logits = logits - jnp.max(logits, axis=-1, keepdims=True)
    o_ref[...] = logits - jnp.log(jnp.sum(jnp.exp(logits), axis=-1, keepdims=True))


# ------------------------------ forward pass ------------------------------
@jax.jit
def gat_forward(kp, x, adj_mask):
    B = x.shape[0]
    return pl.pallas_call(
        fused_gat_kernel,
        out_shape=jax.ShapeDtypeStruct((B, NUM_CLASSES), jnp.float32),
    )(x, adj_mask,
      kp["pre_w"], kp["pre_b"],
      kp["c1_w"], kp["c1_asrc"], kp["c1_adst"], kp["c1_b"],
      kp["c2_w"], kp["c2_asrc"], kp["c2_adst"], kp["c2_b"],
      kp["hmask"],
      kp["l1_w"], kp["l1_b"], kp["l2_w"], kp["l2_b"],
      kp["cls_w"], kp["cls_b"])


# ------------------------------ parameter init ------------------------------
def init_params(key):
    ks = jax.random.split(key, 12)

    def lin(k, fin, fout):
        s = 1.0 / math.sqrt(fin)
        kw, kb = jax.random.split(k)
        w = jax.random.uniform(kw, (fin, fout), jnp.float32, -s, s)
        b = jax.random.uniform(kb, (fout,), jnp.float32, -s, s)
        return w, b

    p = {}
    p["pre_w"], p["pre_b"] = lin(ks[0], NUM_FEATURES, RAISED)
    # GATConv #1: lin (no bias), att_src / att_dst (heads, hid), output bias
    p["c1_w"], _ = lin(ks[1], RAISED, KH)
    p["c1_asrc"] = 0.3 * jax.random.normal(ks[2], (HEADS, HID), jnp.float32)
    p["c1_adst"] = 0.3 * jax.random.normal(ks[3], (HEADS, HID), jnp.float32)
    p["c1_b"] = 0.1 * jax.random.normal(ks[4], (KH,), jnp.float32)
    # GATConv #2
    p["c2_w"], _ = lin(ks[5], KH, KH)
    p["c2_asrc"] = 0.3 * jax.random.normal(ks[6], (HEADS, HID), jnp.float32)
    p["c2_adst"] = 0.3 * jax.random.normal(ks[7], (HEADS, HID), jnp.float32)
    p["c2_b"] = 0.1 * jax.random.normal(ks[8], (KH,), jnp.float32)
    # MLP head
    p["l1_w"], p["l1_b"] = lin(ks[9], LINEAR_INPUT, D1)
    p["l2_w"], p["l2_b"] = lin(ks[10], D1, CONCAT_LAYER)
    p["cls_w"], p["cls_b"] = lin(ks[11], CONCAT_LAYER, NUM_CLASSES)
    return p


def pack_params(p):
    """One-time, host-side repacking into kernel-friendly layouts."""
    eye = jnp.eye(HEADS, dtype=jnp.float32)

    def att_block(att):
        # (K, H) -> (K, 1, KH): row k holds att[k] in its own head segment.
        return (att[:, None, :] * eye[:, :, None]).reshape(HEADS, KH)[:, None, :]

    hmask = jnp.repeat(eye, HID, axis=1)[:, None, :]                # (K, 1, KH)
    return {
        "pre_w": p["pre_w"].reshape(1, 1, RAISED),
        "pre_b": p["pre_b"].reshape(1, 1, RAISED),
        "c1_w": p["c1_w"],
        "c1_asrc": att_block(p["c1_asrc"]),
        "c1_adst": att_block(p["c1_adst"]),
        "c1_b": p["c1_b"].reshape(1, 1, KH),
        "c2_w": p["c2_w"],
        "c2_asrc": att_block(p["c2_asrc"]),
        "c2_adst": att_block(p["c2_adst"]),
        "c2_b": p["c2_b"].reshape(1, 1, KH),
        "hmask": hmask,
        # node-major flatten: row index of l1_w is m*KH + c  ->  (M, KH, D1)
        "l1_w": p["l1_w"].reshape(M_POOL, KH, D1),
        "l1_b": p["l1_b"].reshape(1, D1),
        "l2_w": p["l2_w"],
        "l2_b": p["l2_b"].reshape(1, CONCAT_LAYER),
        "cls_w": p["cls_w"],
        "cls_b": p["cls_b"].reshape(1, NUM_CLASSES),
    }


# ----------------------------------- main -----------------------------------
if __name__ == "__main__":
    key = jax.random.PRNGKey(0)
    kx, kp_key = jax.random.split(key)

    B = 2
    x = jax.random.normal(kx, (B, NUM_NODE, NUM_FEATURES), jnp.float32)

    # Deterministic graph: node j sends edges to (j+1)%N, (j+3)%N, (j+7)%N.
    src = jnp.arange(NUM_NODE, dtype=jnp.int32)
    dst = jnp.concatenate([(src + s) % NUM_NODE for s in (1, 3, 7)])
    edge_index = jnp.stack([jnp.concatenate([src, src, src]), dst], axis=0)

    # Dense adjacency (target i <- source j) with self loops (add_self_loops=True),
    # expressed as an additive softmax mask.  Sound because every row has a
    # self-loop, matching PyG's edge-wise scatter softmax.
    adj = jnp.zeros((NUM_NODE, NUM_NODE), jnp.float32)
    adj = adj.at[edge_index[1], edge_index[0]].set(1.0)
    adj = jnp.maximum(adj, jnp.eye(NUM_NODE, dtype=jnp.float32))
    adj_mask = jnp.where(adj > 0, 0.0, -1e9).astype(jnp.float32)

    # edge_weight unused because edge_weights=False in this configuration.
    params = init_params(kp_key)
    kernel_params = pack_params(params)          # hoisted out of the traced forward

    out = gat_forward(kernel_params, x, adj_mask)
    out = jax.block_until_ready(out)
    assert out.shape == (B, NUM_CLASSES)
    assert bool(jnp.all(jnp.isfinite(out)))
    print("KERNEL_OK")
</pallas_src>

<mosaic_0001>
module attributes {stable_mosaic.version = 11 : i64} {
  func.func @fused_gat_kernel(%arg0: memref<2x32x1xf32, #tpu.memory_space<vmem>>, %arg1: memref<32x32xf32, #tpu.memory_space<vmem>>, %arg2: memref<1x1x8xf32, #tpu.memory_space<vmem>>, %arg3: memref<1x1x8xf32, #tpu.memory_space<vmem>>, %arg4: memref<8x48xf32, #tpu.memory_space<vmem>>, %arg5: memref<8x1x48xf32, #tpu.memory_space<vmem>>, %arg6: memref<8x1x48xf32, #tpu.memory_space<vmem>>, %arg7: memref<1x1x48xf32, #tpu.memory_space<vmem>>, %arg8: memref<48x48xf32, #tpu.memory_space<vmem>>, %arg9: memref<8x1x48xf32, #tpu.memory_space<vmem>>, %arg10: memref<8x1x48xf32, #tpu.memory_space<vmem>>, %arg11: memref<1x1x48xf32, #tpu.memory_space<vmem>>, %arg12: memref<8x1x48xf32, #tpu.memory_space<vmem>>, %arg13: memref<16x48x192xf32, #tpu.memory_space<vmem>>, %arg14: memref<1x192xf32, #tpu.memory_space<vmem>>, %arg15: memref<192x64xf32, #tpu.memory_space<vmem>>, %arg16: memref<1x64xf32, #tpu.memory_space<vmem>>, %arg17: memref<64x3xf32, #tpu.memory_space<vmem>>, %arg18: memref<1x3xf32, #tpu.memory_space<vmem>>, %arg19: memref<2x3xf32, #tpu.memory_space<vmem>>) attributes {dimension_semantics = [], scalar_prefetch = 0 : i64, scratch_operands = 0 : i64, tpu.core_type = #tpu.core_type<tc>} {
    %c0 = arith.constant 0 : index
    %c0_0 = arith.constant 0 : index
    %0 = vector.load %arg1[%c0, %c0_0] : memref<32x32xf32, #tpu.memory_space<vmem>>, vector<32x32xf32>
    %1 = vector.shape_cast %0 : vector<32x32xf32> to vector<1x32x32xf32>
    %c0_1 = arith.constant 0 : index
    %c0_2 = arith.constant 0 : index
    %c0_3 = arith.constant 0 : index
    %2 = vector.load %arg0[%c0_1, %c0_2, %c0_3] : memref<2x32x1xf32, #tpu.memory_space<vmem>>, vector<2x32x1xf32>
    %c0_4 = arith.constant 0 : index
    %c0_5 = arith.constant 0 : index
    %c0_6 = arith.constant 0 : index
    %3 = vector.load %arg2[%c0_4, %c0_5, %c0_6] : memref<1x1x8xf32, #tpu.memory_space<vmem>>, vector<1x1x8xf32>
    %4 = vector.broadcast %2 : vector<2x32x1xf32> to vector<2x32x8xf32>
    %5 = vector.broadcast %3 : vector<1x1x8xf32> to vector<2x32x8xf32>
    %6 = arith.mulf %4, %5 : vector<2x32x8xf32>
    %c0_7 = arith.constant 0 : index
    %c0_8 = arith.constant 0 : index
    %c0_9 = arith.constant 0 : index
    %7 = vector.load %arg3[%c0_7, %c0_8, %c0_9] : memref<1x1x8xf32, #tpu.memory_space<vmem>>, vector<1x1x8xf32>
    %8 = vector.broadcast %7 : vector<1x1x8xf32> to vector<2x32x8xf32>
    %9 = arith.addf %6, %8 : vector<2x32x8xf32>
    %cst = arith.constant 0.000000e+00 : f32
    %10 = vector.broadcast %cst : f32 to vector<2x32x8xf32>
    %11 = arith.maximumf %9, %10 : vector<2x32x8xf32>
    %c0_10 = arith.constant 0 : index
    %c0_11 = arith.constant 0 : index
    %c0_12 = arith.constant 0 : index
    %12 = vector.load %arg12[%c0_10, %c0_11, %c0_12] : memref<8x1x48xf32, #tpu.memory_space<vmem>>, vector<8x1x48xf32>
    %13 = vector.shape_cast %12 : vector<8x1x48xf32> to vector<1x8x1x48xf32>
    %14 = vector.shape_cast %13 : vector<1x8x1x48xf32> to vector<1x8x1x48xf32>
    %15 = vector.broadcast %14 : vector<1x8x1x48xf32> to vector<2x8x1x48xf32>
    %16 = vector.shape_cast %15 : vector<2x8x1x48xf32> to vector<16x1x48xf32>
    %17 = vector.shape_cast %11 : vector<2x32x8xf32> to vector<64x8xf32>
    %c0_13 = arith.constant 0 : index
    %c0_14 = arith.constant 0 : index
    %18 = vector.load %arg4[%c0_13, %c0_14] : memref<8x48xf32, #tpu.memory_space<vmem>>, vector<8x48xf32>
    %cst_15 = arith.constant dense<0.000000e+00> : vector<64x48xf32>
    %19 = tpu.matmul %17, %18, %cst_15 {dimension_numbers = #tpu.dot_dimension_numbers<[1], [0], [0], [1], [0, 0, 1, 1], [], []>} : vector<64x8xf32>, vector<8x48xf32>, vector<64x48xf32> -> vector<64x48xf32>
    %20 = vector.shape_cast %19 : vector<64x48xf32> to vector<2x32x48xf32>
    %21 = vector.shape_cast %20 : vector<2x32x48xf32> to vector<2x1x32x48xf32>
    %22 = vector.shape_cast %21 : vector<2x1x32x48xf32> to vector<2x1x32x48xf32>
    %23 = vector.broadcast %22 : vector<2x1x32x48xf32> to vector<2x8x32x48xf32>
    %24 = vector.shape_cast %23 : vector<2x8x32x48xf32> to vector<16x32x48xf32>
    %c0_16 = arith.constant 0 : index
    %c0_17 = arith.constant 0 : index
    %c0_18 = arith.constant 0 : index
    %25 = vector.load %arg5[%c0_16, %c0_17, %c0_18] : memref<8x1x48xf32, #tpu.memory_space<vmem>>, vector<8x1x48xf32>
    %26 = vector.shape_cast %25 : vector<8x1x48xf32> to vector<1x8x1x48xf32>
    %27 = vector.shape_cast %26 : vector<1x8x1x48xf32> to vector<1x8x1x48xf32>
    %28 = vector.broadcast %27 : vector<1x8x1x48xf32> to vector<2x8x1x48xf32>
    %29 = vector.shape_cast %28 : vector<2x8x1x48xf32> to vector<16x1x48xf32>
    %c0_19 = arith.constant 0 : index
    %c0_20 = arith.constant 0 : index
    %c0_21 = arith.constant 0 : index
    %30 = vector.load %arg6[%c0_19, %c0_20, %c0_21] : memref<8x1x48xf32, #tpu.memory_space<vmem>>, vector<8x1x48xf32>
    %31 = vector.shape_cast %30 : vector<8x1x48xf32> to vector<1x8x1x48xf32>
    %32 = vector.shape_cast %31 : vector<1x8x1x48xf32> to vector<1x8x1x48xf32>
    %33 = vector.broadcast %32 : vector<1x8x1x48xf32> to vector<2x8x1x48xf32>
    %34 = vector.shape_cast %33 : vector<2x8x1x48xf32> to vector<16x1x48xf32>
    "tpu.trace_start"() <{level = 10 : i32, message = "gac,gjc->gaj"}> : () -> ()
    %cst_22 = arith.constant dense<0.000000e+00> : vector<16x1x32xf32>
    %35 = tpu.matmul %29, %24, %cst_22 {dimension_numbers = #tpu.dot_dimension_numbers<[2], [2], [1], [1], [0, 0, 0, 1, 1, 1], [0], [0]>} : vector<16x1x48xf32>, vector<16x32x48xf32>, vector<16x1x32xf32> -> vector<16x1x32xf32>
    "tpu.trace_stop"() : () -> ()
    "tpu.trace_start"() <{level = 10 : i32, message = "gic,gac->gia"}> : () -> ()
    %cst_23 = arith.constant dense<0.000000e+00> : vector<16x32x1xf32>
    %36 = tpu.matmul %24, %34, %cst_23 {dimension_numbers = #tpu.dot_dimension_numbers<[2], [2], [1], [1], [0, 0, 0, 1, 1, 1], [0], [0]>} : vector<16x32x48xf32>, vector<16x1x48xf32>, vector<16x32x1xf32> -> vector<16x32x1xf32>
    "tpu.trace_stop"() : () -> ()
    %37 = vector.broadcast %36 : vector<16x32x1xf32> to vector<16x32x32xf32>
    %38 = vector.broadcast %35 : vector<16x1x32xf32> to vector<16x32x32xf32>
    %39 = arith.addf %37, %38 : vector<16x32x32xf32>
    %cst_24 = arith.constant 0.000000e+00 : f32
    %40 = vector.broadcast %cst_24 : f32 to vector<16x32x32xf32>
    %41 = arith.cmpf oge, %39, %40 : vector<16x32x32xf32>
    %cst_25 = arith.constant 2.000000e-01 : f32
    %42 = vector.broadcast %cst_25 : f32 to vector<16x32x32xf32>
    %43 = arith.mulf %42, %39 : vector<16x32x32xf32>
    %44 = arith.select %41, %39, %43 : vector<16x32x32xi1>, vector<16x32x32xf32>
    %45 = vector.broadcast %1 : vector<1x32x32xf32> to vector<16x32x32xf32>
    %46 = arith.addf %44, %45 : vector<16x32x32xf32>
    %cst_26 = arith.constant dense<0xFF800000> : vector<16x32xf32>
    %47 = vector.multi_reduction <maximumf>, %46, %cst_26 [2] : vector<16x32x32xf32> to vector<16x32xf32>
    %48 = vector.shape_cast %47 : vector<16x32xf32> to vector<16x32x1xf32>
    %49 = vector.broadcast %48 : vector<16x32x1xf32> to vector<16x32x32xf32>
    %50 = arith.subf %46, %49 : vector<16x32x32xf32>
    %51 = math.exp %50 : vector<16x32x32xf32>
    %cst_27 = arith.constant dense<0.000000e+00> : vector<16x32xf32>
    %52 = vector.multi_reduction <add>, %51, %cst_27 [2] : vector<16x32x32xf32> to vector<16x32xf32>
    %53 = vector.shape_cast %52 : vector<16x32xf32> to vector<16x32x1xf32>
    %54 = tpu.reciprocal %53 {approx = true} : vector<16x32x1xf32> -> vector<16x32x1xf32>
    %55 = vector.broadcast %54 : vector<16x32x1xf32> to vector<16x32x32xf32>
    %56 = arith.mulf %51, %55 : vector<16x32x32xf32>
    %57 = vector.broadcast %16 : vector<16x1x48xf32> to vector<16x32x48xf32>
    %58 = arith.mulf %24, %57 : vector<16x32x48xf32>
    "tpu.trace_start"() <{level = 10 : i32, message = "gij,gjc->gic"}> : () -> ()
    %cst_28 = arith.constant dense<0.000000e+00> : vector<16x32x48xf32>
    %59 = tpu.matmul %56, %58, %cst_28 {dimension_numbers = #tpu.dot_dimension_numbers<[2], [1], [1], [2], [0, 0, 0, 1, 1, 2], [0], [0]>} : vector<16x32x32xf32>, vector<16x32x48xf32>, vector<16x32x48xf32> -> vector<16x32x48xf32>
    "tpu.trace_stop"() : () -> ()
    %60 = vector.shape_cast %59 : vector<16x32x48xf32> to vector<2x8x32x48xf32>
    %61 = vector.extract_strided_slice %60 {offsets = [0, 0, 0, 0], sizes = [2, 1, 32, 48], strides = [1, 1, 1, 1]} : vector<2x8x32x48xf32> to vector<2x1x32x48xf32>
    %62 = vector.shape_cast %61 : vector<2x1x32x48xf32> to vector<2x32x48xf32>
    %63 = vector.extract_strided_slice %60 {offsets = [0, 1, 0, 0], sizes = [2, 1, 32, 48], strides = [1, 1, 1, 1]} : vector<2x8x32x48xf32> to vector<2x1x32x48xf32>
    %64 = vector.shape_cast %63 : vector<2x1x32x48xf32> to vector<2x32x48xf32>
    %65 = arith.addf %62, %64 : vector<2x32x48xf32>
    %66 = vector.extract_strided_slice %60 {offsets = [0, 2, 0, 0], sizes = [2, 1, 32, 48], strides = [1, 1, 1, 1]} : vector<2x8x32x48xf32> to vector<2x1x32x48xf32>
    %67 = vector.shape_cast %66 : vector<2x1x32x48xf32> to vector<2x32x48xf32>
    %68 = arith.addf %65, %67 : vector<2x32x48xf32>
    %69 = vector.extract_strided_slice %60 {offsets = [0, 3, 0, 0], sizes = [2, 1, 32, 48], strides = [1, 1, 1, 1]} : vector<2x8x32x48xf32> to vector<2x1x32x48xf32>
    %70 = vector.shape_cast %69 : vector<2x1x32x48xf32> to vector<2x32x48xf32>
    %71 = arith.addf %68, %70 : vector<2x32x48xf32>
    %72 = vector.extract_strided_slice %60 {offsets = [0, 4, 0, 0], sizes = [2, 1, 32, 48], strides = [1, 1, 1, 1]} : vector<2x8x32x48xf32> to vector<2x1x32x48xf32>
    %73 = vector.shape_cast %72 : vector<2x1x32x48xf32> to vector<2x32x48xf32>
    %74 = arith.addf %71, %73 : vector<2x32x48xf32>
    %75 = vector.extract_strided_slice %60 {offsets = [0, 5, 0, 0], sizes = [2, 1, 32, 48], strides = [1, 1, 1, 1]} : vector<2x8x32x48xf32> to vector<2x1x32x48xf32>
    %76 = vector.shape_cast %75 : vector<2x1x32x48xf32> to vector<2x32x48xf32>
    %77 = arith.addf %74, %76 : vector<2x32x48xf32>
    %78 = vector.extract_strided_slice %60 {offsets = [0, 6, 0, 0], sizes = [2, 1, 32, 48], strides = [1, 1, 1, 1]} : vector<2x8x32x48xf32> to vector<2x1x32x48xf32>
    %79 = vector.shape_cast %78 : vector<2x1x32x48xf32> to vector<2x32x48xf32>
    %80 = arith.addf %77, %79 : vector<2x32x48xf32>
    %81 = vector.extract_strided_slice %60 {offsets = [0, 7, 0, 0], sizes = [2, 1, 32, 48], strides = [1, 1, 1, 1]} : vector<2x8x32x48xf32> to vector<2x1x32x48xf32>
    %82 = vector.shape_cast %81 : vector<2x1x32x48xf32> to vector<2x32x48xf32>
    %83 = arith.addf %80, %82 : vector<2x32x48xf32>
    %c0_29 = arith.constant 0 : index
    %c0_30 = arith.constant 0 : index
    %c0_31 = arith.constant 0 : index
    %84 = vector.load %arg7[%c0_29, %c0_30, %c0_31] : memref<1x1x48xf32, #tpu.memory_space<vmem>>, vector<1x1x48xf32>
    %85 = vector.broadcast %84 : vector<1x1x48xf32> to vector<2x32x48xf32>
    %86 = arith.addf %83, %85 : vector<2x32x48xf32>
    %cst_32 = arith.constant 0.000000e+00 : f32
    %87 = vector.broadcast %cst_32 : f32 to vector<2x32x48xf32>
    %88 = arith.cmpf oge, %86, %87 : vector<2x32x48xf32>
    %cst_33 = arith.constant 0.00999999977 : f32
    %89 = vector.broadcast %cst_33 : f32 to vector<2x32x48xf32>
    %90 = arith.mulf %89, %86 : vector<2x32x48xf32>
    %91 = arith.select %88, %86, %90 : vector<2x32x48xi1>, vector<2x32x48xf32>
    %92 = vector.shape_cast %91 : vector<2x32x48xf32> to vector<64x48xf32>
    %c0_34 = arith.constant 0 : index
    %c0_35 = arith.constant 0 : index
    %93 = vector.load %arg8[%c0_34, %c0_35] : memref<48x48xf32, #tpu.memory_space<vmem>>, vector<48x48xf32>
    %cst_36 = arith.constant dense<0.000000e+00> : vector<64x48xf32>
    %94 = tpu.matmul %92, %93, %cst_36 {dimension_numbers = #tpu.dot_dimension_numbers<[1], [0], [0], [1], [0, 0, 1, 1], [], []>} : vector<64x48xf32>, vector<48x48xf32>, vector<64x48xf32> -> vector<64x48xf32>
    %95 = vector.shape_cast %94 : vector<64x48xf32> to vector<2x32x48xf32>
    %96 = vector.shape_cast %95 : vector<2x32x48xf32> to vector<2x1x32x48xf32>
    %97 = vector.shape_cast %96 : vector<2x1x32x48xf32> to vector<2x1x32x48xf32>
    %98 = vector.broadcast %97 : vector<2x1x32x48xf32> to vector<2x8x32x48xf32>
    %99 = vector.shape_cast %98 : vector<2x8x32x48xf32> to vector<16x32x48xf32>
    %c0_37 = arith.constant 0 : index
    %c0_38 = arith.constant 0 : index
    %c0_39 = arith.constant 0 : index
    %100 = vector.load %arg9[%c0_37, %c0_38, %c0_39] : memref<8x1x48xf32, #tpu.memory_space<vmem>>, vector<8x1x48xf32>
    %101 = vector.shape_cast %100 : vector<8x1x48xf32> to vector<1x8x1x48xf32>
    %102 = vector.shape_cast %101 : vector<1x8x1x48xf32> to vector<1x8x1x48xf32>
    %103 = vector.broadcast %102 : vector<1x8x1x48xf32> to vector<2x8x1x48xf32>
    %104 = vector.shape_cast %103 : vector<2x8x1x48xf32> to vector<16x1x48xf32>
    %c0_40 = arith.constant 0 : index
    %c0_41 = arith.constant 0 : index
    %c0_42 = arith.constant 0 : index
    %105 = vector.load %arg10[%c0_40, %c0_41, %c0_42] : memref<8x1x48xf32, #tpu.memory_space<vmem>>, vector<8x1x48xf32>
    %106 = vector.shape_cast %105 : vector<8x1x48xf32> to vector<1x8x1x48xf32>
    %107 = vector.shape_cast %106 : vector<1x8x1x48xf32> to vector<1x8x1x48xf32>
    %108 = vector.broadcast %107 : vector<1x8x1x48xf32> to vector<2x8x1x48xf32>
    %109 = vector.shape_cast %108 : vector<2x8x1x48xf32> to vector<16x1x48xf32>
    "tpu.trace_start"() <{level = 10 : i32, message = "gac,gjc->gaj"}> : () -> ()
    %cst_43 = arith.constant dense<0.000000e+00> : vector<16x1x32xf32>
    %110 = tpu.matmul %104, %99, %cst_43 {dimension_numbers = #tpu.dot_dimension_numbers<[2], [2], [1], [1], [0, 0, 0, 1, 1, 1], [0], [0]>} : vector<16x1x48xf32>, vector<16x32x48xf32>, vector<16x1x32xf32> -> vector<16x1x32xf32>
    "tpu.trace_stop"() : () -> ()
    "tpu.trace_start"() <{level = 10 : i32, message = "gic,gac->gia"}> : () -> ()
    %cst_44 = arith.constant dense<0.000000e+00> : vector<16x32x1xf32>
    %111 = tpu.matmul %99, %109, %cst_44 {dimension_numbers = #tpu.dot_dimension_numbers<[2], [2], [1], [1], [0, 0, 0, 1, 1, 1], [0], [0]>} : vector<16x32x48xf32>, vector<16x1x48xf32>, vector<16x32x1xf32> -> vector<16x32x1xf32>
    "tpu.trace_stop"() : () -> ()
    %112 = vector.broadcast %111 : vector<16x32x1xf32> to vector<16x32x32xf32>
    %113 = vector.broadcast %110 : vector<16x1x32xf32> to vector<16x32x32xf32>
    %114 = arith.addf %112, %113 : vector<16x32x32xf32>
    %cst_45 = arith.constant 0.000000e+00 : f32
    %115 = vector.broadcast %cst_45 : f32 to vector<16x32x32xf32>
    %116 = arith.cmpf oge, %114, %115 : vector<16x32x32xf32>
    %cst_46 = arith.constant 2.000000e-01 : f32
    %117 = vector.broadcast %cst_46 : f32 to vector<16x32x32xf32>
    %118 = arith.mulf %117, %114 : vector<16x32x32xf32>
    %119 = arith.select %116, %114, %118 : vector<16x32x32xi1>, vector<16x32x32xf32>
    %120 = vector.broadcast %1 : vector<1x32x32xf32> to vector<16x32x32xf32>
    %121 = arith.addf %119, %120 : vector<16x32x32xf32>
    %cst_47 = arith.constant dense<0xFF800000> : vector<16x32xf32>
    %122 = vector.multi_reduction <maximumf>, %121, %cst_47 [2] : vector<16x32x32xf32> to vector<16x32xf32>
    %123 = vector.shape_cast %122 : vector<16x32xf32> to vector<16x32x1xf32>
    %124 = vector.broadcast %123 : vector<16x32x1xf32> to vector<16x32x32xf32>
    %125 = arith.subf %121, %124 : vector<16x32x32xf32>
    %126 = math.exp %125 : vector<16x32x32xf32>
    %cst_48 = arith.constant dense<0.000000e+00> : vector<16x32xf32>
    %127 = vector.multi_reduction <add>, %126, %cst_48 [2] : vector<16x32x32xf32> to vector<16x32xf32>
    %128 = vector.shape_cast %127 : vector<16x32xf32> to vector<16x32x1xf32>
    %129 = tpu.reciprocal %128 {approx = true} : vector<16x32x1xf32> -> vector<16x32x1xf32>
    %130 = vector.broadcast %129 : vector<16x32x1xf32> to vector<16x32x32xf32>
    %131 = arith.mulf %126, %130 : vector<16x32x32xf32>
    %132 = vector.broadcast %16 : vector<16x1x48xf32> to vector<16x32x48xf32>
    %133 = arith.mulf %99, %132 : vector<16x32x48xf32>
    "tpu.trace_start"() <{level = 10 : i32, message = "gij,gjc->gic"}> : () -> ()
    %cst_49 = arith.constant dense<0.000000e+00> : vector<16x32x48xf32>
    %134 = tpu.matmul %131, %133, %cst_49 {dimension_numbers = #tpu.dot_dimension_numbers<[2], [1], [1], [2], [0, 0, 0, 1, 1, 2], [0], [0]>} : vector<16x32x32xf32>, vector<16x32x48xf32>, vector<16x32x48xf32> -> vector<16x32x48xf32>
    "tpu.trace_stop"() : () -> ()
    %135 = vector.shape_cast %134 : vector<16x32x48xf32> to vector<2x8x32x48xf32>
    %136 = vector.extract_strided_slice %135 {offsets = [0, 0, 0, 0], sizes = [2, 1, 32, 48], strides = [1, 1, 1, 1]} : vector<2x8x32x48xf32> to vector<2x1x32x48xf32>
    %137 = vector.shape_cast %136 : vector<2x1x32x48xf32> to vector<2x32x48xf32>
    %138 = vector.extract_strided_slice %135 {offsets = [0, 1, 0, 0], sizes = [2, 1, 32, 48], strides = [1, 1, 1, 1]} : vector<2x8x32x48xf32> to vector<2x1x32x48xf32>
    %139 = vector.shape_cast %138 : vector<2x1x32x48xf32> to vector<2x32x48xf32>
    %140 = arith.addf %137, %139 : vector<2x32x48xf32>
    %141 = vector.extract_strided_slice %135 {offsets = [0, 2, 0, 0], sizes = [2, 1, 32, 48], strides = [1, 1, 1, 1]} : vector<2x8x32x48xf32> to vector<2x1x32x48xf32>
    %142 = vector.shape_cast %141 : vector<2x1x32x48xf32> to vector<2x32x48xf32>
    %143 = arith.addf %140, %142 : vector<2x32x48xf32>
    %144 = vector.extract_strided_slice %135 {offsets = [0, 3, 0, 0], sizes = [2, 1, 32, 48], strides = [1, 1, 1, 1]} : vector<2x8x32x48xf32> to vector<2x1x32x48xf32>
    %145 = vector.shape_cast %144 : vector<2x1x32x48xf32> to vector<2x32x48xf32>
    %146 = arith.addf %143, %145 : vector<2x32x48xf32>
    %147 = vector.extract_strided_slice %135 {offsets = [0, 4, 0, 0], sizes = [2, 1, 32, 48], strides = [1, 1, 1, 1]} : vector<2x8x32x48xf32> to vector<2x1x32x48xf32>
    %148 = vector.shape_cast %147 : vector<2x1x32x48xf32> to vector<2x32x48xf32>
    %149 = arith.addf %146, %148 : vector<2x32x48xf32>
    %150 = vector.extract_strided_slice %135 {offsets = [0, 5, 0, 0], sizes = [2, 1, 32, 48], strides = [1, 1, 1, 1]} : vector<2x8x32x48xf32> to vector<2x1x32x48xf32>
    %151 = vector.shape_cast %150 : vector<2x1x32x48xf32> to vector<2x32x48xf32>
    %152 = arith.addf %149, %151 : vector<2x32x48xf32>
    %153 = vector.extract_strided_slice %135 {offsets = [0, 6, 0, 0], sizes = [2, 1, 32, 48], strides = [1, 1, 1, 1]} : vector<2x8x32x48xf32> to vector<2x1x32x48xf32>
    %154 = vector.shape_cast %153 : vector<2x1x32x48xf32> to vector<2x32x48xf32>
    %155 = arith.addf %152, %154 : vector<2x32x48xf32>
    %156 = vector.extract_strided_slice %135 {offsets = [0, 7, 0, 0], sizes = [2, 1, 32, 48], strides = [1, 1, 1, 1]} : vector<2x8x32x48xf32> to vector<2x1x32x48xf32>
    %157 = vector.shape_cast %156 : vector<2x1x32x48xf32> to vector<2x32x48xf32>
    %158 = arith.addf %155, %157 : vector<2x32x48xf32>
    %c0_50 = arith.constant 0 : index
    %c0_51 = arith.constant 0 : index
    %c0_52 = arith.constant 0 : index
    %159 = vector.load %arg11[%c0_50, %c0_51, %c0_52] : memref<1x1x48xf32, #tpu.memory_space<vmem>>, vector<1x1x48xf32>
    %160 = vector.broadcast %159 : vector<1x1x48xf32> to vector<2x32x48xf32>
    %161 = arith.addf %158, %160 : vector<2x32x48xf32>
    %cst_53 = arith.constant 0.000000e+00 : f32
    %162 = vector.broadcast %cst_53 : f32 to vector<2x32x48xf32>
    %163 = arith.cmpf oge, %161, %162 : vector<2x32x48xf32>
    %cst_54 = arith.constant 0.00999999977 : f32
    %164 = vector.broadcast %cst_54 : f32 to vector<2x32x48xf32>
    %165 = arith.mulf %164, %161 : vector<2x32x48xf32>
    %166 = arith.select %163, %161, %165 : vector<2x32x48xi1>, vector<2x32x48xf32>
    %cst_55 = arith.constant 0.000000e+00 : f32
    %167 = vector.broadcast %cst_55 : f32 to vector<2x192xf32>
    %168 = vector.extract_strided_slice %166 {offsets = [0, 0, 0], sizes = [2, 2, 48], strides = [1, 1, 1]} : vector<2x32x48xf32> to vector<2x2x48xf32>
    %cst_56 = arith.constant dense<0xFF800000> : vector<2x48xf32>
    %169 = vector.multi_reduction <maximumf>, %168, %cst_56 [1] : vector<2x2x48xf32> to vector<2x48xf32>
    %c0_57 = arith.constant 0 : index
    %c0_58 = arith.constant 0 : index
    %c0_59 = arith.constant 0 : index
    %170 = vector.load %arg13[%c0_57, %c0_58, %c0_59] : memref<16x48x192xf32, #tpu.memory_space<vmem>>, vector<1x48x192xf32>
    %171 = vector.shape_cast %170 : vector<1x48x192xf32> to vector<48x192xf32>
    %cst_60 = arith.constant dense<0.000000e+00> : vector<2x192xf32>
    %172 = tpu.matmul %169, %171, %cst_60 {dimension_numbers = #tpu.dot_dimension_numbers<[1], [0], [0], [1], [0, 0, 1, 1], [], []>} : vector<2x48xf32>, vector<48x192xf32>, vector<2x192xf32> -> vector<2x192xf32>
    %173 = arith.addf %167, %172 : vector<2x192xf32>
    %174 = vector.extract_strided_slice %166 {offsets = [0, 2, 0], sizes = [2, 2, 48], strides = [1, 1, 1]} : vector<2x32x48xf32> to vector<2x2x48xf32>
    %cst_61 = arith.constant dense<0xFF800000> : vector<2x48xf32>
    %175 = vector.multi_reduction <maximumf>, %174, %cst_61 [1] : vector<2x2x48xf32> to vector<2x48xf32>
    %c1 = arith.constant 1 : index
    %c0_62 = arith.constant 0 : index
    %c0_63 = arith.constant 0 : index
    %176 = vector.load %arg13[%c1, %c0_62, %c0_63] : memref<16x48x192xf32, #tpu.memory_space<vmem>>, vector<1x48x192xf32>
    %177 = vector.shape_cast %176 : vector<1x48x192xf32> to vector<48x192xf32>
    %cst_64 = arith.constant dense<0.000000e+00> : vector<2x192xf32>
    %178 = tpu.matmul %175, %177, %cst_64 {dimension_numbers = #tpu.dot_dimension_numbers<[1], [0], [0], [1], [0, 0, 1, 1], [], []>} : vector<2x48xf32>, vector<48x192xf32>, vector<2x192xf32> -> vector<2x192xf32>
    %179 = arith.addf %173, %178 : vector<2x192xf32>
    %180 = vector.extract_strided_slice %166 {offsets = [0, 4, 0], sizes = [2, 2, 48], strides = [1, 1, 1]} : vector<2x32x48xf32> to vector<2x2x48xf32>
    %cst_65 = arith.constant dense<0xFF800000> : vector<2x48xf32>
    %181 = vector.multi_reduction <maximumf>, %180, %cst_65 [1] : vector<2x2x48xf32> to vector<2x48xf32>
    %c2 = arith.constant 2 : index
    %c0_66 = arith.constant 0 : index
    %c0_67 = arith.constant 0 : index
    %182 = vector.load %arg13[%c2, %c0_66, %c0_67] : memref<16x48x192xf32, #tpu.memory_space<vmem>>, vector<1x48x192xf32>
    %183 = vector.shape_cast %182 : vector<1x48x192xf32> to vector<48x192xf32>
    %cst_68 = arith.constant dense<0.000000e+00> : vector<2x192xf32>
    %184 = tpu.matmul %181, %183, %cst_68 {dimension_numbers = #tpu.dot_dimension_numbers<[1], [0], [0], [1], [0, 0, 1, 1], [], []>} : vector<2x48xf32>, vector<48x192xf32>, vector<2x192xf32> -> vector<2x192xf32>
    %185 = arith.addf %179, %184 : vector<2x192xf32>
    %186 = vector.extract_strided_slice %166 {offsets = [0, 6, 0], sizes = [2, 2, 48], strides = [1, 1, 1]} : vector<2x32x48xf32> to vector<2x2x48xf32>
    %cst_69 = arith.constant dense<0xFF800000> : vector<2x48xf32>
    %187 = vector.multi_reduction <maximumf>, %186, %cst_69 [1] : vector<2x2x48xf32> to vector<2x48xf32>
    %c3 = arith.constant 3 : index
    %c0_70 = arith.constant 0 : index
    %c0_71 = arith.constant 0 : index
    %188 = vector.load %arg13[%c3, %c0_70, %c0_71] : memref<16x48x192xf32, #tpu.memory_space<vmem>>, vector<1x48x192xf32>
    %189 = vector.shape_cast %188 : vector<1x48x192xf32> to vector<48x192xf32>
    %cst_72 = arith.constant dense<0.000000e+00> : vector<2x192xf32>
    %190 = tpu.matmul %187, %189, %cst_72 {dimension_numbers = #tpu.dot_dimension_numbers<[1], [0], [0], [1], [0, 0, 1, 1], [], []>} : vector<2x48xf32>, vector<48x192xf32>, vector<2x192xf32> -> vector<2x192xf32>
    %191 = arith.addf %185, %190 : vector<2x192xf32>
    %192 = vector.extract_strided_slice %166 {offsets = [0, 8, 0], sizes = [2, 2, 48], strides = [1, 1, 1]} : vector<2x32x48xf32> to vector<2x2x48xf32>
    %cst_73 = arith.constant dense<0xFF800000> : vector<2x48xf32>
    %193 = vector.multi_reduction <maximumf>, %192, %cst_73 [1] : vector<2x2x48xf32> to vector<2x48xf32>
    %c4 = arith.constant 4 : index
    %c0_74 = arith.constant 0 : index
    %c0_75 = arith.constant 0 : index
    %194 = vector.load %arg13[%c4, %c0_74, %c0_75] : memref<16x48x192xf32, #tpu.memory_space<vmem>>, vector<1x48x192xf32>
    %195 = vector.shape_cast %194 : vector<1x48x192xf32> to vector<48x192xf32>
    %cst_76 = arith.constant dense<0.000000e+00> : vector<2x192xf32>
    %196 = tpu.matmul %193, %195, %cst_76 {dimension_numbers = #tpu.dot_dimension_numbers<[1], [0], [0], [1], [0, 0, 1, 1], [], []>} : vector<2x48xf32>, vector<48x192xf32>, vector<2x192xf32> -> vector<2x192xf32>
    %197 = arith.addf %191, %196 : vector<2x192xf32>
    %198 = vector.extract_strided_slice %166 {offsets = [0, 10, 0], sizes = [2, 2, 48], strides = [1, 1, 1]} : vector<2x32x48xf32> to vector<2x2x48xf32>
    %cst_77 = arith.constant dense<0xFF800000> : vector<2x48xf32>
    %199 = vector.multi_reduction <maximumf>, %198, %cst_77 [1] : vector<2x2x48xf32> to vector<2x48xf32>
    %c5 = arith.constant 5 : index
    %c0_78 = arith.constant 0 : index
    %c0_79 = arith.constant 0 : index
    %200 = vector.load %arg13[%c5, %c0_78, %c0_79] : memref<16x48x192xf32, #tpu.memory_space<vmem>>, vector<1x48x192xf32>
    %201 = vector.shape_cast %200 : vector<1x48x192xf32> to vector<48x192xf32>
    %cst_80 = arith.constant dense<0.000000e+00> : vector<2x192xf32>
    %202 = tpu.matmul %199, %201, %cst_80 {dimension_numbers = #tpu.dot_dimension_numbers<[1], [0], [0], [1], [0, 0, 1, 1], [], []>} : vector<2x48xf32>, vector<48x192xf32>, vector<2x192xf32> -> vector<2x192xf32>
    %203 = arith.addf %197, %202 : vector<2x192xf32>
    %204 = vector.extract_strided_slice %166 {offsets = [0, 12, 0], sizes = [2, 2, 48], strides = [1, 1, 1]} : vector<2x32x48xf32> to vector<2x2x48xf32>
    %cst_81 = arith.constant dense<0xFF800000> : vector<2x48xf32>
    %205 = vector.multi_reduction <maximumf>, %204, %cst_81 [1] : vector<2x2x48xf32> to vector<2x48xf32>
    %c6 = arith.constant 6 : index
    %c0_82 = arith.constant 0 : index
    %c0_83 = arith.constant 0 : index
    %206 = vector.load %arg13[%c6, %c0_82, %c0_83] : memref<16x48x192xf32, #tpu.memory_space<vmem>>, vector<1x48x192xf32>
    %207 = vector.shape_cast %206 : vector<1x48x192xf32> to vector<48x192xf32>
    %cst_84 = arith.constant dense<0.000000e+00> : vector<2x192xf32>
    %208 = tpu.matmul %205, %207, %cst_84 {dimension_numbers = #tpu.dot_dimension_numbers<[1], [0], [0], [1], [0, 0, 1, 1], [], []>} : vector<2x48xf32>, vector<48x192xf32>, vector<2x192xf32> -> vector<2x192xf32>
    %209 = arith.addf %203, %208 : vector<2x192xf32>
    %210 = vector.extract_strided_slice %166 {offsets = [0, 14, 0], sizes = [2, 2, 48], strides = [1, 1, 1]} : vector<2x32x48xf32> to vector<2x2x48xf32>
    %cst_85 = arith.constant dense<0xFF800000> : vector<2x48xf32>
    %211 = vector.multi_reduction <maximumf>, %210, %cst_85 [1] : vector<2x2x48xf32> to vector<2x48xf32>
    %c7 = arith.constant 7 : index
    %c0_86 = arith.constant 0 : index
    %c0_87 = arith.constant 0 : index
    %212 = vector.load %arg13[%c7, %c0_86, %c0_87] : memref<16x48x192xf32, #tpu.memory_space<vmem>>, vector<1x48x192xf32>
    %213 = vector.shape_cast %212 : vector<1x48x192xf32> to vector<48x192xf32>
    %cst_88 = arith.constant dense<0.000000e+00> : vector<2x192xf32>
    %214 = tpu.matmul %211, %213, %cst_88 {dimension_numbers = #tpu.dot_dimension_numbers<[1], [0], [0], [1], [0, 0, 1, 1], [], []>} : vector<2x48xf32>, vector<48x192xf32>, vector<2x192xf32> -> vector<2x192xf32>
    %215 = arith.addf %209, %214 : vector<2x192xf32>
    %216 = vector.extract_strided_slice %166 {offsets = [0, 16, 0], sizes = [2, 2, 48], strides = [1, 1, 1]} : vector<2x32x48xf32> to vector<2x2x48xf32>
    %cst_89 = arith.constant dense<0xFF800000> : vector<2x48xf32>
    %217 = vector.multi_reduction <maximumf>, %216, %cst_89 [1] : vector<2x2x48xf32> to vector<2x48xf32>
    %c8 = arith.constant 8 : index
    %c0_90 = arith.constant 0 : index
    %c0_91 = arith.constant 0 : index
    %218 = vector.load %arg13[%c8, %c0_90, %c0_91] : memref<16x48x192xf32, #tpu.memory_space<vmem>>, vector<1x48x192xf32>
    %219 = vector.shape_cast %218 : vector<1x48x192xf32> to vector<48x192xf32>
    %cst_92 = arith.constant dense<0.000000e+00> : vector<2x192xf32>
    %220 = tpu.matmul %217, %219, %cst_92 {dimension_numbers = #tpu.dot_dimension_numbers<[1], [0], [0], [1], [0, 0, 1, 1], [], []>} : vector<2x48xf32>, vector<48x192xf32>, vector<2x192xf32> -> vector<2x192xf32>
    %221 = arith.addf %215, %220 : vector<2x192xf32>
    %222 = vector.extract_strided_slice %166 {offsets = [0, 18, 0], sizes = [2, 2, 48], strides = [1, 1, 1]} : vector<2x32x48xf32> to vector<2x2x48xf32>
    %cst_93 = arith.constant dense<0xFF800000> : vector<2x48xf32>
    %223 = vector.multi_reduction <maximumf>, %222, %cst_93 [1] : vector<2x2x48xf32> to vector<2x48xf32>
    %c9 = arith.constant 9 : index
    %c0_94 = arith.constant 0 : index
    %c0_95 = arith.constant 0 : index
    %224 = vector.load %arg13[%c9, %c0_94, %c0_95] : memref<16x48x192xf32, #tpu.memory_space<vmem>>, vector<1x48x192xf32>
    %225 = vector.shape_cast %224 : vector<1x48x192xf32> to vector<48x192xf32>
    %cst_96 = arith.constant dense<0.000000e+00> : vector<2x192xf32>
    %226 = tpu.matmul %223, %225, %cst_96 {dimension_numbers = #tpu.dot_dimension_numbers<[1], [0], [0], [1], [0, 0, 1, 1], [], []>} : vector<2x48xf32>, vector<48x192xf32>, vector<2x192xf32> -> vector<2x192xf32>
    %227 = arith.addf %221, %226 : vector<2x192xf32>
    %228 = vector.extract_strided_slice %166 {offsets = [0, 20, 0], sizes = [2, 2, 48], strides = [1, 1, 1]} : vector<2x32x48xf32> to vector<2x2x48xf32>
    %cst_97 = arith.constant dense<0xFF800000> : vector<2x48xf32>
    %229 = vector.multi_reduction <maximumf>, %228, %cst_97 [1] : vector<2x2x48xf32> to vector<2x48xf32>
    %c10 = arith.constant 10 : index
    %c0_98 = arith.constant 0 : index
    %c0_99 = arith.constant 0 : index
    %230 = vector.load %arg13[%c10, %c0_98, %c0_99] : memref<16x48x192xf32, #tpu.memory_space<vmem>>, vector<1x48x192xf32>
    %231 = vector.shape_cast %230 : vector<1x48x192xf32> to vector<48x192xf32>
    %cst_100 = arith.constant dense<0.000000e+00> : vector<2x192xf32>
    %232 = tpu.matmul %229, %231, %cst_100 {dimension_numbers = #tpu.dot_dimension_numbers<[1], [0], [0], [1], [0, 0, 1, 1], [], []>} : vector<2x48xf32>, vector<48x192xf32>, vector<2x192xf32> -> vector<2x192xf32>
    %233 = arith.addf %227, %232 : vector<2x192xf32>
    %234 = vector.extract_strided_slice %166 {offsets = [0, 22, 0], sizes = [2, 2, 48], strides = [1, 1, 1]} : vector<2x32x48xf32> to vector<2x2x48xf32>
    %cst_101 = arith.constant dense<0xFF800000> : vector<2x48xf32>
    %235 = vector.multi_reduction <maximumf>, %234, %cst_101 [1] : vector<2x2x48xf32> to vector<2x48xf32>
    %c11 = arith.constant 11 : index
    %c0_102 = arith.constant 0 : index
    %c0_103 = arith.constant 0 : index
    %236 = vector.load %arg13[%c11, %c0_102, %c0_103] : memref<16x48x192xf32, #tpu.memory_space<vmem>>, vector<1x48x192xf32>
    %237 = vector.shape_cast %236 : vector<1x48x192xf32> to vector<48x192xf32>
    %cst_104 = arith.constant dense<0.000000e+00> : vector<2x192xf32>
    %238 = tpu.matmul %235, %237, %cst_104 {dimension_numbers = #tpu.dot_dimension_numbers<[1], [0], [0], [1], [0, 0, 1, 1], [], []>} : vector<2x48xf32>, vector<48x192xf32>, vector<2x192xf32> -> vector<2x192xf32>
    %239 = arith.addf %233, %238 : vector<2x192xf32>
    %240 = vector.extract_strided_slice %166 {offsets = [0, 24, 0], sizes = [2, 2, 48], strides = [1, 1, 1]} : vector<2x32x48xf32> to vector<2x2x48xf32>
    %cst_105 = arith.constant dense<0xFF800000> : vector<2x48xf32>
    %241 = vector.multi_reduction <maximumf>, %240, %cst_105 [1] : vector<2x2x48xf32> to vector<2x48xf32>
    %c12 = arith.constant 12 : index
    %c0_106 = arith.constant 0 : index
    %c0_107 = arith.constant 0 : index
    %242 = vector.load %arg13[%c12, %c0_106, %c0_107] : memref<16x48x192xf32, #tpu.memory_space<vmem>>, vector<1x48x192xf32>
    %243 = vector.shape_cast %242 : vector<1x48x192xf32> to vector<48x192xf32>
    %cst_108 = arith.constant dense<0.000000e+00> : vector<2x192xf32>
    %244 = tpu.matmul %241, %243, %cst_108 {dimension_numbers = #tpu.dot_dimension_numbers<[1], [0], [0], [1], [0, 0, 1, 1], [], []>} : vector<2x48xf32>, vector<48x192xf32>, vector<2x192xf32> -> vector<2x192xf32>
    %245 = arith.addf %239, %244 : vector<2x192xf32>
    %246 = vector.extract_strided_slice %166 {offsets = [0, 26, 0], sizes = [2, 2, 48], strides = [1, 1, 1]} : vector<2x32x48xf32> to vector<2x2x48xf32>
    %cst_109 = arith.constant dense<0xFF800000> : vector<2x48xf32>
    %247 = vector.multi_reduction <maximumf>, %246, %cst_109 [1] : vector<2x2x48xf32> to vector<2x48xf32>
    %c13 = arith.constant 13 : index
    %c0_110 = arith.constant 0 : index
    %c0_111 = arith.constant 0 : index
    %248 = vector.load %arg13[%c13, %c0_110, %c0_111] : memref<16x48x192xf32, #tpu.memory_space<vmem>>, vector<1x48x192xf32>
    %249 = vector.shape_cast %248 : vector<1x48x192xf32> to vector<48x192xf32>
    %cst_112 = arith.constant dense<0.000000e+00> : vector<2x192xf32>
    %250 = tpu.matmul %247, %249, %cst_112 {dimension_numbers = #tpu.dot_dimension_numbers<[1], [0], [0], [1], [0, 0, 1, 1], [], []>} : vector<2x48xf32>, vector<48x192xf32>, vector<2x192xf32> -> vector<2x192xf32>
    %251 = arith.addf %245, %250 : vector<2x192xf32>
    %252 = vector.extract_strided_slice %166 {offsets = [0, 28, 0], sizes = [2, 2, 48], strides = [1, 1, 1]} : vector<2x32x48xf32> to vector<2x2x48xf32>
    %cst_113 = arith.constant dense<0xFF800000> : vector<2x48xf32>
    %253 = vector.multi_reduction <maximumf>, %252, %cst_113 [1] : vector<2x2x48xf32> to vector<2x48xf32>
    %c14 = arith.constant 14 : index
    %c0_114 = arith.constant 0 : index
    %c0_115 = arith.constant 0 : index
    %254 = vector.load %arg13[%c14, %c0_114, %c0_115] : memref<16x48x192xf32, #tpu.memory_space<vmem>>, vector<1x48x192xf32>
    %255 = vector.shape_cast %254 : vector<1x48x192xf32> to vector<48x192xf32>
    %cst_116 = arith.constant dense<0.000000e+00> : vector<2x192xf32>
    %256 = tpu.matmul %253, %255, %cst_116 {dimension_numbers = #tpu.dot_dimension_numbers<[1], [0], [0], [1], [0, 0, 1, 1], [], []>} : vector<2x48xf32>, vector<48x192xf32>, vector<2x192xf32> -> vector<2x192xf32>
    %257 = arith.addf %251, %256 : vector<2x192xf32>
    %258 = vector.extract_strided_slice %166 {offsets = [0, 30, 0], sizes = [2, 2, 48], strides = [1, 1, 1]} : vector<2x32x48xf32> to vector<2x2x48xf32>
    %cst_117 = arith.constant dense<0xFF800000> : vector<2x48xf32>
    %259 = vector.multi_reduction <maximumf>, %258, %cst_117 [1] : vector<2x2x48xf32> to vector<2x48xf32>
    %c15 = arith.constant 15 : index
    %c0_118 = arith.constant 0 : index
    %c0_119 = arith.constant 0 : index
    %260 = vector.load %arg13[%c15, %c0_118, %c0_119] : memref<16x48x192xf32, #tpu.memory_space<vmem>>, vector<1x48x192xf32>
    %261 = vector.shape_cast %260 : vector<1x48x192xf32> to vector<48x192xf32>
    %cst_120 = arith.constant dense<0.000000e+00> : vector<2x192xf32>
    %262 = tpu.matmul %259, %261, %cst_120 {dimension_numbers = #tpu.dot_dimension_numbers<[1], [0], [0], [1], [0, 0, 1, 1], [], []>} : vector<2x48xf32>, vector<48x192xf32>, vector<2x192xf32> -> vector<2x192xf32>
    %263 = arith.addf %257, %262 : vector<2x192xf32>
    %c0_121 = arith.constant 0 : index
    %c0_122 = arith.constant 0 : index
    %264 = vector.load %arg14[%c0_121, %c0_122] : memref<1x192xf32, #tpu.memory_space<vmem>>, vector<1x192xf32>
    %265 = vector.broadcast %264 : vector<1x192xf32> to vector<2x192xf32>
    %266 = arith.addf %263, %265 : vector<2x192xf32>
    %cst_123 = arith.constant 0.000000e+00 : f32
    %267 = vector.broadcast %cst_123 : f32 to vector<2x192xf32>
    %268 = arith.maximumf %266, %267 : vector<2x192xf32>
    %c0_124 = arith.constant 0 : index
    %c0_125 = arith.constant 0 : index
    %269 = vector.load %arg15[%c0_124, %c0_125] : memref<192x64xf32, #tpu.memory_space<vmem>>, vector<192x64xf32>
    %cst_126 = arith.constant dense<0.000000e+00> : vector<2x64xf32>
    %270 = tpu.matmul %268, %269, %cst_126 {dimension_numbers = #tpu.dot_dimension_numbers<[1], [0], [0], [1], [0, 0, 1, 1], [], []>} : vector<2x192xf32>, vector<192x64xf32>, vector<2x64xf32> -> vector<2x64xf32>
    %c0_127 = arith.constant 0 : index
    %c0_128 = arith.constant 0 : index
    %271 = vector.load %arg16[%c0_127, %c0_128] : memref<1x64xf32, #tpu.memory_space<vmem>>, vector<1x64xf32>
    %272 = vector.broadcast %271 : vector<1x64xf32> to vector<2x64xf32>
    %273 = arith.addf %270, %272 : vector<2x64xf32>
    %cst_129 = arith.constant 0.000000e+00 : f32
    %274 = vector.broadcast %cst_129 : f32 to vector<2x64xf32>
    %275 = arith.maximumf %273, %274 : vector<2x64xf32>
    %c0_130 = arith.constant 0 : index
    %c0_131 = arith.constant 0 : index
    %276 = vector.load %arg17[%c0_130, %c0_131] : memref<64x3xf32, #tpu.memory_space<vmem>>, vector<64x3xf32>
    %cst_132 = arith.constant dense<0.000000e+00> : vector<2x3xf32>
    %277 = tpu.matmul %275, %276, %cst_132 {dimension_numbers = #tpu.dot_dimension_numbers<[1], [0], [0], [1], [0, 0, 1, 1], [], []>} : vector<2x64xf32>, vector<64x3xf32>, vector<2x3xf32> -> vector<2x3xf32>
    %c0_133 = arith.constant 0 : index
    %c0_134 = arith.constant 0 : index
    %278 = vector.load %arg18[%c0_133, %c0_134] : memref<1x3xf32, #tpu.memory_space<vmem>>, vector<1x3xf32>
    %279 = vector.broadcast %278 : vector<1x3xf32> to vector<2x3xf32>
    %280 = arith.addf %277, %279 : vector<2x3xf32>
    %cst_135 = arith.constant dense<0xFF800000> : vector<2xf32>
    %281 = vector.multi_reduction <maximumf>, %280, %cst_135 [1] : vector<2x3xf32> to vector<2xf32>
    %282 = vector.shape_cast %281 : vector<2xf32> to vector<2x1xf32>
    %283 = vector.broadcast %282 : vector<2x1xf32> to vector<2x3xf32>
    %284 = arith.subf %280, %283 : vector<2x3xf32>
    %285 = math.exp %284 : vector<2x3xf32>
    %cst_136 = arith.constant dense<0.000000e+00> : vector<2xf32>
    %286 = vector.multi_reduction <add>, %285, %cst_136 [1] : vector<2x3xf32> to vector<2xf32>
    %287 = vector.shape_cast %286 : vector<2xf32> to vector<2x1xf32>
    %288 = math.log %287 : vector<2x1xf32>
    %289 = vector.broadcast %288 : vector<2x1xf32> to vector<2x3xf32>
    %290 = arith.subf %284, %289 : vector<2x3xf32>
    %c0_137 = arith.constant 0 : index
    %c0_138 = arith.constant 0 : index
    %291 = vector.load %arg19[%c0_137, %c0_138] : memref<2x3xf32, #tpu.memory_space<vmem>>, vector<2x3xf32>
    tpu.vector_store %arg19[%c0_137, %c0_138], %290 {strides = array<i32>} : memref<2x3xf32, #tpu.memory_space<vmem>>, vector<2x3xf32>,
    return
  }
}

</mosaic_0001>

<bundles_post_ra>
// kernel: gat_forward.1
= control target key start
LH: loop header
LB: loop body
LE: loop exit
PB: predicated region body
PF: predicated region fallthrough
CT: control target
= control target key end

     0   :  { %s12346_s0 = inlined_call_operand.vmem [shape: f32[2,32,1], index: 0, kind: input, shape index: {}]   ;;  %s12347_s1 = inlined_call_operand.vmem [shape: f32[32,32], index: 1, kind: input, shape index: {}]   ;;  %s12348_s2 = inlined_call_operand.vmem [shape: f32[1,1,8], index: 2, kind: input, shape index: {}]   ;;  %s12349_s3 = inlined_call_operand.vmem [shape: f32[1,1,8], index: 3, kind: input, shape index: {}]   ;;  %s12350_s4 = inlined_call_operand.vmem [shape: f32[8,48], index: 4, kind: input, shape index: {}]   ;;  %s12351_s5 = inlined_call_operand.vmem [shape: f32[8,1,48], index: 5, kind: input, shape index: {}]   ;;  %s12352_s6 = inlined_call_operand.vmem [shape: f32[8,1,48], index: 6, kind: input, shape index: {}]   ;;  %s12353_s7 = inlined_call_operand.vmem [shape: f32[1,1,48], index: 7, kind: input, shape index: {}]   ;;  %s12354_s8 = inlined_call_operand.vmem [shape: f32[48,48], index: 8, kind: input, shape index: {}]   ;;  %s12355_s9 = inlined_call_operand.vmem [shape: f32[8,1,48], index: 9, kind: input, shape index: {}]   ;;  %s12356_s10 = inlined_call_operand.vmem [shape: f32[8,1,48], index: 10, kind: input, shape index: {}]   ;;  %s12357_s11 = inlined_call_operand.vmem [shape: f32[1,1,48], index: 11, kind: input, shape index: {}]   ;;  %s12358_s12 = inlined_call_operand.vmem [shape: f32[8,1,48], index: 12, kind: input, shape index: {}]   ;;  %s12359_s13 = inlined_call_operand.hbm [shape: f32[16,48,192], index: 13, kind: input, shape index: {}]   ;;  %s12360_s14 = inlined_call_operand.vmem [shape: f32[1,192], index: 14, kind: input, shape index: {}]   ;;  %s12361_s15 = inlined_call_operand.vmem [shape: f32[192,64], index: 15, kind: input, shape index: {}]   ;;  %s12362_s16 = inlined_call_operand.vmem [shape: f32[1,64], index: 16, kind: input, shape index: {}]   ;;  %s12363_s17 = inlined_call_operand.vmem [shape: f32[64,3], index: 17, kind: input, shape index: {}]   ;;  %s12364_s18 = inlined_call_operand.vmem [shape: f32[1,3], index: 18, kind: input, shape index: {}]   ;;  %s12365_s19 = inlined_call_operand.hbm [shape: f32[2,3], index: 19, kind: output, shape index: {}]  }
   0x1   :  { %12421 = sst [smem:[#allocation43_spill]] %s12346_s0 }
   0x2   :  { %12422 = sst [smem:[#allocation44_spill]] %s12347_s1 }
   0x3   :  { %12423 = sst [smem:[#allocation45_spill]] %s12348_s2 }
   0x4   :  { %12424 = sst [smem:[#allocation46_spill]] %s12349_s3 }
   0x5   :  { %24 = vsyncpa [#allocation3], 0 }
   0x6   :  { %25 = vsyncpa [#allocation4], 0  ;;  %s56_s20 = sshll.u32 %s12359_s13, 4  ;;  %s8330_s21 = smov [#allocation2]   ;;  %s57_s20 = int_to_ptr.hbm [resolvable:$true] %s56_s20 }
   0x7   :  { %s58_s1 = sshll.u32 %s8330_s21, 4  ;;  %s8331_s22 = smov 256   ;;  %s59_s1 = int_to_ptr.vmem [resolvable:$true] %s58_s1 }
   0x8   :  { %s8332_s2 = smov 16  }
   0x9   :  { %64 = dma.hbm_to_vmem [thread:$0]  %s57_s20, 24576, %s59_s1, [#allocation3], %s8331_s22, %s8331_s22, %s8332_s2  }
   0xa   :  { %8326 = dma.done.wait [#allocation3], 24576  }
   0xb   :  { %8327 = vsyncadd [#allocation3], 4294942720  ;;  %v8333_v0 = vmov 0   ;;  %s12425_s25 = sld [smem:[#allocation43_spill]]  ;;  %v171_v9 = vld [vmem:[%s12350_s4] sm:$0xff]  ;;  %vm172_vm0 = vcmask 64512  }
   0xc   :  { %7687 = vset.pattern.permute.xlu0 %v8333_v0  ;;  %7688 = vset.pattern.permute.xlu1 %v8333_v0  ;;  %s12426_s27 = sld [smem:[#allocation45_spill]]  ;;  %v8482_v44 = vld [vmem:[%s12352_s6 + $0x3] ss:$0 sm:$0xff]  ;;  %v8487_v45 = vld [vmem:[%s12352_s6 + $0x2] ss:$0 sm:$0xff]  ;;  %vm254_vm1 = vcmask 392192  }
   0xd   :  { %7689 = vset.pattern.permute.xlu2 %v8333_v0  ;;  %212 = vmatpush.msra.mxu0 %v171_v9  ;;  %s12427_s0 = sld [smem:[#allocation46_spill]]  ;;  %v8492_v46 = vld [vmem:[%s12352_s6] ss:$0 sm:$0xff]  ;;  %v8505_v51 = vld [vmem:[%s12352_s6 + $0x6] ss:$0 sm:$0xff]  ;;  %vm1559_vm3 = vcmask 261120  }
   0xe   :  { %v8513_v55 = vld [vmem:[%s12352_s6 + $0x5] ss:$0 sm:$0xff]  ;;  %v8518_v56 = vld [vmem:[%s12352_s6 + $0x1] ss:$0 sm:$0xff]  ;;  %v8534_v0 = vld [vmem:[%s12352_s6 + $0x4] ss:$0 sm:$0xff] }
   0xf   :  { %s12436_s26 = sld [smem:[#allocation44_spill]] }
  0x11   :  { %v83_v1 = vld [vmem:[%s12425_s25] sm:$0xff]  ;;  %v85_v2 = vld [vmem:[%s12425_s25 + $0x10] sm:$0xff]  ;;  %v84_v4 = vld [vmem:[%s12425_s25 + $0x8] sm:$0xff] }
  0x12   :  { %94 = vperm.xlu0 %7687, %v83_v1   ;;  %104 = vperm.xlu1 %7688, %v85_v2   ;;  %v87_v3 = vld [vmem:[%s12425_s25 + $0x20] sm:$0xff]  ;;  %v86_v5 = vld [vmem:[%s12425_s25 + $0x18] sm:$0xff]  ;;  %v88_v6 = vld [vmem:[%s12425_s25 + $0x28] sm:$0xff] }
  0x13   :  { %114 = vperm.xlu2 %7689, %v87_v3   ;;  %v89_v7 = vld [vmem:[%s12425_s25 + $0x30] sm:$0xff]  ;;  %v90_v8 = vld [vmem:[%s12425_s25 + $0x38] sm:$0xff]  ;;  %v7690_v10 = vld [vmem:[%s12426_s27] ss:$0 sm:$0xff] }
  0x14   :  { %v7691_v11 = vld [vmem:[%s12427_s0] ss:$0 sm:$0xff] }
  0x1a   :  { %99 = vperm.xlu0 %7687, %v84_v4   ;;  %109 = vperm.xlu1 %7688, %v86_v5  }
  0x1b   :  { %119 = vperm.xlu2 %7689, %v88_v6  }
  0x22   :  { %124 = vperm.xlu0 %7687, %v89_v7   ;;  %129 = vperm.xlu1 %7688, %v90_v8   ;;  %v8550_v8 = vld [vmem:[%s12352_s6 + $0x7] ss:$0 sm:$0xff] }
  0x6d   :  { %v115_v26 = vpop.permute.xlu2 %114 }
  0x6e   :  { %v139_v29 = vmul.f32 %v7690_v10, %v115_v26 }
  0x70   :  { %v151_v30 = vadd.f32 %v7691_v11, %v139_v29 }
  0x72   :  { %v159_v32 = vmax.f32 %v151_v30, 0.0 }
  0x75   :  { %v120_v31 = vpop.permute.xlu2 %119 }
  0x76   :  { %v140_v33 = vmul.f32 %v7690_v10, %v120_v31 }
  0x78   :  { %v152_v34 = vadd.f32 %v7691_v11, %v140_v33 }
  0x7a   :  { %v160_v36 = vmax.f32 %v152_v34, 0.0 }
  0x84   :  { %v95_v12 = vpop.permute.xlu0 %94  ;;  %v105_v16 = vpop.permute.xlu1 %104 }
  0x85   :  { %v135_v13 = vmul.f32 %v7690_v10, %v95_v12  ;;  %v137_v20 = vmul.f32 %v7690_v10, %v105_v16 }
  0x87   :  { %v147_v14 = vadd.f32 %v7691_v11, %v135_v13  ;;  %v149_v22 = vadd.f32 %v7691_v11, %v137_v20 }
  0x89   :  { %v155_v15 = vmax.f32 %v147_v14, 0.0  ;;  %v157_v24 = vmax.f32 %v149_v22, 0.0 }
  0x8b   :  { %7340 = vmatmul.msk.f32.vlgmr.msra.gmra.mxu0 %vm172_vm0, %v155_v15 }
  0x8c   :  { %v100_v17 = vpop.permute.xlu0 %99  ;;  %v110_v23 = vpop.permute.xlu1 %109 }
  0x8d   :  { %v136_v18 = vmul.f32 %v7690_v10, %v100_v17  ;;  %v138_v25 = vmul.f32 %v7690_v10, %v110_v23  ;;  %v8597_v23 = vld [vmem:[%s12351_s5] sm:$0x1] }
  0x8f   :  { %v148_v19 = vadd.f32 %v7691_v11, %v136_v18  ;;  %v150_v27 = vadd.f32 %v7691_v11, %v138_v25  ;;  %v8611_v25 = vld [vmem:[%s12351_s5 + $0x2] sm:$0x1] }
  0x91   :  { %v156_v21 = vmax.f32 %v148_v19, 0.0  ;;  %v158_v28 = vmax.f32 %v150_v27, 0.0 }
  0x93   :  { %7341 = vmatmul.msk.f32.gmra.mxu0 %vm172_vm0, %v156_v21 }
  0x94   :  { %v125_v35 = vpop.permute.xlu0 %124  ;;  %v130_v39 = vpop.permute.xlu1 %129 }
  0x95   :  { %v141_v37 = vmul.f32 %v7690_v10, %v125_v35  ;;  %v142_v40 = vmul.f32 %v7690_v10, %v130_v39  ;;  %v8673_v39 = vld [vmem:[%s12351_s5 + $0x4] sm:$0x1] }
  0x97   :  { %v153_v38 = vadd.f32 %v7691_v11, %v141_v37  ;;  %v154_v42 = vadd.f32 %v7691_v11, %v142_v40 }
  0x99   :  { %v161_v41 = vmax.f32 %v153_v38, 0.0  ;;  %v162_v43 = vmax.f32 %v154_v42, 0.0  ;;  %v8668_v38 = vld [vmem:[%s12351_s5 + $0x3] sm:$0x1]  ;;  %v8682_v42 = vld [vmem:[%s12351_s5 + $0x5] sm:$0x1] }
  0x9b   :  { %7342 = vmatmul.msk.f32.gmra.mxu0 %vm172_vm0, %v157_v24  ;;  %v8606_v24 = vld [vmem:[%s12351_s5 + $0x1] sm:$0x1] }
  0xa3   :  { %7343 = vmatmul.msk.f32.gmra.mxu0 %vm172_vm0, %v158_v28 }
  0xab   :  { %7344 = vmatmul.msk.f32.gmra.mxu0 %vm172_vm0, %v159_v32 }
  0xb3   :  { %7345 = vmatmul.msk.f32.gmra.mxu0 %vm172_vm0, %v160_v36 }
  0xbb   :  { %7346 = vmatmul.msk.f32.gmra.mxu0 %vm172_vm0, %v161_v41 }
  0xc3   :  { %7347 = vmatmul.msk.f32.gmra.mxu0 %vm172_vm0, %v162_v43 }
 0x108   :  { %v8494_v47 = vpop.f32.mrf.mxu0 }
 0x109   :  { %v683_v48 = vmul.f32 %v8482_v44, %v8494_v47  ;;  %v664_v49 = vmul.f32 %v8487_v45, %v8494_v47  ;;  %v626_v50 = vmul.f32 %v8492_v46, %v8494_v47  ;;  %v740_v57 = vmul.f32 %v8505_v51, %v8494_v47 }
 0x10a   :  { %v721_v58 = vmul.f32 %v8513_v55, %v8494_v47  ;;  %v645_v60 = vmul.f32 %v8518_v56, %v8494_v47  ;;  %v702_v4 = vmul.f32 %v8534_v0, %v8494_v47  ;;  %v759_v12 = vmul.f32 %v8550_v8, %v8494_v47 }
 0x10b   :  { %v687_v52 = vsel %vm254_vm1, %v683_v48, 0.0  ;;  %v668_v53 = vsel %vm254_vm1, %v664_v49, 0.0  ;;  %v630_v54 = vsel %vm254_vm1, %v626_v50, 0.0  ;;  %v744_v61 = vsel %vm254_vm1, %v740_v57, 0.0 }
 0x10c   :  { %688 = vadd.xlane.f32.xlu1 %v687_v52  ;;  %669 = vadd.xlane.f32.xlu0 %v668_v53  ;;  %v725_v62 = vsel %vm254_vm1, %v721_v58, 0.0  ;;  %v649_v63 = vsel %vm254_vm1, %v645_v60, 0.0  ;;  %v706_v7 = vsel %vm254_vm1, %v702_v4, 0.0  ;;  %v763_v15 = vsel %vm254_vm1, %v759_v12, 0.0  ;;  %v7700_v4 = vld [vmem:[%s12358_s12] ss:$0 sm:$0xff] }
 0x10d   :  { %631 = vadd.xlane.f32.xlu2 %v630_v54 }
 0x110   :  { %v8524_v59 = vpop.f32.mrf.mxu0 }
 0x111   :  { %v665_v1 = vmul.f32 %v8487_v45, %v8524_v59  ;;  %v627_v2 = vmul.f32 %v8492_v46, %v8524_v59  ;;  %v722_v9 = vmul.f32 %v8513_v55, %v8524_v59  ;;  %v646_v10 = vmul.f32 %v8518_v56, %v8524_v59 }
 0x112   :  { %v703_v17 = vmul.f32 %v8534_v0, %v8524_v59  ;;  %v684_v19 = vmul.f32 %v8482_v44, %v8524_v59  ;;  %v760_v26 = vmul.f32 %v8550_v8, %v8524_v59  ;;  %v741_v28 = vmul.f32 %v8505_v51, %v8524_v59 }
 0x113   :  { %v671_v5 = vsel %vm254_vm1, %v665_v1, 0.0  ;;  %v633_v6 = vsel %vm254_vm1, %v627_v2, 0.0  ;;  %v728_v13 = vsel %vm254_vm1, %v722_v9, 0.0  ;;  %v652_v14 = vsel %vm254_vm1, %v646_v10, 0.0 }
 0x114   :  { %745 = vadd.xlane.f32.xlu1 %v744_v61  ;;  %726 = vadd.xlane.f32.xlu0 %v725_v62  ;;  %v709_v21 = vsel %vm254_vm1, %v703_v17, 0.0  ;;  %v690_v22 = vsel %vm254_vm1, %v684_v19, 0.0  ;;  %v766_v30 = vsel %vm254_vm1, %v760_v26, 0.0  ;;  %v747_v31 = vsel %vm254_vm1, %v741_v28, 0.0  ;;  %v8732_v61 = vld [vmem:[%s12351_s5 + $0x6] sm:$0x1] }
 0x115   :  { %650 = vadd.xlane.f32.xlu2 %v649_v63  ;;  %v8737_v62 = vld [vmem:[%s12351_s5 + $0x7] sm:$0x1]  ;;  %v2289_v12 = vmul.f32 %v7700_v4, %v8524_v59  ;;  %v2288_v17 = vmul.f32 %v7700_v4, %v8494_v47 }
 0x118   :  { %v8540_v3 = vpop.f32.mrf.mxu0 }
 0x119   :  { %v628_v16 = vmul.f32 %v8492_v46, %v8540_v3  ;;  %v647_v29 = vmul.f32 %v8518_v56, %v8540_v3  ;;  %v685_v34 = vmul.f32 %v8482_v44, %v8540_v3  ;;  %v666_v35 = vmul.f32 %v8487_v45, %v8540_v3 }
 0x11a   :  { %v704_v36 = vmul.f32 %v8534_v0, %v8540_v3  ;;  %v742_v48 = vmul.f32 %v8505_v51, %v8540_v3  ;;  %v723_v49 = vmul.f32 %v8513_v55, %v8540_v3  ;;  %v761_v50 = vmul.f32 %v8550_v8, %v8540_v3 }
 0x11b   :  { %v636_v20 = vsel %vm254_vm1, %v628_v16, 0.0  ;;  %v655_v32 = vsel %vm254_vm1, %v647_v29, 0.0  ;;  %v693_v37 = vsel %vm254_vm1, %v685_v34, 0.0  ;;  %v674_v40 = vsel %vm254_vm1, %v666_v35, 0.0  ;;  %v7701_v16 = vld [vmem:[%s12358_s12 + $0x4] ss:$0 sm:$0xff] }
 0x11c   :  { %672 = vadd.xlane.f32.xlu1 %v671_v5  ;;  %634 = vadd.xlane.f32.xlu0 %v633_v6  ;;  %v712_v41 = vsel %vm254_vm1, %v704_v36, 0.0  ;;  %v750_v52 = vsel %vm254_vm1, %v742_v48, 0.0  ;;  %v731_v53 = vsel %vm254_vm1, %v723_v49, 0.0  ;;  %v769_v54 = vsel %vm254_vm1, %v761_v50, 0.0 }
 0x11d   :  { %707 = vadd.xlane.f32.xlu2 %v706_v7  ;;  %v2290_v7 = vmul.f32 %v7700_v4, %v8540_v3  ;;  %v2305_v26 = vmul.f32 %v7701_v16, %v8524_v59  ;;  %v2304_v28 = vmul.f32 %v7701_v16, %v8494_v47 }
 0x120   :  { %v8556_v11 = vpop.f32.mrf.mxu0 }
 0x121   :  { %7348 = vmatpush.xpose.msk.msra.mxu1 %vm254_vm1, %v8556_v11  ;;  %7353 = vmatpush.xpose.msk.msra.mxu2 %vm254_vm1, %v8556_v11  ;;  %v667_v57 = vmul.f32 %v8487_v45, %v8556_v11  ;;  %v686_v58 = vmul.f32 %v8482_v44, %v8556_v11  ;;  %v629_v60 = vmul.f32 %v8492_v46, %v8556_v11 }
 0x122   :  { %7358 = vmatpush.xpose.msk.msra.mxu3 %vm254_vm1, %v8556_v11  ;;  %v2291_v5 = vmul.f32 %v7700_v4, %v8556_v11  ;;  %v724_v6 = vmul.f32 %v8513_v55, %v8556_v11  ;;  %v743_v9 = vmul.f32 %v8505_v51, %v8556_v11  ;;  %v648_v10 = vmul.f32 %v8518_v56, %v8556_v11 }
 0x123   :  { %v677_v63 = vsel %vm254_vm1, %v667_v57, 0.0  ;;  %v696_v1 = vsel %vm254_vm1, %v686_v58, 0.0  ;;  %v639_v2 = vsel %vm254_vm1, %v629_v60, 0.0  ;;  %v2307_v19 = vmul.f32 %v7701_v16, %v8556_v11  ;;  %v7705_v58 = vld [vmem:[%s12358_s12 + $0x5] ss:$0 sm:$0xff] }
 0x124   :  { %729 = vadd.xlane.f32.xlu1 %v728_v13  ;;  %653 = vadd.xlane.f32.xlu0 %v652_v14  ;;  %v734_v13 = vsel %vm254_vm1, %v724_v6, 0.0  ;;  %v753_v14 = vsel %vm254_vm1, %v743_v9, 0.0  ;;  %v2310_v4 = vmul.f32 %v7705_v58, %v8540_v3  ;;  %v2309_v9 = vmul.f32 %v7705_v58, %v8524_v59 }
 0x125   :  { %764 = vadd.xlane.f32.xlu2 %v763_v15  ;;  %7349 = vmatpush.xpose.msk.msra.mxu1 %vm254_vm1, %v8540_v3  ;;  %v658_v15 = vsel %vm254_vm1, %v648_v10, 0.0 }
 0x126   :  { %7354 = vmatpush.xpose.msk.msra.mxu2 %vm254_vm1, %v8540_v3  ;;  %7359 = vmatpush.xpose.msk.msra.mxu3 %vm254_vm1, %v8540_v3 }
 0x128   :  { %v8579_v18 = vpop.f32.mrf.mxu0 }
 0x129   :  { %12428 = vst [vmem:[#allocation8_spill] sm:$0xff] %v8579_v18  ;;  %7350 = vmatpush.xpose.msk.msra.mxu1 %vm254_vm1, %v8524_v59  ;;  %v839_v34 = vmul.f32 %v8534_v0, %v8579_v18  ;;  %v823_v35 = vmul.f32 %v8482_v44, %v8579_v18  ;;  %v887_v60 = vmul.f32 %v8550_v8, %v8579_v18 }
 0x12a   :  { %7355 = vmatpush.xpose.msk.msra.mxu2 %vm254_vm1, %v8524_v59  ;;  %7360 = vmatpush.xpose.msk.msra.mxu3 %vm254_vm1, %v8524_v59 }
 0x12c   :  { %710 = vadd.xlane.f32.xlu0 %v709_v21  ;;  %637 = vadd.xlane.f32.xlu1 %v636_v20  ;;  %v2306_v20 = vmul.f32 %v7701_v16, %v8540_v3  ;;  %v705_v21 = vmul.f32 %v8534_v0, %v8556_v11 }
 0x12d   :  { %691 = vadd.xlane.f32.xlu2 %v690_v22  ;;  %7351 = vmatpush.xpose.msk.msra.mxu1 %vm254_vm1, %v8494_v47  ;;  %v791_v22 = vmul.f32 %v8518_v56, %v8579_v18 }
 0x12e   :  { %7356 = vmatpush.xpose.msk.msra.mxu2 %vm254_vm1, %v8494_v47  ;;  %7361 = vmatpush.xpose.msk.msra.mxu3 %vm254_vm1, %v8494_v47  ;;  %v715_v29 = vsel %vm254_vm1, %v705_v21, 0.0 }
 0x130   :  { %v8621_v27 = vpop.f32.mrf.mxu0  ;;  %7352 = vmatmul.msk.f32.vlgmr.msra.gmra.mxu1 %vm254_vm1, %v8597_v23 }
 0x131   :  { %7363 = vmatpush.xpose.msk.msrb.mxu1 %vm254_vm1, %v8556_v11  ;;  %7357 = vmatmul.msk.f32.vlgmr.msra.gmra.mxu2 %vm254_vm1, %v8606_v24  ;;  %v776_v16 = vmul.f32 %v8492_v46, %v8621_v27 }
 0x132   :  { %7368 = vmatpush.xpose.msk.msrb.mxu2 %vm254_vm1, %v8556_v11  ;;  %7373 = vmatpush.xpose.msk.msrb.mxu3 %vm254_vm1, %v8556_v11 }
 0x133   :  { %7362 = vmatmul.msk.f32.vlgmr.msra.gmra.mxu3 %vm254_vm1, %v8611_v25 }
 0x134   :  { %767 = vadd.xlane.f32.xlu0 %v766_v30  ;;  %656 = vadd.xlane.f32.xlu1 %v655_v32  ;;  %v795_v30 = vsel %vm254_vm1, %v791_v22, 0.0  ;;  %v762_v32 = vmul.f32 %v8550_v8, %v8556_v11  ;;  %v782_v22 = vsel %vm254_vm1, %v776_v16, 0.0 }
 0x135   :  { %7364 = vmatpush.xpose.msk.msrb.mxu1 %vm254_vm1, %v8540_v3  ;;  %748 = vadd.xlane.f32.xlu2 %v747_v31  ;;  %v7703_v31 = vld [vmem:[%s12358_s12 + $0x2] ss:$0 sm:$0xff] }
 0x136   :  { %7369 = vmatpush.xpose.msk.msrb.mxu2 %vm254_vm1, %v8540_v3  ;;  %7374 = vmatpush.xpose.msk.msrb.mxu3 %vm254_vm1, %v8540_v3  ;;  %v2298_v48 = vmul.f32 %v7703_v31, %v8540_v3  ;;  %v2297_v50 = vmul.f32 %v7703_v31, %v8524_v59  ;;  %v2296_v57 = vmul.f32 %v7703_v31, %v8494_v47 }
 0x138   :  { %v8648_v33 = vpop.f32.mrf.mxu0 }
 0x139   :  { %7365 = vmatpush.xpose.msk.msrb.mxu1 %vm254_vm1, %v8524_v59 }
 0x13a   :  { %7370 = vmatpush.xpose.msk.msrb.mxu2 %vm254_vm1, %v8524_v59  ;;  %7375 = vmatpush.xpose.msk.msrb.mxu3 %vm254_vm1, %v8524_v59 }
 0x13c   :  { %694 = vadd.xlane.f32.xlu0 %v693_v37  ;;  %713 = vadd.xlane.f32.xlu1 %v712_v41  ;;  %v2299_v37 = vmul.f32 %v7703_v31, %v8556_v11 }
 0x13d   :  { %7366 = vmatpush.xpose.msk.msrb.mxu1 %vm254_vm1, %v8494_v47  ;;  %675 = vadd.xlane.f32.xlu2 %v674_v40  ;;  %v827_v40 = vsel %vm254_vm1, %v823_v35, 0.0  ;;  %v840_v35 = vmul.f32 %v8534_v0, %v8621_v27 }
 0x13e   :  { %7371 = vmatpush.xpose.msk.msrb.mxu2 %vm254_vm1, %v8494_v47  ;;  %7376 = vmatpush.xpose.msk.msrb.mxu3 %vm254_vm1, %v8494_v47 }
 0x140   :  { %7367 = vmatmul.msk.f32.vlgmr.msrb.gmra.mxu1 %vm254_vm1, %v8668_v38  ;;  %v8690_v43 = vpop.f32.mrf.mxu0 }
 0x141   :  { %7378 = vmatpush.xpose.msk.msra.mxu1 %vm254_vm1, %v8556_v11  ;;  %7372 = vmatmul.msk.f32.vlgmr.msrb.gmra.mxu2 %vm254_vm1, %v8673_v39 }
 0x142   :  { %7383 = vmatpush.xpose.msk.msra.mxu2 %vm254_vm1, %v8556_v11  ;;  %7377 = vmatmul.msk.f32.vlgmr.msrb.gmra.mxu3 %vm254_vm1, %v8682_v42 }
 0x143   :  { %7388 = vmatpush.xpose.msk.msra.mxu3 %vm254_vm1, %v8690_v43  ;;  %7408 = vmatpush.xpose.msk.msrb.mxu0 %vm254_vm1, %v8690_v43 }
 0x144   :  { %751 = vadd.xlane.f32.xlu0 %v750_v52  ;;  %770 = vadd.xlane.f32.xlu1 %v769_v54  ;;  %v7704_v52 = vld [vmem:[%s12358_s12 + $0x3] ss:$0 sm:$0xff] }
 0x145   :  { %7379 = vmatpush.xpose.msk.msra.mxu1 %vm254_vm1, %v8540_v3  ;;  %732 = vadd.xlane.f32.xlu2 %v731_v53  ;;  %v807_v53 = vmul.f32 %v8487_v45, %v8579_v18  ;;  %v2301_v6 = vmul.f32 %v7704_v52, %v8524_v59  ;;  %v2300_v10 = vmul.f32 %v7704_v52, %v8494_v47 }
 0x146   :  { %7384 = vmatpush.xpose.msk.msra.mxu2 %vm254_vm1, %v8540_v3 }
 0x147   :  { %7389 = vmatpush.xpose.msk.msra.mxu3 %vm254_vm1, %v8648_v33  ;;  %7409 = vmatpush.xpose.msk.msrb.mxu0 %vm254_vm1, %v8648_v33 }
 0x149   :  { %7380 = vmatpush.xpose.msk.msra.mxu1 %vm254_vm1, %v8524_v59 }
 0x14a   :  { %7385 = vmatpush.xpose.msk.msra.mxu2 %vm254_vm1, %v8524_v59 }
 0x14b   :  { %7390 = vmatpush.xpose.msk.msra.mxu3 %vm254_vm1, %v8621_v27  ;;  %7410 = vmatpush.xpose.msk.msrb.mxu0 %vm254_vm1, %v8621_v27 }
 0x14c   :  { %678 = vadd.xlane.f32.xlu0 %v677_v63  ;;  %697 = vadd.xlane.f32.xlu1 %v696_v1  ;;  %v871_v63 = vmul.f32 %v8505_v51, %v8579_v18  ;;  %v2302_v1 = vmul.f32 %v7704_v52, %v8540_v3 }
 0x14d   :  { %7381 = vmatpush.xpose.msk.msra.mxu1 %vm254_vm1, %v8494_v47  ;;  %640 = vadd.xlane.f32.xlu2 %v639_v2  ;;  %v811_v2 = vsel %vm254_vm1, %v807_v53, 0.0  ;;  %v841_v53 = vmul.f32 %v8534_v0, %v8648_v33 }
 0x14e   :  { %7386 = vmatpush.xpose.msk.msra.mxu2 %vm254_vm1, %v8494_v47 }
 0x14f   :  { %7391 = vmatpush.xpose.msk.msra.mxu3 %vm254_vm1, %v8579_v18  ;;  %7411 = vmatpush.xpose.msk.msrb.mxu0 %vm254_vm1, %v8579_v18 }
 0x150   :  { %7382 = vmatmul.msk.f32.vlgmr.msra.gmra.mxu1 %vm254_vm1, %v8732_v61 }
 0x151   :  { %7393 = vmatpush.xpose.msk.msrb.mxu1 %vm254_vm1, %v8690_v43  ;;  %7387 = vmatmul.msk.f32.vlgmr.msra.gmra.mxu2 %vm254_vm1, %v8737_v62 }
 0x152   :  { %7398 = vmatpush.xpose.msk.msrb.mxu2 %vm254_vm1, %v8690_v43  ;;  %7392 = vmatmul.msk.f32.vlgmr.msra.gmra.mxu3 %vm254_vm1, %v8597_v23  ;;  %v775_v23 = vmul.f32 %v8492_v46, %v8579_v18 }
 0x153   :  { %7403 = vmatpush.xpose.msk.msrb.mxu3 %vm254_vm1, %v8690_v43  ;;  %2376 = vmatpush.msra.mxu0 %v2291_v5  ;;  %v891_v5 = vsel %vm254_vm1, %v887_v60, 0.0 }
 0x154   :  { %7412 = vmatmul.msk.f32.vlgmr.msrb.gmra.mxu0 %vm254_vm1, %v8673_v39  ;;  %735 = vadd.xlane.f32.xlu0 %v734_v13  ;;  %v843_v39 = vsel %vm254_vm1, %v839_v34, 0.0  ;;  %v855_v13 = vmul.f32 %v8513_v55, %v8579_v18 }
 0x155   :  { %7394 = vmatpush.xpose.msk.msrb.mxu1 %vm254_vm1, %v8648_v33  ;;  %2377 = vmatpush.msra.mxu0 %v2290_v7  ;;  %v875_v7 = vsel %vm254_vm1, %v871_v63, 0.0  ;;  %v777_v63 = vmul.f32 %v8492_v46, %v8648_v33 }
 0x156   :  { %7399 = vmatpush.xpose.msk.msrb.mxu2 %vm254_vm1, %v8648_v33  ;;  %754 = vadd.xlane.f32.xlu1 %v753_v14  ;;  %v2308_v14 = vmul.f32 %v7705_v58, %v8494_v47 }
 0x157   :  { %7404 = vmatpush.xpose.msk.msrb.mxu3 %vm254_vm1, %v8648_v33  ;;  %2378 = vmatpush.msra.mxu0 %v2289_v12  ;;  %v7706_v12 = vld [vmem:[%s12358_s12 + $0x7] ss:$0 sm:$0xff] }
 0x158   :  { %659 = vadd.xlane.f32.xlu2 %v658_v15  ;;  %v2319_v15 = vmul.f32 %v7706_v12, %v8556_v11  ;;  %v2317_v21 = vmul.f32 %v7706_v12, %v8524_v59 }
 0x159   :  { %7395 = vmatpush.xpose.msk.msrb.mxu1 %vm254_vm1, %v8621_v27  ;;  %2379 = vmatpush.msra.mxu0 %v2288_v17  ;;  %v808_v17 = vmul.f32 %v8487_v45, %v8621_v27 }
 0x15a   :  { %7400 = vmatpush.xpose.msk.msrb.mxu2 %vm254_vm1, %v8621_v27 }
 0x15b   :  { %2540 = vmatpush.msrb.mxu0 %v2307_v19  ;;  %7405 = vmatpush.xpose.msk.msrb.mxu3 %vm254_vm1, %v8621_v27  ;;  %v2318_v19 = vmul.f32 %v7706_v12, %v8540_v3 }
 0x15d   :  { %7396 = vmatpush.xpose.msk.msrb.mxu1 %vm254_vm1, %v8579_v18  ;;  %2541 = vmatpush.msrb.mxu0 %v2306_v20  ;;  %v859_v20 = vsel %vm254_vm1, %v855_v13, 0.0  ;;  %v794_v13 = vmul.f32 %v8518_v56, %v8690_v43 }
 0x15e   :  { %7401 = vmatpush.xpose.msk.msrb.mxu2 %vm254_vm1, %v8579_v18  ;;  %796 = vadd.xlane.f32.xlu1 %v795_v30 }
 0x15f   :  { %2542 = vmatpush.msrb.mxu0 %v2305_v26  ;;  %7406 = vmatpush.xpose.msk.msrb.mxu3 %vm254_vm1, %v8579_v18  ;;  %v792_v26 = vmul.f32 %v8518_v56, %v8621_v27 }
 0x160   :  { %7397 = vmatmul.msk.f32.vlgmr.msrb.gmra.mxu1 %vm254_vm1, %v8606_v24  ;;  %v779_v24 = vsel %vm254_vm1, %v775_v23, 0.0  ;;  %716 = vadd.xlane.f32.xlu2 %v715_v29  ;;  %v814_v23 = vsel %vm254_vm1, %v808_v17, 0.0  ;;  %v856_v29 = vmul.f32 %v8513_v55, %v8621_v27 }
 0x161   :  { %7413 = vmatpush.xpose.msk.msra.mxu1 %vm254_vm1, %v8690_v43  ;;  %7402 = vmatmul.msk.f32.vlgmr.msrb.gmra.mxu2 %vm254_vm1, %v8611_v25  ;;  %v7702_v25 = vld [vmem:[%s12358_s12 + $0x1] ss:$0 sm:$0xff]  ;;  %v798_v30 = vsel %vm254_vm1, %v792_v26, 0.0 }
 0x162   :  { %7418 = vmatpush.xpose.msk.msra.mxu2 %vm254_vm1, %v8690_v43  ;;  %2543 = vmatpush.msrb.mxu0 %v2304_v28  ;;  %v2295_v36 = vmul.f32 %v7702_v25, %v8556_v11  ;;  %v2294_v41 = vmul.f32 %v7702_v25, %v8540_v3  ;;  %v2293_v49 = vmul.f32 %v7702_v25, %v8524_v59  ;;  %v862_v34 = vsel %vm254_vm1, %v856_v29, 0.0 }
 0x163   :  { %7423 = vmatpush.xpose.msk.msra.mxu3 %vm254_vm1, %v8690_v43  ;;  %780 = vadd.xlane.f32.xlu0 %v779_v24  ;;  %v2292_v54 = vmul.f32 %v7702_v25, %v8494_v47  ;;  %v824_v28 = vmul.f32 %v8482_v44, %v8621_v27 }
 0x164   :  { %7407 = vmatmul.msk.f32.vlgmr.msrb.gmra.mxu3 %vm254_vm1, %v8668_v38  ;;  %v772_v38 = vsel %vm254_vm1, %v762_v32, 0.0 }
 0x165   :  { %7414 = vmatpush.xpose.msk.msra.mxu1 %vm254_vm1, %v8648_v33  ;;  %v830_v31 = vsel %vm254_vm1, %v824_v28, 0.0 }
 0x166   :  { %7419 = vmatpush.xpose.msk.msra.mxu2 %vm254_vm1, %v8648_v33  ;;  %844 = vadd.xlane.f32.xlu1 %v843_v39 }
 0x167   :  { %7424 = vmatpush.xpose.msk.msra.mxu3 %vm254_vm1, %v8648_v33 }
 0x168   :  { %773 = vadd.xlane.f32.xlu2 %v772_v38  ;;  %v846_v38 = vsel %vm254_vm1, %v840_v35, 0.0 }
 0x169   :  { %7415 = vmatpush.xpose.msk.msra.mxu1 %vm254_vm1, %v8621_v27 }
 0x16a   :  { %7420 = vmatpush.xpose.msk.msra.mxu2 %vm254_vm1, %v8621_v27 }
 0x16b   :  { %7425 = vmatpush.xpose.msk.msra.mxu3 %vm254_vm1, %v8621_v27  ;;  %828 = vadd.xlane.f32.xlu0 %v827_v40 }
 0x16d   :  { %7416 = vmatpush.xpose.msk.msra.mxu1 %vm254_vm1, %v8579_v18 }
 0x16e   :  { %7421 = vmatpush.xpose.msk.msra.mxu2 %vm254_vm1, %v8579_v18  ;;  %892 = vadd.xlane.f32.xlu1 %v891_v5 }
 0x16f   :  { %7426 = vmatpush.xpose.msk.msra.mxu3 %vm254_vm1, %v8579_v18 }
 0x170   :  { %7417 = vmatmul.msk.f32.vlgmr.msra.gmra.mxu1 %vm254_vm1, %v8682_v42  ;;  %v2303_v42 = vmul.f32 %v7704_v52, %v8556_v11  ;;  %812 = vadd.xlane.f32.xlu2 %v811_v2  ;;  %v809_v52 = vmul.f32 %v8487_v45, %v8648_v33  ;;  %v889_v2 = vmul.f32 %v8550_v8, %v8648_v33 }
 0x171   :  { %2417 = vmatpush.msrb.mxu1 %v2295_v36  ;;  %7422 = vmatmul.msk.f32.vlgmr.msra.gmra.mxu2 %vm254_vm1, %v8732_v61  ;;  %v2311_v61 = vmul.f32 %v7705_v58, %v8556_v11  ;;  %v872_v36 = vmul.f32 %v8505_v51, %v8621_v27 }
 0x172   :  { %2458 = vmatpush.msrb.mxu2 %v2299_v37  ;;  %7427 = vmatmul.msk.f32.vlgmr.msra.gmra.mxu3 %vm254_vm1, %v8737_v62  ;;  %v2316_v62 = vmul.f32 %v7706_v12, %v8494_v47  ;;  %v793_v37 = vmul.f32 %v8518_v56, %v8648_v33  ;;  %v825_v12 = vmul.f32 %v8482_v44, %v8648_v33 }
 0x173   :  { %2418 = vmatpush.msrb.mxu1 %v2294_v41  ;;  %7678 = vmatpush.msrb.mxu3 %v2303_v42  ;;  %v878_v41 = vsel %vm254_vm1, %v872_v36, 0.0  ;;  %v873_v56 = vmul.f32 %v8505_v51, %v8648_v33 }
 0x174   :  { %2459 = vmatpush.msrb.mxu2 %v2298_v48  ;;  %876 = vadd.xlane.f32.xlu0 %v875_v7 }
 0x175   :  { %2419 = vmatpush.msrb.mxu1 %v2293_v49  ;;  %7679 = vmatpush.msrb.mxu3 %v2302_v1  ;;  %v801_v49 = vsel %vm254_vm1, %v793_v37, 0.0 }
 0x176   :  { %2460 = vmatpush.msrb.mxu2 %v2297_v50  ;;  %783 = vadd.xlane.f32.xlu1 %v782_v22  ;;  %v888_v50 = vmul.f32 %v8550_v8, %v8621_v27  ;;  %v826_v22 = vmul.f32 %v8482_v44, %v8690_v43  ;;  %v874_v44 = vmul.f32 %v8505_v51, %v8690_v43 }
 0x177   :  { %2420 = vmatpush.msrb.mxu1 %v2292_v54  ;;  %7680 = vmatpush.msrb.mxu3 %v2301_v6 }
 0x178   :  { %2461 = vmatpush.msrb.mxu2 %v2296_v57  ;;  %860 = vadd.xlane.f32.xlu2 %v859_v20  ;;  %v894_v54 = vsel %vm254_vm1, %v888_v50, 0.0  ;;  %v884_v37 = vsel %vm254_vm1, %v874_v44, 0.0 }
 0x179   :  { %2581 = vmatpush.msra.mxu1 %v2311_v61  ;;  %7681 = vmatpush.msrb.mxu3 %v2300_v10  ;;  %v849_v61 = vsel %vm254_vm1, %v841_v53, 0.0 }
 0x17a   :  { %2499 = vmatpush.msra.mxu2 %v2303_v42  ;;  %v817_v42 = vsel %vm254_vm1, %v809_v52, 0.0 }
 0x17b   :  { %2582 = vmatpush.msra.mxu1 %v2310_v4  ;;  %2663 = vmatpush.msra.mxu3 %v2319_v15  ;;  %v785_v4 = vsel %vm254_vm1, %v777_v63, 0.0  ;;  %v833_v15 = vsel %vm254_vm1, %v825_v12, 0.0 }
 0x17c   :  { %2500 = vmatpush.msra.mxu2 %v2302_v1  ;;  %815 = vadd.xlane.f32.xlu0 %v814_v23  ;;  %v857_v1 = vmul.f32 %v8513_v55, %v8648_v33  ;;  %v881_v23 = vsel %vm254_vm1, %v873_v56, 0.0 }
 0x17d   :  { %2583 = vmatpush.msra.mxu1 %v2309_v9  ;;  %2664 = vmatpush.msra.mxu3 %v2318_v19  ;;  %v804_v19 = vsel %vm254_vm1, %v794_v13, 0.0 }
 0x17e   :  { %2501 = vmatpush.msra.mxu2 %v2301_v6  ;;  %831 = vadd.xlane.f32.xlu1 %v830_v31  ;;  %v865_v7 = vsel %vm254_vm1, %v857_v1, 0.0  ;;  %v810_v31 = vmul.f32 %v8487_v45, %v8690_v43  ;;  %v858_v45 = vmul.f32 %v8513_v55, %v8690_v43 }
 0x17f   :  { %2584 = vmatpush.msra.mxu1 %v2308_v14  ;;  %2665 = vmatpush.msra.mxu3 %v2317_v21  ;;  %v8917_v24 = vpop.xlane.xlu1 %688  ;;  %v8919_v25 = vpop.xlane.xlu0 %669  ;;  %v778_v14 = vmul.f32 %v8492_v46, %v8690_v43  ;;  %v842_v46 = vmul.f32 %v8534_v0, %v8690_v43  ;;  %v890_v0 = vmul.f32 %v8550_v8, %v8690_v43 }
 0x180   :  { %2502 = vmatpush.msra.mxu2 %v2300_v10  ;;  %799 = vadd.xlane.f32.xlu2 %v798_v30  ;;  %v8922_v32 = vpop.xlane.xlu2 %631  ;;  %v897_v10 = vsel %vm254_vm1, %v889_v2, 0.0  ;;  %v836_v30 = vsel %vm254_vm1, %v826_v22, 0.0  ;;  %v868_v8 = vsel %vm254_vm1, %v858_v45, 0.0 }
 0x181   :  { %2666 = vmatpush.msra.mxu3 %v2316_v62  ;;  %v788_v21 = vsel %vm254_vm1, %v778_v14, 0.0  ;;  %v852_v26 = vsel %vm254_vm1, %v842_v46, 0.0  ;;  %v900_v35 = vsel %vm254_vm1, %v890_v0, 0.0 }
 0x184   :  { %863 = vadd.xlane.f32.xlu0 %v862_v34  ;;  %v820_v34 = vsel %vm254_vm1, %v810_v31, 0.0 }
 0x186   :  { %879 = vadd.xlane.f32.xlu1 %v878_v41 }
 0x187   :  { %v8932_v39 = vpop.xlane.xlu1 %745  ;;  %v8934_v40 = vpop.xlane.xlu0 %726 }
 0x188   :  { %847 = vadd.xlane.f32.xlu2 %v846_v38  ;;  %v8937_v48 = vpop.xlane.xlu2 %650 }
 0x18c   :  { %802 = vadd.xlane.f32.xlu0 %v801_v49 }
 0x18e   :  { %818 = vadd.xlane.f32.xlu1 %v817_v42 }
 0x18f   :  { %v8947_v57 = vpop.xlane.xlu1 %672  ;;  %v8949_v58 = vpop.xlane.xlu0 %634 }
 0x190   :  { %895 = vadd.xlane.f32.xlu2 %v894_v54  ;;  %v8952_v60 = vpop.xlane.xlu2 %707 }
 0x194   :  { %850 = vadd.xlane.f32.xlu0 %v849_v61 }
 0x196   :  { %866 = vadd.xlane.f32.xlu1 %v865_v7 }
 0x197   :  { %v8962_v5 = vpop.xlane.xlu1 %729  ;;  %v8964_v6 = vpop.xlane.xlu0 %653 }
 0x198   :  { %786 = vadd.xlane.f32.xlu2 %v785_v4  ;;  %v8967_v9 = vpop.xlane.xlu2 %764 }
 0x19c   :  { %898 = vadd.xlane.f32.xlu0 %v897_v10 }
 0x19e   :  { %805 = vadd.xlane.f32.xlu1 %v804_v19 }
 0x19f   :  { %v8977_v16 = vpop.xlane.xlu1 %637  ;;  %v711_v17 = vpop.xlane.xlu0 %710 }
 0x1a0   :  { %834 = vadd.xlane.f32.xlu2 %v833_v15  ;;  %v8980_v20 = vpop.xlane.xlu2 %691 }
 0x1a4   :  { %789 = vadd.xlane.f32.xlu0 %v788_v21 }
 0x1a6   :  { %853 = vadd.xlane.f32.xlu1 %v852_v26 }
 0x1a7   :  { %v768_v62 = vpop.xlane.xlu0 %767  ;;  %v657_v29 = vpop.xlane.xlu1 %656 }
 0x1a8   :  { %882 = vadd.xlane.f32.xlu2 %v881_v23  ;;  %v749_v28 = vpop.xlane.xlu2 %748 }
 0x1ac   :  { %837 = vadd.xlane.f32.xlu0 %v836_v30 }
 0x1ad   :  { %v287_v23 = vpop.f32.mrf.mxu1 }
 0x1ae   :  { %901 = vadd.xlane.f32.xlu1 %v900_v35 }
 0x1af   :  { %v695_v36 = vpop.xlane.xlu0 %694  ;;  %v714_v41 = vpop.xlane.xlu1 %713 }
 0x1b0   :  { %821 = vadd.xlane.f32.xlu2 %v820_v34  ;;  %v676_v38 = vpop.xlane.xlu2 %675 }
 0x1b4   :  { %885 = vadd.xlane.f32.xlu0 %v884_v37  ;;  %v310_v30 = vpop.f32.mrf.mxu2 }
 0x1b7   :  { %v752_v49 = vpop.xlane.xlu0 %751  ;;  %v771_v50 = vpop.xlane.xlu1 %770 }
 0x1b8   :  { %869 = vadd.xlane.f32.xlu2 %v868_v8  ;;  %v733_v51 = vpop.xlane.xlu2 %732 }
 0x1bf   :  { %v679_v52 = vpop.xlane.xlu0 %678  ;;  %v698_v53 = vpop.xlane.xlu1 %697 }
 0x1c0   :  { %v641_v54 = vpop.xlane.xlu2 %640 }
 0x1c7   :  { %v736_v42 = vpop.xlane.xlu0 %735  ;;  %945 = vperm.xlu1 %7688, %v8919_v25  }
 0x1c8   :  { %965 = vperm.xlu0 %7687, %v8917_v24  }
 0x1c9   :  { %v755_v61 = vpop.xlane.xlu1 %754 }
 0x1cb   :  { %v660_v63 = vpop.xlane.xlu2 %659 }
 0x1cf   :  { %1005 = vperm.xlu1 %7688, %v8934_v40  }
 0x1d0   :  { %1025 = vperm.xlu0 %7687, %v8932_v39   ;;  %905 = vperm.xlu2 %7689, %v8922_v32  }
 0x1d1   :  { %v797_v1 = vpop.xlane.xlu1 %796 }
 0x1d3   :  { %v717_v55 = vpop.xlane.xlu2 %716 }
 0x1d6   :  { %v781_v2 = vpop.xlane.xlu0 %780 }
 0x1d7   :  { %930 = vperm.xlu1 %7688, %v8964_v6  }
 0x1d8   :  { %910 = vperm.xlu0 %7687, %v8949_v58   ;;  %925 = vperm.xlu2 %7689, %v8937_v48  }
 0x1d9   :  { %v9012_v4 = vpop.xlane.xlu1 %844 }
 0x1db   :  { %v774_v24 = vpop.xlane.xlu2 %773 }
 0x1de   :  { %v829_v7 = vpop.xlane.xlu0 %828 }
 0x1df   :  { %990 = vperm.xlu1 %7688, %v711_v17  }
 0x1e0   :  { %950 = vperm.xlu0 %7687, %v8947_v57   ;;  %985 = vperm.xlu2 %7689, %v8952_v60  }
 0x1e1   :  { %v9016_v32 = vpop.xlane.xlu1 %892 }
 0x1e2   :  { %12429 = vst [vmem:[#allocation9_spill] sm:$0xff] %v9016_v32 }
 0x1e3   :  { %v813_v25 = vpop.xlane.xlu2 %812 }
 0x1e7   :  { %v9018_v39 = vpop.xlane.xlu0 %876  ;;  %1050 = vperm.xlu1 %7688, %v768_v62  }
 0x1e8   :  { %1010 = vperm.xlu0 %7687, %v8962_v5   ;;  %1045 = vperm.xlu2 %7689, %v8967_v9  }
 0x1e9   :  { %v784_v58 = vpop.xlane.xlu1 %783 }
 0x1eb   :  { %v9022_v40 = vpop.xlane.xlu2 %860 }
 0x1ef   :  { %v9024_v48 = vpop.xlane.xlu0 %815  ;;  %915 = vperm.xlu1 %7688, %v8977_v16  }
 0x1f0   :  { %935 = vperm.xlu0 %7687, %v657_v29   ;;  %970 = vperm.xlu2 %7689, %v8980_v20   ;;  %v356_v29 = vpop.f32.mrf.mxu1 }
 0x1f1   :  { %v9030_v6 = vpop.xlane.xlu1 %831  ;;  %v9064_v44 = vperm.slane %v356_v29, 0 }
 0x1f3   :  { %v800_v57 = vpop.xlane.xlu2 %799 }
 0x1f7   :  { %v9028_v60 = vpop.xlane.xlu0 %863  ;;  %975 = vperm.xlu1 %7688, %v695_v36  }
 0x1f8   :  { %995 = vperm.xlu0 %7687, %v714_v41   ;;  %1030 = vperm.xlu2 %7689, %v749_v28   ;;  %v425_v37 = vpop.f32.mrf.mxu1  ;;  %v379_v41 = vpop.f32.mrf.mxu2 }
 0x1f9   :  { %v9036_v10 = vpop.xlane.xlu1 %879  ;;  %v9067_v8 = vperm.slane %v425_v37, 0 }
 0x1fb   :  { %v9032_v5 = vpop.xlane.xlu2 %847 }
 0x1fc   :  { %12430 = vst [vmem:[#allocation10_spill] sm:$0xff] %v9032_v5 }
 0x1ff   :  { %v9034_v9 = vpop.xlane.xlu0 %802  ;;  %1035 = vperm.xlu1 %7688, %v752_v49  }
 0x200   :  { %1055 = vperm.xlu0 %7687, %v771_v50   ;;  %955 = vperm.xlu2 %7689, %v676_v38  }
 0x201   :  { %v819_v15 = vpop.xlane.xlu1 %818 }
 0x203   :  { %v9038_v12 = vpop.xlane.xlu2 %895 }
 0x207   :  { %v9040_v13 = vpop.xlane.xlu0 %850  ;;  %960 = vperm.xlu1 %7688, %v679_v52  }
 0x208   :  { %920 = vperm.xlu0 %7687, %v641_v54   ;;  %1015 = vperm.xlu2 %7689, %v733_v51   ;;  %v9072_v51 = vld [vmem:[%s12436_s26] sm:$0xff] }
 0x209   :  { %v9046_v19 = vpop.xlane.xlu1 %866 }
 0x20b   :  { %v787_v14 = vpop.xlane.xlu2 %786 }
 0x20f   :  { %v9042_v16 = vpop.xlane.xlu0 %898  ;;  %1020 = vperm.xlu1 %7688, %v736_v42  }
 0x210   :  { %980 = vperm.xlu0 %7687, %v698_v53   ;;  %940 = vperm.xlu2 %7689, %v660_v63   ;;  %12431 = vst [vmem:[#allocation11_spill] sm:$0xff] %v9042_v16  ;;  %v9077_v53 = vperm.slane %v379_v41, 0 }
 0x211   :  { %v806_v56 = vpop.xlane.xlu1 %805 }
 0x213   :  { %v9044_v17 = vpop.xlane.xlu2 %834 }
 0x217   :  { %1065 = vperm.xlu1 %7688, %v781_v2   ;;  %v9050_v21 = vpop.xlane.xlu0 %789 }
 0x218   :  { %1040 = vperm.xlu0 %7687, %v755_v61   ;;  %1000 = vperm.xlu2 %7689, %v717_v55   ;;  %v333_v61 = vpop.f32.mrf.mxu3 }
 0x219   :  { %v9056_v62 = vpop.xlane.xlu1 %853  ;;  %v9090_v29 = vperm.slane %v333_v61, 0 }
 0x21b   :  { %v9048_v20 = vpop.xlane.xlu2 %882 }
 0x21c   :  { %12432 = vst [vmem:[#allocation12_spill] sm:$0xff] %v9048_v20 }
 0x21f   :  { %v9054_v22 = vpop.xlane.xlu0 %837 }
 0x220   :  { %1085 = vperm.xlu0 %7687, %v797_v1   ;;  %1060 = vperm.xlu2 %7689, %v774_v24   ;;  %12433 = vst [vmem:[#allocation13_spill] sm:$0xff] %v9054_v22  ;;  %v448_v24 = vpop.f32.mrf.mxu2 }
 0x221   :  { %v9062_v0 = vpop.xlane.xlu1 %901 }
 0x222   :  { %12435 = vst [vmem:[#allocation15_spill] sm:$0xff] %v9062_v0 }
 0x223   :  { %v9052_v46 = vpop.xlane.xlu2 %821 }
 0x227   :  { %v9060_v28 = vpop.xlane.xlu0 %885 }
 0x228   :  { %1125 = vperm.xlu0 %7687, %v829_v7   ;;  %1105 = vperm.xlu2 %7689, %v813_v25  }
 0x22b   :  { %v9058_v26 = vpop.xlane.xlu2 %869 }
 0x22c   :  { %12434 = vst [vmem:[#allocation14_spill] sm:$0xff] %v9058_v26 }
 0x230   :  { %1070 = vperm.xlu0 %7687, %v784_v58   ;;  %1090 = vperm.xlu2 %7689, %v800_v57  }
 0x233   :  { %v906_v31 = vpop.permute.xlu2 %905 }
 0x238   :  { %1115 = vperm.xlu0 %7687, %v819_v15   ;;  %1075 = vperm.xlu2 %7689, %v787_v14   ;;  %v9086_v14 = vperm.slane %v448_v24, 0 }
 0x239   :  { %v946_v45 = vpop.permute.xlu1 %945 }
 0x23a   :  { %v966_v34 = vpop.permute.xlu0 %965 }
 0x23b   :  { %v1251_v35 = vadd.f32 %v9064_v44, %v966_v34  ;;  %v926_v36 = vpop.permute.xlu2 %925 }
 0x23d   :  { %v1379_v38 = vmul.f32 0.2, %v1251_v35  ;;  %vm1315_vm2 = vcmp.ge.f32.partialorder %v1251_v35, 0.0 }
 0x23f   :  { %v1443_v49 = vsel %vm1315_vm2, %v1251_v35, %v1379_v38  ;;  %v402_v38 = vpop.f32.mrf.mxu3 }
 0x240   :  { %1100 = vperm.xlu0 %7687, %v806_v56   ;;  %v9075_v50 = vadd.f32 %v1443_v49, %v9072_v51  ;;  %v1247_v49 = vadd.f32 %v9090_v29, %v946_v45 }
 0x241   :  { %v1006_v2 = vpop.permute.xlu1 %1005 }
 0x242   :  { %12437 = vst [vmem:[#allocation16_spill] sm:$0xff] %v9075_v50  ;;  %v1026_v52 = vpop.permute.xlu0 %1025  ;;  %v1596_v55 = vsel %vm1559_vm3, %v9075_v50, -inf  ;;  %v1375_v24 = vmul.f32 0.2, %v1247_v49  ;;  %vm1311_vm7 = vcmp.ge.f32.partialorder %v1247_v49, 0.0 }
 0x243   :  { %v1263_v54 = vadd.f32 %v9067_v8, %v1026_v52  ;;  %v986_v42 = vpop.permute.xlu2 %985  ;;  %1597 = vmax.xlane.f32.xlu1 %v1596_v55  ;;  %v9097_v52 = vperm.slane %v402_v38, 0  ;;  %v9103_v55 = vperm.slane %v310_v30, 0 }
 0x244   :  { %v1255_v1 = vadd.f32 %v9077_v53, %v986_v42  ;;  %v1439_v50 = vsel %vm1311_vm7, %v1247_v49, %v1375_v24 }
 0x245   :  { %v1391_v63 = vmul.f32 0.2, %v1263_v54  ;;  %vm1327_vm4 = vcmp.ge.f32.partialorder %v1263_v54, 0.0 }
 0x246   :  { %v1383_v58 = vmul.f32 0.2, %v1255_v1  ;;  %vm1319_vm5 = vcmp.ge.f32.partialorder %v1255_v1, 0.0 }
 0x247   :  { %v1455_v7 = vsel %vm1327_vm4, %v1263_v54, %v1391_v63  ;;  %v9099_v63 = vperm.slane %v287_v23, 0  ;;  %v1243_v23 = vadd.f32 %v9103_v55, %v926_v36 }
 0x248   :  { %v9084_v25 = vadd.f32 %v1455_v7, %v9072_v51  ;;  %v1447_v37 = vsel %vm1319_vm5, %v1255_v1, %v1383_v58  ;;  %v1259_v1 = vadd.f32 %v9097_v52, %v1006_v2  ;;  %v9114_v2 = vadd.f32 %v1439_v50, %v9072_v51 }
 0x249   :  { %v931_v35 = vpop.permute.xlu1 %930  ;;  %v9094_v41 = vadd.f32 %v1447_v37, %v9072_v51  ;;  %vm1307_vm10 = vcmp.ge.f32.partialorder %v1243_v23, 0.0 }
 0x24a   :  { %12438 = vst [vmem:[#allocation17_spill] sm:$0xff] %v9084_v25  ;;  %v911_v57 = vpop.permute.xlu0 %910  ;;  %v1632_v56 = vsel %vm1559_vm3, %v9084_v25, -inf  ;;  %v1387_v37 = vmul.f32 0.2, %v1259_v1  ;;  %vm1323_vm8 = vcmp.ge.f32.partialorder %v1259_v1, 0.0  ;;  %v1584_v49 = vsel %vm1559_vm3, %v9114_v2, -inf }
 0x24b   :  { %v1046_v15 = vpop.permute.xlu2 %1045  ;;  %1633 = vmax.xlane.f32.xlu1 %v1632_v56  ;;  %12439 = vst [vmem:[#allocation18_spill] sm:$0xff] %v9094_v41  ;;  %v1608_v61 = vsel %vm1559_vm3, %v9094_v41, -inf  ;;  %v1239_v56 = vadd.f32 %v9099_v63, %v906_v31  ;;  %v1240_v31 = vadd.f32 %v9099_v63, %v911_v57 }
 0x24c   :  { %v1267_v34 = vadd.f32 %v9086_v14, %v1046_v15  ;;  %v1451_v0 = vsel %vm1323_vm8, %v1259_v1, %v1387_v37 }
 0x24d   :  { %vm1303_vm9 = vcmp.ge.f32.partialorder %v1239_v56, 0.0  ;;  %v9121_v24 = vadd.f32 %v1451_v0, %v9072_v51  ;;  %v1368_v1 = vmul.f32 0.2, %v1240_v31  ;;  %v1244_v0 = vadd.f32 %v9103_v55, %v931_v35 }
 0x24e   :  { %v1395_v54 = vmul.f32 0.2, %v1267_v34  ;;  %vm1331_vm6 = vcmp.ge.f32.partialorder %v1267_v34, 0.0  ;;  %vm1304_vm12 = vcmp.ge.f32.partialorder %v1240_v31, 0.0 }
 0x24f   :  { %12441 = vst [vmem:[#allocation20_spill] sm:$0xff] %v9121_v24  ;;  %v1620_v57 = vsel %vm1559_vm3, %v9121_v24, -inf  ;;  %v1432_v35 = vsel %vm1304_vm12, %v1240_v31, %v1368_v1  ;;  %vm1308_vm14 = vcmp.ge.f32.partialorder %v1244_v0, 0.0 }
 0x250   :  { %v1459_v58 = vsel %vm1331_vm6, %v1267_v34, %v1395_v54  ;;  %v1367_v34 = vmul.f32 0.2, %v1239_v56  ;;  %v1371_v54 = vmul.f32 0.2, %v1243_v23 }
 0x251   :  { %v991_v7 = vpop.permute.xlu1 %990  ;;  %v9107_v45 = vadd.f32 %v1459_v58, %v9072_v51 }
 0x252   :  { %v951_v42 = vpop.permute.xlu0 %950 }
 0x253   :  { %1609 = vmax.xlane.f32.xlu1 %v1608_v61  ;;  %v971_v15 = vpop.permute.xlu2 %970  ;;  %12440 = vst [vmem:[#allocation19_spill] sm:$0xff] %v9107_v45  ;;  %v1644_v30 = vsel %vm1559_vm3, %v9107_v45, -inf  ;;  %v1248_v61 = vadd.f32 %v9090_v29, %v951_v42  ;;  %v1431_v42 = vsel %vm1303_vm9, %v1239_v56, %v1367_v34  ;;  %v9138_v56 = vld [vmem:[%s12436_s26 + $0x8] sm:$0xff] }
 0x254   :  { %v1252_v45 = vadd.f32 %v9064_v44, %v971_v15  ;;  %v9129_v37 = vadd.f32 %v1431_v42, %v9072_v51  ;;  %v9154_v24 = vadd.f32 %v1432_v35, %v9138_v56 }
 0x255   :  { %v1376_v50 = vmul.f32 0.2, %v1248_v61  ;;  %vm1312_vm11 = vcmp.ge.f32.partialorder %v1248_v61, 0.0 }
 0x256   :  { %v1380_v5 = vmul.f32 0.2, %v1252_v45  ;;  %vm1316_vm13 = vcmp.ge.f32.partialorder %v1252_v45, 0.0 }
 0x257   :  { %v1440_v32 = vsel %vm1312_vm11, %v1248_v61, %v1376_v50  ;;  %v1256_v61 = vadd.f32 %v9077_v53, %v991_v7 }
 0x259   :  { %v1051_v58 = vpop.permute.xlu1 %1050  ;;  %v1384_v31 = vmul.f32 0.2, %v1256_v61  ;;  %vm1320_vm15 = vcmp.ge.f32.partialorder %v1256_v61, 0.0 }
 0x25a   :  { %v1011_v38 = vpop.permute.xlu0 %1010 }
 0x25b   :  { %1645 = vmax.xlane.f32.xlu1 %v1644_v30  ;;  %v1031_v36 = vpop.permute.xlu2 %1030  ;;  %v1435_v30 = vsel %vm1307_vm10, %v1243_v23, %v1371_v54  ;;  %v1560_v23 = vsel %vm1559_vm3, %v9129_v37, -inf  ;;  %v9145_v54 = vadd.f32 %v1440_v32, %v9138_v56  ;;  %v1260_v7 = vadd.f32 %v9097_v52, %v1011_v38 }
 0x25c   :  { %v9132_v20 = vadd.f32 %v1435_v30, %v9072_v51  ;;  %v1264_v50 = vadd.f32 %v9067_v8, %v1031_v36  ;;  %v1444_v30 = vsel %vm1316_vm13, %v1252_v45, %v1380_v5  ;;  %v1268_v5 = vadd.f32 %v9086_v14, %v1051_v58 }
 0x25d   :  { %v1587_v22 = vsel %vm1559_vm3, %v9145_v54, -inf  ;;  %v9157_v32 = vadd.f32 %v1444_v30, %v9138_v56  ;;  %v1563_v45 = vsel %vm1559_vm3, %v9154_v24, -inf  ;;  %v1388_v30 = vmul.f32 0.2, %v1260_v7 }
 0x25e   :  { %v1572_v34 = vsel %vm1559_vm3, %v9132_v20, -inf  ;;  %v1392_v36 = vmul.f32 0.2, %v1264_v50  ;;  %vm1328_vm0 = vcmp.ge.f32.partialorder %v1264_v50, 0.0  ;;  %vm1324_vm2 = vcmp.ge.f32.partialorder %v1260_v7, 0.0 }
 0x25f   :  { %v1396_v58 = vmul.f32 0.2, %v1268_v5  ;;  %vm1332_vm4 = vcmp.ge.f32.partialorder %v1268_v5, 0.0 }
 0x261   :  { %1585 = vmax.xlane.f32.xlu2 %v1584_v49  ;;  %v916_v15 = vpop.permute.xlu1 %915  ;;  %v1372_v49 = vmul.f32 0.2, %v1244_v0 }
 0x262   :  { %v9124_v16 = vpop.permute.xlu0 %935  ;;  %v1241_v38 = vadd.f32 %v9099_v63, %v916_v15 }
 0x263   :  { %1621 = vmax.xlane.f32.xlu1 %v1620_v57  ;;  %v956_v57 = vpop.permute.xlu2 %955 }
 0x264   :  { %v1249_v15 = vadd.f32 %v9090_v29, %v956_v57  ;;  %v1369_v18 = vmul.f32 0.2, %v1241_v38  ;;  %vm1305_vm5 = vcmp.ge.f32.partialorder %v1241_v38, 0.0 }
 0x266   :  { %v1377_v57 = vmul.f32 0.2, %v1249_v15  ;;  %vm1313_vm6 = vcmp.ge.f32.partialorder %v1249_v15, 0.0 }
 0x269   :  { %1573 = vmax.xlane.f32.xlu2 %v1572_v34  ;;  %v976_v1 = vpop.permute.xlu1 %975  ;;  %v1599_v34 = vsel %vm1559_vm3, %v9157_v32, -inf }
 0x26a   :  { %v9149_v42 = vpop.permute.xlu0 %995  ;;  %1561 = vmax.xlane.f32.xlu0 %v1560_v23  ;;  %v1436_v23 = vsel %vm1308_vm14, %v1244_v0, %v1372_v49  ;;  %v1456_v0 = vsel %vm1328_vm0, %v1264_v50, %v1392_v36 }
 0x26b   :  { %1588 = vmax.xlane.f32.xlu1 %v1587_v22  ;;  %v9166_v35 = vadd.f32 %v1436_v23, %v9138_v56  ;;  %v1448_v22 = vsel %vm1320_vm15, %v1256_v61, %v1384_v31  ;;  %v9171_v49 = vpop.permute.xlu2 %1015  ;;  %v9179_v23 = vadd.f32 %v1456_v0, %v9138_v56  ;;  %v1452_v61 = vsel %vm1324_vm2, %v1260_v7, %v1388_v30  ;;  %v9197_v30 = vld [vmem:[%s12436_s26 + $0x10] sm:$0xff] }
 0x26c   :  { %v9176_v26 = vadd.f32 %v1448_v22, %v9138_v56  ;;  %v9187_v36 = vadd.f32 %v1452_v61, %v9138_v56  ;;  %v1245_v22 = vadd.f32 %v9103_v55, %v9124_v16  ;;  %v1253_v61 = vadd.f32 %v9064_v44, %v976_v1 }
 0x26d   :  { %v1575_v41 = vsel %vm1559_vm3, %v9166_v35, -inf  ;;  %12443 = vst [vmem:[#allocation22_spill] sm:$0xff] %v9179_v23  ;;  %v1635_v31 = vsel %vm1559_vm3, %v9179_v23, -inf }
 0x26e   :  { %12442 = vst [vmem:[#allocation21_spill] sm:$0xff] %v9176_v26  ;;  %v1611_v50 = vsel %vm1559_vm3, %v9176_v26, -inf  ;;  %v1373_v16 = vmul.f32 0.2, %v1245_v22  ;;  %vm1309_vm7 = vcmp.ge.f32.partialorder %v1245_v22, 0.0  ;;  %vm1317_vm9 = vcmp.ge.f32.partialorder %v1253_v61, 0.0 }
 0x26f   :  { %12444 = vst [vmem:[#allocation23_spill] sm:$0xff] %v9187_v36  ;;  %v1381_v23 = vmul.f32 0.2, %v1253_v61 }
 0x271   :  { %1600 = vmax.xlane.f32.xlu2 %v1599_v34  ;;  %v1460_v34 = vsel %vm1332_vm4, %v1268_v5, %v1396_v58  ;;  %v1623_v5 = vsel %vm1559_vm3, %v9187_v36, -inf }
 0x272   :  { %v9169_v25 = vpop.permute.xlu0 %1055  ;;  %1564 = vmax.xlane.f32.xlu0 %v1563_v45  ;;  %v1036_v45 = vpop.permute.xlu1 %1035  ;;  %v9192_v7 = vadd.f32 %v1460_v34, %v9138_v56 }
 0x273   :  { %1576 = vmax.xlane.f32.xlu1 %v1575_v41  ;;  %v1433_v41 = vsel %vm1305_vm5, %v1241_v38, %v1369_v18  ;;  %v1441_v18 = vsel %vm1313_vm6, %v1249_v15, %v1377_v57  ;;  %v941_v38 = vpop.permute.xlu2 %940 }
 0x274   :  { %12445 = vst [vmem:[#allocation24_spill] sm:$0xff] %v9192_v7  ;;  %v9202_v58 = vadd.f32 %v1433_v41, %v9197_v30  ;;  %v1647_v34 = vsel %vm1559_vm3, %v9192_v7, -inf  ;;  %v9211_v41 = vadd.f32 %v1441_v18, %v9197_v30  ;;  %v1246_v1 = vadd.f32 %v9103_v55, %v941_v38 }
 0x276   :  { %v1566_v36 = vsel %vm1559_vm3, %v9202_v58, -inf  ;;  %v1590_v18 = vsel %vm1559_vm3, %v9211_v41, -inf  ;;  %vm1310_vm10 = vcmp.ge.f32.partialorder %v1246_v1, 0.0 }
 0x279   :  { %1636 = vmax.xlane.f32.xlu2 %v1635_v31 }
 0x27a   :  { %v921_v0 = vpop.permute.xlu0 %920  ;;  %1612 = vmax.xlane.f32.xlu0 %v1611_v50  ;;  %v961_v50 = vpop.permute.xlu1 %960 }
 0x27b   :  { %1624 = vmax.xlane.f32.xlu1 %v1623_v5  ;;  %v1250_v31 = vadd.f32 %v9090_v29, %v961_v50  ;;  %v1242_v15 = vadd.f32 %v9099_v63, %v921_v0  ;;  %v1437_v29 = vsel %vm1309_vm7, %v1245_v22, %v1373_v16  ;;  %v9218_v50 = vld [vmem:[%s12436_s26 + $0x18] sm:$0xff]  ;;  %v1374_v63 = vmul.f32 0.2, %v1246_v1 }
 0x27c   :  { %v9226_v55 = vadd.f32 %v1437_v29, %v9197_v30  ;;  %v1269_v0 = vadd.f32 %v9086_v14, %v9169_v25 }
 0x27d   :  { %v1378_v26 = vmul.f32 0.2, %v1250_v31  ;;  %vm1314_vm8 = vcmp.ge.f32.partialorder %v1250_v31, 0.0  ;;  %vm1306_vm11 = vcmp.ge.f32.partialorder %v1242_v15, 0.0 }
 0x27e   :  { %12446 = vst [vmem:[#allocation25_spill] sm:$0xff] %v9226_v55  ;;  %v1578_v38 = vsel %vm1559_vm3, %v9226_v55, -inf  ;;  %vm1333_vm13 = vcmp.ge.f32.partialorder %v1269_v0, 0.0 }
 0x27f   :  { %v1442_v5 = vsel %vm1314_vm8, %v1250_v31, %v1378_v26  ;;  %v1445_v26 = vsel %vm1317_vm9, %v1253_v61, %v1381_v23  ;;  %v1397_v61 = vmul.f32 0.2, %v1269_v0 }
 0x280   :  { %v9223_v7 = vadd.f32 %v1442_v5, %v9218_v50  ;;  %v9236_v31 = vadd.f32 %v1445_v26, %v9197_v30 }
 0x281   :  { %1567 = vmax.xlane.f32.xlu2 %v1566_v36  ;;  %v1370_v36 = vmul.f32 0.2, %v1242_v15 }
 0x282   :  { %1648 = vmax.xlane.f32.xlu0 %v1647_v34  ;;  %v981_v57 = vpop.permute.xlu0 %980  ;;  %v1593_v16 = vsel %vm1559_vm3, %v9223_v7, -inf  ;;  %v1265_v34 = vadd.f32 %v9067_v8, %v1036_v45  ;;  %v1602_v25 = vsel %vm1559_vm3, %v9236_v31, -inf  ;;  %v1257_v45 = vadd.f32 %v9077_v53, %v9149_v42 }
 0x283   :  { %v1254_v22 = vadd.f32 %v9064_v44, %v981_v57  ;;  %1591 = vmax.xlane.f32.xlu1 %v1590_v18  ;;  %v1438_v44 = vsel %vm1310_vm10, %v1246_v1, %v1374_v63  ;;  %v1434_v23 = vsel %vm1306_vm11, %v1242_v15, %v1370_v36  ;;  %v1001_v57 = vpop.permute.xlu2 %1000  ;;  %v1021_v1 = vpop.permute.xlu1 %1020 }
 0x284   :  { %v9242_v5 = vadd.f32 %v1438_v44, %v9218_v50  ;;  %v9245_v18 = vadd.f32 %v1434_v23, %v9218_v50  ;;  %v1393_v26 = vmul.f32 0.2, %v1265_v34  ;;  %vm1329_vm14 = vcmp.ge.f32.partialorder %v1265_v34, 0.0 }
 0x285   :  { %v1382_v29 = vmul.f32 0.2, %v1254_v22  ;;  %vm1318_vm12 = vcmp.ge.f32.partialorder %v1254_v22, 0.0  ;;  %v1385_v44 = vmul.f32 0.2, %v1257_v45  ;;  %v1258_v23 = vadd.f32 %v9077_v53, %v1001_v57 }
 0x286   :  { %v1581_v15 = vsel %vm1559_vm3, %v9242_v5, -inf  ;;  %v1569_v63 = vsel %vm1559_vm3, %v9245_v18, -inf  ;;  %v1262_v42 = vadd.f32 %v9097_v52, %v1021_v1  ;;  %vm1321_vm15 = vcmp.ge.f32.partialorder %v1257_v45, 0.0 }
 0x287   :  { %v1449_v57 = vsel %vm1321_vm15, %v1257_v45, %v1385_v44  ;;  %vm1322_vm0 = vcmp.ge.f32.partialorder %v1258_v23, 0.0 }
 0x288   :  { %v1390_v53 = vmul.f32 0.2, %v1262_v42  ;;  %vm1326_vm2 = vcmp.ge.f32.partialorder %v1262_v42, 0.0  ;;  %v9273_v1 = vadd.f32 %v1449_v57, %v9197_v30 }
 0x289   :  { %1579 = vmax.xlane.f32.xlu2 %v1578_v38  ;;  %v1461_v38 = vsel %vm1333_vm13, %v1269_v0, %v1397_v61  ;;  %v1261_v0 = vadd.f32 %v9097_v52, %v9171_v49  ;;  %v1386_v61 = vmul.f32 0.2, %v1258_v23 }
 0x28a   :  { %1594 = vmax.xlane.f32.xlu0 %v1593_v16  ;;  %v1446_v16 = vsel %vm1318_vm12, %v1254_v22, %v1382_v29  ;;  %v1457_v22 = vsel %vm1329_vm14, %v1265_v34, %v1393_v26  ;;  %v9264_v55 = vadd.f32 %v1461_v38, %v9197_v30  ;;  %12448 = vst [vmem:[#allocation27_spill] sm:$0xff] %v9273_v1  ;;  %v1041_v45 = vpop.permute.xlu0 %1040  ;;  %v1614_v38 = vsel %vm1559_vm3, %v9273_v1, -inf }
 0x28b   :  { %1603 = vmax.xlane.f32.xlu1 %v1602_v25  ;;  %v9254_v36 = vadd.f32 %v1446_v16, %v9218_v50  ;;  %v9261_v25 = vadd.f32 %v1457_v22, %v9197_v30  ;;  %v1061_v16 = vpop.permute.xlu2 %1060  ;;  %v1450_v52 = vsel %vm1322_vm0, %v1258_v23, %v1386_v61  ;;  %v1454_v49 = vsel %vm1326_vm2, %v1262_v42, %v1390_v53 }
 0x28c   :  { %12447 = vst [vmem:[#allocation26_spill] sm:$0xff] %v9264_v55  ;;  %v1650_v26 = vsel %vm1559_vm3, %v9264_v55, -inf  ;;  %vm1325_vm4 = vcmp.ge.f32.partialorder %v1261_v0, 0.0  ;;  %v9279_v44 = vadd.f32 %v1450_v52, %v9218_v50  ;;  %v9282_v22 = vadd.f32 %v1454_v49, %v9218_v50  ;;  %v500_v55 = vpop.f32.mrf.mxu1 }
 0x28d   :  { %v1605_v29 = vsel %vm1559_vm3, %v9254_v36, -inf  ;;  %v1638_v34 = vsel %vm1559_vm3, %v9261_v25, -inf  ;;  %v1266_v57 = vadd.f32 %v9067_v8, %v1041_v45  ;;  %v480_v45 = vpop.f32.mrf.mxu3 }
 0x28e   :  { %12449 = vst [vmem:[#allocation28_spill] sm:$0xff] %v9279_v44  ;;  %v1617_v23 = vsel %vm1559_vm3, %v9279_v44, -inf  ;;  %v1629_v42 = vsel %vm1559_vm3, %v9282_v22, -inf }
 0x28f   :  { %12450 = vst [vmem:[#allocation29_spill] sm:$0xff] %v9282_v22  ;;  %v1394_v53 = vmul.f32 0.2, %v1266_v57  ;;  %vm1330_vm6 = vcmp.ge.f32.partialorder %v1266_v57, 0.0 }
 0x291   :  { %1570 = vmax.xlane.f32.xlu2 %v1569_v63  ;;  %v1270_v63 = vadd.f32 %v9086_v14, %v1061_v16  ;;  %v520_v16 = vpop.f32.mrf.mxu2  ;;  %v1458_v49 = vsel %vm1330_vm6, %v1266_v57, %v1394_v53 }
 0x292   :  { %1582 = vmax.xlane.f32.xlu0 %v1581_v15  ;;  %v1389_v15 = vmul.f32 0.2, %v1261_v0 }
 0x293   :  { %1606 = vmax.xlane.f32.xlu1 %v1605_v29  ;;  %v1398_v29 = vmul.f32 0.2, %v1270_v63  ;;  %vm1334_vm5 = vcmp.ge.f32.partialorder %v1270_v63, 0.0  ;;  %v1106_v8 = vpop.permute.xlu2 %1105 }
 0x294   :  { %v1453_v14 = vsel %vm1325_vm4, %v1261_v0, %v1389_v15 }
 0x295   :  { %v9290_v61 = vadd.f32 %v1453_v14, %v9197_v30  ;;  %v540_v53 = vpop.f32.mrf.mxu3 }
 0x297   :  { %12451 = vst [vmem:[#allocation30_spill] sm:$0xff] %v9290_v61  ;;  %v1626_v0 = vsel %vm1559_vm3, %v9290_v61, -inf }
 0x299   :  { %1651 = vmax.xlane.f32.xlu2 %v1650_v26  ;;  %v1462_v26 = vsel %vm1334_vm5, %v1270_v63, %v1398_v29  ;;  %v9305_v63 = vperm.slane %v480_v45, 0 }
 0x29a   :  { %1639 = vmax.xlane.f32.xlu0 %v1638_v34  ;;  %v9292_v34 = vperm.slane %v520_v16, 0  ;;  %v9297_v15 = vadd.f32 %v1462_v26, %v9218_v50  ;;  %v9303_v16 = vadd.f32 %v1458_v49, %v9218_v50  ;;  %v9313_v49 = vperm.slane %v540_v53, 0 }
 0x29b   :  { %1615 = vmax.xlane.f32.xlu1 %v1614_v38  ;;  %v1086_v38 = vpop.permute.xlu0 %1085 }
 0x29c   :  { %12452 = vst [vmem:[#allocation31_spill] sm:$0xff] %v9297_v15  ;;  %v1279_v52 = vadd.f32 %v9292_v34, %v1106_v8  ;;  %v1653_v14 = vsel %vm1559_vm3, %v9297_v15, -inf }
 0x29d   :  { %12453 = vst [vmem:[#allocation32_spill] sm:$0xff] %v9303_v16 }
 0x29e   :  { %v1407_v29 = vmul.f32 0.2, %v1279_v52  ;;  %vm1343_vm7 = vcmp.ge.f32.partialorder %v1279_v52, 0.0 }
 0x2a0   :  { %v1471_v57 = vsel %vm1343_vm7, %v1279_v52, %v1407_v29  ;;  %v9323_v29 = vperm.slane %v500_v55, 0  ;;  %v9335_v55 = vpop.permute.xlu2 %1090 }
 0x2a1   :  { %1630 = vmax.xlane.f32.xlu2 %v1629_v42  ;;  %v1641_v42 = vsel %vm1559_vm3, %v9303_v16, -inf  ;;  %v9311_v8 = vadd.f32 %v1471_v57, %v9072_v51 }
 0x2a2   :  { %1618 = vmax.xlane.f32.xlu0 %v1617_v23  ;;  %v1066_v23 = vpop.permute.xlu1 %1065  ;;  %v1275_v53 = vadd.f32 %v9323_v29, %v1086_v38 }
 0x2a3   :  { %1627 = vmax.xlane.f32.xlu1 %v1626_v0  ;;  %v1271_v26 = vadd.f32 %v9305_v63, %v1066_v23  ;;  %12454 = vst [vmem:[#allocation33_spill] sm:$0xff] %v9311_v8  ;;  %v1126_v45 = vpop.permute.xlu0 %1125 }
 0x2a4   :  { %v1283_v15 = vadd.f32 %v9313_v49, %v1126_v45  ;;  %vm1339_vm10 = vcmp.ge.f32.partialorder %v1275_v53, 0.0 }
 0x2a5   :  { %v1399_v0 = vmul.f32 0.2, %v1271_v26  ;;  %vm1335_vm8 = vcmp.ge.f32.partialorder %v1271_v26, 0.0 }
 0x2a6   :  { %vm1347_vm9 = vcmp.ge.f32.partialorder %v1283_v15, 0.0 }
 0x2a7   :  { %v1463_v16 = vsel %vm1335_vm8, %v1271_v26, %v1399_v0 }
 0x2a8   :  { %v9321_v52 = vadd.f32 %v1463_v16, %v9072_v51  ;;  %v1403_v16 = vmul.f32 0.2, %v1275_v53 }
 0x2aa   :  { %1654 = vmax.xlane.f32.xlu0 %v1653_v14  ;;  %v1680_v14 = vsel %vm1559_vm3, %v9311_v8, -inf  ;;  %12456 = vst [vmem:[#allocation35_spill] sm:$0xff] %v9321_v52  ;;  %v1656_v57 = vsel %vm1559_vm3, %v9321_v52, -inf  ;;  %v1467_v52 = vsel %vm1339_vm10, %v1275_v53, %v1403_v16 }
 0x2ab   :  { %1642 = vmax.xlane.f32.xlu1 %v1641_v42  ;;  %v1411_v42 = vmul.f32 0.2, %v1283_v15  ;;  %v9328_v45 = vpop.permute.xlu0 %1070 }
 0x2ad   :  { %v1475_v8 = vsel %vm1347_vm9, %v1283_v15, %v1411_v42  ;;  %v9342_v15 = vadd.f32 %v1467_v52, %v9072_v51  ;;  %v9346_v42 = vpop.permute.xlu2 %1075 }
 0x2ae   :  { %v9333_v0 = vadd.f32 %v1475_v8, %v9072_v51  ;;  %12459 = vst [vmem:[#allocation38_spill] sm:$0xff] %v9346_v42 }
 0x2af   :  { %12458 = vst [vmem:[#allocation37_spill] sm:$0xff] %v9342_v15  ;;  %v1668_v8 = vsel %vm1559_vm3, %v9342_v15, -inf }
 0x2b0   :  { %12457 = vst [vmem:[#allocation36_spill] sm:$0xff] %v9333_v0 }
 0x2b3   :  { %1681 = vmax.xlane.f32.xlu1 %v1680_v14  ;;  %v1692_v14 = vsel %vm1559_vm3, %v9333_v0, -inf  ;;  %v9344_v38 = vpop.permute.xlu0 %1115 }
 0x2b6   :  { %v9318_v23 = vpop.xlane.xlu1 %1597 }
 0x2b7   :  { %12455 = vst [vmem:[#allocation34_spill] sm:$0xff] %v9318_v23 }
 0x2bb   :  { %1657 = vmax.xlane.f32.xlu1 %v1656_v57  ;;  %v9352_v1 = vpop.permute.xlu0 %1100 }
 0x2be   :  { %v9330_v26 = vpop.xlane.xlu1 %1633 }
 0x2c3   :  { %1693 = vmax.xlane.f32.xlu1 %v1692_v14 }
 0x2c6   :  { %v9339_v61 = vpop.xlane.xlu1 %1609 }
 0x2cb   :  { %1669 = vmax.xlane.f32.xlu1 %v1668_v8 }
 0x2ce   :  { %v9350_v57 = vpop.xlane.xlu1 %1645 }
 0x2cf   :  { %12460 = vst [vmem:[#allocation39_spill] sm:$0xff] %v9350_v57 }
 0x2d4   :  { %v1586_v23 = vpop.xlane.xlu2 %1585 }
 0x2d5   :  { %v1760_v53 = vsub.f32 %v9114_v2, %v1586_v23 }
 0x2d6   :  { %v9355_v14 = vpop.xlane.xlu1 %1621 }
 0x2d7   :  { %v1832_v16 = vmul.f32 1.442695, %v1760_v53 }
 0x2d9   :  { %7720 = vpow2.f32 %v1832_v16 }
 0x2dc   :  { %v1574_v52 = vpop.xlane.xlu2 %1573 }
 0x2dd   :  { %v1562_v51 = vpop.xlane.xlu0 %1561  ;;  %v1756_v42 = vsub.f32 %v9132_v20, %v1574_v52 }
 0x2de   :  { %v1752_v0 = vsub.f32 %v9129_v37, %v1562_v51  ;;  %v1589_v57 = vpop.xlane.xlu1 %1588 }
 0x2df   :  { %v9359_v22 = vpop.eup %7720  ;;  %v1824_v15 = vmul.f32 1.442695, %v1756_v42  ;;  %v1761_v2 = vsub.f32 %v9145_v54, %v1589_v57 }
 0x2e0   :  { %v1816_v8 = vmul.f32 1.442695, %v1752_v0  ;;  %v1968_v44 = vsel %vm1559_vm3, %v9359_v22, 0.0 }
 0x2e1   :  { %1969 = vadd.xlane.f32.xlu2 %v1968_v44  ;;  %v1834_v23 = vmul.f32 1.442695, %v1761_v2 }
 0x2e2   :  { %7722 = vpow2.f32 %v1816_v8 }
 0x2e3   :  { %7724 = vpow2.f32 %v1824_v15 }
 0x2e4   :  { %v1601_v16 = vpop.xlane.xlu2 %1600  ;;  %7726 = vpow2.f32 %v1834_v23 }
 0x2e5   :  { %v1565_v53 = vpop.xlane.xlu0 %1564  ;;  %v1765_v37 = vsub.f32 %v9157_v32, %v1601_v16 }
 0x2e6   :  { %v1753_v0 = vsub.f32 %v9154_v24, %v1565_v53  ;;  %v1577_v42 = vpop.xlane.xlu1 %1576 }
 0x2e7   :  { %v1842_v20 = vmul.f32 1.442695, %v1765_v37  ;;  %v1757_v54 = vsub.f32 %v9166_v35, %v1577_v42 }
 0x2e8   :  { %v9365_v51 = vpop.eup %7722  ;;  %v1818_v15 = vmul.f32 1.442695, %v1753_v0 }
 0x2e9   :  { %v9367_v52 = vpop.eup %7724  ;;  %v1944_v8 = vsel %vm1559_vm3, %v9365_v51, 0.0  ;;  %7728 = vpow2.f32 %v1842_v20  ;;  %v1826_v32 = vmul.f32 1.442695, %v1757_v54 }
 0x2ea   :  { %v1956_v44 = vsel %vm1559_vm3, %v9367_v52, 0.0  ;;  %1945 = vadd.xlane.f32.xlu2 %v1944_v8  ;;  %v9379_v24 = vpop.eup %7726 }
 0x2eb   :  { %1957 = vadd.xlane.f32.xlu0 %v1956_v44  ;;  %7730 = vpow2.f32 %v1826_v32  ;;  %v1971_v35 = vsel %vm1559_vm3, %v9379_v24, 0.0 }
 0x2ec   :  { %v9377_v2 = vpop.xlane.xlu2 %1636  ;;  %7732 = vpow2.f32 %v1818_v15 }
 0x2ed   :  { %v9375_v57 = vpop.xlane.xlu0 %1612  ;;  %12462 = vst [vmem:[#allocation41_spill] sm:$0xff] %v9377_v2 }
 0x2ee   :  { %12461 = vst [vmem:[#allocation40_spill] sm:$0xff] %v9375_v57  ;;  %v9383_v53 = vpop.xlane.xlu1 %1624 }
 0x2ef   :  { %v9381_v23 = vpop.eup %7728  ;;  %12463 = vst [vmem:[#allocation42_spill] sm:$0xff] %v9383_v53 }
 0x2f0   :  { %v1983_v16 = vsel %vm1559_vm3, %v9381_v23, 0.0 }
 0x2f1   :  { %v9389_v37 = vpop.eup %7730 }
 0x2f2   :  { %1984 = vadd.xlane.f32.xlu2 %v1983_v16  ;;  %v1959_v0 = vsel %vm1559_vm3, %v9389_v37, 0.0  ;;  %v9396_v54 = vpop.eup %7732 }
 0x2f3   :  { %1972 = vadd.xlane.f32.xlu0 %v1971_v35  ;;  %1960 = vadd.xlane.f32.xlu1 %v1959_v0  ;;  %v1947_v35 = vsel %vm1559_vm3, %v9396_v54, 0.0 }
 0x2f4   :  { %v1568_v42 = vpop.xlane.xlu2 %1567 }
 0x2f5   :  { %v9391_v20 = vpop.xlane.xlu0 %1648  ;;  %v1754_v8 = vsub.f32 %v9202_v58, %v1568_v42 }
 0x2f6   :  { %v1592_v32 = vpop.xlane.xlu1 %1591 }
 0x2f7   :  { %v1820_v44 = vmul.f32 1.442695, %v1754_v8  ;;  %v1762_v15 = vsub.f32 %v9211_v41, %v1592_v32 }
 0x2f9   :  { %7734 = vpow2.f32 %v1820_v44  ;;  %v1836_v16 = vmul.f32 1.442695, %v1762_v15 }
 0x2fb   :  { %1948 = vadd.xlane.f32.xlu0 %v1947_v35  ;;  %7736 = vpow2.f32 %v1836_v16 }
 0x2fc   :  { %v9427_v35 = vpop.xlane.xlu2 %1579 }
 0x2fd   :  { %v1595_v53 = vpop.xlane.xlu0 %1594 }
 0x2fe   :  { %v1763_v57 = vsub.f32 %v9223_v7, %v1595_v53  ;;  %v1604_v58 = vpop.xlane.xlu1 %1603 }
 0x2ff   :  { %v9402_v0 = vpop.eup %7734  ;;  %v1766_v42 = vsub.f32 %v9236_v31, %v1604_v58 }
 0x300   :  { %v1838_v2 = vmul.f32 1.442695, %v1763_v57  ;;  %v1950_v41 = vsel %vm1559_vm3, %v9402_v0, 0.0 }
 0x301   :  { %1951 = vadd.xlane.f32.xlu2 %v1950_v41  ;;  %v9407_v8 = vpop.eup %7736  ;;  %v1844_v44 = vmul.f32 1.442695, %v1766_v42 }
 0x302   :  { %7738 = vpow2.f32 %v1838_v2  ;;  %v1974_v32 = vsel %vm1559_vm3, %v9407_v8, 0.0 }
 0x303   :  { %7740 = vpow2.f32 %v1844_v44  ;;  %1975 = vadd.xlane.f32.xlu1 %v1974_v32 }
 0x305   :  { %v9434_v58 = vpop.xlane.xlu0 %1582 }
 0x306   :  { %v9419_v53 = vpop.xlane.xlu1 %1606 }
 0x308   :  { %v9411_v7 = vpop.eup %7738 }
 0x309   :  { %v1977_v57 = vsel %vm1559_vm3, %v9411_v7, 0.0  ;;  %v9415_v2 = vpop.eup %7740 }
 0x30a   :  { %1978 = vadd.xlane.f32.xlu0 %v1977_v57  ;;  %v1986_v31 = vsel %vm1559_vm3, %v9415_v2, 0.0 }
 0x30b   :  { %1987 = vadd.xlane.f32.xlu1 %v1986_v31 }
 0x30e   :  { %v9423_v15 = vpop.xlane.xlu1 %1615 }
 0x316   :  { %v9429_v16 = vpop.xlane.xlu1 %1627 }
 0x319   :  { %1130 = vperm.xlu2 %7689, %v9030_v6   ;;  %v9436_v6 = vpop.xlane.xlu2 %1570 }
 0x321   :  { %1135 = vperm.xlu2 %7689, %v9044_v17   ;;  %v9438_v17 = vpop.xlane.xlu1 %1642 }
 0x324   :  { %1080 = vperm.xlu1 %7688, %v9050_v21   ;;  %v9444_v21 = vpop.xlane.xlu2 %1651 }
 0x329   :  { %1185 = vperm.xlu2 %7689, %v9018_v39   ;;  %v9442_v39 = vpop.xlane.xlu0 %1639  ;;  %v9446_v42 = vpop.xlane.xlu1 %1681 }
 0x32c   :  { %1095 = vperm.xlu1 %7688, %v9034_v9  }
 0x331   :  { %1165 = vperm.xlu2 %7689, %v9022_v40   ;;  %v9451_v40 = vpop.xlane.xlu0 %1618  ;;  %v9455_v9 = vpop.xlane.xlu1 %1657 }
 0x334   :  { %1110 = vperm.xlu1 %7688, %v9024_v48   ;;  %v9453_v48 = vpop.xlane.xlu2 %1630 }
 0x339   :  { %1170 = vperm.xlu2 %7689, %v9028_v60   ;;  %v9460_v41 = vpop.xlane.xlu1 %1693 }
 0x33c   :  { %1120 = vperm.xlu1 %7688, %v9052_v46   ;;  %v9458_v46 = vpop.xlane.xlu0 %1654 }
 0x341   :  { %1155 = vperm.xlu2 %7689, %v9040_v13   ;;  %v9471_v57 = vpop.xlane.xlu1 %1669 }
 0x344   :  { %1145 = vperm.xlu1 %7688, %v9012_v4   ;;  %v7707_v4 = vld [vmem:[%s12358_s12 + $0x6] ss:$0 sm:$0xff] }
 0x345   :  { %v2313_v31 = vmul.f32 %v7707_v4, %v8524_v59 }
 0x349   :  { %1200 = vperm.xlu2 %7689, %v9060_v28  }
 0x34c   :  { %1190 = vperm.xlu1 %7688, %v9036_v10   ;;  %v2315_v10 = vmul.f32 %v7707_v4, %v8556_v11  ;;  %v2312_v11 = vmul.f32 %v7707_v4, %v8494_v47  ;;  %v8237_v47 = vld [vmem:[%s12358_s12 + $0x1] ss:$0 sm:$0xff] }
 0x354   :  { %v1970_v60 = vpop.xlane.xlu2 %1969  ;;  %1210 = vperm.xlu1 %7688, %v9038_v12   ;;  %v2314_v12 = vmul.f32 %v7707_v4, %v8540_v3 }
 0x355   :  { %7742 = vrcp.f32 %v1970_v60 }
 0x35b   :  { %v7743_v13 = vpop.eup %7742 }
 0x35c   :  { %v2208_v28 = vmul.f32 %v7743_v13, %v9359_v22  ;;  %1175 = vperm.xlu1 %7688, %v9046_v19   ;;  %v1276_v22 = vadd.f32 %v9323_v29, %v9335_v55  ;;  %v2327_v55 = vmul.f32 %v8237_v47, %v8690_v43 }
 0x35d   :  { %v1946_v44 = vpop.xlane.xlu2 %1945 }
 0x35e   :  { %7744 = vrcp.f32 %v1946_v44  ;;  %v1958_v32 = vpop.xlane.xlu0 %1957  ;;  %7436 = vmatmul.msk.f32.vlgmr.msrb.gmra.mxu2 %vm1559_vm3, %v2208_v28  ;;  %vm1340_vm11 = vcmp.ge.f32.partialorder %v1276_v22, 0.0 }
 0x35f   :  { %7746 = vrcp.f32 %v1958_v32  ;;  %2622 = vmatpush.msrb.mxu2 %v2315_v10  ;;  %v8236_v32 = vld [vmem:[%s12358_s12] ss:$0 sm:$0xff]  ;;  %v1767_v10 = vsub.f32 %v9254_v36, %v9419_v53  ;;  %v12465_v53 = vld [vmem:[#allocation14_spill] sm:$0xff] }
 0x360   :  { %v2323_v59 = vmul.f32 %v8236_v32, %v8690_v43 }
 0x361   :  { %2623 = vmatpush.msrb.mxu2 %v2314_v12  ;;  %v2321_v12 = vmul.f32 %v8236_v32, %v8621_v27 }
 0x363   :  { %2624 = vmatpush.msrb.mxu2 %v2313_v31  ;;  %v2325_v31 = vmul.f32 %v8237_v47, %v8621_v27 }
 0x364   :  { %v7745_v60 = vpop.eup %7744  ;;  %1160 = vperm.xlu1 %7688, %v9056_v62   ;;  %v2326_v62 = vmul.f32 %v8237_v47, %v8648_v33 }
 0x365   :  { %v7747_v13 = vpop.eup %7746  ;;  %v2200_v19 = vmul.f32 %v7745_v60, %v9365_v51  ;;  %2625 = vmatpush.msrb.mxu2 %v2312_v11  ;;  %v1985_v44 = vpop.xlane.xlu2 %1984  ;;  %v1404_v51 = vmul.f32 0.2, %v1276_v22  ;;  %v12464_v60 = vld [vmem:[#allocation8_spill] sm:$0xff] }
 0x366   :  { %v2204_v28 = vmul.f32 %v7747_v13, %v9367_v52  ;;  %v1973_v3 = vpop.xlane.xlu0 %1972  ;;  %7748 = vrcp.f32 %v1985_v44  ;;  %v2322_v52 = vmul.f32 %v8236_v32, %v8648_v33  ;;  %v1961_v4 = vpop.xlane.xlu1 %1960  ;;  %v2320_v11 = vmul.f32 %v8236_v32, %v12464_v60 }
 0x367   :  { %7428 = vmatmul.msk.f32.vlgmr.msra.gmra.mxu0 %vm1559_vm3, %v2200_v19  ;;  %7750 = vrcp.f32 %v1973_v3  ;;  %v1468_v13 = vsel %vm1340_vm11, %v1276_v22, %v1404_v51  ;;  %v1846_v3 = vmul.f32 1.442695, %v1767_v10  ;;  %v8238_v22 = vld [vmem:[%s12358_s12 + $0x3] ss:$0 sm:$0xff] }
 0x368   :  { %7432 = vmatmul.msk.f32.vlgmr.msrb.gmra.mxu1 %vm1559_vm3, %v2204_v28  ;;  %2704 = vmatpush.msra.mxu0 %v2323_v59  ;;  %7752 = vrcp.f32 %v1961_v4  ;;  %v2324_v28 = vmul.f32 %v8237_v47, %v12464_v60  ;;  %v2335_v32 = vmul.f32 %v8238_v22, %v8690_v43  ;;  %v9506_v47 = vadd.f32 %v1468_v13, %v9138_v56 }
 0x369   :  { %2745 = vmatpush.msrb.mxu1 %v2327_v55  ;;  %v2333_v4 = vmul.f32 %v8238_v22, %v8621_v27 }
 0x36a   :  { %2705 = vmatpush.msra.mxu0 %v2322_v52  ;;  %v2334_v52 = vmul.f32 %v8238_v22, %v8648_v33 }
 0x36b   :  { %2746 = vmatpush.msrb.mxu1 %v2326_v62  ;;  %v1281_v62 = vadd.f32 %v9292_v34, %v9344_v38 }
 0x36c   :  { %2706 = vmatpush.msra.mxu0 %v2321_v12  ;;  %v7749_v19 = vpop.eup %7748  ;;  %1180 = vperm.xlu1 %7688, %v12465_v53   ;;  %v2332_v12 = vmul.f32 %v8238_v22, %v12464_v60 }
 0x36d   :  { %2747 = vmatpush.msrb.mxu1 %v2325_v31  ;;  %v7751_v44 = vpop.eup %7750  ;;  %v2213_v59 = vmul.f32 %v7749_v19, %v9381_v23  ;;  %v1409_v13 = vmul.f32 0.2, %v1281_v62  ;;  %vm1345_vm12 = vcmp.ge.f32.partialorder %v1281_v62, 0.0  ;;  %v1759_v19 = vsub.f32 %v9242_v5, %v9434_v58 }
 0x36e   :  { %2707 = vmatpush.msra.mxu0 %v2320_v11  ;;  %v1949_v36 = vpop.xlane.xlu0 %1948  ;;  %v2209_v55 = vmul.f32 %v7751_v44, %v9379_v24  ;;  %v7753_v51 = vpop.eup %7752  ;;  %v1671_v24 = vsel %vm1559_vm3, %v9506_v47, -inf }
 0x36f   :  { %2748 = vmatpush.msrb.mxu1 %v2324_v28  ;;  %7754 = vrcp.f32 %v1949_v36  ;;  %7441 = vmatmul.msk.f32.vlgmr.msrb.gmra.mxu3 %vm1559_vm3, %v2213_v59  ;;  %v2205_v23 = vmul.f32 %v7753_v51, %v9389_v37  ;;  %v1473_v44 = vsel %vm1345_vm12, %v1281_v62, %v1409_v13 }
 0x370   :  { %7437 = vmatmul.msk.f32.gmra.mxu2 %vm1559_vm3, %v2209_v55  ;;  %2827 = vmatpush.msrb.mxu3 %v2335_v32  ;;  %7756 = vpow2.f32 %v1846_v3  ;;  %v9531_v55 = vadd.f32 %v1473_v44, %v9197_v30 }
 0x371   :  { %7433 = vmatmul.msk.f32.gmra.mxu1 %vm1559_vm3, %v2205_v23 }
 0x372   :  { %2828 = vmatpush.msrb.mxu3 %v2334_v52  ;;  %1672 = vmax.xlane.f32.xlu2 %v1671_v24  ;;  %v1686_v32 = vsel %vm1559_vm3, %v9531_v55, -inf  ;;  %v1755_v52 = vsub.f32 %v9245_v18, %v9436_v6 }
 0x374   :  { %2829 = vmatpush.msrb.mxu3 %v2333_v4  ;;  %v1952_v37 = vpop.xlane.xlu2 %1951 }
 0x375   :  { %v7755_v10 = vpop.eup %7754  ;;  %7758 = vrcp.f32 %v1952_v37 }
 0x376   :  { %v2201_v31 = vmul.f32 %v7755_v10, %v9396_v54  ;;  %2830 = vmatpush.msrb.mxu3 %v2332_v12  ;;  %v9520_v11 = vpop.eup %7756  ;;  %v1976_v38 = vpop.xlane.xlu1 %1975  ;;  %v1830_v54 = vmul.f32 1.442695, %v1759_v19  ;;  %v12466_v12 = vld [vmem:[#allocation18_spill] sm:$0xff]  ;;  %v12467_v19 = vld [vmem:[#allocation17_spill] sm:$0xff] }
 0x377   :  { %7760 = vrcp.f32 %v1976_v38  ;;  %v1989_v28 = vsel %vm1559_vm3, %v9520_v11, 0.0  ;;  %v1768_v37 = vsub.f32 %v12466_v12, %v9339_v61  ;;  %v1776_v38 = vsub.f32 %v12467_v19, %v9330_v26  ;;  %v12468_v61 = vld [vmem:[#allocation20_spill] sm:$0xff] }
 0x378   :  { %7429 = vmatmul.msk.f32.gmra.mxu0 %vm1559_vm3, %v2201_v31  ;;  %v1822_v31 = vmul.f32 1.442695, %v1755_v52 }
 0x379   :  { %v1848_v13 = vmul.f32 1.442695, %v1768_v37 }
 0x37a   :  { %1990 = vadd.xlane.f32.xlu2 %v1989_v28  ;;  %v1864_v28 = vmul.f32 1.442695, %v1776_v38 }
 0x37b   :  { %v7759_v3 = vpop.eup %7758 }
 0x37c   :  { %v9527_v36 = vpop.permute.xlu2 %1130  ;;  %v2202_v53 = vmul.f32 %v7759_v3, %v9402_v0 }
 0x37d   :  { %v1979_v59 = vpop.xlane.xlu0 %1978  ;;  %v7761_v22 = vpop.eup %7760 }
 0x37e   :  { %7762 = vrcp.f32 %v1979_v59  ;;  %v1988_v5 = vpop.xlane.xlu1 %1987  ;;  %v2210_v58 = vmul.f32 %v7761_v22, %v9407_v8 }
 0x37f   :  { %7764 = vpow2.f32 %v1830_v54 }
 0x380   :  { %7430 = vmatmul.msk.f32.gmra.mxu0 %vm1559_vm3, %v2202_v53  ;;  %7766 = vrcp.f32 %v1988_v5  ;;  %7438 = vmatmul.msk.f32.gmra.mxu2 %vm1559_vm3, %v2210_v58  ;;  %v1278_v53 = vadd.f32 %v9323_v29, %v9352_v1 }
 0x381   :  { %7768 = vpow2.f32 %v1822_v31 }
 0x382   :  { %1687 = vmax.xlane.f32.xlu2 %v1686_v32  ;;  %7770 = vpow2.f32 %v1848_v13  ;;  %v1406_v58 = vmul.f32 0.2, %v1278_v53  ;;  %vm1342_vm14 = vcmp.ge.f32.partialorder %v1278_v53, 0.0 }
 0x383   :  { %7772 = vpow2.f32 %v1864_v28 }
 0x384   :  { %v7763_v51 = vpop.eup %7762  ;;  %v1136_v0 = vpop.permute.xlu2 %1135  ;;  %v1470_v1 = vsel %vm1342_vm14, %v1278_v53, %v1406_v58 }
 0x385   :  { %v9538_v23 = vpop.eup %7764  ;;  %v1285_v24 = vadd.f32 %v9313_v49, %v1136_v0  ;;  %v2211_v8 = vmul.f32 %v7763_v51, %v9411_v7  ;;  %v12469_v0 = vld [vmem:[#allocation24_spill] sm:$0xff] }
 0x386   :  { %v7767_v4 = vpop.eup %7766  ;;  %v1965_v18 = vsel %vm1559_vm3, %v9538_v23, 0.0  ;;  %v1781_v52 = vsub.f32 %v12469_v0, %v9391_v20 }
 0x387   :  { %vm1349_vm13 = vcmp.ge.f32.partialorder %v1285_v24, 0.0  ;;  %v1413_v62 = vmul.f32 0.2, %v1285_v24  ;;  %v2214_v10 = vmul.f32 %v7767_v4, %v9415_v2  ;;  %v1772_v2 = vsub.f32 %v12468_v61, %v9355_v14  ;;  %v9560_v3 = vpop.eup %7768 }
 0x388   :  { %7439 = vmatmul.msk.f32.gmra.mxu2 %vm1559_vm3, %v2211_v8  ;;  %v9562_v59 = vpop.eup %7770  ;;  %v1953_v26 = vsel %vm1559_vm3, %v9560_v3, 0.0  ;;  %v1874_v4 = vmul.f32 1.442695, %v1781_v52  ;;  %v12470_v8 = vld [vmem:[#allocation25_spill] sm:$0xff]  ;;  %v1272_v61 = vadd.f32 %v9305_v63, %v9328_v45 }
 0x389   :  { %7442 = vmatmul.msk.f32.gmra.mxu3 %vm1559_vm3, %v2214_v10  ;;  %v1477_v6 = vsel %vm1349_vm13, %v1285_v24, %v1413_v62  ;;  %v1856_v54 = vmul.f32 1.442695, %v1772_v2  ;;  %v1992_v14 = vsel %vm1559_vm3, %v9562_v59, 0.0  ;;  %v9572_v22 = vpop.eup %7772  ;;  %v9585_v62 = vadd.f32 %v1470_v1, %v9218_v50 }
 0x38a   :  { %1966 = vadd.xlane.f32.xlu2 %v1965_v18  ;;  %v9554_v7 = vadd.f32 %v1477_v6, %v9197_v30  ;;  %v2016_v32 = vsel %vm1559_vm3, %v9572_v22, 0.0  ;;  %v1758_v10 = vsub.f32 %v12470_v8, %v9427_v35  ;;  %vm1336_vm2 = vcmp.ge.f32.partialorder %v1272_v61, 0.0  ;;  %v9625_v8 = vld [vmem:[%s12436_s26 + $0x8] sm:$0xff] }
 0x38b   :  { %7774 = vpow2.f32 %v1856_v54  ;;  %v1677_v31 = vsel %vm1559_vm3, %v9585_v62, -inf }
 0x38c   :  { %v1698_v44 = vsel %vm1559_vm3, %v9554_v7, -inf  ;;  %7776 = vpow2.f32 %v1874_v4  ;;  %v1828_v20 = vmul.f32 1.442695, %v1758_v10  ;;  %v9606_v53 = vpop.permute.xlu2 %1185 }
 0x38e   :  { %7778 = vpow2.f32 %v1828_v20 }
 0x391   :  { %v9574_v5 = vpop.eup %7774 }
 0x392   :  { %1699 = vmax.xlane.f32.xlu2 %v1698_v44  ;;  %v2004_v24 = vsel %vm1559_vm3, %v9574_v5, 0.0  ;;  %v9595_v19 = vpop.eup %7776 }
 0x393   :  { %v2031_v28 = vsel %vm1559_vm3, %v9595_v19, 0.0 }
 0x394   :  { %v9604_v54 = vpop.eup %7778 }
 0x395   :  { %v1962_v52 = vsel %vm1559_vm3, %v9604_v54, 0.0 }
 0x396   :  { %v9566_v30 = vpop.permute.xlu1 %1080  ;;  %1954 = vadd.xlane.f32.xlu1 %v1953_v26  ;;  %v1400_v26 = vmul.f32 0.2, %v1272_v61 }
 0x39a   :  { %1993 = vadd.xlane.f32.xlu2 %v1992_v14 }
 0x39e   :  { %v9578_v51 = vpop.permute.xlu1 %1095  ;;  %2017 = vadd.xlane.f32.xlu1 %v2016_v32 }
 0x3a2   :  { %2005 = vadd.xlane.f32.xlu2 %v2004_v24  ;;  %v1284_v24 = vadd.f32 %v9313_v49, %v9527_v36  ;;  %v9633_v36 = vld [vmem:[%s12436_s26] sm:$0xff] }
 0x3a4   :  { %vm1348_vm5 = vcmp.ge.f32.partialorder %v1284_v24, 0.0 }
 0x3a6   :  { %v1111_v12 = vpop.permute.xlu1 %1110 }
 0x3a7   :  { %v1280_v37 = vadd.f32 %v9292_v34, %v1111_v12  ;;  %v1412_v12 = vmul.f32 0.2, %v1284_v24 }
 0x3a9   :  { %vm1344_vm15 = vcmp.ge.f32.partialorder %v1280_v37, 0.0  ;;  %v1408_v18 = vmul.f32 0.2, %v1280_v37 }
 0x3aa   :  { %1678 = vmax.xlane.f32.xlu2 %v1677_v31 }
 0x3ab   :  { %v1472_v6 = vsel %vm1344_vm15, %v1280_v37, %v1408_v18  ;;  %v9640_v18 = vpop.permute.xlu2 %1165 }
 0x3ac   :  { %v9593_v13 = vadd.f32 %v1472_v6, %v9138_v56  ;;  %v560_v56 = vpop.f32.mrf.mxu0 }
 0x3ad   :  { %v9613_v45 = vperm.slane %v560_v56, 0 }
 0x3ae   :  { %v1121_v38 = vpop.permute.xlu1 %1120  ;;  %v1683_v35 = vsel %vm1559_vm3, %v9593_v13, -inf }
 0x3af   :  { %v1282_v2 = vadd.f32 %v9292_v34, %v1121_v38  ;;  %1684 = vmax.xlane.f32.xlu0 %v1683_v35  ;;  %v1778_v34 = vsub.f32 %v9261_v25, %v9442_v39  ;;  %v600_v39 = vpop.f32.mrf.mxu2 }
 0x3b0   :  { %v9638_v20 = vperm.slane %v600_v39, 0 }
 0x3b1   :  { %vm1346_vm0 = vcmp.ge.f32.partialorder %v1282_v2, 0.0  ;;  %v1410_v44 = vmul.f32 0.2, %v1282_v2  ;;  %v1868_v4 = vmul.f32 1.442695, %v1778_v34 }
 0x3b2   :  { %2032 = vadd.xlane.f32.xlu2 %v2031_v28  ;;  %v620_v28 = vpop.f32.mrf.mxu3 }
 0x3b3   :  { %v1474_v14 = vsel %vm1346_vm0, %v1282_v2, %v1410_v44  ;;  %7780 = vpow2.f32 %v1868_v4  ;;  %v1476_v2 = vsel %vm1348_vm5, %v1284_v24, %v1412_v12 }
 0x3b4   :  { %v9609_v58 = vadd.f32 %v1474_v14, %v9218_v50  ;;  %v1464_v50 = vsel %vm1336_vm2, %v1272_v61, %v1400_v26  ;;  %v9648_v44 = vadd.f32 %v9625_v8, %v1476_v2  ;;  %v9652_v14 = vperm.slane %v620_v28, 0 }
 0x3b5   :  { %v9628_v10 = vadd.f32 %v9625_v8, %v1464_v50 }
 0x3b6   :  { %v1146_v32 = vpop.permute.xlu1 %1145  ;;  %v1689_v0 = vsel %vm1559_vm3, %v9609_v58, -inf }
 0x3b7   :  { %v1287_v1 = vadd.f32 %v9613_v45, %v1146_v32  ;;  %1690 = vmax.xlane.f32.xlu1 %v1689_v0  ;;  %1963 = vadd.xlane.f32.xlu0 %v1962_v52  ;;  %v1659_v38 = vsel %vm1559_vm3, %v9628_v10, -inf  ;;  %v1695_v32 = vsel %vm1559_vm3, %v9648_v44, -inf }
 0x3b9   :  { %vm1351_vm4 = vcmp.ge.f32.partialorder %v1287_v1, 0.0  ;;  %v1415_v25 = vmul.f32 0.2, %v1287_v1  ;;  %v9650_v56 = vpop.eup %7780 }
 0x3ba   :  { %v2022_v0 = vsel %vm1559_vm3, %v9650_v56, 0.0 }
 0x3bb   :  { %v1479_v37 = vsel %vm1351_vm4, %v1287_v1, %v1415_v25  ;;  %v9659_v1 = vpop.permute.xlu2 %1170  ;;  %v12471_v25 = vld [vmem:[#allocation28_spill] sm:$0xff] }
 0x3bc   :  { %v9636_v31 = vadd.f32 %v9633_v36, %v1479_v37  ;;  %v1771_v39 = vsub.f32 %v12471_v25, %v9451_v40 }
 0x3be   :  { %v1191_v6 = vpop.permute.xlu1 %1190  ;;  %v1704_v35 = vsel %vm1559_vm3, %v9636_v31, -inf }
 0x3bf   :  { %v1296_v61 = vadd.f32 %v9638_v20, %v1191_v6  ;;  %1660 = vmax.xlane.f32.xlu0 %v1659_v38  ;;  %1705 = vmax.xlane.f32.xlu2 %v1704_v35  ;;  %v1854_v6 = vmul.f32 1.442695, %v1771_v39 }
 0x3c1   :  { %v1424_v26 = vmul.f32 0.2, %v1296_v61  ;;  %vm1360_vm6 = vcmp.ge.f32.partialorder %v1296_v61, 0.0  ;;  %7782 = vpow2.f32 %v1854_v6 }
 0x3c3   :  { %v1488_v24 = vsel %vm1360_vm6, %v1296_v61, %v1424_v26  ;;  %v9668_v38 = vpop.permute.xlu2 %1155  ;;  %v12473_v61 = vld [vmem:[#allocation29_spill] sm:$0xff]  ;;  %v580_v26 = vpop.f32.mrf.mxu1 }
 0x3c4   :  { %v9662_v50 = vadd.f32 %v9625_v8, %v1488_v24  ;;  %v1775_v2 = vsub.f32 %v12473_v61, %v9453_v48  ;;  %v9682_v24 = vperm.slane %v580_v26, 0  ;;  %v9699_v26 = vld [vmem:[%s12436_s26 + $0x10] sm:$0xff] }
 0x3c6   :  { %v1211_v34 = vpop.permute.xlu1 %1210  ;;  %v1731_v12 = vsel %vm1559_vm3, %v9662_v50, -inf  ;;  %v1862_v40 = vmul.f32 1.442695, %v1775_v2 }
 0x3c7   :  { %v1300_v52 = vadd.f32 %v9652_v14, %v1211_v34  ;;  %1696 = vmax.xlane.f32.xlu0 %v1695_v32  ;;  %2023 = vadd.xlane.f32.xlu2 %v2022_v0  ;;  %v9677_v34 = vpop.eup %7782  ;;  %v12475_v32 = vld [vmem:[#allocation13_spill] sm:$0xff] }
 0x3c8   :  { %12474 = vst [vmem:[#allocation14_spill] sm:$0xff] %v9677_v34  ;;  %7784 = vpow2.f32 %v1862_v40 }
 0x3c9   :  { %v1428_v4 = vmul.f32 0.2, %v1300_v52  ;;  %vm1364_vm7 = vcmp.ge.f32.partialorder %v1300_v52, 0.0 }
 0x3cb   :  { %v1492_v37 = vsel %vm1364_vm7, %v1300_v52, %v1428_v4  ;;  %v9680_v0 = vpop.permute.xlu2 %1200  ;;  %v2001_v4 = vsel %vm1559_vm3, %v9677_v34, 0.0  ;;  %v12487_v34 = vld [vmem:[#allocation16_spill] sm:$0xff] }
 0x3cc   :  { %v9671_v35 = vadd.f32 %v9625_v8, %v1492_v37  ;;  %v12478_v37 = vld [vmem:[#allocation36_spill] sm:$0xff] }
 0x3cd   :  { %v1796_v6 = vsub.f32 %v12478_v37, %v9460_v41 }
 0x3ce   :  { %12472 = vst [vmem:[#allocation8_spill] sm:$0xff] %v9671_v35  ;;  %v1743_v28 = vsel %vm1559_vm3, %v9671_v35, -inf  ;;  %v1176_v52 = vpop.permute.xlu1 %1175  ;;  %v9687_v25 = vpop.eup %7784 }
 0x3cf   :  { %1732 = vmax.xlane.f32.xlu2 %v1731_v12  ;;  %v1293_v48 = vadd.f32 %v9682_v24, %v1176_v52  ;;  %12476 = vst [vmem:[#allocation18_spill] sm:$0xff] %v9687_v25  ;;  %v12477_v12 = vld [vmem:[#allocation9_spill] sm:$0xff]  ;;  %v2013_v2 = vsel %vm1559_vm3, %v9687_v25, 0.0  ;;  %v1904_v40 = vmul.f32 1.442695, %v1796_v6  ;;  %v12480_v52 = vld [vmem:[#allocation10_spill] sm:$0xff] }
 0x3d1   :  { %v1421_v39 = vmul.f32 0.2, %v1293_v48  ;;  %vm1357_vm8 = vcmp.ge.f32.partialorder %v1293_v48, 0.0  ;;  %7786 = vpow2.f32 %v1904_v40 }
 0x3d6   :  { %v1161_v41 = vpop.permute.xlu1 %1160 }
 0x3d7   :  { %1744 = vmax.xlane.f32.xlu2 %v1743_v28  ;;  %v1485_v28 = vsel %vm1357_vm8, %v1293_v48, %v1421_v39  ;;  %v1290_v48 = vadd.f32 %v9613_v45, %v1161_v41  ;;  %v9708_v39 = vpop.eup %7786  ;;  %v9720_v41 = vld [vmem:[%s12436_s26 + $0x18] sm:$0xff] }
 0x3d8   :  { %12481 = vst [vmem:[#allocation20_spill] sm:$0xff] %v9708_v39 }
 0x3d9   :  { %v1418_v6 = vmul.f32 0.2, %v1290_v48  ;;  %vm1354_vm9 = vcmp.ge.f32.partialorder %v1290_v48, 0.0 }
 0x3db   :  { %1140 = vperm.xlu0 %7687, %v12475_v32   ;;  %v9702_v32 = vadd.f32 %v9699_v26, %v1485_v28 }
 0x3dd   :  { %12479 = vst [vmem:[#allocation17_spill] sm:$0xff] %v9702_v32 }
 0x3df   :  { %2002 = vadd.xlane.f32.xlu2 %v2001_v4 }
 0x3e3   :  { %1205 = vperm.xlu0 %7687, %v12477_v12   ;;  %v1722_v12 = vsel %vm1559_vm3, %v9702_v32, -inf }
 0x3e5   :  { %v9692_v61 = vpop.xlane.xlu2 %1672 }
 0x3e7   :  { %2014 = vadd.xlane.f32.xlu2 %v2013_v2  ;;  %v12482_v2 = vld [vmem:[#allocation12_spill] sm:$0xff] }
 0x3eb   :  { %1150 = vperm.xlu0 %7687, %v12480_v52   ;;  %v2076_v52 = vsel %vm1559_vm3, %v9708_v39, 0.0 }
 0x3ed   :  { %v1991_v4 = vpop.xlane.xlu2 %1990 }
 0x3ee   :  { %7788 = vrcp.f32 %v1991_v4  ;;  %v1482_v4 = vsel %vm1354_vm9, %v1290_v48, %v1418_v6 }
 0x3ef   :  { %1723 = vmax.xlane.f32.xlu2 %v1722_v12  ;;  %v9723_v12 = vadd.f32 %v9720_v41, %v1482_v4 }
 0x3f1   :  { %12483 = vst [vmem:[#allocation24_spill] sm:$0xff] %v9723_v12 }
 0x3f3   :  { %1195 = vperm.xlu0 %7687, %v12482_v2   ;;  %v12484_v2 = vld [vmem:[#allocation11_spill] sm:$0xff] }
 0x3f4   :  { %v7789_v37 = vpop.eup %7788 }
 0x3f5   :  { %v9711_v28 = vpop.xlane.xlu2 %1687  ;;  %v2215_v40 = vmul.f32 %v7789_v37, %v9520_v11  ;;  %v1713_v11 = vsel %vm1559_vm3, %v9723_v12, -inf  ;;  %v9728_v37 = vpop.permute.xlu1 %1180 }
 0x3f7   :  { %7443 = vmatmul.msk.f32.gmra.mxu3 %vm1559_vm3, %v2215_v40  ;;  %2077 = vadd.xlane.f32.xlu2 %v2076_v52  ;;  %v12485_v40 = vld [vmem:[#allocation15_spill] sm:$0xff] }
 0x3fb   :  { %1215 = vperm.xlu0 %7687, %v12484_v2  }
 0x3fd   :  { %v1967_v32 = vpop.xlane.xlu2 %1966 }
 0x3ff   :  { %1714 = vmax.xlane.f32.xlu2 %v1713_v11  ;;  %v8243_v11 = vld [vmem:[%s12358_s12 + $0x4] ss:$0 sm:$0xff] }
 0x400   :  { %v2339_v12 = vmul.f32 %v8243_v11, %v8690_v43 }
 0x403   :  { %1220 = vperm.xlu0 %7687, %v12485_v40   ;;  %v12486_v40 = vld [vmem:[#allocation34_spill] sm:$0xff] }
 0x404   :  { %v1764_v35 = vsub.f32 %v12487_v34, %v12486_v40 }
 0x405   :  { %v1700_v48 = vpop.xlane.xlu2 %1699 }
 0x409   :  { %v1955_v6 = vpop.xlane.xlu1 %1954 }
 0x40a   :  { %7790 = vrcp.f32 %v1955_v6  ;;  %v2338_v6 = vmul.f32 %v8243_v11, %v8648_v33 }
 0x40d   :  { %v1994_v52 = vpop.xlane.xlu2 %1993 }
 0x40e   :  { %7792 = vrcp.f32 %v1994_v52 }
 0x410   :  { %v7791_v39 = vpop.eup %7790 }
 0x411   :  { %v2203_v4 = vmul.f32 %v7791_v39, %v9560_v3  ;;  %v2337_v3 = vmul.f32 %v8243_v11, %v8621_v27  ;;  %v1840_v39 = vmul.f32 1.442695, %v1764_v35 }
 0x413   :  { %7431 = vmatmul.msk.f32.gmra.mxu0 %vm1559_vm3, %v2203_v4  ;;  %7794 = vpow2.f32 %v1840_v39 }
 0x414   :  { %v7793_v2 = vpop.eup %7792 }
 0x415   :  { %v2216_v25 = vmul.f32 %v7793_v2, %v9562_v59  ;;  %v2336_v59 = vmul.f32 %v8243_v11, %v12464_v60  ;;  %v12488_v2 = vld [vmem:[#allocation38_spill] sm:$0xff] }
 0x416   :  { %v1273_v34 = vadd.f32 %v9305_v63, %v12488_v2 }
 0x418   :  { %vm1337_vm10 = vcmp.ge.f32.partialorder %v1273_v34, 0.0 }
 0x419   :  { %v9749_v40 = vpop.eup %7794 }
 0x41a   :  { %v1980_v11 = vsel %vm1559_vm3, %v9749_v40, 0.0 }
 0x41b   :  { %7444 = vmatmul.msk.f32.vlgmr.msrb.gmra.mxu0 %vm1559_vm3, %v2216_v25  ;;  %v1789_v25 = vsub.f32 %v9506_v47, %v9692_v61  ;;  %v1798_v47 = vsub.f32 %v9554_v7, %v1700_v48  ;;  %v12490_v7 = vld [vmem:[#allocation19_spill] sm:$0xff] }
 0x41c   :  { %2868 = vmatpush.msrb.mxu0 %v2339_v12 }
 0x41d   :  { %v1890_v35 = vmul.f32 1.442695, %v1789_v25  ;;  %v1908_v25 = vmul.f32 1.442695, %v1798_v47 }
 0x41e   :  { %2869 = vmatpush.msrb.mxu0 %v2338_v6  ;;  %v1401_v6 = vmul.f32 0.2, %v1273_v34 }
 0x420   :  { %2870 = vmatpush.msrb.mxu0 %v2337_v3  ;;  %v1465_v61 = vsel %vm1337_vm10, %v1273_v34, %v1401_v6 }
 0x422   :  { %2871 = vmatpush.msrb.mxu0 %v2336_v59  ;;  %v1685_v52 = vpop.xlane.xlu0 %1684 }
 0x423   :  { %v1793_v4 = vsub.f32 %v9593_v13, %v1685_v52  ;;  %v1277_v13 = vadd.f32 %v9323_v29, %v9578_v51  ;;  %v9761_v52 = vadd.f32 %v9699_v26, %v1465_v61  ;;  %v12489_v51 = vld [vmem:[#allocation39_spill] sm:$0xff] }
 0x424   :  { %v1780_v48 = vsub.f32 %v12490_v7, %v12489_v51  ;;  %v12492_v7 = vld [vmem:[#allocation41_spill] sm:$0xff] }
 0x425   :  { %v1898_v12 = vmul.f32 1.442695, %v1793_v4  ;;  %v1405_v2 = vmul.f32 0.2, %v1277_v13  ;;  %vm1341_vm11 = vcmp.ge.f32.partialorder %v1277_v13, 0.0  ;;  %v1662_v34 = vsel %vm1559_vm3, %v9761_v52, -inf }
 0x427   :  { %7796 = vpow2.f32 %v1898_v12  ;;  %v1469_v6 = vsel %vm1341_vm11, %v1277_v13, %v1405_v2 }
 0x42a   :  { %v1964_v3 = vpop.xlane.xlu0 %1963 }
 0x42b   :  { %7798 = vrcp.f32 %v1964_v3 }
 0x42c   :  { %7800 = vpow2.f32 %v1890_v35  ;;  %v2006_v35 = vpop.xlane.xlu2 %2005 }
 0x42d   :  { %v9753_v39 = vpop.eup %7796  ;;  %1981 = vadd.xlane.f32.xlu0 %v1980_v11  ;;  %7802 = vrcp.f32 %v1967_v32  ;;  %v1872_v11 = vmul.f32 1.442695, %v1780_v48  ;;  %v12493_v48 = vld [vmem:[#allocation22_spill] sm:$0xff] }
 0x42e   :  { %v2067_v59 = vsel %vm1559_vm3, %v9753_v39, 0.0  ;;  %7804 = vpow2.f32 %v1908_v25 }
 0x42f   :  { %2068 = vadd.xlane.f32.xlu2 %v2067_v59  ;;  %7806 = vrcp.f32 %v2006_v35 }
 0x430   :  { %7808 = vpow2.f32 %v1872_v11 }
 0x431   :  { %v7799_v4 = vpop.eup %7798 }
 0x432   :  { %v2206_v12 = vmul.f32 %v7799_v4, %v9604_v54  ;;  %v9764_v29 = vpop.eup %7800  ;;  %v9774_v54 = vadd.f32 %v9699_v26, %v1469_v6  ;;  %v9779_v59 = vpop.xlane.xlu0 %1660  ;;  %v1274_v4 = vadd.f32 %v9305_v63, %v9566_v30  ;;  %v8244_v6 = vld [vmem:[%s12358_s12 + $0x5] ss:$0 sm:$0xff] }
 0x433   :  { %v2055_v32 = vsel %vm1559_vm3, %v9764_v29, 0.0  ;;  %v7803_v3 = vpop.eup %7802  ;;  %v2343_v63 = vmul.f32 %v8244_v6, %v8690_v43  ;;  %v2341_v11 = vmul.f32 %v8244_v6, %v8621_v27 }
 0x434   :  { %7434 = vmatmul.msk.f32.gmra.mxu1 %vm1559_vm3, %v2206_v12  ;;  %v2207_v47 = vmul.f32 %v7803_v3, %v9538_v23  ;;  %v9777_v61 = vpop.eup %7804  ;;  %v1674_v13 = vsel %vm1559_vm3, %v9774_v54, -inf  ;;  %v1402_v12 = vmul.f32 0.2, %v1274_v4  ;;  %vm1338_vm12 = vcmp.ge.f32.partialorder %v1274_v4, 0.0 }
 0x435   :  { %1663 = vmax.xlane.f32.xlu0 %v1662_v34  ;;  %12491 = vst [vmem:[#allocation25_spill] sm:$0xff] %v9777_v61  ;;  %v2082_v2 = vsel %vm1559_vm3, %v9777_v61, 0.0  ;;  %v7807_v25 = vpop.eup %7806  ;;  %v1777_v34 = vsub.f32 %v12493_v48, %v12492_v7 }
 0x436   :  { %v9788_v23 = vpop.eup %7808  ;;  %v2220_v51 = vmul.f32 %v7807_v25, %v9574_v5  ;;  %v2342_v5 = vmul.f32 %v8244_v6, %v8648_v33  ;;  %v12495_v25 = vld [vmem:[#allocation21_spill] sm:$0xff] }
 0x437   :  { %2056 = vadd.xlane.f32.xlu2 %v2055_v32  ;;  %v2028_v30 = vsel %vm1559_vm3, %v9788_v23, 0.0  ;;  %v1466_v32 = vsel %vm1338_vm12, %v1274_v4, %v1402_v12  ;;  %v1866_v3 = vmul.f32 1.442695, %v1777_v34  ;;  %v1295_v4 = vadd.f32 %v9638_v20, %v9606_v53 }
 0x439   :  { %7810 = vpow2.f32 %v1866_v3  ;;  %vm1359_vm14 = vcmp.ge.f32.partialorder %v1295_v4, 0.0  ;;  %v12496_v3 = vld [vmem:[#allocation42_spill] sm:$0xff] }
 0x43a   :  { %v9800_v35 = vpop.xlane.xlu0 %1696 }
 0x43c   :  { %7435 = vmatmul.msk.f32.gmra.mxu1 %vm1559_vm3, %v2207_v47  ;;  %v9805_v47 = vadd.f32 %v9720_v41, %v1466_v32 }
 0x43d   :  { %1675 = vmax.xlane.f32.xlu0 %v1674_v13  ;;  %v2340_v13 = vmul.f32 %v8244_v6, %v12464_v60  ;;  %v1423_v6 = vmul.f32 0.2, %v1295_v4 }
 0x43e   :  { %v1665_v7 = vsel %vm1559_vm3, %v9805_v47, -inf }
 0x43f   :  { %2083 = vadd.xlane.f32.xlu2 %v2082_v2  ;;  %v12494_v2 = vld [vmem:[#allocation40_spill] sm:$0xff] }
 0x444   :  { %7448 = vmatmul.msk.f32.vlgmr.msra.gmra.mxu1 %vm1559_vm3, %v2220_v51  ;;  %v1769_v51 = vsub.f32 %v12495_v25, %v12494_v2  ;;  %v1487_v25 = vsel %vm1359_vm14, %v1295_v4, %v1423_v6 }
 0x445   :  { %2909 = vmatpush.msra.mxu1 %v2343_v63  ;;  %2029 = vadd.xlane.f32.xlu0 %v2028_v30  ;;  %v9815_v30 = vpop.eup %7810 }
 0x446   :  { %v1850_v34 = vmul.f32 1.442695, %v1769_v51  ;;  %v2019_v53 = vsel %vm1559_vm3, %v9815_v30, 0.0 }
 0x447   :  { %2910 = vmatpush.msra.mxu1 %v2342_v5 }
 0x448   :  { %7812 = vpow2.f32 %v1850_v34 }
 0x449   :  { %2911 = vmatpush.msra.mxu1 %v2341_v11  ;;  %v12497_v11 = vld [vmem:[#allocation23_spill] sm:$0xff] }
 0x44b   :  { %2912 = vmatpush.msra.mxu1 %v2340_v13  ;;  %v1773_v13 = vsub.f32 %v12497_v11, %v12496_v3  ;;  %v1291_v11 = vadd.f32 %v9682_v24, %v9640_v18 }
 0x44d   :  { %1666 = vmax.xlane.f32.xlu0 %v1665_v7  ;;  %v1141_v12 = vpop.permute.xlu0 %1140  ;;  %v1858_v7 = vmul.f32 1.442695, %v1773_v13  ;;  %vm1355_vm0 = vcmp.ge.f32.partialorder %v1291_v11, 0.0 }
 0x44e   :  { %v1286_v48 = vadd.f32 %v9313_v49, %v1141_v12  ;;  %v9828_v12 = vadd.f32 %v9633_v36, %v1487_v25  ;;  %v9830_v34 = vpop.eup %7812 }
 0x44f   :  { %7814 = vpow2.f32 %v1858_v7  ;;  %v1995_v4 = vsel %vm1559_vm3, %v9830_v34, 0.0  ;;  %v12500_v7 = vld [vmem:[#allocation26_spill] sm:$0xff] }
 0x450   :  { %vm1350_vm13 = vcmp.ge.f32.partialorder %v1286_v48, 0.0  ;;  %v1414_v63 = vmul.f32 0.2, %v1286_v48  ;;  %v1728_v3 = vsel %vm1559_vm3, %v9828_v12, -inf }
 0x452   :  { %v1478_v5 = vsel %vm1350_vm13, %v1286_v48, %v1414_v63  ;;  %v12498_v63 = vld [vmem:[#allocation27_spill] sm:$0xff] }
 0x453   :  { %v9818_v32 = vadd.f32 %v9720_v41, %v1478_v5  ;;  %v1770_v5 = vsub.f32 %v12498_v63, %v9423_v15  ;;  %v1419_v15 = vmul.f32 0.2, %v1291_v11  ;;  %v1782_v63 = vsub.f32 %v12500_v7, %v9444_v21 }
 0x455   :  { %2020 = vadd.xlane.f32.xlu0 %v2019_v53  ;;  %v1206_v49 = vpop.permute.xlu0 %1205  ;;  %v1701_v2 = vsel %vm1559_vm3, %v9818_v32, -inf  ;;  %v1852_v13 = vmul.f32 1.442695, %v1770_v5 }
 0x456   :  { %v1299_v51 = vadd.f32 %v9652_v14, %v1206_v49  ;;  %1702 = vmax.xlane.f32.xlu1 %v1701_v2  ;;  %v9843_v49 = vpop.eup %7814  ;;  %v12499_v2 = vld [vmem:[#allocation30_spill] sm:$0xff] }
 0x457   :  { %7816 = vpow2.f32 %v1852_v13  ;;  %v1774_v25 = vsub.f32 %v12499_v2, %v9429_v16  ;;  %v2007_v18 = vsel %vm1559_vm3, %v9843_v49, 0.0  ;;  %v1292_v13 = vadd.f32 %v9682_v24, %v9659_v1  ;;  %v12502_v1 = vld [vmem:[#allocation32_spill] sm:$0xff] }
 0x458   :  { %v1427_v48 = vmul.f32 0.2, %v1299_v51  ;;  %vm1363_vm15 = vcmp.ge.f32.partialorder %v1299_v51, 0.0 }
 0x459   :  { %v1860_v5 = vmul.f32 1.442695, %v1774_v25  ;;  %vm1356_vm2 = vcmp.ge.f32.partialorder %v1292_v13, 0.0 }
 0x45a   :  { %v1491_v6 = vsel %vm1363_vm15, %v1299_v51, %v1427_v48  ;;  %v1483_v48 = vsel %vm1355_vm0, %v1291_v11, %v1419_v15 }
 0x45b   :  { %v9841_v53 = vadd.f32 %v9633_v36, %v1491_v6  ;;  %v9856_v6 = vadd.f32 %v9633_v36, %v1483_v48  ;;  %7818 = vpow2.f32 %v1860_v5  ;;  %v1420_v36 = vmul.f32 0.2, %v1292_v13 }
 0x45d   :  { %1729 = vmax.xlane.f32.xlu0 %v1728_v3  ;;  %v1740_v51 = vsel %vm1559_vm3, %v9841_v53, -inf  ;;  %v1876_v3 = vmul.f32 1.442695, %v1782_v63  ;;  %v1151_v16 = vpop.permute.xlu0 %1150  ;;  %v1716_v11 = vsel %vm1559_vm3, %v9856_v6, -inf  ;;  %v12501_v63 = vld [vmem:[#allocation31_spill] sm:$0xff] }
 0x45e   :  { %1996 = vadd.xlane.f32.xlu1 %v1995_v4  ;;  %v9853_v4 = vpop.eup %7816  ;;  %v1288_v15 = vadd.f32 %v9613_v45, %v1151_v16 }
 0x45f   :  { %7820 = vpow2.f32 %v1876_v3  ;;  %v1998_v21 = vsel %vm1559_vm3, %v9853_v4, 0.0  ;;  %v1484_v3 = vsel %vm1356_vm2, %v1292_v13, %v1420_v36 }
 0x460   :  { %v1416_v7 = vmul.f32 0.2, %v1288_v15  ;;  %vm1352_vm4 = vcmp.ge.f32.partialorder %v1288_v15, 0.0  ;;  %v9878_v61 = vadd.f32 %v9625_v8, %v1484_v3 }
 0x461   :  { %v9865_v2 = vpop.eup %7818 }
 0x462   :  { %v2010_v48 = vsel %vm1559_vm3, %v9865_v2, 0.0  ;;  %v1480_v16 = vsel %vm1352_vm4, %v1288_v15, %v1416_v7 }
 0x465   :  { %1741 = vmax.xlane.f32.xlu0 %v1740_v51  ;;  %v9867_v25 = vpop.eup %7820  ;;  %v1783_v51 = vsub.f32 %v12501_v63, %v9458_v46  ;;  %v1196_v46 = vpop.permute.xlu0 %1195  ;;  %v9881_v63 = vadd.f32 %v9625_v8, %v1480_v16 }
 0x466   :  { %2008 = vadd.xlane.f32.xlu1 %v2007_v18  ;;  %v1779_v18 = vsub.f32 %v12502_v1, %v9438_v17  ;;  %v2034_v5 = vsel %vm1559_vm3, %v9867_v25, 0.0  ;;  %v1719_v17 = vsel %vm1559_vm3, %v9878_v61, -inf  ;;  %v1289_v1 = vadd.f32 %v9613_v45, %v9668_v38 }
 0x467   :  { %v1707_v13 = vsel %vm1559_vm3, %v9881_v63, -inf  ;;  %v1297_v15 = vadd.f32 %v9638_v20, %v1196_v46 }
 0x468   :  { %v1417_v7 = vmul.f32 0.2, %v1289_v1  ;;  %vm1353_vm5 = vcmp.ge.f32.partialorder %v1289_v1, 0.0 }
 0x469   :  { %vm1361_vm6 = vcmp.ge.f32.partialorder %v1297_v15, 0.0 }
 0x46a   :  { %v1481_v3 = vsel %vm1353_vm5, %v1289_v1, %v1417_v7  ;;  %v1298_v7 = vadd.f32 %v9638_v20, %v9680_v0 }
 0x46b   :  { %v9902_v46 = vadd.f32 %v9699_v26, %v1481_v3  ;;  %v12505_v3 = vld [vmem:[#allocation37_spill] sm:$0xff] }
 0x46c   :  { %vm1362_vm8 = vcmp.ge.f32.partialorder %v1298_v7, 0.0 }
 0x46d   :  { %1999 = vadd.xlane.f32.xlu0 %v1998_v21  ;;  %v1878_v21 = vmul.f32 1.442695, %v1783_v51  ;;  %v1425_v51 = vmul.f32 0.2, %v1297_v15  ;;  %v1710_v1 = vsel %vm1559_vm3, %v9902_v46, -inf }
 0x46e   :  { %1717 = vmax.xlane.f32.xlu1 %v1716_v11  ;;  %v1870_v11 = vmul.f32 1.442695, %v1779_v18  ;;  %v12503_v18 = vld [vmem:[#allocation33_spill] sm:$0xff] }
 0x46f   :  { %7822 = vpow2.f32 %v1878_v21  ;;  %v1489_v21 = vsel %vm1361_vm6, %v1297_v15, %v1425_v51 }
 0x470   :  { %7824 = vpow2.f32 %v1870_v11 }
 0x475   :  { %2011 = vadd.xlane.f32.xlu0 %v2010_v48  ;;  %v9890_v36 = vpop.eup %7822  ;;  %v1792_v48 = vsub.f32 %v12503_v18, %v9446_v42  ;;  %v9905_v42 = vadd.f32 %v9699_v26, %v1489_v21  ;;  %v1788_v21 = vsub.f32 %v12505_v3, %v9471_v57  ;;  %v1785_v57 = vsub.f32 %v9628_v10, %v9779_v59 }
 0x476   :  { %2035 = vadd.xlane.f32.xlu1 %v2034_v5  ;;  %v9892_v8 = vpop.eup %7824  ;;  %v1216_v5 = vpop.permute.xlu0 %1215  ;;  %v2037_v45 = vsel %vm1559_vm3, %v9890_v36, 0.0  ;;  %v1794_v3 = vsub.f32 %v9531_v55, %v9711_v28 }
 0x477   :  { %v2025_v38 = vsel %vm1559_vm3, %v9892_v8, 0.0  ;;  %v1301_v16 = vadd.f32 %v9652_v14, %v1216_v5  ;;  %v1896_v11 = vmul.f32 1.442695, %v1792_v48  ;;  %v1734_v15 = vsel %vm1559_vm3, %v9905_v42, -inf }
 0x479   :  { %7826 = vpow2.f32 %v1896_v11  ;;  %vm1365_vm7 = vcmp.ge.f32.partialorder %v1301_v16, 0.0 }
 0x47d   :  { %1720 = vmax.xlane.f32.xlu0 %v1719_v17  ;;  %v1429_v17 = vmul.f32 0.2, %v1301_v16 }
 0x47e   :  { %1708 = vmax.xlane.f32.xlu1 %v1707_v13  ;;  %v12504_v13 = vld [vmem:[#allocation35_spill] sm:$0xff] }
 0x47f   :  { %v1784_v18 = vsub.f32 %v12504_v13, %v9455_v9  ;;  %v1493_v51 = vsel %vm1365_vm7, %v1301_v16, %v1429_v17  ;;  %v9915_v5 = vpop.eup %7826  ;;  %v1221_v9 = vpop.permute.xlu0 %1220  ;;  %v1888_v17 = vmul.f32 1.442695, %v1788_v21 }
 0x480   :  { %v2064_v20 = vsel %vm1559_vm3, %v9915_v5, 0.0  ;;  %v1302_v0 = vadd.f32 %v9652_v14, %v1221_v9  ;;  %v9945_v9 = vpop.xlane.xlu2 %1678  ;;  %v2018_v21 = vpop.xlane.xlu1 %2017 }
 0x481   :  { %v1880_v48 = vmul.f32 1.442695, %v1784_v18 }
 0x482   :  { %v1430_v13 = vmul.f32 0.2, %v1302_v0  ;;  %vm1366_vm9 = vcmp.ge.f32.partialorder %v1302_v0, 0.0 }
 0x483   :  { %7828 = vpow2.f32 %v1880_v48 }
 0x484   :  { %7830 = vpow2.f32 %v1888_v17 }
 0x485   :  { %2038 = vadd.xlane.f32.xlu0 %v2037_v45  ;;  %v1426_v45 = vmul.f32 0.2, %v1298_v7 }
 0x486   :  { %2026 = vadd.xlane.f32.xlu1 %v2025_v38  ;;  %v9918_v38 = vadd.f32 %v9699_v26, %v1493_v51  ;;  %v1882_v51 = vmul.f32 1.442695, %v1785_v57 }
 0x487   :  { %v1490_v11 = vsel %vm1362_vm8, %v1298_v7, %v1426_v45  ;;  %v1494_v7 = vsel %vm1366_vm9, %v1302_v0, %v1430_v13 }
 0x488   :  { %v1746_v16 = vsel %vm1559_vm3, %v9918_v38, -inf  ;;  %v9928_v26 = vadd.f32 %v9720_v41, %v1490_v11  ;;  %v9941_v45 = vadd.f32 %v9720_v41, %v1494_v7  ;;  %v1900_v11 = vmul.f32 1.442695, %v1794_v3 }
 0x489   :  { %v9930_v18 = vpop.eup %7828 }
 0x48a   :  { %v1737_v14 = vsel %vm1559_vm3, %v9928_v26, -inf  ;;  %v9943_v10 = vpop.eup %7830 }
 0x48d   :  { %1711 = vmax.xlane.f32.xlu0 %v1710_v1  ;;  %v2040_v1 = vsel %vm1559_vm3, %v9930_v18, 0.0 }
 0x48e   :  { %1735 = vmax.xlane.f32.xlu1 %v1734_v15  ;;  %v1294_v15 = vadd.f32 %v9682_v24, %v9728_v37  ;;  %v1797_v24 = vsub.f32 %v9648_v44, %v9800_v35  ;;  %v1749_v37 = vsel %vm1559_vm3, %v9941_v45, -inf  ;;  %v8245_v44 = vld [vmem:[%s12358_s12 + $0x2] ss:$0 sm:$0xff] }
 0x48f   :  { %v2331_v35 = vmul.f32 %v8245_v44, %v8690_v43 }
 0x490   :  { %v1422_v59 = vmul.f32 0.2, %v1294_v15  ;;  %vm1358_vm10 = vcmp.ge.f32.partialorder %v1294_v15, 0.0  ;;  %v1906_v17 = vmul.f32 1.442695, %v1797_v24  ;;  %v1691_v24 = vpop.xlane.xlu1 %1690 }
 0x492   :  { %v1486_v0 = vsel %vm1358_vm10, %v1294_v15, %v1422_v59 }
 0x493   :  { %v9963_v57 = vadd.f32 %v9720_v41, %v1486_v0 }
 0x495   :  { %2065 = vadd.xlane.f32.xlu0 %v2064_v20  ;;  %v2052_v20 = vsel %vm1559_vm3, %v9943_v10, 0.0  ;;  %v1725_v41 = vsel %vm1559_vm3, %v9963_v57, -inf }
 0x496   :  { %1747 = vmax.xlane.f32.xlu1 %v1746_v16 }
 0x49d   :  { %1738 = vmax.xlane.f32.xlu0 %v1737_v14  ;;  %v2330_v14 = vmul.f32 %v8245_v44, %v8648_v33 }
 0x49e   :  { %2041 = vadd.xlane.f32.xlu1 %v2040_v1  ;;  %v2033_v1 = vpop.xlane.xlu2 %2032 }
 0x4a0   :  { %v1982_v48 = vpop.xlane.xlu0 %1981 }
 0x4a1   :  { %7832 = vrcp.f32 %v1982_v48  ;;  %v2328_v48 = vmul.f32 %v8245_v44, %v12464_v60 }
 0x4a2   :  { %7834 = vpow2.f32 %v1882_v51  ;;  %v2329_v51 = vmul.f32 %v8245_v44, %v8621_v27 }
 0x4a3   :  { %7836 = vrcp.f32 %v2018_v21 }
 0x4a4   :  { %7838 = vpow2.f32 %v1900_v11 }
 0x4a5   :  { %1750 = vmax.xlane.f32.xlu0 %v1749_v37  ;;  %7840 = vpow2.f32 %v1906_v17  ;;  %v1795_v17 = vsub.f32 %v9609_v58, %v1691_v24 }
 0x4a6   :  { %2053 = vadd.xlane.f32.xlu1 %v2052_v20  ;;  %v8246_v20 = vld [vmem:[%s12358_s12 + $0x6] ss:$0 sm:$0xff] }
 0x4a7   :  { %v7833_v16 = vpop.eup %7832  ;;  %v2347_v0 = vmul.f32 %v8246_v20, %v8690_v43  ;;  %v2345_v44 = vmul.f32 %v8246_v20, %v8621_v27 }
 0x4a8   :  { %v2212_v55 = vmul.f32 %v7833_v16, %v9749_v40  ;;  %v1664_v28 = vpop.xlane.xlu0 %1663  ;;  %v9956_v13 = vpop.eup %7834 }
 0x4a9   :  { %v1786_v40 = vsub.f32 %v9761_v52, %v1664_v28  ;;  %v2043_v7 = vsel %vm1559_vm3, %v9956_v13, 0.0  ;;  %v7837_v15 = vpop.eup %7836 }
 0x4aa   :  { %7440 = vmatmul.msk.f32.vlgmr.msra.gmra.mxu2 %vm1559_vm3, %v2212_v55  ;;  %v2224_v59 = vmul.f32 %v7837_v15, %v9572_v22  ;;  %v9975_v52 = vpop.eup %7838  ;;  %v2346_v22 = vmul.f32 %v8246_v20, %v8648_v33  ;;  %v9987_v55 = vpop.xlane.xlu2 %1705  ;;  %v1791_v15 = vsub.f32 %v9585_v62, %v9945_v9  ;;  %v8247_v62 = vld [vmem:[%s12358_s12 + $0x7] ss:$0 sm:$0xff] }
 0x4ab   :  { %2786 = vmatpush.msra.mxu2 %v2331_v35  ;;  %v1884_v3 = vmul.f32 1.442695, %v1786_v40  ;;  %v9982_v16 = vpop.eup %7840  ;;  %v2344_v35 = vmul.f32 %v8246_v20, %v12464_v60  ;;  %v2351_v9 = vmul.f32 %v8247_v62, %v8690_v43  ;;  %v2348_v43 = vmul.f32 %v8247_v62, %v12464_v60 }
 0x4ac   :  { %v2079_v28 = vsel %vm1559_vm3, %v9982_v16, 0.0 }
 0x4ad   :  { %2787 = vmatpush.msra.mxu2 %v2330_v14  ;;  %2044 = vadd.xlane.f32.xlu0 %v2043_v7  ;;  %7842 = vpow2.f32 %v1884_v3  ;;  %v1902_v14 = vmul.f32 1.442695, %v1795_v17  ;;  %v1894_v3 = vmul.f32 1.442695, %v1791_v15 }
 0x4ae   :  { %1726 = vmax.xlane.f32.xlu1 %v1725_v41 }
 0x4af   :  { %2788 = vmatpush.msra.mxu2 %v2329_v51 }
 0x4b0   :  { %v1676_v21 = vpop.xlane.xlu0 %1675 }
 0x4b1   :  { %2789 = vmatpush.msra.mxu2 %v2328_v48  ;;  %v1790_v37 = vsub.f32 %v9774_v54, %v1676_v21  ;;  %v2070_v54 = vsel %vm1559_vm3, %v9975_v52, 0.0 }
 0x4b2   :  { %7452 = vmatmul.msk.f32.vlgmr.msrb.gmra.mxu2 %vm1559_vm3, %v2224_v59  ;;  %v2024_v48 = vpop.xlane.xlu2 %2023 }
 0x4b3   :  { %v1892_v11 = vmul.f32 1.442695, %v1790_v37  ;;  %2950 = vmatpush.msrb.mxu2 %v2347_v0  ;;  %v9995_v40 = vpop.eup %7842 }
 0x4b4   :  { %v2046_v51 = vsel %vm1559_vm3, %v9995_v40, 0.0 }
 0x4b5   :  { %7844 = vpow2.f32 %v1892_v11  ;;  %2951 = vmatpush.msrb.mxu2 %v2346_v22  ;;  %2071 = vadd.xlane.f32.xlu0 %v2070_v54 }
 0x4b6   :  { %2080 = vadd.xlane.f32.xlu1 %v2079_v28 }
 0x4b7   :  { %2952 = vmatpush.msrb.mxu2 %v2345_v44 }
 0x4b8   :  { %v2030_v58 = vpop.xlane.xlu0 %2029 }
 0x4b9   :  { %2953 = vmatpush.msrb.mxu2 %v2344_v35  ;;  %7846 = vrcp.f32 %v2030_v58 }
 0x4ba   :  { %7848 = vpow2.f32 %v1902_v14  ;;  %v1733_v22 = vpop.xlane.xlu2 %1732 }
 0x4bb   :  { %v9997_v7 = vpop.eup %7844  ;;  %7850 = vrcp.f32 %v2033_v1  ;;  %v2350_v1 = vmul.f32 %v8247_v62, %v8648_v33 }
 0x4bc   :  { %v2058_v41 = vsel %vm1559_vm3, %v9997_v7, 0.0  ;;  %7852 = vpow2.f32 %v1894_v3 }
 0x4bd   :  { %2059 = vadd.xlane.f32.xlu0 %v2058_v41 }
 0x4be   :  { %2047 = vadd.xlane.f32.xlu1 %v2046_v51 }
 0x4bf   :  { %v7847_v59 = vpop.eup %7846 }
 0x4c0   :  { %v2228_v21 = vmul.f32 %v7847_v59, %v9788_v23  ;;  %v1667_v24 = vpop.xlane.xlu0 %1666  ;;  %v10011_v20 = vpop.eup %7848 }
 0x4c1   :  { %v1787_v37 = vsub.f32 %v9805_v47, %v1667_v24  ;;  %v7851_v11 = vpop.eup %7850  ;;  %v2073_v23 = vsel %vm1559_vm3, %v10011_v20, 0.0  ;;  %v2349_v47 = vmul.f32 %v8247_v62, %v8621_v27  ;;  %v1800_v27 = vsub.f32 %v9636_v31, %v9987_v55 }
 0x4c2   :  { %7456 = vmatmul.msk.f32.vlgmr.msra.gmra.mxu3 %vm1559_vm3, %v2228_v21  ;;  %v2229_v54 = vmul.f32 %v7851_v11, %v9595_v19  ;;  %v10020_v28 = vpop.eup %7852  ;;  %v1745_v31 = vpop.xlane.xlu2 %1744  ;;  %v1809_v21 = vsub.f32 %v9662_v50, %v1733_v22 }
 0x4c3   :  { %v1886_v0 = vmul.f32 1.442695, %v1787_v37  ;;  %2991 = vmatpush.msra.mxu3 %v2351_v9  ;;  %v2061_v19 = vsel %vm1559_vm3, %v10020_v28, 0.0 }
 0x4c4   :  { %v1930_v37 = vmul.f32 1.442695, %v1809_v21 }
 0x4c5   :  { %7854 = vpow2.f32 %v1886_v0  ;;  %2992 = vmatpush.msra.mxu3 %v2350_v1 }
 0x4c6   :  { %2074 = vadd.xlane.f32.xlu1 %v2073_v23 }
 0x4c7   :  { %2993 = vmatpush.msra.mxu3 %v2349_v47 }
 0x4c8   :  { %v2021_v17 = vpop.xlane.xlu0 %2020 }
 0x4c9   :  { %2994 = vmatpush.msra.mxu3 %v2348_v43  ;;  %7856 = vrcp.f32 %v2021_v17  ;;  %v1703_v33 = vpop.xlane.xlu1 %1702 }
 0x4ca   :  { %v1799_v44 = vsub.f32 %v9818_v32, %v1703_v33  ;;  %7457 = vmatmul.msk.f32.gmra.mxu3 %vm1559_vm3, %v2229_v54  ;;  %v1912_v32 = vmul.f32 1.442695, %v1800_v27  ;;  %v2003_v47 = vpop.xlane.xlu2 %2002  ;;  %v12506_v27 = vld [vmem:[#allocation8_spill] sm:$0xff] }
 0x4cb   :  { %v10024_v35 = vpop.eup %7854 }
 0x4cc   :  { %v1910_v14 = vmul.f32 1.442695, %v1799_v44  ;;  %v2049_v60 = vsel %vm1559_vm3, %v10024_v35, 0.0 }
 0x4cd   :  { %2050 = vadd.xlane.f32.xlu2 %v2049_v60 }
 0x4ce   :  { %7858 = vpow2.f32 %v1910_v14  ;;  %2062 = vadd.xlane.f32.xlu1 %v2061_v19  ;;  %v1813_v14 = vsub.f32 %v12506_v27, %v1745_v31 }
 0x4cf   :  { %v7857_v58 = vpop.eup %7856  ;;  %7860 = vrcp.f32 %v2024_v48 }
 0x4d0   :  { %v1730_v15 = vpop.xlane.xlu0 %1729  ;;  %v2225_v41 = vmul.f32 %v7857_v58, %v9815_v30 }
 0x4d1   :  { %v1808_v51 = vsub.f32 %v9828_v12, %v1730_v15  ;;  %v1997_v59 = vpop.xlane.xlu1 %1996 }
 0x4d2   :  { %7862 = vrcp.f32 %v1997_v59  ;;  %7453 = vmatmul.msk.f32.gmra.mxu2 %vm1559_vm3, %v2225_v41 }
 0x4d3   :  { %v1928_v55 = vmul.f32 1.442695, %v1808_v51  ;;  %7864 = vpow2.f32 %v1912_v32  ;;  %v2015_v32 = vpop.xlane.xlu2 %2014 }
 0x4d4   :  { %v10035_v3 = vpop.eup %7858 }
 0x4d5   :  { %v7861_v24 = vpop.eup %7860  ;;  %7866 = vpow2.f32 %v1928_v55  ;;  %v2085_v48 = vsel %vm1559_vm3, %v10035_v3, 0.0 }
 0x4d6   :  { %2086 = vadd.xlane.f32.xlu0 %v2085_v48  ;;  %v2226_v62 = vmul.f32 %v7861_v24, %v9650_v56 }
 0x4d8   :  { %v7863_v30 = vpop.eup %7862  ;;  %v1742_v12 = vpop.xlane.xlu0 %1741 }
 0x4d9   :  { %v1812_v9 = vsub.f32 %v9841_v53, %v1742_v12  ;;  %v2009_v0 = vpop.xlane.xlu1 %2008  ;;  %v2217_v1 = vmul.f32 %v7863_v30, %v9830_v34  ;;  %v10043_v11 = vpop.eup %7864 }
 0x4da   :  { %7868 = vrcp.f32 %v2009_v0  ;;  %7454 = vmatmul.msk.f32.gmra.mxu2 %vm1559_vm3, %v2226_v62  ;;  %v2088_v34 = vsel %vm1559_vm3, %v10043_v11, 0.0 }
 0x4db   :  { %v10046_v50 = vpop.eup %7866  ;;  %v1936_v23 = vmul.f32 1.442695, %v1812_v9  ;;  %7445 = vmatmul.msk.f32.gmra.mxu0 %vm1559_vm3, %v2217_v1  ;;  %7870 = vpow2.f32 %v1930_v37  ;;  %v1724_v48 = vpop.xlane.xlu2 %1723  ;;  %v12507_v37 = vld [vmem:[#allocation14_spill] sm:$0xff] }
 0x4dc   :  { %v2112_v56 = vsel %vm1559_vm3, %v10046_v50, 0.0 }
 0x4dd   :  { %7872 = vpow2.f32 %v1936_v23  ;;  %2113 = vadd.xlane.f32.xlu2 %v2112_v56 }
 0x4de   :  { %2089 = vadd.xlane.f32.xlu0 %v2088_v34 }
 0x4e0   :  { %v7869_v53 = vpop.eup %7868  ;;  %v2000_v43 = vpop.xlane.xlu0 %1999 }
 0x4e1   :  { %7874 = vrcp.f32 %v2000_v43  ;;  %v1718_v22 = vpop.xlane.xlu1 %1717  ;;  %v2221_v17 = vmul.f32 %v7869_v53, %v9843_v49  ;;  %v10054_v54 = vpop.eup %7870 }
 0x4e2   :  { %v1804_v33 = vsub.f32 %v9856_v6, %v1718_v22  ;;  %v2115_v58 = vsel %vm1559_vm3, %v10054_v54, 0.0  ;;  %v1938_v6 = vmul.f32 1.442695, %v1813_v14 }
 0x4e3   :  { %v10057_v44 = vpop.eup %7872  ;;  %7449 = vmatmul.msk.f32.gmra.mxu1 %vm1559_vm3, %v2221_v17  ;;  %v2078_v43 = vpop.xlane.xlu2 %2077 }
 0x4e4   :  { %v1920_v60 = vmul.f32 1.442695, %v1804_v33  ;;  %v2124_v19 = vsel %vm1559_vm3, %v10057_v44, 0.0 }
 0x4e5   :  { %2125 = vadd.xlane.f32.xlu1 %v2124_v19 }
 0x4e6   :  { %7876 = vpow2.f32 %v1920_v60  ;;  %2116 = vadd.xlane.f32.xlu0 %v2115_v58 }
 0x4e7   :  { %v7875_v49 = vpop.eup %7874  ;;  %7878 = vrcp.f32 %v2003_v47 }
 0x4e8   :  { %v2012_v15 = vpop.xlane.xlu0 %2011  ;;  %v2218_v41 = vmul.f32 %v7875_v49, %v9853_v4 }
 0x4e9   :  { %7880 = vrcp.f32 %v2012_v15  ;;  %v2036_v51 = vpop.xlane.xlu1 %2035 }
 0x4ea   :  { %7882 = vrcp.f32 %v2036_v51  ;;  %7446 = vmatmul.msk.f32.gmra.mxu0 %vm1559_vm3, %v2218_v41  ;;  %v12509_v51 = vld [vmem:[#allocation17_spill] sm:$0xff] }
 0x4eb   :  { %7884 = vpow2.f32 %v1938_v6 }
 0x4ec   :  { %v10067_v59 = vpop.eup %7876  ;;  %7886 = vrcp.f32 %v2015_v32 }
 0x4ed   :  { %v7879_v31 = vpop.eup %7878  ;;  %v2100_v55 = vsel %vm1559_vm3, %v10067_v59, 0.0 }
 0x4ee   :  { %2101 = vadd.xlane.f32.xlu2 %v2100_v55  ;;  %v2219_v4 = vmul.f32 %v7879_v31, %v12507_v37  ;;  %v1806_v31 = vsub.f32 %v12509_v51, %v1724_v48  ;;  %v1715_v55 = vpop.xlane.xlu2 %1714  ;;  %v12511_v48 = vld [vmem:[#allocation24_spill] sm:$0xff] }
 0x4ef   :  { %v7881_v21 = vpop.eup %7880 }
 0x4f0   :  { %v7883_v24 = vpop.eup %7882  ;;  %v1721_v30 = vpop.xlane.xlu0 %1720  ;;  %v2222_v12 = vmul.f32 %v7881_v21, %v9865_v2 }
 0x4f1   :  { %v1805_v62 = vsub.f32 %v9878_v61, %v1721_v30  ;;  %v1709_v9 = vpop.xlane.xlu1 %1708  ;;  %v2230_v0 = vmul.f32 %v7883_v24, %v9867_v25  ;;  %v10075_v1 = vpop.eup %7884  ;;  %v12508_v25 = vld [vmem:[#allocation18_spill] sm:$0xff]  ;;  %v12510_v30 = vld [vmem:[#allocation20_spill] sm:$0xff] }
 0x4f2   :  { %v1801_v23 = vsub.f32 %v9881_v63, %v1709_v9  ;;  %7447 = vmatmul.msk.f32.gmra.mxu0 %vm1559_vm3, %v2219_v4  ;;  %7450 = vmatmul.msk.f32.gmra.mxu1 %vm1559_vm3, %v2222_v12  ;;  %v7887_v34 = vpop.eup %7886  ;;  %v2127_v61 = vsel %vm1559_vm3, %v10075_v1, 0.0 }
 0x4f3   :  { %v1922_v47 = vmul.f32 1.442695, %v1805_v62  ;;  %7458 = vmatmul.msk.f32.gmra.mxu3 %vm1559_vm3, %v2230_v0  ;;  %v2223_v53 = vmul.f32 %v7887_v34, %v12508_v25  ;;  %v1803_v62 = vsub.f32 %v12511_v48, %v1715_v55 }
 0x4f4   :  { %v1914_v56 = vmul.f32 1.442695, %v1801_v23 }
 0x4f5   :  { %7888 = vpow2.f32 %v1922_v47 }
 0x4f6   :  { %7890 = vpow2.f32 %v1914_v56  ;;  %2128 = vadd.xlane.f32.xlu2 %v2127_v61  ;;  %v2069_v9 = vpop.xlane.xlu2 %2068  ;;  %v1918_v56 = vmul.f32 1.442695, %v1803_v62 }
 0x4f8   :  { %v2039_v2 = vpop.xlane.xlu0 %2038 }
 0x4f9   :  { %7892 = vrcp.f32 %v2039_v2  ;;  %v2027_v63 = vpop.xlane.xlu1 %2026 }
 0x4fa   :  { %7894 = vrcp.f32 %v2027_v63  ;;  %7451 = vmatmul.msk.f32.gmra.mxu1 %vm1559_vm3, %v2223_v53 }
 0x4fb   :  { %v10085_v22 = vpop.eup %7888  ;;  %7896 = vrcp.f32 %v2078_v43 }
 0x4fc   :  { %v10087_v17 = vpop.eup %7890  ;;  %v2103_v33 = vsel %vm1559_vm3, %v10085_v22, 0.0 }
 0x4fd   :  { %2104 = vadd.xlane.f32.xlu0 %v2103_v33  ;;  %v2091_v27 = vsel %vm1559_vm3, %v10087_v17, 0.0 }
 0x4fe   :  { %2092 = vadd.xlane.f32.xlu1 %v2091_v27  ;;  %v2057_v51 = vpop.xlane.xlu2 %2056 }
 0x4ff   :  { %v7893_v14 = vpop.eup %7892 }
 0x500   :  { %v7895_v60 = vpop.eup %7894  ;;  %v1712_v19 = vpop.xlane.xlu0 %1711  ;;  %v2231_v58 = vmul.f32 %v7893_v14, %v9890_v36  ;;  %v1924_v36 = vmul.f32 1.442695, %v1806_v31 }
 0x501   :  { %v1802_v32 = vsub.f32 %v9902_v46, %v1712_v19  ;;  %v1736_v49 = vpop.xlane.xlu1 %1735  ;;  %v2227_v6 = vmul.f32 %v7895_v60, %v9892_v8  ;;  %v7897_v24 = vpop.eup %7896 }
 0x502   :  { %v1810_v15 = vsub.f32 %v9905_v42, %v1736_v49  ;;  %7459 = vmatmul.msk.f32.gmra.mxu3 %vm1559_vm3, %v2231_v58  ;;  %v2244_v46 = vmul.f32 %v7897_v24, %v12510_v30 }
 0x503   :  { %v1916_v41 = vmul.f32 1.442695, %v1802_v32  ;;  %7455 = vmatmul.msk.f32.gmra.mxu2 %vm1559_vm3, %v2227_v6 }
 0x504   :  { %v1932_v21 = vmul.f32 1.442695, %v1810_v15 }
 0x505   :  { %7898 = vpow2.f32 %v1916_v41 }
 0x506   :  { %7900 = vpow2.f32 %v1932_v21  ;;  %v2084_v62 = vpop.xlane.xlu2 %2083 }
 0x508   :  { %v2066_v37 = vpop.xlane.xlu0 %2065 }
 0x509   :  { %7902 = vrcp.f32 %v2066_v37  ;;  %v1748_v8 = vpop.xlane.xlu1 %1747 }
 0x50a   :  { %v1814_v42 = vsub.f32 %v9918_v38, %v1748_v8  ;;  %7472 = vmatmul.msk.f32.vlgmr.msrb.gmra.mxu3 %vm1559_vm3, %v2244_v46  ;;  %7904 = vpow2.f32 %v1924_v36 }
 0x50b   :  { %v10103_v4 = vpop.eup %7898 }
 0x50c   :  { %v10105_v12 = vpop.eup %7900  ;;  %v1940_v0 = vmul.f32 1.442695, %v1814_v42  ;;  %v2094_v23 = vsel %vm1559_vm3, %v10103_v4, 0.0 }
 0x50d   :  { %2095 = vadd.xlane.f32.xlu2 %v2094_v23  ;;  %v2118_v47 = vsel %vm1559_vm3, %v10105_v12, 0.0 }
 0x50e   :  { %7906 = vpow2.f32 %v1940_v0  ;;  %2119 = vadd.xlane.f32.xlu1 %v2118_v47 }
 0x50f   :  { %v7903_v38 = vpop.eup %7902  ;;  %7908 = vrcp.f32 %v2069_v9 }
 0x510   :  { %v2240_v34 = vmul.f32 %v7903_v38, %v9915_v5  ;;  %v1739_v61 = vpop.xlane.xlu0 %1738  ;;  %v10114_v53 = vpop.eup %7904 }
 0x511   :  { %v1811_v2 = vsub.f32 %v9928_v26, %v1739_v61  ;;  %v2042_v25 = vpop.xlane.xlu1 %2041  ;;  %v2106_v27 = vsel %vm1559_vm3, %v10114_v53, 0.0 }
 0x512   :  { %7910 = vrcp.f32 %v2042_v25  ;;  %7468 = vmatmul.msk.f32.vlgmr.msra.gmra.mxu2 %vm1559_vm3, %v2240_v34 }
 0x513   :  { %v1934_v63 = vmul.f32 1.442695, %v1811_v2  ;;  %7912 = vpow2.f32 %v1918_v56 }
 0x514   :  { %v10117_v43 = vpop.eup %7906 }
 0x515   :  { %v7909_v33 = vpop.eup %7908  ;;  %7914 = vpow2.f32 %v1934_v63  ;;  %v2130_v5 = vsel %vm1559_vm3, %v10117_v43, 0.0 }
 0x516   :  { %2107 = vadd.xlane.f32.xlu1 %v2106_v27  ;;  %2131 = vadd.xlane.f32.xlu0 %v2130_v5  ;;  %v2241_v60 = vmul.f32 %v7909_v33, %v9753_v39  ;;  %v12512_v33 = vld [vmem:[#allocation25_spill] sm:$0xff] }
 0x518   :  { %v7911_v26 = vpop.eup %7910  ;;  %v1751_v14 = vpop.xlane.xlu0 %1750 }
 0x519   :  { %v2232_v19 = vmul.f32 %v7911_v26, %v9930_v18  ;;  %v1815_v58 = vsub.f32 %v9941_v45, %v1751_v14  ;;  %v2054_v32 = vpop.xlane.xlu1 %2053  ;;  %v10126_v49 = vpop.eup %7912 }
 0x51a   :  { %7916 = vrcp.f32 %v2054_v32  ;;  %7469 = vmatmul.msk.f32.gmra.mxu2 %vm1559_vm3, %v2241_v60  ;;  %v2097_v39 = vsel %vm1559_vm3, %v10126_v49, 0.0 }
 0x51b   :  { %v10129_v6 = vpop.eup %7914  ;;  %v1942_v15 = vmul.f32 1.442695, %v1815_v58  ;;  %7460 = vmatmul.msk.f32.vlgmr.msra.gmra.mxu0 %vm1559_vm3, %v2232_v19 }
 0x51c   :  { %v2121_v41 = vsel %vm1559_vm3, %v10129_v6, 0.0 }
 0x51d   :  { %7918 = vpow2.f32 %v1942_v15  ;;  %2122 = vadd.xlane.f32.xlu2 %v2121_v41 }
 0x51e   :  { %2098 = vadd.xlane.f32.xlu0 %v2097_v39  ;;  %7920 = vrcp.f32 %v2057_v51 }
 0x520   :  { %v7917_v18 = vpop.eup %7916  ;;  %v2045_v45 = vpop.xlane.xlu0 %2044 }
 0x521   :  { %v2236_v31 = vmul.f32 %v7917_v18, %v9943_v10  ;;  %7922 = vrcp.f32 %v2045_v45  ;;  %v1727_v55 = vpop.xlane.xlu1 %1726 }
 0x522   :  { %v1807_v21 = vsub.f32 %v9963_v57, %v1727_v55  ;;  %v2463_v55 = vpop.f32.mrf.mxu2 }
 0x523   :  { %v10138_v24 = vpop.eup %7918  ;;  %7464 = vmatmul.msk.f32.vlgmr.msrb.gmra.mxu1 %vm1559_vm3, %v2236_v31 }
 0x524   :  { %v1926_v36 = vmul.f32 1.442695, %v1807_v21  ;;  %v2133_v30 = vsel %vm1559_vm3, %v10138_v24, 0.0  ;;  %v7921_v46 = vpop.eup %7920 }
 0x525   :  { %2134 = vadd.xlane.f32.xlu1 %v2133_v30  ;;  %v2237_v48 = vmul.f32 %v7921_v46, %v9764_v29  ;;  %v2422_v30 = vpop.f32.mrf.mxu1 }
 0x526   :  { %7924 = vpow2.f32 %v1926_v36 }
 0x527   :  { %v7923_v37 = vpop.eup %7922 }
 0x528   :  { %v2072_v8 = vpop.xlane.xlu0 %2071  ;;  %v2233_v42 = vmul.f32 %v7923_v37, %v9956_v13 }
 0x529   :  { %7926 = vrcp.f32 %v2072_v8  ;;  %v2081_v10 = vpop.xlane.xlu1 %2080 }
 0x52a   :  { %7928 = vrcp.f32 %v2081_v10  ;;  %7461 = vmatmul.msk.f32.gmra.mxu0 %vm1559_vm3, %v2233_v42  ;;  %v2466_v37 = vpop.f32.mrf.mxu2  ;;  %v3103_v10 = vld [vmem:[%s12354_s8 + $0x18] sm:$0xff] }
 0x52b   :  { %7465 = vmatmul.msk.f32.gmra.mxu1 %vm1559_vm3, %v2237_v48  ;;  %7930 = vrcp.f32 %v2084_v62 }
 0x52c   :  { %v10147_v57 = vpop.eup %7924 }
 0x52d   :  { %v2109_v9 = vsel %vm1559_vm3, %v10147_v57, 0.0  ;;  %v2425_v48 = vpop.f32.mrf.mxu1 }
 0x52e   :  { %2110 = vadd.xlane.f32.xlu2 %v2109_v9 }
 0x52f   :  { %v7927_v0 = vpop.eup %7926 }
 0x530   :  { %v7929_v23 = vpop.eup %7928  ;;  %v2060_v13 = vpop.xlane.xlu0 %2059  ;;  %v2242_v47 = vmul.f32 %v7927_v0, %v9975_v52 }
 0x531   :  { %7932 = vrcp.f32 %v2060_v13  ;;  %v2048_v29 = vpop.xlane.xlu1 %2047  ;;  %v2245_v38 = vmul.f32 %v7929_v23, %v9982_v16  ;;  %v7931_v56 = vpop.eup %7930  ;;  %v3102_v13 = vld [vmem:[%s12354_s8 + $0x10] sm:$0xff] }
 0x532   :  { %7934 = vrcp.f32 %v2048_v29  ;;  %7470 = vmatmul.msk.f32.gmra.mxu2 %vm1559_vm3, %v2242_v47  ;;  %v2246_v27 = vmul.f32 %v7931_v56, %v12512_v33  ;;  %v10188_v0 = vpop.f32.mrf.mxu2 }
 0x533   :  { %7473 = vmatmul.msk.f32.gmra.mxu3 %vm1559_vm3, %v2245_v38 }
 0x535   :  { %v2428_v38 = vpop.f32.mrf.mxu1 }
 0x537   :  { %v7933_v34 = vpop.eup %7932 }
 0x538   :  { %v7935_v61 = vpop.eup %7934  ;;  %v2238_v2 = vmul.f32 %v7933_v34, %v9997_v7  ;;  %v2507_v34 = vpop.f32.mrf.mxu3 }
 0x539   :  { %v2075_v25 = vpop.xlane.xlu1 %2074  ;;  %v2234_v63 = vmul.f32 %v7935_v61, %v9995_v40 }
 0x53a   :  { %7936 = vrcp.f32 %v2075_v25  ;;  %7466 = vmatmul.msk.f32.gmra.mxu1 %vm1559_vm3, %v2238_v2  ;;  %v10201_v25 = vpop.f32.mrf.mxu2 }
 0x53b   :  { %7462 = vmatmul.msk.f32.gmra.mxu0 %vm1559_vm3, %v2234_v63  ;;  %7474 = vmatmul.msk.f32.gmra.mxu3 %vm1559_vm3, %v2246_v27  ;;  %v3100_v63 = vld [vmem:[%s12354_s8] sm:$0xff] }
 0x53d   :  { %v2431_v27 = vpop.f32.mrf.mxu1 }
 0x540   :  { %v7937_v52 = vpop.eup %7936  ;;  %v2051_v16 = vpop.xlane.xlu2 %2050 }
 0x541   :  { %7938 = vrcp.f32 %v2051_v16  ;;  %v2063_v5 = vpop.xlane.xlu1 %2062  ;;  %v2243_v26 = vmul.f32 %v7937_v52, %v10011_v20 }
 0x542   :  { %7940 = vrcp.f32 %v2063_v5  ;;  %v2504_v16 = vpop.f32.mrf.mxu2 }
 0x543   :  { %7471 = vmatmul.msk.f32.gmra.mxu2 %vm1559_vm3, %v2243_v26 }
 0x547   :  { %v7939_v7 = vpop.eup %7938 }
 0x548   :  { %v7941_v40 = vpop.eup %7940  ;;  %v2235_v14 = vmul.f32 %v7939_v7, %v10024_v35 }
 0x549   :  { %v2087_v60 = vpop.xlane.xlu0 %2086  ;;  %v2239_v19 = vmul.f32 %v7941_v40, %v10020_v28 }
 0x54a   :  { %7942 = vrcp.f32 %v2087_v60  ;;  %7463 = vmatmul.msk.f32.gmra.mxu0 %vm1559_vm3, %v2235_v14 }
 0x54b   :  { %7467 = vmatmul.msk.f32.gmra.mxu1 %vm1559_vm3, %v2239_v19 }
 0x550   :  { %v7943_v58 = vpop.eup %7942  ;;  %v2114_v32 = vpop.xlane.xlu2 %2113 }
 0x551   :  { %7944 = vrcp.f32 %v2114_v32  ;;  %v2090_v15 = vpop.xlane.xlu0 %2089  ;;  %v2247_v20 = vmul.f32 %v7943_v58, %v10035_v3 }
 0x552   :  { %7946 = vrcp.f32 %v2090_v15 }
 0x553   :  { %7475 = vmatmul.msk.f32.gmra.mxu3 %vm1559_vm3, %v2247_v20 }
 0x557   :  { %v7945_v41 = vpop.eup %7944 }
 0x558   :  { %v7947_v51 = vpop.eup %7946  ;;  %v2256_v35 = vmul.f32 %v7945_v41, %v10046_v50  ;;  %v2126_v39 = vpop.xlane.xlu1 %2125 }
 0x559   :  { %v2248_v28 = vmul.f32 %v7947_v51, %v10043_v11  ;;  %7948 = vrcp.f32 %v2126_v39  ;;  %v2117_v18 = vpop.xlane.xlu0 %2116  ;;  %v3105_v11 = vld [vmem:[%s12354_s8 + $0x28] sm:$0xff]  ;;  %v2381_v50 = vpop.f32.mrf.mxu0 }
 0x55a   :  { %7950 = vrcp.f32 %v2117_v18  ;;  %7484 = vmatmul.msk.f32.vlgmr.msrb.gmra.mxu2 %vm1559_vm3, %v2256_v35  ;;  %3140 = vmatpush.msra.mxu0 %v3105_v11  ;;  %v3008_v5 = vadd.f32 %v2422_v30, %v2381_v50  ;;  %v2586_v51 = vpop.f32.mrf.mxu1  ;;  %v2627_v35 = vpop.f32.mrf.mxu2 }
 0x55b   :  { %7476 = vmatmul.msk.f32.vlgmr.msrb.gmra.mxu0 %vm1559_vm3, %v2248_v28 }
 0x55c   :  { %v3016_v60 = vadd.f32 %v3008_v5, %v2463_v55 }
 0x55e   :  { %v3024_v41 = vadd.f32 %v3016_v60, %v2504_v16 }
 0x55f   :  { %v7949_v45 = vpop.eup %7948 }
 0x560   :  { %v7951_v31 = vpop.eup %7950  ;;  %v2260_v3 = vmul.f32 %v7949_v45, %v10057_v44 }
 0x561   :  { %v2102_v21 = vpop.xlane.xlu2 %2101  ;;  %v2257_v36 = vmul.f32 %v7951_v31, %v10054_v54  ;;  %v3104_v54 = vld [vmem:[%s12354_s8 + $0x20] sm:$0xff]  ;;  %v2384_v42 = vpop.f32.mrf.mxu0 }
 0x562   :  { %7952 = vrcp.f32 %v2102_v21  ;;  %7488 = vmatmul.msk.f32.vlgmr.msra.gmra.mxu3 %vm1559_vm3, %v2260_v3  ;;  %3141 = vmatpush.msra.mxu0 %v3104_v54  ;;  %v3009_v20 = vadd.f32 %v2425_v48, %v2384_v42  ;;  %v2589_v50 = vpop.f32.mrf.mxu1  ;;  %v10224_v54 = vld [vmem:[%s12353_s7] ss:$0 sm:$0xff] }
 0x563   :  { %7485 = vmatmul.msk.f32.gmra.mxu2 %vm1559_vm3, %v2257_v36 }
 0x564   :  { %3142 = vmatpush.msra.mxu0 %v3103_v10  ;;  %v3017_v39 = vadd.f32 %v3009_v20, %v2466_v37 }
 0x566   :  { %3143 = vmatpush.msra.mxu0 %v3102_v13  ;;  %v3025_v36 = vadd.f32 %v3017_v39, %v2507_v34 }
 0x568   :  { %v7953_v46 = vpop.eup %7952 }
 0x569   :  { %v2252_v44 = vmul.f32 %v7953_v46, %v10067_v59  ;;  %v2129_v8 = vpop.xlane.xlu2 %2128  ;;  %v2387_v47 = vpop.f32.mrf.mxu0 }
 0x56a   :  { %7954 = vrcp.f32 %v2129_v8  ;;  %v3010_v30 = vadd.f32 %v2428_v38, %v2387_v47 }
 0x56b   :  { %7480 = vmatmul.msk.f32.vlgmr.msra.gmra.mxu1 %vm1559_vm3, %v2252_v44  ;;  %v2630_v44 = vpop.f32.mrf.mxu2 }
 0x570   :  { %v7955_v62 = vpop.eup %7954  ;;  %v2105_v9 = vpop.xlane.xlu0 %2104 }
 0x571   :  { %7956 = vrcp.f32 %v2105_v9  ;;  %v2093_v59 = vpop.xlane.xlu1 %2092  ;;  %v2261_v23 = vmul.f32 %v7955_v62, %v10075_v1  ;;  %v3101_v1 = vld [vmem:[%s12354_s8 + $0x8] sm:$0xff]  ;;  %v10207_v33 = vpop.f32.mrf.mxu0 }
 0x572   :  { %7958 = vrcp.f32 %v2093_v59  ;;  %3144 = vmatpush.msra.mxu0 %v3101_v1  ;;  %v3011_v38 = vadd.f32 %v2431_v27, %v10207_v33 }
 0x573   :  { %7489 = vmatmul.msk.f32.gmra.mxu3 %vm1559_vm3, %v2261_v23 }
 0x574   :  { %3145 = vmatpush.msra.mxu0 %v3100_v63 }
 0x577   :  { %v7957_v29 = vpop.eup %7956 }
 0x578   :  { %v7959_v56 = vpop.eup %7958  ;;  %v2253_v61 = vmul.f32 %v7957_v29, %v10085_v22  ;;  %v10209_v22 = vpop.f32.mrf.mxu3 }
 0x579   :  { %v2249_v2 = vmul.f32 %v7959_v56, %v10087_v17  ;;  %v2545_v14 = vpop.f32.mrf.mxu0  ;;  %v2592_v29 = vpop.f32.mrf.mxu1 }
 0x57a   :  { %7481 = vmatmul.msk.f32.gmra.mxu1 %vm1559_vm3, %v2253_v61  ;;  %v3032_v28 = vadd.f32 %v3024_v41, %v2545_v14 }
 0x57b   :  { %7477 = vmatmul.msk.f32.gmra.mxu0 %vm1559_vm3, %v2249_v2  ;;  %v2633_v2 = vpop.f32.mrf.mxu2 }
 0x57c   :  { %v3040_v21 = vadd.f32 %v3032_v28, %v2586_v51 }
 0x57e   :  { %v3048_v46 = vadd.f32 %v3040_v21, %v2627_v35 }
 0x580   :  { %v2096_v17 = vpop.xlane.xlu2 %2095  ;;  %v10211_v40 = vpop.f32.mrf.mxu3 }
 0x581   :  { %7960 = vrcp.f32 %v2096_v17  ;;  %v2120_v52 = vpop.xlane.xlu1 %2119  ;;  %v2548_v3 = vpop.f32.mrf.mxu0 }
 0x582   :  { %7962 = vrcp.f32 %v2120_v52  ;;  %v3033_v37 = vadd.f32 %v3025_v36, %v2548_v3 }
 0x586   :  { %v2636_v60 = vpop.f32.mrf.mxu2 }
 0x587   :  { %v7961_v26 = vpop.eup %7960 }
 0x588   :  { %v7963_v7 = vpop.eup %7962  ;;  %v2250_v19 = vmul.f32 %v7961_v26, %v10103_v4  ;;  %v2668_v45 = vpop.f32.mrf.mxu3 }
 0x589   :  { %v2108_v58 = vpop.xlane.xlu1 %2107  ;;  %v2132_v32 = vpop.xlane.xlu0 %2131  ;;  %v2258_v15 = vmul.f32 %v7963_v7, %v10105_v12  ;;  %v3056_v8 = vadd.f32 %v3048_v46, %v2668_v45 }
 0x58a   :  { %7964 = vrcp.f32 %v2108_v58  ;;  %7478 = vmatmul.msk.f32.gmra.mxu0 %vm1559_vm3, %v2250_v19  ;;  %v2551_v9 = vpop.f32.mrf.mxu0  ;;  %v2595_v26 = vpop.f32.mrf.mxu1 }
 0x58b   :  { %7966 = vrcp.f32 %v2132_v32  ;;  %7486 = vmatmul.msk.f32.gmra.mxu2 %vm1559_vm3, %v2258_v15  ;;  %v3068_v23 = vadd.f32 %v10224_v54, %v3056_v8 }
 0x58d   :  { %v3084_v56 = vmul.f32 0.01, %v3068_v23  ;;  %vm3076_vm11 = vcmp.ge.f32.partialorder %v3068_v23, 0.0 }
 0x58f   :  { %v3092_v52 = vsel %vm3076_vm11, %v3068_v23, %v3084_v56 }
 0x590   :  { %v7965_v18 = vpop.eup %7964  ;;  %v2123_v31 = vpop.xlane.xlu2 %2122 }
 0x591   :  { %v7967_v4 = vpop.eup %7966  ;;  %7968 = vrcp.f32 %v2123_v31  ;;  %v2099_v55 = vpop.xlane.xlu0 %2098  ;;  %v2254_v12 = vmul.f32 %v7965_v18, %v10114_v53  ;;  %v3041_v53 = vadd.f32 %v3033_v37, %v2589_v50 }
 0x592   :  { %7970 = vrcp.f32 %v2099_v55  ;;  %v2262_v11 = vmul.f32 %v7967_v4, %v10117_v43  ;;  %v3018_v43 = vadd.f32 %v3010_v30, %v10188_v0  ;;  %v2671_v47 = vpop.f32.mrf.mxu3  ;;  %v2554_v33 = vpop.f32.mrf.mxu0 }
 0x593   :  { %7482 = vmatmul.msk.f32.gmra.mxu1 %vm1559_vm3, %v2254_v12  ;;  %v3049_v13 = vadd.f32 %v3041_v53, %v2630_v44 }
 0x594   :  { %7490 = vmatmul.msk.f32.gmra.mxu3 %vm1559_vm3, %v2262_v11  ;;  %v3026_v0 = vadd.f32 %v3018_v43, %v10209_v22 }
 0x595   :  { %v3057_v34 = vadd.f32 %v3049_v13, %v2671_v47  ;;  %v2791_v31 = vpop.f32.mrf.mxu2 }
 0x597   :  { %v7969_v42 = vpop.eup %7968  ;;  %v3069_v16 = vadd.f32 %v10224_v54, %v3057_v34 }
 0x598   :  { %v7971_v10 = vpop.eup %7970  ;;  %v2135_v48 = vpop.xlane.xlu1 %2134  ;;  %v2259_v62 = vmul.f32 %v7969_v42, %v10129_v6  ;;  %v3034_v6 = vadd.f32 %v3026_v0, %v2551_v9 }
 0x599   :  { %7972 = vrcp.f32 %v2135_v48  ;;  %v2251_v59 = vmul.f32 %v7971_v10, %v10126_v49  ;;  %v3019_v49 = vadd.f32 %v3011_v38, %v10201_v25  ;;  %v3085_v14 = vmul.f32 0.01, %v3069_v16 }
 0x59a   :  { %7487 = vmatmul.msk.f32.gmra.mxu2 %vm1559_vm3, %v2259_v62  ;;  %v3042_v1 = vadd.f32 %v3034_v6, %v2592_v29  ;;  %v2674_v22 = vpop.f32.mrf.mxu3  ;;  %vm3077_vm12 = vcmp.ge.f32.partialorder %v3069_v16, 0.0  ;;  %v2709_v18 = vpop.f32.mrf.mxu0 }
 0x59b   :  { %7479 = vmatmul.msk.f32.gmra.mxu0 %vm1559_vm3, %v2251_v59  ;;  %v3027_v27 = vadd.f32 %v3019_v49, %v10211_v40  ;;  %v3093_v20 = vsel %vm3077_vm12, %v3069_v16, %v3085_v14 }
 0x59c   :  { %v3050_v5 = vadd.f32 %v3042_v1, %v2633_v2 }
 0x59d   :  { %v3035_v7 = vadd.f32 %v3027_v27, %v2554_v33  ;;  %v2794_v12 = vpop.f32.mrf.mxu2 }
 0x59e   :  { %v3058_v25 = vadd.f32 %v3050_v5, %v2674_v22 }
 0x59f   :  { %v7973_v61 = vpop.eup %7972  ;;  %v3043_v19 = vadd.f32 %v3035_v7, %v2595_v26 }
 0x5a0   :  { %v2263_v63 = vmul.f32 %v7973_v61, %v10138_v24  ;;  %v3070_v32 = vadd.f32 %v10224_v54, %v3058_v25  ;;  %v2750_v45 = vpop.f32.mrf.mxu1 }
 0x5a1   :  { %v2111_v17 = vpop.xlane.xlu2 %2110  ;;  %v3051_v15 = vadd.f32 %v3043_v19, %v2636_v60  ;;  %v3012_v37 = vadd.f32 %v2750_v45, %v2709_v18 }
 0x5a2   :  { %7974 = vrcp.f32 %v2111_v17  ;;  %7491 = vmatmul.msk.f32.gmra.mxu3 %vm1559_vm3, %v2263_v63  ;;  %v2677_v40 = vpop.f32.mrf.mxu3  ;;  %v3086_v51 = vmul.f32 0.01, %v3070_v32  ;;  %vm3078_vm13 = vcmp.ge.f32.partialorder %v3070_v32, 0.0 }
 0x5a3   :  { %7492 = vmatmul.msk.f32.vlgmr.msra.gmra.mxu0 %vm254_vm1, %v3092_v52  ;;  %v3059_v41 = vadd.f32 %v3051_v15, %v2677_v40  ;;  %v3020_v8 = vadd.f32 %v3012_v37, %v2791_v31 }
 0x5a4   :  { %v3094_v39 = vsel %vm3078_vm13, %v3070_v32, %v3086_v51  ;;  %v10257_v51 = vld [vmem:[%s12356_s10 + $0x3] ss:$0 sm:$0xff] }
 0x5a5   :  { %v3071_v35 = vadd.f32 %v10224_v54, %v3059_v41 }
 0x5a7   :  { %v3087_v28 = vmul.f32 0.01, %v3071_v35  ;;  %vm3079_vm14 = vcmp.ge.f32.partialorder %v3071_v35, 0.0  ;;  %v2712_v3 = vpop.f32.mrf.mxu0 }
 0x5a8   :  { %v7975_v24 = vpop.eup %7974  ;;  %v2753_v55 = vpop.f32.mrf.mxu1 }
 0x5a9   :  { %v2255_v58 = vmul.f32 %v7975_v24, %v10147_v57  ;;  %v3095_v57 = vsel %vm3079_vm14, %v3071_v35, %v3087_v28  ;;  %v3013_v38 = vadd.f32 %v2753_v55, %v2712_v3  ;;  %v10262_v35 = vld [vmem:[%s12356_s10 + $0x2] ss:$0 sm:$0xff] }
 0x5aa   :  { %v2832_v4 = vpop.f32.mrf.mxu3 }
 0x5ab   :  { %7483 = vmatmul.msk.f32.gmra.mxu1 %vm1559_vm3, %v2255_v58  ;;  %7493 = vmatmul.msk.f32.gmra.mxu0 %vm254_vm1, %v3093_v20  ;;  %v3028_v43 = vadd.f32 %v3020_v8, %v2832_v4  ;;  %v3021_v34 = vadd.f32 %v3013_v38, %v2794_v12 }
 0x5b3   :  { %7494 = vmatmul.msk.f32.gmra.mxu0 %vm254_vm1, %v3094_v39  ;;  %v10267_v39 = vld [vmem:[%s12356_s10] ss:$0 sm:$0xff] }
 0x5b5   :  { %v2797_v50 = vpop.f32.mrf.mxu2 }
 0x5b6   :  { %v2835_v21 = vpop.f32.mrf.mxu3 }
 0x5b7   :  { %v2756_v11 = vpop.f32.mrf.mxu1  ;;  %v3029_v6 = vadd.f32 %v3021_v34, %v2835_v21 }
 0x5b8   :  { %v2715_v36 = vpop.f32.mrf.mxu0 }
 0x5b9   :  { %v3014_v5 = vadd.f32 %v2756_v11, %v2715_v36  ;;  %v10284_v36 = vld [vmem:[%s12356_s10 + $0x1] ss:$0 sm:$0xff] }
 0x5bb   :  { %7495 = vmatmul.msk.f32.gmra.mxu0 %vm254_vm1, %v3095_v57  ;;  %v3022_v26 = vadd.f32 %v3014_v5, %v2797_v50 }
 0x5be   :  { %v2838_v30 = vpop.f32.mrf.mxu3 }
 0x5bf   :  { %v3030_v25 = vadd.f32 %v3022_v26, %v2838_v30  ;;  %v10351_v26 = vld [vmem:[%s12356_s10 + $0x4] ss:$0 sm:$0xff] }
 0x5c6   :  { %v2800_v53 = vpop.f32.mrf.mxu2 }
 0x5c7   :  { %v2718_v46 = vpop.f32.mrf.mxu0 }
 0x5c8   :  { %v2759_v44 = vpop.f32.mrf.mxu1 }
 0x5c9   :  { %v3015_v57 = vadd.f32 %v2759_v44, %v2718_v46 }
 0x5cb   :  { %v3023_v3 = vadd.f32 %v3015_v57, %v2800_v53 }
 0x5d6   :  { %v10247_v42 = vpop.f32.mrf.mxu3 }
 0x5d7   :  { %v3031_v11 = vadd.f32 %v3023_v3, %v10247_v42 }
 0x5d8   :  { %v2873_v10 = vpop.f32.mrf.mxu0 }
 0x5d9   :  { %v3036_v48 = vadd.f32 %v3028_v43, %v2873_v10 }
 0x5dd   :  { %v2955_v59 = vpop.f32.mrf.mxu2 }
 0x5e5   :  { %v2996_v13 = vpop.f32.mrf.mxu3 }
 0x5e6   :  { %v2958_v63 = vpop.f32.mrf.mxu2 }
 0x5e8   :  { %v2914_v62 = vpop.f32.mrf.mxu1 }
 0x5e9   :  { %v3044_v9 = vadd.f32 %v3036_v48, %v2914_v62 }
 0x5eb   :  { %v3052_v23 = vadd.f32 %v3044_v9, %v2955_v59 }
 0x5ed   :  { %v3060_v47 = vadd.f32 %v3052_v23, %v2996_v13 }
 0x5ef   :  { %v3072_v29 = vadd.f32 %v10224_v54, %v3060_v47 }
 0x5f1   :  { %vm3080_vm15 = vcmp.ge.f32.partialorder %v3072_v29, 0.0  ;;  %v3088_v0 = vmul.f32 0.01, %v3072_v29 }
 0x5f3   :  { %v3096_v56 = vsel %vm3080_vm15, %v3072_v29, %v3088_v0 }
 0x5f4   :  { %7496 = vmatmul.msk.f32.gmra.mxu0 %vm254_vm1, %v3096_v56 }
 0x5f6   :  { %v2999_v52 = vpop.f32.mrf.mxu3 }
 0x5f7   :  { %v2917_v49 = vpop.f32.mrf.mxu1 }
 0x5f8   :  { %v2876_v61 = vpop.f32.mrf.mxu0 }
 0x5f9   :  { %v3037_v2 = vadd.f32 %v3029_v6, %v2876_v61 }
 0x5fb   :  { %v3045_v1 = vadd.f32 %v3037_v2, %v2917_v49 }
 0x5fd   :  { %v3053_v17 = vadd.f32 %v3045_v1, %v2958_v63 }
 0x5ff   :  { %v3061_v16 = vadd.f32 %v3053_v17, %v2999_v52 }
 0x601   :  { %v3073_v33 = vadd.f32 %v10224_v54, %v3061_v16 }
 0x603   :  { %vm3081_vm0 = vcmp.ge.f32.partialorder %v3073_v33, 0.0  ;;  %v3089_v22 = vmul.f32 0.01, %v3073_v33 }
 0x605   :  { %v3097_v27 = vsel %vm3081_vm0, %v3073_v33, %v3089_v22 }
 0x606   :  { %7497 = vmatmul.msk.f32.gmra.mxu0 %vm254_vm1, %v3097_v27 }
 0x607   :  { %v2879_v7 = vpop.f32.mrf.mxu0 }
 0x608   :  { %v3038_v14 = vadd.f32 %v3030_v25, %v2879_v7  ;;  %v10357_v25 = vld [vmem:[%s12356_s10 + $0x6] ss:$0 sm:$0xff] }
 0x60e   :  { %v2961_v19 = vpop.f32.mrf.mxu2 }
 0x610   :  { %v2920_v60 = vpop.f32.mrf.mxu1 }
 0x611   :  { %v3046_v24 = vadd.f32 %v3038_v14, %v2920_v60  ;;  %v10364_v14 = vld [vmem:[%s12355_s9] sm:$0x1]  ;;  %v10373_v60 = vld [vmem:[%s12355_s9 + $0x1] sm:$0x1] }
 0x613   :  { %v3054_v58 = vadd.f32 %v3046_v24, %v2961_v19 }
 0x617   :  { %v3002_v32 = vpop.f32.mrf.mxu3 }
 0x618   :  { %v3062_v15 = vadd.f32 %v3054_v58, %v3002_v32  ;;  %v2882_v20 = vpop.f32.mrf.mxu0 }
 0x619   :  { %v3039_v50 = vadd.f32 %v3031_v11, %v2882_v20 }
 0x61a   :  { %v3074_v40 = vadd.f32 %v10224_v54, %v3062_v15 }
 0x61c   :  { %vm3082_vm2 = vcmp.ge.f32.partialorder %v3074_v40, 0.0  ;;  %v3090_v41 = vmul.f32 0.01, %v3074_v40 }
 0x61d   :  { %v2964_v10 = vpop.f32.mrf.mxu2 }
 0x61e   :  { %v3098_v28 = vsel %vm3082_vm2, %v3074_v40, %v3090_v41  ;;  %v10403_v40 = vld [vmem:[%s12356_s10 + $0x7] ss:$0 sm:$0xff]  ;;  %v10408_v41 = vld [vmem:[%s12356_s10 + $0x5] ss:$0 sm:$0xff] }
 0x61f   :  { %7498 = vmatmul.msk.f32.gmra.mxu0 %vm254_vm1, %v3098_v28 }
 0x620   :  { %v10270_v18 = vpop.f32.mrf.mxu0 }
 0x621   :  { %v3615_v45 = vmul.f32 %v10257_v51, %v10270_v18  ;;  %v3596_v31 = vmul.f32 %v10262_v35, %v10270_v18  ;;  %v3558_v4 = vmul.f32 %v10267_v39, %v10270_v18  ;;  %v3577_v30 = vmul.f32 %v10284_v36, %v10270_v18 }
 0x622   :  { %v3634_v24 = vmul.f32 %v10351_v26, %v10270_v18  ;;  %v3672_v58 = vmul.f32 %v10357_v25, %v10270_v18  ;;  %v3691_v57 = vmul.f32 %v10403_v40, %v10270_v18 }
 0x623   :  { %v3619_v55 = vsel %vm254_vm1, %v3615_v45, 0.0  ;;  %v3600_v12 = vsel %vm254_vm1, %v3596_v31, 0.0  ;;  %v3562_v21 = vsel %vm254_vm1, %v3558_v4, 0.0  ;;  %v3581_v48 = vsel %vm254_vm1, %v3577_v30, 0.0 }
 0x624   :  { %3620 = vadd.xlane.f32.xlu2 %v3619_v55  ;;  %3601 = vadd.xlane.f32.xlu0 %v3600_v12  ;;  %v3638_v32 = vsel %vm254_vm1, %v3634_v24, 0.0  ;;  %v3676_v20 = vsel %vm254_vm1, %v3672_v58, 0.0  ;;  %v3653_v45 = vmul.f32 %v10408_v41, %v10270_v18  ;;  %v3695_v4 = vsel %vm254_vm1, %v3691_v57, 0.0 }
 0x625   :  { %3563 = vadd.xlane.f32.xlu1 %v3562_v21  ;;  %v3005_v9 = vpop.f32.mrf.mxu3 }
 0x626   :  { %v3657_v3 = vsel %vm254_vm1, %v3653_v45, 0.0 }
 0x628   :  { %v2923_v46 = vpop.f32.mrf.mxu1  ;;  %v10289_v37 = vpop.f32.mrf.mxu0 }
 0x629   :  { %v3047_v44 = vadd.f32 %v3039_v50, %v2923_v46  ;;  %v3597_v8 = vmul.f32 %v10262_v35, %v10289_v37  ;;  %v3559_v53 = vmul.f32 %v10267_v39, %v10289_v37  ;;  %v3616_v13 = vmul.f32 %v10257_v51, %v10289_v37 }
 0x62a   :  { %v3578_v29 = vmul.f32 %v10284_v36, %v10289_v37  ;;  %v3673_v28 = vmul.f32 %v10357_v25, %v10289_v37  ;;  %v3692_v55 = vmul.f32 %v10403_v40, %v10289_v37  ;;  %v3654_v12 = vmul.f32 %v10408_v41, %v10289_v37 }
 0x62b   :  { %v3055_v43 = vadd.f32 %v3047_v44, %v2964_v10  ;;  %v3603_v42 = vsel %vm254_vm1, %v3597_v8, 0.0  ;;  %v3565_v62 = vsel %vm254_vm1, %v3559_v53, 0.0  ;;  %v3622_v56 = vsel %vm254_vm1, %v3616_v13, 0.0  ;;  %v10465_v53 = vld [vmem:[%s12355_s9 + $0x3] sm:$0x1] }
 0x62c   :  { %3582 = vadd.xlane.f32.xlu0 %v3581_v48  ;;  %3566 = vadd.xlane.f32.xlu2 %v3565_v62  ;;  %v3679_v31 = vsel %vm254_vm1, %v3673_v28, 0.0  ;;  %v3635_v21 = vmul.f32 %v10351_v26, %v10289_v37  ;;  %v3698_v11 = vsel %vm254_vm1, %v3692_v55, 0.0  ;;  %v3660_v50 = vsel %vm254_vm1, %v3654_v12, 0.0 }
 0x62d   :  { %v3063_v59 = vadd.f32 %v3055_v43, %v3005_v9  ;;  %3604 = vadd.xlane.f32.xlu1 %v3603_v42 }
 0x62e   :  { %v3641_v30 = vsel %vm254_vm1, %v3635_v21, 0.0 }
 0x62f   :  { %v3075_v23 = vadd.f32 %v10224_v54, %v3063_v59  ;;  %v3584_v54 = vsel %vm254_vm1, %v3578_v29, 0.0 }
 0x630   :  { %v10301_v47 = vpop.f32.mrf.mxu0 }
 0x631   :  { %v3598_v38 = vmul.f32 %v10262_v35, %v10301_v47  ;;  %vm3083_vm4 = vcmp.ge.f32.partialorder %v3075_v23, 0.0  ;;  %v3091_v0 = vmul.f32 0.01, %v3075_v23  ;;  %v3579_v61 = vmul.f32 %v10284_v36, %v10301_v47 }
 0x632   :  { %v3560_v2 = vmul.f32 %v10267_v39, %v10301_v47  ;;  %v3617_v1 = vmul.f32 %v10257_v51, %v10301_v47  ;;  %v3674_v46 = vmul.f32 %v10357_v25, %v10301_v47  ;;  %v3693_v44 = vmul.f32 %v10403_v40, %v10301_v47 }
 0x633   :  { %v3606_v34 = vsel %vm254_vm1, %v3598_v38, 0.0  ;;  %v3099_v6 = vsel %vm3083_vm4, %v3075_v23, %v3091_v0  ;;  %v3587_v63 = vsel %vm254_vm1, %v3579_v61, 0.0  ;;  %v3636_v8 = vmul.f32 %v10351_v26, %v10301_v47  ;;  %v10495_v61 = vld [vmem:[%s12355_s9 + $0x2] sm:$0x1] }
 0x634   :  { %3623 = vadd.xlane.f32.xlu0 %v3622_v56  ;;  %3607 = vadd.xlane.f32.xlu2 %v3606_v34  ;;  %v3568_v17 = vsel %vm254_vm1, %v3560_v2, 0.0  ;;  %v3625_v52 = vsel %vm254_vm1, %v3617_v1, 0.0  ;;  %v3682_v10 = vsel %vm254_vm1, %v3674_v46, 0.0  ;;  %v3701_v43 = vsel %vm254_vm1, %v3693_v44, 0.0 }
 0x635   :  { %3585 = vadd.xlane.f32.xlu1 %v3584_v54  ;;  %7499 = vmatmul.msk.f32.gmra.mxu0 %vm254_vm1, %v3099_v6  ;;  %v3644_v48 = vsel %vm254_vm1, %v3636_v8, 0.0  ;;  %v3655_v62 = vmul.f32 %v10408_v41, %v10301_v47 }
 0x637   :  { %v3663_v23 = vsel %vm254_vm1, %v3655_v62, 0.0 }
 0x638   :  { %v10315_v49 = vpop.f32.mrf.mxu0 }
 0x639   :  { %7500 = vmatpush.xpose.msk.msrb.mxu1 %vm254_vm1, %v10315_v49  ;;  %7505 = vmatpush.xpose.msk.msra.mxu2 %vm254_vm1, %v10315_v49  ;;  %v3618_v16 = vmul.f32 %v10257_v51, %v10315_v49  ;;  %v3599_v33 = vmul.f32 %v10262_v35, %v10315_v49  ;;  %v3561_v22 = vmul.f32 %v10267_v39, %v10315_v49 }
 0x63a   :  { %7510 = vmatpush.xpose.msk.msrb.mxu3 %vm254_vm1, %v10315_v49  ;;  %v3580_v19 = vmul.f32 %v10284_v36, %v10315_v49  ;;  %v3675_v42 = vmul.f32 %v10357_v25, %v10315_v49  ;;  %v3637_v9 = vmul.f32 %v10351_v26, %v10315_v49  ;;  %v3694_v38 = vmul.f32 %v10403_v40, %v10315_v49 }
 0x63b   :  { %v3628_v27 = vsel %vm254_vm1, %v3618_v16, 0.0  ;;  %v3609_v5 = vsel %vm254_vm1, %v3599_v33, 0.0  ;;  %v3571_v7 = vsel %vm254_vm1, %v3561_v22, 0.0  ;;  %v3656_v2 = vmul.f32 %v10408_v41, %v10315_v49  ;;  %v10518_v33 = vld [vmem:[%s12355_s9 + $0x7] sm:$0x1] }
 0x63c   :  { %3588 = vadd.xlane.f32.xlu2 %v3587_v63  ;;  %3569 = vadd.xlane.f32.xlu0 %v3568_v17  ;;  %v3590_v15 = vsel %vm254_vm1, %v3580_v19, 0.0  ;;  %v3685_v59 = vsel %vm254_vm1, %v3675_v42, 0.0  ;;  %v3647_v13 = vsel %vm254_vm1, %v3637_v9, 0.0  ;;  %v3704_v54 = vsel %vm254_vm1, %v3694_v38, 0.0  ;;  %v10505_v63 = vld [vmem:[%s12355_s9 + $0x4] sm:$0x1] }
 0x63d   :  { %3626 = vadd.xlane.f32.xlu1 %v3625_v52  ;;  %7501 = vmatpush.xpose.msk.msrb.mxu1 %vm254_vm1, %v10301_v47  ;;  %v3666_v1 = vsel %vm254_vm1, %v3656_v2, 0.0  ;;  %v8248_v42 = vld [vmem:[%s12358_s12] ss:$0 sm:$0xff]  ;;  %v8249_v38 = vld [vmem:[%s12358_s12 + $0x4] ss:$0 sm:$0xff] }
 0x63e   :  { %7506 = vmatpush.xpose.msk.msra.mxu2 %vm254_vm1, %v10301_v47  ;;  %7511 = vmatpush.xpose.msk.msrb.mxu3 %vm254_vm1, %v10301_v47  ;;  %v5198_v62 = vmul.f32 %v8248_v42, %v10315_v49  ;;  %v5197_v9 = vmul.f32 %v8248_v42, %v10301_v47  ;;  %v8251_v2 = vld [vmem:[%s12358_s12 + $0x2] ss:$0 sm:$0xff] }
 0x641   :  { %7502 = vmatpush.xpose.msk.msrb.mxu1 %vm254_vm1, %v10289_v37 }
 0x642   :  { %7507 = vmatpush.xpose.msk.msra.mxu2 %vm254_vm1, %v10289_v37  ;;  %7512 = vmatpush.xpose.msk.msrb.mxu3 %vm254_vm1, %v10289_v37 }
 0x644   :  { %3629 = vadd.xlane.f32.xlu2 %v3628_v27  ;;  %3610 = vadd.xlane.f32.xlu0 %v3609_v5 }
 0x645   :  { %3572 = vadd.xlane.f32.xlu1 %v3571_v7  ;;  %7503 = vmatpush.xpose.msk.msrb.mxu1 %vm254_vm1, %v10270_v18  ;;  %v10529_v7 = vld [vmem:[%s12355_s9 + $0x5] sm:$0x1] }
 0x646   :  { %7508 = vmatpush.xpose.msk.msra.mxu2 %vm254_vm1, %v10270_v18  ;;  %7513 = vmatpush.xpose.msk.msrb.mxu3 %vm254_vm1, %v10270_v18 }
 0x648   :  { %7504 = vmatmul.msk.f32.vlgmr.msrb.gmra.mxu1 %vm254_vm1, %v10364_v14 }
 0x649   :  { %7515 = vmatpush.xpose.msk.msra.mxu1 %vm254_vm1, %v10315_v49  ;;  %7509 = vmatmul.msk.f32.vlgmr.msra.gmra.mxu2 %vm254_vm1, %v10373_v60 }
 0x64a   :  { %7520 = vmatpush.xpose.msk.msrb.mxu2 %vm254_vm1, %v10315_v49  ;;  %7525 = vmatpush.xpose.msk.msra.mxu3 %vm254_vm1, %v10315_v49 }
 0x64b   :  { %7514 = vmatmul.msk.f32.vlgmr.msrb.gmra.mxu3 %vm254_vm1, %v10495_v61 }
 0x64c   :  { %3639 = vadd.xlane.f32.xlu2 %v3638_v32  ;;  %3591 = vadd.xlane.f32.xlu0 %v3590_v15 }
 0x64d   :  { %7516 = vmatpush.xpose.msk.msra.mxu1 %vm254_vm1, %v10301_v47  ;;  %3677 = vadd.xlane.f32.xlu1 %v3676_v20 }
 0x64e   :  { %7521 = vmatpush.xpose.msk.msrb.mxu2 %vm254_vm1, %v10301_v47  ;;  %7526 = vmatpush.xpose.msk.msra.mxu3 %vm254_vm1, %v10301_v47 }
 0x651   :  { %7517 = vmatpush.xpose.msk.msra.mxu1 %vm254_vm1, %v10289_v37 }
 0x652   :  { %7522 = vmatpush.xpose.msk.msrb.mxu2 %vm254_vm1, %v10289_v37  ;;  %7527 = vmatpush.xpose.msk.msra.mxu3 %vm254_vm1, %v10289_v37 }
 0x654   :  { %3680 = vadd.xlane.f32.xlu2 %v3679_v31  ;;  %3696 = vadd.xlane.f32.xlu0 %v3695_v4 }
 0x655   :  { %7518 = vmatpush.xpose.msk.msra.mxu1 %vm254_vm1, %v10270_v18  ;;  %3658 = vadd.xlane.f32.xlu1 %v3657_v3  ;;  %v10543_v3 = vld [vmem:[%s12355_s9 + $0x6] sm:$0x1] }
 0x656   :  { %7523 = vmatpush.xpose.msk.msrb.mxu2 %vm254_vm1, %v10270_v18  ;;  %7528 = vmatpush.xpose.msk.msra.mxu3 %vm254_vm1, %v10270_v18 }
 0x658   :  { %7519 = vmatmul.msk.f32.vlgmr.msra.gmra.mxu1 %vm254_vm1, %v10465_v53 }
 0x659   :  { %7530 = vmatpush.xpose.msk.msrb.mxu1 %vm254_vm1, %v10315_v49  ;;  %7524 = vmatmul.msk.f32.vlgmr.msrb.gmra.mxu2 %vm254_vm1, %v10505_v63 }
 0x65a   :  { %7535 = vmatpush.xpose.msk.msra.mxu2 %vm254_vm1, %v10315_v49  ;;  %7529 = vmatmul.msk.f32.vlgmr.msra.gmra.mxu3 %vm254_vm1, %v10529_v7 }
 0x65c   :  { %3699 = vadd.xlane.f32.xlu2 %v3698_v11  ;;  %3661 = vadd.xlane.f32.xlu0 %v3660_v50 }
 0x65d   :  { %7531 = vmatpush.xpose.msk.msrb.mxu1 %vm254_vm1, %v10301_v47  ;;  %3642 = vadd.xlane.f32.xlu1 %v3641_v30 }
 0x65e   :  { %7536 = vmatpush.xpose.msk.msra.mxu2 %vm254_vm1, %v10301_v47 }
 0x661   :  { %7532 = vmatpush.xpose.msk.msrb.mxu1 %vm254_vm1, %v10289_v37 }
 0x662   :  { %7537 = vmatpush.xpose.msk.msra.mxu2 %vm254_vm1, %v10289_v37 }
 0x664   :  { %3683 = vadd.xlane.f32.xlu2 %v3682_v10  ;;  %3702 = vadd.xlane.f32.xlu0 %v3701_v43 }
 0x665   :  { %7533 = vmatpush.xpose.msk.msrb.mxu1 %vm254_vm1, %v10270_v18  ;;  %3645 = vadd.xlane.f32.xlu1 %v3644_v48 }
 0x666   :  { %7538 = vmatpush.xpose.msk.msra.mxu2 %vm254_vm1, %v10270_v18 }
 0x668   :  { %7534 = vmatmul.msk.f32.vlgmr.msrb.gmra.mxu1 %vm254_vm1, %v10543_v3 }
 0x669   :  { %7539 = vmatmul.msk.f32.vlgmr.msra.gmra.mxu2 %vm254_vm1, %v10518_v33 }
 0x66c   :  { %3686 = vadd.xlane.f32.xlu2 %v3685_v59  ;;  %3664 = vadd.xlane.f32.xlu0 %v3663_v23  ;;  %v5196_v59 = vmul.f32 %v8248_v42, %v10289_v37  ;;  %v5195_v23 = vmul.f32 %v8248_v42, %v10270_v18 }
 0x66d   :  { %3648 = vadd.xlane.f32.xlu1 %v3647_v13 }
 0x671   :  { %v10481_v29 = vpop.f32.mrf.mxu0 }
 0x672   :  { %v3739_v0 = vmul.f32 %v10262_v35, %v10481_v29  ;;  %v3707_v56 = vmul.f32 %v10267_v39, %v10481_v29  ;;  %v3755_v17 = vmul.f32 %v10257_v51, %v10481_v29  ;;  %v3723_v5 = vmul.f32 %v10284_v36, %v10481_v29 }
 0x674   :  { %v3743_v34 = vsel %vm254_vm1, %v3739_v0, 0.0  ;;  %v3711_v6 = vsel %vm254_vm1, %v3707_v56, 0.0  ;;  %3705 = vadd.xlane.f32.xlu0 %v3704_v54  ;;  %v3759_v22 = vsel %vm254_vm1, %v3755_v17, 0.0  ;;  %v3727_v24 = vsel %vm254_vm1, %v3723_v5, 0.0  ;;  %v8250_v54 = vld [vmem:[%s12358_s12 + $0x1] ss:$0 sm:$0xff] }
 0x675   :  { %3744 = vadd.xlane.f32.xlu2 %v3743_v34  ;;  %3712 = vadd.xlane.f32.xlu1 %v3711_v6  ;;  %v5214_v0 = vmul.f32 %v8249_v38, %v10315_v49  ;;  %v5213_v6 = vmul.f32 %v8249_v38, %v10301_v47  ;;  %v5201_v17 = vmul.f32 %v8250_v54, %v10301_v47 }
 0x676   :  { %v5200_v5 = vmul.f32 %v8250_v54, %v10289_v37 }
 0x67c   :  { %3667 = vadd.xlane.f32.xlu0 %v3666_v1  ;;  %v5206_v1 = vmul.f32 %v8251_v2, %v10315_v49 }
 0x683   :  { %v10511_v52 = vpop.f32.mrf.mxu0 }
 0x684   :  { %v3740_v16 = vmul.f32 %v10262_v35, %v10511_v52  ;;  %3760 = vadd.xlane.f32.xlu0 %v3759_v22  ;;  %v3756_v19 = vmul.f32 %v10257_v51, %v10511_v52  ;;  %v3724_v28 = vmul.f32 %v10284_v36, %v10511_v52 }
 0x686   :  { %v3746_v27 = vsel %vm254_vm1, %v3740_v16, 0.0  ;;  %v3762_v58 = vsel %vm254_vm1, %v3756_v19, 0.0  ;;  %v3730_v57 = vsel %vm254_vm1, %v3724_v28, 0.0  ;;  %v5199_v19 = vmul.f32 %v8250_v54, %v10270_v18 }
 0x687   :  { %3747 = vadd.xlane.f32.xlu2 %v3746_v27 }
 0x68c   :  { %3728 = vadd.xlane.f32.xlu0 %v3727_v24  ;;  %v5204_v24 = vmul.f32 %v8251_v2, %v10289_v37 }
 0x694   :  { %3763 = vadd.xlane.f32.xlu0 %v3762_v58  ;;  %v5203_v58 = vmul.f32 %v8251_v2, %v10270_v18 }
 0x697   :  { %v3621_v32 = vpop.xlane.xlu2 %3620  ;;  %v3602_v15 = vpop.xlane.xlu0 %3601 }
 0x698   :  { %v3564_v20 = vpop.xlane.xlu1 %3563 }
 0x699   :  { %3837 = vperm.xlu1 %7688, %v3564_v20   ;;  %v8253_v20 = vld [vmem:[%s12358_s12 + $0x6] ss:$0 sm:$0xff] }
 0x69a   :  { %v5222_v28 = vmul.f32 %v8253_v20, %v10315_v49 }
 0x69c   :  { %3731 = vadd.xlane.f32.xlu0 %v3730_v57  ;;  %v10547_v11 = vpop.f32.mrf.mxu0  ;;  %v5221_v57 = vmul.f32 %v8253_v20, %v10301_v47 }
 0x69f   :  { %v3583_v45 = vpop.xlane.xlu0 %3582  ;;  %v3567_v31 = vpop.xlane.xlu2 %3566  ;;  %3897 = vperm.xlu2 %7689, %v3621_v32   ;;  %v8252_v32 = vld [vmem:[%s12358_s12 + $0x5] ss:$0 sm:$0xff] }
 0x6a0   :  { %v3605_v4 = vpop.xlane.xlu1 %3604 }
 0x6a1   :  { %3857 = vperm.xlu1 %7688, %v3583_v45  }
 0x6a7   :  { %v3624_v55 = vpop.xlane.xlu0 %3623  ;;  %v3608_v21 = vpop.xlane.xlu2 %3607 }
 0x6a8   :  { %v3586_v12 = vpop.xlane.xlu1 %3585  ;;  %3902 = vperm.xlu2 %7689, %v3624_v55  }
 0x6a9   :  { %3882 = vperm.xlu1 %7688, %v3605_v4  }
 0x6af   :  { %v3570_v50 = vpop.xlane.xlu0 %3569  ;;  %v3589_v44 = vpop.xlane.xlu2 %3588 }
 0x6b0   :  { %v3627_v30 = vpop.xlane.xlu1 %3626  ;;  %3877 = vperm.xlu0 %7687, %v3602_v15   ;;  %v5218_v15 = vmul.f32 %v8252_v32, %v10315_v49 }
 0x6b1   :  { %3862 = vperm.xlu1 %7688, %v3586_v12   ;;  %3907 = vperm.xlu2 %7689, %v3627_v30   ;;  %v5215_v12 = vmul.f32 %v8252_v32, %v10270_v18 }
 0x6b2   :  { %v10549_v46 = vpop.f32.mrf.mxu0 }
 0x6b3   :  { %7540 = vmatpush.xpose.msk.msrb.mxu3 %vm254_vm1, %v10549_v46  ;;  %7545 = vmatpush.xpose.msk.msra.mxu1 %vm254_vm1, %v10549_v46 }
 0x6b4   :  { %7550 = vmatpush.xpose.msk.msrb.mxu2 %vm254_vm1, %v10549_v46  ;;  %7560 = vmatpush.xpose.msk.msrb.mxu0 %vm254_vm1, %v10549_v46 }
 0x6b7   :  { %7541 = vmatpush.xpose.msk.msrb.mxu3 %vm254_vm1, %v10547_v11  ;;  %7546 = vmatpush.xpose.msk.msra.mxu1 %vm254_vm1, %v10547_v11  ;;  %v3611_v8 = vpop.xlane.xlu0 %3610  ;;  %v3630_v43 = vpop.xlane.xlu2 %3629 }
 0x6b8   :  { %7551 = vmatpush.xpose.msk.msrb.mxu2 %vm254_vm1, %v10547_v11  ;;  %7561 = vmatpush.xpose.msk.msrb.mxu0 %vm254_vm1, %v10547_v11  ;;  %v3573_v10 = vpop.xlane.xlu1 %3572 }
 0x6b9   :  { %3887 = vperm.xlu1 %7688, %v3608_v21   ;;  %3852 = vperm.xlu2 %7689, %v3573_v10   ;;  %v5219_v21 = vmul.f32 %v8253_v20, %v10270_v18  ;;  %v8255_v10 = vld [vmem:[%s12358_s12 + $0x7] ss:$0 sm:$0xff] }
 0x6ba   :  { %3842 = vperm.xlu0 %7687, %v3567_v31   ;;  %v5216_v31 = vmul.f32 %v8252_v32, %v10289_v37  ;;  %v5225_v42 = vmul.f32 %v8255_v10, %v10301_v47 }
 0x6bb   :  { %7542 = vmatpush.xpose.msk.msrb.mxu3 %vm254_vm1, %v10511_v52  ;;  %7547 = vmatpush.xpose.msk.msra.mxu1 %vm254_vm1, %v10511_v52 }
 0x6bc   :  { %7552 = vmatpush.xpose.msk.msrb.mxu2 %vm254_vm1, %v10511_v52  ;;  %7562 = vmatpush.xpose.msk.msrb.mxu0 %vm254_vm1, %v10511_v52 }
 0x6bf   :  { %7543 = vmatpush.xpose.msk.msrb.mxu3 %vm254_vm1, %v10481_v29  ;;  %7548 = vmatpush.xpose.msk.msra.mxu1 %vm254_vm1, %v10481_v29  ;;  %v3592_v48 = vpop.xlane.xlu0 %3591  ;;  %v3640_v13 = vpop.xlane.xlu2 %3639 }
 0x6c0   :  { %7553 = vmatpush.xpose.msk.msrb.mxu2 %vm254_vm1, %v10481_v29  ;;  %7563 = vmatpush.xpose.msk.msrb.mxu0 %vm254_vm1, %v10481_v29  ;;  %v3678_v56 = vpop.xlane.xlu1 %3677 }
 0x6c1   :  { %3867 = vperm.xlu1 %7688, %v3589_v44   ;;  %3872 = vperm.xlu2 %7689, %v3592_v48  }
 0x6c2   :  { %3847 = vperm.xlu0 %7687, %v3570_v50   ;;  %7549 = vmatmul.msk.f32.vlgmr.msra.gmra.mxu1 %vm254_vm1, %v10373_v60  ;;  %v5212_v60 = vmul.f32 %v8249_v38, %v10289_v37 }
 0x6c3   :  { %7555 = vmatpush.xpose.msk.msra.mxu3 %vm254_vm1, %v10549_v46  ;;  %7565 = vmatpush.xpose.msk.msrb.mxu1 %vm254_vm1, %v10549_v46 }
 0x6c4   :  { %7570 = vmatpush.xpose.msk.msra.mxu2 %vm254_vm1, %v10549_v46  ;;  %5283 = vmatpush.msra.mxu0 %v5198_v62 }
 0x6c5   :  { %7564 = vmatmul.msk.f32.vlgmr.msrb.gmra.mxu0 %vm254_vm1, %v10505_v63  ;;  %7554 = vmatmul.msk.f32.vlgmr.msrb.gmra.mxu2 %vm254_vm1, %v10495_v61  ;;  %v5202_v61 = vmul.f32 %v8250_v54, %v10315_v49  ;;  %v5211_v63 = vmul.f32 %v8249_v38, %v10270_v18  ;;  %v3708_v38 = vmul.f32 %v10267_v39, %v10511_v52 }
 0x6c6   :  { %5284 = vmatpush.msra.mxu0 %v5197_v9  ;;  %7544 = vmatmul.msk.f32.vlgmr.msrb.gmra.mxu3 %vm254_vm1, %v10364_v14  ;;  %v5205_v14 = vmul.f32 %v8251_v2, %v10301_v47  ;;  %v5223_v9 = vmul.f32 %v8255_v10, %v10270_v18 }
 0x6c7   :  { %7556 = vmatpush.xpose.msk.msra.mxu3 %vm254_vm1, %v10547_v11  ;;  %7566 = vmatpush.xpose.msk.msrb.mxu1 %vm254_vm1, %v10547_v11  ;;  %v3697_v34 = vpop.xlane.xlu0 %3696  ;;  %v10640_v16 = vpop.xlane.xlu2 %3680 }
 0x6c8   :  { %7571 = vmatpush.xpose.msk.msra.mxu2 %vm254_vm1, %v10547_v11  ;;  %5285 = vmatpush.msra.mxu0 %v5196_v59  ;;  %v3659_v27 = vpop.xlane.xlu1 %3658 }
 0x6c9   :  { %3892 = vperm.xlu1 %7688, %v3611_v8   ;;  %3977 = vperm.xlu2 %7689, %v3697_v34  }
 0x6ca   :  { %5286 = vmatpush.msra.mxu0 %v5195_v23  ;;  %3912 = vperm.xlu0 %7687, %v3630_v43   ;;  %v5226_v43 = vmul.f32 %v8255_v10, %v10315_v49 }
 0x6cb   :  { %7557 = vmatpush.xpose.msk.msra.mxu3 %vm254_vm1, %v10511_v52  ;;  %7567 = vmatpush.xpose.msk.msrb.mxu1 %vm254_vm1, %v10511_v52 }
 0x6cc   :  { %5447 = vmatpush.msrb.mxu0 %v5214_v0  ;;  %7572 = vmatpush.xpose.msk.msra.mxu2 %vm254_vm1, %v10511_v52 }
 0x6ce   :  { %5448 = vmatpush.msrb.mxu0 %v5213_v6  ;;  %v3742_v6 = vmul.f32 %v10262_v35, %v10549_v46 }
 0x6cf   :  { %7558 = vmatpush.xpose.msk.msra.mxu3 %vm254_vm1, %v10481_v29  ;;  %7568 = vmatpush.xpose.msk.msrb.mxu1 %vm254_vm1, %v10481_v29  ;;  %v10643_v22 = vpop.xlane.xlu0 %3661  ;;  %v3700_v4 = vpop.xlane.xlu2 %3699 }
 0x6d0   :  { %5449 = vmatpush.msrb.mxu0 %v5212_v60  ;;  %7573 = vmatpush.xpose.msk.msra.mxu2 %vm254_vm1, %v10481_v29  ;;  %v10692_v48 = vpop.xlane.xlu1 %3642  ;;  %v3741_v60 = vmul.f32 %v10262_v35, %v10547_v11  ;;  %v3752_v2 = vsel %vm254_vm1, %v3742_v6, 0.0 }
 0x6d1   :  { %3957 = vperm.xlu1 %7688, %v3678_v56   ;;  %3937 = vperm.xlu2 %7689, %v3659_v27   ;;  %v3714_v56 = vsel %vm254_vm1, %v3708_v38, 0.0 }
 0x6d2   :  { %5450 = vmatpush.msrb.mxu0 %v5211_v63  ;;  %3917 = vperm.xlu0 %7687, %v3640_v13  }
 0x6d3   :  { %7575 = vmatpush.xpose.msk.msrb.mxu3 %vm254_vm1, %v10549_v46  ;;  %5324 = vmatpush.msra.mxu1 %v5202_v61 }
 0x6d4   :  { %5365 = vmatpush.msrb.mxu2 %v5206_v1  ;;  %7569 = vmatmul.msk.f32.vlgmr.msrb.gmra.mxu1 %vm254_vm1, %v10529_v7  ;;  %v5217_v7 = vmul.f32 %v8252_v32, %v10301_v47  ;;  %v3749_v1 = vsel %vm254_vm1, %v3741_v60, 0.0 }
 0x6d5   :  { %5325 = vmatpush.msra.mxu1 %v5201_v17  ;;  %7574 = vmatmul.msk.f32.vlgmr.msra.gmra.mxu2 %vm254_vm1, %v10543_v3  ;;  %v5220_v3 = vmul.f32 %v8253_v20, %v10289_v37  ;;  %v3726_v17 = vmul.f32 %v10284_v36, %v10549_v46 }
 0x6d6   :  { %5366 = vmatpush.msrb.mxu2 %v5205_v14  ;;  %7559 = vmatmul.msk.f32.vlgmr.msra.gmra.mxu3 %vm254_vm1, %v10465_v53  ;;  %v8254_v53 = vld [vmem:[%s12358_s12 + $0x3] ss:$0 sm:$0xff]  ;;  %v3709_v14 = vmul.f32 %v10267_v39, %v10547_v11 }
 0x6d7   :  { %7576 = vmatpush.xpose.msk.msrb.mxu3 %vm254_vm1, %v10547_v11  ;;  %5326 = vmatpush.msra.mxu1 %v5200_v5  ;;  %v10669_v45 = vpop.xlane.xlu0 %3702  ;;  %v5210_v55 = vmul.f32 %v8254_v53, %v10315_v49  ;;  %v5209_v50 = vmul.f32 %v8254_v53, %v10301_v47  ;;  %v5208_v30 = vmul.f32 %v8254_v53, %v10289_v37  ;;  %v10695_v62 = vpop.xlane.xlu2 %3683  ;;  %v3736_v35 = vsel %vm254_vm1, %v3726_v17, 0.0 }
 0x6d8   :  { %5367 = vmatpush.msrb.mxu2 %v5204_v24  ;;  %v5207_v8 = vmul.f32 %v8254_v53, %v10270_v18  ;;  %v10701_v23 = vpop.xlane.xlu1 %3645  ;;  %v3757_v47 = vmul.f32 %v10257_v51, %v10547_v11  ;;  %v3717_v5 = vsel %vm254_vm1, %v3709_v14, 0.0 }
 0x6d9   :  { %5327 = vmatpush.msra.mxu1 %v5199_v19  ;;  %v3819_v19 = vmul.f32 %v10403_v40, %v10481_v29 }
 0x6da   :  { %5368 = vmatpush.msrb.mxu2 %v5203_v58  ;;  %3982 = vperm.xlu0 %7687, %v3700_v4   ;;  %v3765_v18 = vsel %vm254_vm1, %v3757_v47, 0.0  ;;  %v3725_v58 = vmul.f32 %v10284_v36, %v10547_v11  ;;  %v3710_v4 = vmul.f32 %v10267_v39, %v10549_v46  ;;  %v3219_v36 = vpop.f32.mrf.mxu1 }
 0x6db   :  { %5488 = vmatpush.msrb.mxu1 %v5218_v15  ;;  %7577 = vmatpush.xpose.msk.msrb.mxu3 %vm254_vm1, %v10511_v52  ;;  %v3823_v20 = vsel %vm254_vm1, %v3819_v19, 0.0 }
 0x6dc   :  { %5529 = vmatpush.msra.mxu2 %v5222_v28  ;;  %v3733_v28 = vsel %vm254_vm1, %v3725_v58, 0.0 }
 0x6dd   :  { %5489 = vmatpush.msrb.mxu1 %v5217_v7  ;;  %v3265_v7 = vpop.f32.mrf.mxu3 }
 0x6de   :  { %5530 = vmatpush.msra.mxu2 %v5221_v57 }
 0x6df   :  { %5490 = vmatpush.msrb.mxu1 %v5216_v31  ;;  %7578 = vmatpush.xpose.msk.msrb.mxu3 %vm254_vm1, %v10481_v29  ;;  %v10683_v44 = vpop.xlane.xlu0 %3664  ;;  %v10703_v49 = vpop.xlane.xlu2 %3686  ;;  %v10749_v31 = vperm.slane %v3265_v7, 0 }
 0x6e0   :  { %5531 = vmatpush.msra.mxu2 %v5220_v3  ;;  %v10711_v0 = vpop.xlane.xlu1 %3648 }
 0x6e1   :  { %5491 = vmatpush.msrb.mxu1 %v5215_v12  ;;  %v3720_v12 = vsel %vm254_vm1, %v3710_v4, 0.0 }
 0x6e2   :  { %5532 = vmatpush.msra.mxu2 %v5219_v21  ;;  %7579 = vmatmul.msk.f32.vlgmr.msrb.gmra.mxu3 %vm254_vm1, %v10518_v33  ;;  %v5224_v33 = vmul.f32 %v8255_v10, %v10289_v37  ;;  %v10762_v10 = vld [vmem:[%s12436_s26 + $0x8] sm:$0xff]  ;;  %v3288_v38 = vpop.f32.mrf.mxu1 }
 0x6e3   :  { %5406 = vmatpush.msra.mxu3 %v5210_v55  ;;  %v10775_v6 = vperm.slane %v3288_v38, 0 }
 0x6e5   :  { %5407 = vmatpush.msra.mxu3 %v5209_v50 }
 0x6e7   :  { %5408 = vmatpush.msra.mxu3 %v5208_v30  ;;  %v10699_v59 = vpop.xlane.xlu0 %3705  ;;  %v10757_v30 = vperm.slane %v3219_v36, 0 }
 0x6e8   :  { %v10713_v37 = vpop.xlane.xlu2 %3744  ;;  %v10723_v54 = vpop.xlane.xlu1 %3712 }
 0x6e9   :  { %5409 = vmatpush.msra.mxu3 %v5207_v8 }
 0x6eb   :  { %5570 = vmatpush.msrb.mxu3 %v5226_v43 }
 0x6ed   :  { %5571 = vmatpush.msrb.mxu3 %v5225_v42 }
 0x6ef   :  { %5572 = vmatpush.msrb.mxu3 %v5224_v33  ;;  %v10705_v13 = vpop.xlane.xlu0 %3667 }
 0x6f1   :  { %5573 = vmatpush.msrb.mxu3 %v5223_v9 }
 0x6f7   :  { %v10717_v34 = vpop.xlane.xlu0 %3760 }
 0x6fa   :  { %3766 = vadd.xlane.f32.xlu2 %v3765_v18  ;;  %v10725_v61 = vpop.xlane.xlu2 %3747 }
 0x6fb   :  { %3715 = vadd.xlane.f32.xlu1 %v3714_v56  ;;  %v3787_v56 = vmul.f32 %v10408_v41, %v10481_v29 }
 0x6fd   :  { %v3791_v58 = vsel %vm254_vm1, %v3787_v56, 0.0  ;;  %v3772_v56 = vmul.f32 %v10351_v26, %v10511_v52 }
 0x6ff   :  { %v10729_v63 = vpop.xlane.xlu0 %3728 }
 0x702   :  { %3753 = vadd.xlane.f32.xlu2 %v3752_v2  ;;  %v3898_v24 = vpop.permute.xlu2 %3897 }
 0x703   :  { %3750 = vadd.xlane.f32.xlu1 %v3749_v1  ;;  %v10780_v1 = vld [vmem:[%s12436_s26] sm:$0xff] }
 0x707   :  { %v10741_v32 = vpop.xlane.xlu0 %3763 }
 0x70a   :  { %3737 = vadd.xlane.f32.xlu2 %v3736_v35  ;;  %v10747_v57 = vpop.permute.xlu2 %3902 }
 0x70b   :  { %v3838_v27 = vpop.permute.xlu1 %3837  ;;  %3718 = vadd.xlane.f32.xlu1 %v3717_v5 }
 0x70c   :  { %v4171_v9 = vadd.f32 %v10757_v30, %v3838_v27 }
 0x70e   :  { %v4299_v60 = vmul.f32 0.2, %v4171_v9  ;;  %vm4235_vm7 = vcmp.ge.f32.partialorder %v4171_v9, 0.0 }
 0x70f   :  { %v10753_v53 = vpop.xlane.xlu0 %3731 }
 0x712   :  { %3824 = vadd.xlane.f32.xlu2 %v3823_v20  ;;  %v3908_v8 = vpop.permute.xlu2 %3907  ;;  %v4183_v20 = vadd.f32 %v10775_v6, %v3898_v24 }
 0x713   :  { %v10743_v15 = vpop.permute.xlu1 %3857  ;;  %3734 = vadd.xlane.f32.xlu1 %v3733_v28  ;;  %v4363_v28 = vsel %vm4235_vm7, %v4171_v9, %v4299_v60  ;;  %v3242_v9 = vpop.f32.mrf.mxu2  ;;  %v4185_v38 = vadd.f32 %v10775_v6, %v3908_v8 }
 0x714   :  { %v10793_v4 = vadd.f32 %v10780_v1, %v4363_v28  ;;  %v4311_v36 = vmul.f32 0.2, %v4183_v20  ;;  %vm4247_vm9 = vcmp.ge.f32.partialorder %v4183_v20, 0.0 }
 0x715   :  { %vm4249_vm12 = vcmp.ge.f32.partialorder %v4185_v38, 0.0 }
 0x716   :  { %12514 = vst [vmem:[#allocation29_spill] sm:$0xff] %v10793_v4 }
 0x71a   :  { %v3853_v14 = vpop.permute.xlu2 %3852 }
 0x71b   :  { %v3883_v3 = vpop.permute.xlu1 %3882  ;;  %3721 = vadd.xlane.f32.xlu1 %v3720_v12 }
 0x71c   :  { %v4180_v55 = vadd.f32 %v10749_v31, %v3883_v3 }
 0x71e   :  { %vm4244_vm5 = vcmp.ge.f32.partialorder %v4180_v55, 0.0  ;;  %v4308_v21 = vmul.f32 0.2, %v4180_v55 }
 0x720   :  { %v4372_v50 = vsel %vm4244_vm5, %v4180_v55, %v4308_v21  ;;  %v10798_v55 = vld [vmem:[%s12436_s26 + $0x10] sm:$0xff]  ;;  %v4174_v21 = vadd.f32 %v10757_v30, %v3853_v14  ;;  %v10817_v14 = vperm.slane %v3242_v9, 0 }
 0x721   :  { %v10765_v39 = vadd.f32 %v10762_v10, %v4372_v50  ;;  %v4491_v50 = vsel %vm1559_vm3, %v10793_v4, -inf }
 0x722   :  { %v3878_v33 = vpop.permute.xlu0 %3877  ;;  %v4302_v60 = vmul.f32 0.2, %v4174_v21  ;;  %vm4238_vm10 = vcmp.ge.f32.partialorder %v4174_v21, 0.0 }
 0x723   :  { %12513 = vst [vmem:[#allocation28_spill] sm:$0xff] %v10765_v39  ;;  %v10767_v43 = vpop.permute.xlu1 %3862  ;;  %v4518_v42 = vsel %vm1559_vm3, %v10765_v39, -inf  ;;  %v4179_v47 = vadd.f32 %v10749_v31, %v3878_v33  ;;  %v4375_v33 = vsel %vm4247_vm9, %v4183_v20, %v4311_v36 }
 0x724   :  { %4519 = vmax.xlane.f32.xlu1 %v4518_v42  ;;  %v10808_v42 = vpop.permute.xlu2 %3872 }
 0x725   :  { %vm4243_vm6 = vcmp.ge.f32.partialorder %v4179_v47, 0.0  ;;  %v4307_v18 = vmul.f32 0.2, %v4179_v47 }
 0x727   :  { %v4371_v2 = vsel %vm4243_vm6, %v4179_v47, %v4307_v18 }
 0x728   :  { %v10783_v17 = vadd.f32 %v10780_v1, %v4371_v2  ;;  %v10815_v2 = vadd.f32 %v10780_v1, %v4375_v33 }
 0x72a   :  { %v4515_v19 = vsel %vm1559_vm3, %v10783_v17, -inf  ;;  %v4527_v8 = vsel %vm1559_vm3, %v10815_v2, -inf }
 0x72b   :  { %v3888_v27 = vpop.permute.xlu1 %3887  ;;  %4516 = vmax.xlane.f32.xlu0 %v4515_v19  ;;  %v4313_v19 = vmul.f32 0.2, %v4185_v38 }
 0x72c   :  { %v4181_v35 = vadd.f32 %v10749_v31, %v3888_v27  ;;  %v10786_v5 = vpop.permute.xlu0 %3842  ;;  %3792 = vadd.xlane.f32.xlu1 %v3791_v58  ;;  %v3778_v58 = vsel %vm254_vm1, %v3772_v56, 0.0 }
 0x72e   :  { %vm4245_vm8 = vcmp.ge.f32.partialorder %v4181_v35, 0.0  ;;  %v4309_v7 = vmul.f32 0.2, %v4181_v35 }
 0x730   :  { %v4373_v3 = vsel %vm4245_vm8, %v4181_v35, %v4309_v7  ;;  %v4366_v7 = vsel %vm4238_vm10, %v4174_v21, %v4302_v60 }
 0x731   :  { %v10801_v12 = vadd.f32 %v10798_v55, %v4373_v3  ;;  %v4175_v3 = vadd.f32 %v10817_v14, %v10743_v15  ;;  %v4377_v15 = vsel %vm4249_vm12, %v4185_v38, %v4313_v19  ;;  %v3334_v19 = vpop.f32.mrf.mxu3 }
 0x732   :  { %v10858_v4 = vperm.slane %v3334_v19, 0 }
 0x733   :  { %v4521_v24 = vsel %vm1559_vm3, %v10801_v12, -inf  ;;  %4492 = vmax.xlane.f32.xlu0 %v4491_v50  ;;  %v3868_v35 = vpop.permute.xlu1 %3867  ;;  %v10829_v50 = vpop.permute.xlu2 %3977  ;;  %v4303_v56 = vmul.f32 0.2, %v4175_v3  ;;  %vm4239_vm14 = vcmp.ge.f32.partialorder %v4175_v3, 0.0 }
 0x734   :  { %4522 = vmax.xlane.f32.xlu2 %v4521_v24  ;;  %v3848_v47 = vpop.permute.xlu0 %3847  ;;  %v4177_v33 = vadd.f32 %v10817_v14, %v3868_v35  ;;  %v10844_v35 = vadd.f32 %v10798_v55, %v4377_v15 }
 0x735   :  { %v4173_v18 = vadd.f32 %v10757_v30, %v3848_v47  ;;  %v10836_v47 = vld [vmem:[%s12436_s26 + $0x18] sm:$0xff] }
 0x736   :  { %v10839_v21 = vadd.f32 %v10836_v47, %v4366_v7  ;;  %vm4241_vm15 = vcmp.ge.f32.partialorder %v4177_v33, 0.0  ;;  %v4533_v15 = vsel %vm1559_vm3, %v10844_v35, -inf }
 0x737   :  { %vm4237_vm11 = vcmp.ge.f32.partialorder %v4173_v18, 0.0  ;;  %v4301_v27 = vmul.f32 0.2, %v4173_v18 }
 0x738   :  { %12516 = vst [vmem:[#allocation9_spill] sm:$0xff] %v10839_v21 }
 0x739   :  { %v4365_v20 = vsel %vm4237_vm11, %v4173_v18, %v4301_v27  ;;  %v3758_v18 = vmul.f32 %v10257_v51, %v10549_v46  ;;  %v3311_v27 = vpop.f32.mrf.mxu2 }
 0x73a   :  { %v10823_v28 = vadd.f32 %v10798_v55, %v4365_v20  ;;  %v4305_v20 = vmul.f32 0.2, %v4177_v33 }
 0x73b   :  { %4528 = vmax.xlane.f32.xlu0 %v4527_v8  ;;  %v4500_v8 = vsel %vm1559_vm3, %v10839_v21, -inf  ;;  %v3893_v7 = vpop.permute.xlu1 %3892  ;;  %v3768_v38 = vsel %vm254_vm1, %v3758_v18, 0.0  ;;  %v3938_v18 = vpop.permute.xlu2 %3937 }
 0x73c   :  { %3779 = vadd.xlane.f32.xlu2 %v3778_v58  ;;  %12515 = vst [vmem:[#allocation13_spill] sm:$0xff] %v10823_v28  ;;  %v3913_v36 = vpop.permute.xlu0 %3912  ;;  %v4497_v24 = vsel %vm1559_vm3, %v10823_v28, -inf  ;;  %v10846_v58 = vperm.slane %v3311_v27, 0  ;;  %v4182_v27 = vadd.f32 %v10749_v31, %v3893_v7  ;;  %v4369_v28 = vsel %vm4241_vm15, %v4177_v33, %v4305_v20 }
 0x73d   :  { %v4186_v9 = vadd.f32 %v10775_v6, %v3913_v36  ;;  %4498 = vmax.xlane.f32.xlu1 %v4497_v24  ;;  %v4367_v36 = vsel %vm4239_vm14, %v4175_v3, %v4303_v56  ;;  %v10864_v56 = vadd.f32 %v10798_v55, %v4369_v28  ;;  %v4172_v7 = vadd.f32 %v10757_v30, %v10786_v5 }
 0x73e   :  { %vm4246_vm2 = vcmp.ge.f32.partialorder %v4182_v27, 0.0 }
 0x73f   :  { %vm4250_vm13 = vcmp.ge.f32.partialorder %v4186_v9, 0.0  ;;  %v4314_v60 = vmul.f32 0.2, %v4186_v9  ;;  %v4509_v28 = vsel %vm1559_vm3, %v10864_v56, -inf  ;;  %vm4236_vm5 = vcmp.ge.f32.partialorder %v4172_v7, 0.0 }
 0x741   :  { %v4378_v51 = vsel %vm4250_vm13, %v4186_v9, %v4314_v60  ;;  %v10861_v9 = vadd.f32 %v10780_v1, %v4367_v36  ;;  %v4310_v60 = vmul.f32 0.2, %v4182_v27  ;;  %v3803_v36 = vmul.f32 %v10357_v25, %v10481_v29 }
 0x742   :  { %v10856_v21 = vadd.f32 %v10836_v47, %v4378_v51 }
 0x743   :  { %3769 = vadd.xlane.f32.xlu0 %v3768_v38  ;;  %v4503_v33 = vsel %vm1559_vm3, %v10861_v9, -inf  ;;  %v4374_v51 = vsel %vm4246_vm2, %v4182_v27, %v4310_v60  ;;  %v3807_v5 = vsel %vm254_vm1, %v3803_v36, 0.0  ;;  %v4184_v27 = vadd.f32 %v10775_v6, %v10747_v57 }
 0x744   :  { %4501 = vmax.xlane.f32.xlu2 %v4500_v8  ;;  %v3918_v24 = vpop.permute.xlu0 %3917  ;;  %v4536_v31 = vsel %vm1559_vm3, %v10856_v21, -inf  ;;  %v4191_v8 = vadd.f32 %v10858_v4, %v3938_v18  ;;  %v4176_v36 = vadd.f32 %v10817_v14, %v10767_v43 }
 0x745   :  { %v4187_v39 = vadd.f32 %v10846_v58, %v3918_v24  ;;  %4534 = vmax.xlane.f32.xlu1 %v4533_v15  ;;  %v4300_v24 = vmul.f32 0.2, %v4172_v7  ;;  %vm4248_vm6 = vcmp.ge.f32.partialorder %v4184_v27, 0.0 }
 0x746   :  { %v4319_v19 = vmul.f32 0.2, %v4191_v8  ;;  %vm4255_vm4 = vcmp.ge.f32.partialorder %v4191_v8, 0.0  ;;  %vm4240_vm7 = vcmp.ge.f32.partialorder %v4176_v36, 0.0 }
 0x747   :  { %vm4251_vm0 = vcmp.ge.f32.partialorder %v4187_v39, 0.0  ;;  %v4315_v3 = vmul.f32 0.2, %v4187_v39  ;;  %v4364_v18 = vsel %vm4236_vm5, %v4172_v7, %v4300_v24 }
 0x748   :  { %v4383_v15 = vsel %vm4255_vm4, %v4191_v8, %v4319_v19  ;;  %v3805_v8 = vmul.f32 %v10357_v25, %v10547_v11 }
 0x749   :  { %v4379_v20 = vsel %vm4251_vm0, %v4187_v39, %v4315_v3  ;;  %v10881_v39 = vadd.f32 %v10836_v47, %v4374_v51  ;;  %v10891_v60 = vadd.f32 %v10780_v1, %v4383_v15  ;;  %v3821_v51 = vmul.f32 %v10403_v40, %v10547_v11 }
 0x74a   :  { %v10876_v38 = vadd.f32 %v10780_v1, %v4379_v20  ;;  %v3813_v7 = vsel %vm254_vm1, %v3805_v8, 0.0  ;;  %v3789_v15 = vmul.f32 %v10408_v41, %v10547_v11 }
 0x74b   :  { %4504 = vmax.xlane.f32.xlu0 %v4503_v33  ;;  %v4524_v3 = vsel %vm1559_vm3, %v10881_v39, -inf  ;;  %12517 = vst [vmem:[#allocation36_spill] sm:$0xff] %v10891_v60  ;;  %v4312_v33 = vmul.f32 0.2, %v4184_v27  ;;  %v4551_v57 = vsel %vm1559_vm3, %v10891_v60, -inf  ;;  %v3829_v24 = vsel %vm254_vm1, %v3821_v51, 0.0 }
 0x74c   :  { %4537 = vmax.xlane.f32.xlu2 %v4536_v31  ;;  %v4539_v30 = vsel %vm1559_vm3, %v10876_v38, -inf  ;;  %v10894_v31 = vadd.f32 %v10762_v10, %v4364_v18  ;;  %v3788_v51 = vmul.f32 %v10408_v41, %v10511_v52 }
 0x74d   :  { %4510 = vmax.xlane.f32.xlu1 %v4509_v28  ;;  %v4376_v20 = vsel %vm4248_vm6, %v4184_v27, %v4312_v33 }
 0x74e   :  { %v4494_v6 = vsel %vm1559_vm3, %v10894_v31, -inf  ;;  %v10904_v28 = vadd.f32 %v10762_v10, %v4376_v20 }
 0x750   :  { %v4530_v19 = vsel %vm1559_vm3, %v10904_v28, -inf }
 0x753   :  { %3808 = vadd.xlane.f32.xlu0 %v3807_v5  ;;  %v4304_v5 = vmul.f32 0.2, %v4176_v36 }
 0x754   :  { %4540 = vmax.xlane.f32.xlu2 %v4539_v30  ;;  %v3771_v30 = vmul.f32 %v10351_v26, %v10481_v29  ;;  %v3804_v26 = vmul.f32 %v10357_v25, %v10511_v52  ;;  %v3357_v25 = vpop.f32.mrf.mxu1 }
 0x755   :  { %4525 = vmax.xlane.f32.xlu1 %v4524_v3  ;;  %v4368_v18 = vsel %vm4240_vm7, %v4176_v36, %v4304_v5  ;;  %v3797_v3 = vsel %vm254_vm1, %v3789_v15, 0.0  ;;  %v3794_v36 = vsel %vm254_vm1, %v3788_v51, 0.0 }
 0x756   :  { %v3775_v27 = vsel %vm254_vm1, %v3771_v30, 0.0  ;;  %v10920_v43 = vadd.f32 %v10762_v10, %v4368_v18  ;;  %v3810_v8 = vsel %vm254_vm1, %v3804_v26, 0.0 }
 0x758   :  { %v4506_v33 = vsel %vm1559_vm3, %v10920_v43, -inf }
 0x75b   :  { %4495 = vmax.xlane.f32.xlu0 %v4494_v6 }
 0x75c   :  { %4552 = vmax.xlane.f32.xlu2 %v4551_v57  ;;  %v3820_v57 = vmul.f32 %v10403_v40, %v10511_v52 }
 0x75d   :  { %3814 = vadd.xlane.f32.xlu1 %v3813_v7  ;;  %v3958_v7 = vpop.permute.xlu1 %3957 }
 0x75e   :  { %v3826_v20 = vsel %vm254_vm1, %v3820_v57, 0.0 }
 0x763   :  { %4531 = vmax.xlane.f32.xlu0 %v4530_v19  ;;  %v10939_v19 = vperm.slane %v3357_v25, 0 }
 0x765   :  { %3830 = vadd.xlane.f32.xlu1 %v3829_v24 }
 0x76b   :  { %3776 = vadd.xlane.f32.xlu0 %v3775_v27 }
 0x76d   :  { %3798 = vadd.xlane.f32.xlu1 %v3797_v3  ;;  %v10931_v6 = vpop.xlane.xlu2 %3766 }
 0x76e   :  { %v3716_v24 = vpop.xlane.xlu1 %3715 }
 0x773   :  { %4507 = vmax.xlane.f32.xlu0 %v4506_v33  ;;  %v3983_v33 = vpop.permute.xlu0 %3982 }
 0x774   :  { %3962 = vperm.xlu2 %7689, %v10640_v16   ;;  %v4178_v16 = vadd.f32 %v10817_v14, %v10808_v42  ;;  %v3380_v14 = vpop.f32.mrf.mxu2 }
 0x775   :  { %v10941_v40 = vpop.xlane.xlu2 %3753  ;;  %v10949_v41 = vperm.slane %v3380_v14, 0 }
 0x776   :  { %vm4242_vm8 = vcmp.ge.f32.partialorder %v4178_v16, 0.0  ;;  %v10958_v3 = vpop.xlane.xlu1 %3750 }
 0x777   :  { %v4200_v51 = vadd.f32 %v10949_v41, %v3983_v33 }
 0x779   :  { %vm4264_vm11 = vcmp.ge.f32.partialorder %v4200_v51, 0.0 }
 0x77b   :  { %3811 = vadd.xlane.f32.xlu0 %v3810_v8 }
 0x77c   :  { %3942 = vperm.xlu2 %7689, %v10643_v22   ;;  %v4306_v22 = vmul.f32 0.2, %v4178_v16 }
 0x77d   :  { %v10956_v27 = vpop.xlane.xlu2 %3737 }
 0x77e   :  { %v4370_v42 = vsel %vm4242_vm8, %v4178_v16, %v4306_v22 }
 0x77f   :  { %v10947_v30 = vadd.f32 %v10836_v47, %v4370_v42  ;;  %v4328_v42 = vmul.f32 0.2, %v4200_v51 }
 0x781   :  { %v4512_v15 = vsel %vm1559_vm3, %v10947_v30, -inf }
 0x783   :  { %3827 = vadd.xlane.f32.xlu0 %v3826_v20 }
 0x784   :  { %3927 = vperm.xlu2 %7689, %v10701_v23   ;;  %v4195_v23 = vadd.f32 %v10939_v19, %v3958_v7  ;;  %v3719_v7 = vpop.xlane.xlu1 %3718 }
 0x786   :  { %v4323_v5 = vmul.f32 0.2, %v4195_v23  ;;  %vm4259_vm9 = vcmp.ge.f32.partialorder %v4195_v23, 0.0 }
 0x788   :  { %v4387_v18 = vsel %vm4259_vm9, %v4195_v23, %v4323_v5  ;;  %v4392_v5 = vsel %vm4264_vm11, %v4200_v51, %v4328_v42 }
 0x789   :  { %v10961_v26 = vadd.f32 %v10780_v1, %v4387_v18  ;;  %v10993_v18 = vadd.f32 %v10762_v10, %v4392_v5 }
 0x78b   :  { %3795 = vadd.xlane.f32.xlu0 %v3794_v36  ;;  %v4563_v57 = vsel %vm1559_vm3, %v10961_v26, -inf  ;;  %v10983_v36 = vld [vmem:[%s12356_s10 + $0x4] ss:$0 sm:$0xff]  ;;  %12520 = vst [vmem:[#allocation11_spill] sm:$0xff] %v10993_v18  ;;  %v4578_v33 = vsel %vm1559_vm3, %v10993_v18, -inf }
 0x78c   :  { %3972 = vperm.xlu2 %7689, %v10703_v49   ;;  %v4199_v49 = vadd.f32 %v10949_v41, %v10829_v50  ;;  %v10966_v50 = vpop.xlane.xlu2 %3824  ;;  %v3773_v23 = vmul.f32 %v10983_v36, %v10547_v11  ;;  %v3735_v14 = vpop.xlane.xlu1 %3734 }
 0x78d   :  { %12518 = vst [vmem:[#allocation10_spill] sm:$0xff] %v10966_v50 }
 0x78e   :  { %v4327_v8 = vmul.f32 0.2, %v4199_v49  ;;  %vm4263_vm10 = vcmp.ge.f32.partialorder %v4199_v49, 0.0 }
 0x793   :  { %4513 = vmax.xlane.f32.xlu0 %v4512_v15 }
 0x794   :  { %3952 = vperm.xlu2 %7689, %v10705_v13   ;;  %v4391_v13 = vsel %vm4263_vm10, %v4199_v49, %v4327_v8 }
 0x795   :  { %v10971_v16 = vadd.f32 %v10780_v1, %v4391_v13 }
 0x797   :  { %v4575_v25 = vsel %vm1559_vm3, %v10971_v16, -inf }
 0x79b   :  { %4564 = vmax.xlane.f32.xlu0 %v4563_v57 }
 0x79c   :  { %4057 = vperm.xlu2 %7689, %v10717_v34  }
 0x79e   :  { %v10968_v20 = vpop.xlane.xlu0 %4516 }
 0x7a3   :  { %4576 = vmax.xlane.f32.xlu0 %v4575_v25 }
 0x7a4   :  { %4002 = vperm.xlu2 %7689, %v3716_v24   ;;  %v3781_v24 = vsel %vm254_vm1, %v3773_v23, 0.0 }
 0x7a6   :  { %v10978_v34 = vpop.xlane.xlu0 %4492 }
 0x7a7   :  { %v10976_v22 = vpop.xlane.xlu2 %4522 }
 0x7ab   :  { %3782 = vadd.xlane.f32.xlu0 %v3781_v24 }
 0x7ac   :  { %4027 = vperm.xlu2 %7689, %v3735_v14  }
 0x7ae   :  { %v10990_v49 = vpop.xlane.xlu0 %4528 }
 0x7af   :  { %v10988_v15 = vpop.xlane.xlu2 %3779 }
 0x7b0   :  { %12519 = vst [vmem:[#allocation12_spill] sm:$0xff] %v10988_v15 }
 0x7b3   :  { %4579 = vmax.xlane.f32.xlu0 %v4578_v33 }
 0x7b6   :  { %v10999_v57 = vpop.xlane.xlu0 %3769 }
 0x7b7   :  { %v10997_v8 = vpop.xlane.xlu2 %4501 }
 0x7be   :  { %v11003_v25 = vpop.xlane.xlu0 %4504 }
 0x7bf   :  { %v11001_v13 = vpop.xlane.xlu2 %4537 }
 0x7c6   :  { %v11007_v23 = vpop.xlane.xlu0 %3808 }
 0x7c7   :  { %v11005_v51 = vpop.xlane.xlu2 %4540  ;;  %12521 = vst [vmem:[#allocation15_spill] sm:$0xff] %v11007_v23  ;;  %3987 = vperm.xlu0 %7687, %v10669_v45  }
 0x7ce   :  { %v11012_v14 = vpop.xlane.xlu0 %4495 }
 0x7cf   :  { %v11010_v42 = vpop.xlane.xlu2 %4552  ;;  %3932 = vperm.xlu0 %7687, %v10711_v0  }
 0x7d6   :  { %v11015_v5 = vpop.xlane.xlu0 %4531 }
 0x7d7   :  { %v3963_v24 = vpop.permute.xlu2 %3962  ;;  %4037 = vperm.xlu0 %7687, %v10713_v37   ;;  %v3722_v37 = vpop.xlane.xlu1 %3721 }
 0x7d8   :  { %v4196_v33 = vadd.f32 %v10939_v19, %v3963_v24 }
 0x7da   :  { %vm4260_vm12 = vcmp.ge.f32.partialorder %v4196_v33, 0.0  ;;  %v4324_v18 = vmul.f32 0.2, %v4196_v33 }
 0x7dc   :  { %v4388_v50 = vsel %vm4260_vm12, %v4196_v33, %v4324_v18 }
 0x7dd   :  { %v11020_v15 = vadd.f32 %v10762_v10, %v4388_v50 }
 0x7de   :  { %v11024_v23 = vpop.xlane.xlu0 %3776 }
 0x7df   :  { %v4566_v45 = vsel %vm1559_vm3, %v11020_v15, -inf  ;;  %12522 = vst [vmem:[#allocation34_spill] sm:$0xff] %v11024_v23  ;;  %4017 = vperm.xlu0 %7687, %v10729_v63  }
 0x7e0   :  { %4567 = vmax.xlane.f32.xlu1 %v4566_v45 }
 0x7e6   :  { %v11027_v0 = vpop.xlane.xlu0 %4507 }
 0x7e7   :  { %4007 = vperm.xlu0 %7687, %v3719_v7   ;;  %v11042_v7 = vpop.xlane.xlu1 %4519 }
 0x7ee   :  { %v11029_v24 = vpop.xlane.xlu0 %3811 }
 0x7ef   :  { %12523 = vst [vmem:[#allocation16_spill] sm:$0xff] %v11029_v24  ;;  %4067 = vperm.xlu0 %7687, %v10931_v6   ;;  %v11047_v33 = vpop.xlane.xlu1 %3792 }
 0x7f0   :  { %12526 = vst [vmem:[#allocation19_spill] sm:$0xff] %v11047_v33 }
 0x7f6   :  { %v11032_v18 = vpop.xlane.xlu0 %3827 }
 0x7f7   :  { %12524 = vst [vmem:[#allocation38_spill] sm:$0xff] %v11032_v18  ;;  %4012 = vperm.xlu0 %7687, %v3722_v37  }
 0x7f9   :  { %3922 = vperm.xlu1 %7688, %v10692_v48   ;;  %v11050_v48 = vpop.xlane.xlu1 %4498 }
 0x7fe   :  { %v11035_v50 = vpop.xlane.xlu0 %3795 }
 0x7ff   :  { %12525 = vst [vmem:[#allocation39_spill] sm:$0xff] %v11035_v50  ;;  %4032 = vperm.xlu0 %7687, %v10956_v27   ;;  %v3943_v27 = vpop.permute.xlu2 %3942 }
 0x801   :  { %3967 = vperm.xlu1 %7688, %v10695_v62   ;;  %v11055_v62 = vpop.xlane.xlu1 %4534 }
 0x806   :  { %v11040_v63 = vpop.xlane.xlu0 %4513 }
 0x807   :  { %v11068_v50 = vpop.permute.xlu2 %3927 }
 0x809   :  { %3947 = vperm.xlu1 %7688, %v10683_v44  }
 0x80e   :  { %v11045_v6 = vpop.xlane.xlu0 %4564 }
 0x811   :  { %3992 = vperm.xlu1 %7688, %v10699_v59   ;;  %v11061_v59 = vpop.xlane.xlu1 %4510 }
 0x816   :  { %v11052_v45 = vpop.xlane.xlu0 %4576 }
 0x819   :  { %3997 = vperm.xlu1 %7688, %v10723_v54   ;;  %v4691_v54 = vsub.f32 %v10783_v17, %v10968_v20 }
 0x81e   :  { %v11057_v44 = vpop.xlane.xlu0 %3782 }
 0x81f   :  { %12527 = vst [vmem:[#allocation41_spill] sm:$0xff] %v11057_v44  ;;  %v11071_v44 = vpop.xlane.xlu1 %4525 }
 0x821   :  { %4042 = vperm.xlu1 %7688, %v10725_v61  }
 0x826   :  { %v11063_v37 = vpop.xlane.xlu0 %4579 }
 0x827   :  { %12528 = vst [vmem:[#allocation22_spill] sm:$0xff] %v11063_v37  ;;  %v11079_v20 = vpop.xlane.xlu1 %3814 }
 0x828   :  { %12530 = vst [vmem:[#allocation21_spill] sm:$0xff] %v11079_v20 }
 0x829   :  { %4062 = vperm.xlu1 %7688, %v10741_v32   ;;  %v4763_v32 = vmul.f32 1.442695, %v4691_v54 }
 0x82b   :  { %7976 = vpow2.f32 %v4763_v32 }
 0x831   :  { %4022 = vperm.xlu1 %7688, %v10753_v53  }
 0x839   :  { %4047 = vperm.xlu1 %7688, %v10958_v3   ;;  %v3988_v61 = vpop.permute.xlu0 %3987  ;;  %v3973_v3 = vpop.permute.xlu2 %3972 }
 0x83a   :  { %v4201_v18 = vadd.f32 %v10949_v41, %v3988_v61  ;;  %v11081_v61 = vpop.eup %7976 }
 0x83c   :  { %vm4265_vm13 = vcmp.ge.f32.partialorder %v4201_v18, 0.0  ;;  %v4329_v24 = vmul.f32 0.2, %v4201_v18 }
 0x83e   :  { %v4393_v53 = vsel %vm4265_vm13, %v4201_v18, %v4329_v24  ;;  %v4695_v24 = vsub.f32 %v10815_v2, %v10990_v49  ;;  %v11086_v18 = vpop.f32.mrf.mxu3  ;;  %v4696_v2 = vsub.f32 %v10904_v28, %v11015_v5 }
 0x83f   :  { %v11075_v37 = vadd.f32 %v10798_v55, %v4393_v53  ;;  %v8261_v53 = vld [vmem:[%s12356_s10 + $0x7] ss:$0 sm:$0xff] }
 0x840   :  { %v4771_v54 = vmul.f32 1.442695, %v4695_v24 }
 0x841   :  { %4052 = vperm.xlu1 %7688, %v10941_v40   ;;  %12529 = vst [vmem:[#allocation40_spill] sm:$0xff] %v11075_v37  ;;  %v4581_v17 = vsel %vm1559_vm3, %v11075_v37, -inf  ;;  %v4899_v40 = vsel %vm1559_vm3, %v11081_v61, 0.0  ;;  %v11090_v32 = vpop.permute.xlu2 %3952  ;;  %v11096_v37 = vpop.xlane.xlu1 %3830 }
 0x842   :  { %4582 = vmax.xlane.f32.xlu0 %v4581_v17  ;;  %v3822_v17 = vmul.f32 %v8261_v53, %v10549_v46  ;;  %12531 = vst [vmem:[#allocation42_spill] sm:$0xff] %v11096_v37  ;;  %7978 = vpow2.f32 %v4771_v54 }
 0x844   :  { %v3832_v49 = vsel %vm254_vm1, %v3822_v17, 0.0  ;;  %v4693_v17 = vsub.f32 %v10801_v12, %v10976_v22 }
 0x848   :  { %v11101_v24 = vpop.eup %7978 }
 0x849   :  { %4072 = vperm.xlu1 %7688, %v10999_v57   ;;  %v3472_v57 = vpop.f32.mrf.mxu3  ;;  %v4058_v23 = vpop.permute.xlu2 %4057  ;;  %v4911_v53 = vsel %vm1559_vm3, %v11101_v24, 0.0 }
 0x84a   :  { %4900 = vadd.xlane.f32.xlu0 %v4899_v40  ;;  %v4773_v40 = vmul.f32 1.442695, %v4696_v2  ;;  %v11103_v20 = vperm.slane %v3472_v57, 0  ;;  %v11105_v33 = vpop.xlane.xlu1 %3798  ;;  %v4192_v2 = vadd.f32 %v10858_v4, %v3943_v27 }
 0x84b   :  { %12532 = vst [vmem:[#allocation23_spill] sm:$0xff] %v11105_v33  ;;  %v4767_v33 = vmul.f32 1.442695, %v4693_v17 }
 0x84c   :  { %7980 = vpow2.f32 %v4773_v40  ;;  %v4215_v54 = vadd.f32 %v11103_v20, %v4058_v23  ;;  %v4320_v37 = vmul.f32 0.2, %v4192_v2  ;;  %vm4256_vm15 = vcmp.ge.f32.partialorder %v4192_v2, 0.0 }
 0x84d   :  { %7982 = vpow2.f32 %v4767_v33 }
 0x84e   :  { %v4343_v5 = vmul.f32 0.2, %v4215_v54  ;;  %vm4279_vm14 = vcmp.ge.f32.partialorder %v4215_v54, 0.0  ;;  %v4384_v22 = vsel %vm4256_vm15, %v4192_v2, %v4320_v37  ;;  %v3933_v37 = vpop.permute.xlu0 %3932 }
 0x850   :  { %v4407_v40 = vsel %vm4279_vm14, %v4215_v54, %v4343_v5 }
 0x851   :  { %v11120_v23 = vadd.f32 %v10780_v1, %v4407_v40  ;;  %v4198_v40 = vadd.f32 %v10939_v19, %v3973_v3  ;;  %v3774_v3 = vmul.f32 %v10983_v36, %v10549_v46 }
 0x852   :  { %3833 = vadd.xlane.f32.xlu0 %v3832_v49  ;;  %v11110_v28 = vpop.eup %7980 }
 0x853   :  { %v11115_v49 = vpop.xlane.xlu1 %4567  ;;  %v4914_v57 = vsel %vm1559_vm3, %v11110_v28, 0.0  ;;  %12533 = vst [vmem:[#allocation27_spill] sm:$0xff] %v11120_v23  ;;  %v4623_v12 = vsel %vm1559_vm3, %v11120_v23, -inf  ;;  %v11128_v54 = vpop.eup %7982  ;;  %vm4262_vm4 = vcmp.ge.f32.partialorder %v4198_v40, 0.0 }
 0x85a   :  { %4912 = vadd.xlane.f32.xlu0 %v4911_v53 }
 0x862   :  { %4915 = vadd.xlane.f32.xlu0 %v4914_v57  ;;  %v11126_v57 = vadd.f32 %v10762_v10, %v4384_v22 }
 0x864   :  { %12534 = vst [vmem:[#allocation30_spill] sm:$0xff] %v11126_v57  ;;  %v4554_v33 = vsel %vm1559_vm3, %v11126_v57, -inf }
 0x86a   :  { %4624 = vmax.xlane.f32.xlu0 %v4623_v12 }
 0x86b   :  { %v3923_v53 = vpop.permute.xlu1 %3922 }
 0x86c   :  { %v4188_v27 = vadd.f32 %v10846_v58, %v3923_v53  ;;  %v4905_v53 = vsel %vm1559_vm3, %v11128_v54, 0.0 }
 0x86e   :  { %vm4252_vm0 = vcmp.ge.f32.partialorder %v4188_v27, 0.0  ;;  %v4316_v60 = vmul.f32 0.2, %v4188_v27 }
 0x870   :  { %v4380_v5 = vsel %vm4252_vm0, %v4188_v27, %v4316_v60  ;;  %v4189_v60 = vadd.f32 %v10846_v58, %v11068_v50  ;;  %v4190_v50 = vadd.f32 %v10846_v58, %v3933_v37  ;;  %v4684_v58 = vsub.f32 %v10894_v31, %v11012_v14  ;;  %v8262_v31 = vld [vmem:[%s12356_s10 + $0x6] ss:$0 sm:$0xff] }
 0x871   :  { %v11131_v17 = vadd.f32 %v10762_v10, %v4380_v5  ;;  %v4326_v5 = vmul.f32 0.2, %v4198_v40  ;;  %v3806_v14 = vmul.f32 %v8262_v31, %v10549_v46 }
 0x872   :  { %4906 = vadd.xlane.f32.xlu0 %v4905_v53  ;;  %vm4253_vm5 = vcmp.ge.f32.partialorder %v4189_v60, 0.0  ;;  %vm4254_vm6 = vcmp.ge.f32.partialorder %v4190_v50, 0.0 }
 0x873   :  { %12535 = vst [vmem:[#allocation26_spill] sm:$0xff] %v11131_v17  ;;  %4555 = vmax.xlane.f32.xlu1 %v4554_v33  ;;  %v3968_v2 = vpop.permute.xlu1 %3967  ;;  %v4542_v12 = vsel %vm1559_vm3, %v11131_v17, -inf  ;;  %v4317_v33 = vmul.f32 0.2, %v4189_v60  ;;  %v3784_v17 = vsel %vm254_vm1, %v3774_v3, 0.0  ;;  %v4390_v53 = vsel %vm4262_vm4, %v4198_v40, %v4326_v5 }
 0x874   :  { %v4197_v22 = vadd.f32 %v10939_v19, %v3968_v2  ;;  %4543 = vmax.xlane.f32.xlu2 %v4542_v12  ;;  %v11152_v12 = vpop.permute.xlu0 %4037  ;;  %v4749_v5 = vmul.f32 1.442695, %v4684_v58 }
 0x875   :  { %v4381_v36 = vsel %vm4253_vm5, %v4189_v60, %v4317_v33 }
 0x876   :  { %vm4261_vm2 = vcmp.ge.f32.partialorder %v4197_v22, 0.0  ;;  %v4325_v27 = vmul.f32 0.2, %v4197_v22  ;;  %7984 = vpow2.f32 %v4749_v5  ;;  %v3452_v5 = vpop.f32.mrf.mxu2 }
 0x878   :  { %v4389_v23 = vsel %vm4261_vm2, %v4197_v22, %v4325_v27  ;;  %v11155_v22 = vadd.f32 %v10836_v47, %v4390_v53  ;;  %v4318_v27 = vmul.f32 0.2, %v4190_v50 }
 0x879   :  { %v11146_v57 = vadd.f32 %v10798_v55, %v4389_v23  ;;  %v11158_v23 = vadd.f32 %v10798_v55, %v4381_v36  ;;  %v4688_v36 = vsub.f32 %v10920_v43, %v11027_v0 }
 0x87a   :  { %12537 = vst [vmem:[#allocation32_spill] sm:$0xff] %v11155_v22  ;;  %v4382_v60 = vsel %vm4254_vm6, %v4190_v50, %v4318_v27  ;;  %v12540_v50 = vld [vmem:[#allocation29_spill] sm:$0xff] }
 0x87b   :  { %12536 = vst [vmem:[#allocation31_spill] sm:$0xff] %v11146_v57  ;;  %3785 = vadd.xlane.f32.xlu1 %v3784_v17  ;;  %v3948_v19 = vpop.permute.xlu1 %3947  ;;  %v4569_v2 = vsel %vm1559_vm3, %v11146_v57, -inf  ;;  %v4572_v17 = vsel %vm1559_vm3, %v11155_v22, -inf  ;;  %v4545_v37 = vsel %vm1559_vm3, %v11158_v23, -inf  ;;  %v11170_v33 = vadd.f32 %v10836_v47, %v4382_v60 }
 0x87c   :  { %4570 = vmax.xlane.f32.xlu2 %v4569_v2  ;;  %12538 = vst [vmem:[#allocation33_spill] sm:$0xff] %v11158_v23  ;;  %v4193_v3 = vadd.f32 %v10858_v4, %v3948_v19  ;;  %v4018_v2 = vpop.permute.xlu0 %4017  ;;  %v4683_v19 = vsub.f32 %v12540_v50, %v10978_v34  ;;  %v4757_v60 = vmul.f32 1.442695, %v4688_v36  ;;  %v11183_v22 = vpop.eup %7984  ;;  %v11189_v34 = vperm.slane %v11086_v18, 0  ;;  %v8263_v23 = vld [vmem:[%s12356_s10 + $0x5] ss:$0 sm:$0xff] }
 0x87d   :  { %12539 = vst [vmem:[#allocation35_spill] sm:$0xff] %v11170_v33  ;;  %v4548_v27 = vsel %vm1559_vm3, %v11170_v33, -inf  ;;  %v11193_v50 = vperm.slane %v3452_v5, 0  ;;  %v3432_v18 = vpop.f32.mrf.mxu1  ;;  %v3790_v57 = vmul.f32 %v8263_v23, %v10549_v46 }
 0x87e   :  { %v4321_v53 = vmul.f32 0.2, %v4193_v3  ;;  %vm4257_vm7 = vcmp.ge.f32.partialorder %v4193_v3, 0.0  ;;  %v4747_v31 = vmul.f32 1.442695, %v4683_v19  ;;  %7986 = vpow2.f32 %v4757_v60 }
 0x87f   :  { %v11207_v5 = vperm.slane %v3432_v18, 0 }
 0x880   :  { %7988 = vpow2.f32 %v4747_v31 }
 0x881   :  { %v4207_v33 = vadd.f32 %v11207_v5, %v4018_v2 }
 0x883   :  { %4573 = vmax.xlane.f32.xlu1 %v4572_v17  ;;  %v11164_v40 = vpop.permute.xlu1 %3992  ;;  %v3816_v17 = vsel %vm254_vm1, %v3806_v14, 0.0  ;;  %vm4271_vm11 = vcmp.ge.f32.partialorder %v4207_v33, 0.0 }
 0x884   :  { %4546 = vmax.xlane.f32.xlu2 %v4545_v37  ;;  %v4385_v37 = vsel %vm4257_vm7, %v4193_v3, %v4321_v53  ;;  %v11191_v0 = vpop.permute.xlu0 %4007  ;;  %v4878_v3 = vsel %vm1559_vm3, %v11183_v22, 0.0 }
 0x885   :  { %v11186_v43 = vadd.f32 %v10798_v55, %v4385_v37 }
 0x887   :  { %12541 = vst [vmem:[#allocation37_spill] sm:$0xff] %v11186_v43  ;;  %v4557_v36 = vsel %vm1559_vm3, %v11186_v43, -inf }
 0x88b   :  { %4549 = vmax.xlane.f32.xlu1 %v4548_v27  ;;  %v3998_v58 = vpop.permute.xlu1 %3997 }
 0x88c   :  { %3817 = vadd.xlane.f32.xlu2 %v3816_v17  ;;  %v4203_v14 = vadd.f32 %v11189_v34, %v3998_v58  ;;  %v11201_v17 = vpop.eup %7986  ;;  %v4687_v58 = vsub.f32 %v10861_v9, %v11003_v25  ;;  %v11217_v43 = vpop.permute.xlu0 %4067 }
 0x88d   :  { %v11203_v60 = vpop.eup %7988 }
 0x88e   :  { %v4331_v37 = vmul.f32 0.2, %v4203_v14  ;;  %vm4267_vm9 = vcmp.ge.f32.partialorder %v4203_v14, 0.0  ;;  %v4875_v9 = vsel %vm1559_vm3, %v11203_v60, 0.0 }
 0x890   :  { %v4395_v18 = vsel %vm4267_vm9, %v4203_v14, %v4331_v37  ;;  %v12542_v37 = vld [vmem:[#allocation13_spill] sm:$0xff] }
 0x891   :  { %v11225_v2 = vadd.f32 %v10780_v1, %v4395_v18 }
 0x893   :  { %4879 = vadd.xlane.f32.xlu1 %v4878_v3  ;;  %v4043_v53 = vpop.permute.xlu1 %4042 }
 0x894   :  { %v4212_v19 = vadd.f32 %v11193_v50, %v4043_v53  ;;  %4558 = vmax.xlane.f32.xlu2 %v4557_v36  ;;  %v4694_v53 = vsub.f32 %v10881_v39, %v11071_v44  ;;  %v4890_v36 = vsel %vm1559_vm3, %v11201_v17, 0.0  ;;  %v4755_v39 = vmul.f32 1.442695, %v4687_v58 }
 0x896   :  { %vm4276_vm8 = vcmp.ge.f32.partialorder %v4212_v19, 0.0  ;;  %v4340_v27 = vmul.f32 0.2, %v4212_v19  ;;  %v4769_v44 = vmul.f32 1.442695, %v4694_v53  ;;  %7990 = vpow2.f32 %v4755_v39 }
 0x897   :  { %v4698_v53 = vsub.f32 %v10856_v21, %v11001_v13 }
 0x898   :  { %v4404_v31 = vsel %vm4276_vm8, %v4212_v19, %v4340_v27  ;;  %7992 = vpow2.f32 %v4769_v44  ;;  %v11252_v44 = vpop.permute.xlu2 %4002 }
 0x899   :  { %v11210_v3 = vadd.f32 %v10762_v10, %v4404_v31  ;;  %v4777_v21 = vmul.f32 1.442695, %v4698_v53 }
 0x89b   :  { %4891 = vadd.xlane.f32.xlu1 %v4890_v36  ;;  %v4063_v19 = vpop.permute.xlu1 %4062  ;;  %v4614_v25 = vsel %vm1559_vm3, %v11210_v3, -inf  ;;  %v4335_v36 = vmul.f32 0.2, %v4207_v33 }
 0x89c   :  { %v4216_v27 = vadd.f32 %v11103_v20, %v4063_v19  ;;  %4876 = vadd.xlane.f32.xlu2 %v4875_v9  ;;  %4615 = vmax.xlane.f32.xlu0 %v4614_v25  ;;  %v4685_v19 = vsub.f32 %v12542_v37, %v11050_v48  ;;  %v4587_v9 = vsel %vm1559_vm3, %v11225_v2, -inf  ;;  %v3800_v25 = vsel %vm254_vm1, %v3790_v57, 0.0  ;;  %v11250_v39 = vpop.eup %7990 }
 0x89d   :  { %v4399_v18 = vsel %vm4271_vm11, %v4207_v33, %v4335_v36  ;;  %v4202_v48 = vadd.f32 %v10949_v41, %v11164_v40  ;;  %v4689_v41 = vsub.f32 %v10864_v56, %v11061_v59  ;;  %v4194_v36 = vadd.f32 %v10858_v4, %v11090_v32  ;;  %v12544_v4 = vld [vmem:[#allocation9_spill] sm:$0xff] }
 0x89e   :  { %vm4280_vm10 = vcmp.ge.f32.partialorder %v4216_v27, 0.0  ;;  %v4344_v31 = vmul.f32 0.2, %v4216_v27  ;;  %v11248_v13 = vadd.f32 %v10780_v1, %v4399_v18  ;;  %v11254_v57 = vpop.eup %7992  ;;  %v4887_v1 = vsel %vm1559_vm3, %v11250_v39, 0.0  ;;  %v12545_v18 = vld [vmem:[#allocation28_spill] sm:$0xff] }
 0x89f   :  { %vm4266_vm12 = vcmp.ge.f32.partialorder %v4202_v48, 0.0  ;;  %v4908_v33 = vsel %vm1559_vm3, %v11254_v57, 0.0  ;;  %v4759_v59 = vmul.f32 1.442695, %v4689_v41  ;;  %v4686_v32 = vsub.f32 %v12544_v4, %v10997_v8 }
 0x8a0   :  { %v4408_v14 = vsel %vm4280_vm10, %v4216_v27, %v4344_v31  ;;  %v11245_v27 = vpop.permute.xlu0 %4012  ;;  %v4330_v31 = vmul.f32 0.2, %v4202_v48  ;;  %v4599_v40 = vsel %vm1559_vm3, %v11248_v13, -inf  ;;  %vm4258_vm13 = vcmp.ge.f32.partialorder %v4194_v36, 0.0 }
 0x8a1   :  { %v11234_v58 = vadd.f32 %v10762_v10, %v4408_v14  ;;  %v4751_v10 = vmul.f32 1.442695, %v4685_v19  ;;  %v4205_v14 = vadd.f32 %v11189_v34, %v11191_v0  ;;  %v4028_v0 = vpop.permute.xlu2 %4027 }
 0x8a2   :  { %v4394_v56 = vsel %vm4266_vm12, %v4202_v48, %v4330_v31  ;;  %v4692_v48 = vsub.f32 %v12545_v18, %v11042_v7  ;;  %v4209_v41 = vadd.f32 %v11207_v5, %v4028_v0  ;;  %v4690_v0 = vsub.f32 %v10947_v30, %v11040_v63 }
 0x8a3   :  { %12543 = vst [vmem:[#allocation8_spill] sm:$0xff] %v11234_v58  ;;  %4588 = vmax.xlane.f32.xlu1 %v4587_v9  ;;  %v4626_v23 = vsel %vm1559_vm3, %v11234_v58, -inf  ;;  %7994 = vpow2.f32 %v4751_v10  ;;  %v11273_v53 = vadd.f32 %v10836_v47, %v4394_v56  ;;  %vm4269_vm14 = vcmp.ge.f32.partialorder %v4205_v14, 0.0 }
 0x8a4   :  { %3801 = vadd.xlane.f32.xlu2 %v3800_v25  ;;  %4627 = vmax.xlane.f32.xlu0 %v4626_v23  ;;  %7996 = vpow2.f32 %v4777_v21  ;;  %v4322_v25 = vmul.f32 0.2, %v4194_v36  ;;  %v4333_v23 = vmul.f32 0.2, %v4205_v14  ;;  %v4337_v18 = vmul.f32 0.2, %v4209_v41 }
 0x8a5   :  { %7998 = vpow2.f32 %v4759_v59  ;;  %v4584_v21 = vsel %vm1559_vm3, %v11273_v53, -inf  ;;  %vm4273_vm15 = vcmp.ge.f32.partialorder %v4209_v41, 0.0  ;;  %v4211_v30 = vadd.f32 %v11193_v50, %v11152_v12 }
 0x8a6   :  { %v4386_v8 = vsel %vm4258_vm13, %v4194_v36, %v4322_v25  ;;  %v11300_v36 = vpop.permute.xlu1 %4022  ;;  %v4711_v25 = vsub.f32 %v10971_v16, %v11052_v45  ;;  %v4401_v63 = vsel %vm4273_vm15, %v4209_v41, %v4337_v18  ;;  %v4697_v12 = vsub.f32 %v10844_v35, %v11055_v62 }
 0x8a7   :  { %v11293_v59 = vadd.f32 %v10836_v47, %v4386_v8  ;;  %v11315_v16 = vadd.f32 %v10798_v55, %v4401_v63  ;;  %vm4275_vm0 = vcmp.ge.f32.partialorder %v4211_v30, 0.0  ;;  %v4217_v8 = vadd.f32 %v11103_v20, %v11217_v43 }
 0x8a8   :  { %v11270_v19 = vpop.permute.xlu0 %4032  ;;  %v4206_v35 = vadd.f32 %v11189_v34, %v11245_v27  ;;  %v4775_v18 = vmul.f32 1.442695, %v4697_v12  ;;  %v8265_v27 = vld [vmem:[%s12358_s12 + $0x2] ss:$0 sm:$0xff] }
 0x8a9   :  { %v11268_v37 = vpop.eup %7994  ;;  %v4560_v47 = vsel %vm1559_vm3, %v11293_v59, -inf  ;;  %12547 = vst [vmem:[#allocation18_spill] sm:$0xff] %v11315_v16  ;;  %v4345_v43 = vmul.f32 0.2, %v4217_v8  ;;  %vm4281_vm2 = vcmp.ge.f32.partialorder %v4217_v8, 0.0 }
 0x8aa   :  { %v11275_v9 = vpop.eup %7996  ;;  %v4881_v10 = vsel %vm1559_vm3, %v11268_v37, 0.0  ;;  %vm4270_vm4 = vcmp.ge.f32.partialorder %v4206_v35, 0.0 }
 0x8ab   :  { %4600 = vmax.xlane.f32.xlu1 %v4599_v40  ;;  %v4920_v31 = vsel %vm1559_vm3, %v11275_v9, 0.0  ;;  %v4397_v40 = vsel %vm4269_vm14, %v4205_v14, %v4333_v23  ;;  %v11288_v56 = vpop.eup %7998  ;;  %v4409_v12 = vsel %vm4281_vm2, %v4217_v8, %v4345_v43  ;;  %v5235_v8 = vmul.f32 %v8265_v27, %v10481_v29 }
 0x8ac   :  { %4888 = vadd.xlane.f32.xlu2 %v4887_v1  ;;  %4909 = vadd.xlane.f32.xlu0 %v4908_v33  ;;  %v4753_v1 = vmul.f32 1.442695, %v4686_v32  ;;  %v4765_v33 = vmul.f32 1.442695, %v4692_v48  ;;  %v11296_v4 = vadd.f32 %v10798_v55, %v4397_v40  ;;  %v4893_v14 = vsel %vm1559_vm3, %v11288_v56, 0.0 }
 0x8ad   :  { %v4761_v32 = vmul.f32 1.442695, %v4690_v0  ;;  %v4605_v40 = vsel %vm1559_vm3, %v11315_v16, -inf }
 0x8ae   :  { %12546 = vst [vmem:[#allocation14_spill] sm:$0xff] %v11296_v4  ;;  %8000 = vpow2.f32 %v4753_v1  ;;  %v4593_v23 = vsel %vm1559_vm3, %v11296_v4, -inf  ;;  %v11329_v1 = vpop.permute.xlu1 %4047 }
 0x8af   :  { %8002 = vpow2.f32 %v4765_v33 }
 0x8b3   :  { %4882 = vadd.xlane.f32.xlu1 %v4881_v10  ;;  %v4803_v10 = vmul.f32 1.442695, %v4711_v25 }
 0x8b4   :  { %4585 = vmax.xlane.f32.xlu2 %v4584_v21  ;;  %4921 = vadd.xlane.f32.xlu0 %v4920_v31  ;;  %v11312_v48 = vpop.eup %8000  ;;  %v4339_v31 = vmul.f32 0.2, %v4211_v30 }
 0x8b5   :  { %v11290_v7 = vpop.xlane.xlu0 %4582  ;;  %v11317_v45 = vpop.eup %8002  ;;  %v4884_v41 = vsel %vm1559_vm3, %v11312_v48, 0.0 }
 0x8b6   :  { %v4902_v55 = vsel %vm1559_vm3, %v11317_v45, 0.0  ;;  %v4403_v33 = vsel %vm4275_vm0, %v4211_v30, %v4339_v31  ;;  %v5238_v30 = vmul.f32 %v8265_v27, %v10549_v46 }
 0x8bb   :  { %4894 = vadd.xlane.f32.xlu1 %v4893_v14 }
 0x8bc   :  { %4561 = vmax.xlane.f32.xlu2 %v4560_v47  ;;  %4594 = vmax.xlane.f32.xlu0 %v4593_v23  ;;  %v11341_v47 = vld [vmem:[%s12436_s26] sm:$0xff] }
 0x8bd   :  { %v4901_v21 = vpop.xlane.xlu0 %4900  ;;  %v11344_v23 = vadd.f32 %v11341_v47, %v4403_v33 }
 0x8be   :  { %8004 = vrcp.f32 %v4901_v21 }
 0x8bf   :  { %8006 = vpow2.f32 %v4761_v32  ;;  %v4334_v32 = vmul.f32 0.2, %v4206_v35  ;;  %v4611_v31 = vsel %vm1559_vm3, %v11344_v23, -inf }
 0x8c0   :  { %8008 = vpow2.f32 %v4803_v10  ;;  %v5237_v10 = vmul.f32 %v8265_v27, %v10547_v11 }
 0x8c1   :  { %8010 = vpow2.f32 %v4775_v18  ;;  %v4398_v33 = vsel %vm4270_vm4, %v4206_v35, %v4334_v32 }
 0x8c3   :  { %4885 = vadd.xlane.f32.xlu1 %v4884_v41  ;;  %v4204_v41 = vadd.f32 %v11189_v34, %v11252_v44  ;;  %v11371_v34 = vld [vmem:[%s12436_s26 + $0x10] sm:$0xff] }
 0x8c4   :  { %4903 = vadd.xlane.f32.xlu2 %v4902_v55  ;;  %4606 = vmax.xlane.f32.xlu0 %v4605_v40  ;;  %v8005_v62 = vpop.eup %8004  ;;  %v4210_v40 = vadd.f32 %v11207_v5, %v11270_v19  ;;  %v11374_v44 = vadd.f32 %v11371_v34, %v4409_v12  ;;  %v11381_v19 = vld [vmem:[%s12436_s26 + $0x18] sm:$0xff] }
 0x8c5   :  { %v11333_v0 = vpop.eup %8006  ;;  %v5139_v14 = vmul.f32 %v8005_v62, %v11081_v61  ;;  %v11336_v25 = vpop.xlane.xlu0 %3833  ;;  %v4707_v61 = vsub.f32 %v10961_v26, %v11045_v6  ;;  %v5236_v26 = vmul.f32 %v8265_v27, %v10511_v52  ;;  %v11384_v35 = vadd.f32 %v11381_v19, %v4398_v33 }
 0x8c6   :  { %v11350_v63 = vpop.eup %8008  ;;  %v4896_v21 = vsel %vm1559_vm3, %v11333_v0, 0.0  ;;  %v4053_v62 = vpop.permute.xlu1 %4052  ;;  %vm4268_vm5 = vcmp.ge.f32.partialorder %v4204_v41, 0.0  ;;  %v4338_v27 = vmul.f32 0.2, %v4210_v40  ;;  %vm4274_vm6 = vcmp.ge.f32.partialorder %v4210_v40, 0.0 }
 0x8c7   :  { %7588 = vmatmul.msk.f32.vlgmr.msrb.gmra.mxu2 %vm1559_vm3, %v5139_v14  ;;  %v4959_v6 = vsel %vm1559_vm3, %v11350_v63, 0.0  ;;  %v4795_v55 = vmul.f32 1.442695, %v4707_v61  ;;  %v11376_v43 = vpop.eup %8010  ;;  %v4332_v14 = vmul.f32 0.2, %v4204_v41  ;;  %12548 = vst [vmem:[#allocation17_spill] sm:$0xff] %v11384_v35  ;;  %v4214_v61 = vadd.f32 %v11193_v50, %v4053_v62 }
 0x8c8   :  { %5693 = vmatpush.msrb.mxu2 %v5238_v30  ;;  %v4629_v30 = vsel %vm1559_vm3, %v11374_v44, -inf  ;;  %v4917_v32 = vsel %vm1559_vm3, %v11376_v43, 0.0  ;;  %v4402_v12 = vsel %vm4274_vm6, %v4210_v40, %v4338_v27 }
 0x8c9   :  { %vm4278_vm7 = vcmp.ge.f32.partialorder %v4214_v61, 0.0 }
 0x8ca   :  { %5694 = vmatpush.msrb.mxu2 %v5237_v10  ;;  %v4208_v10 = vadd.f32 %v11207_v5, %v11300_v36  ;;  %v11405_v36 = vld [vmem:[%s12436_s26 + $0x8] sm:$0xff] }
 0x8cb   :  { %4897 = vadd.xlane.f32.xlu1 %v4896_v21  ;;  %v4596_v21 = vsel %vm1559_vm3, %v11384_v35, -inf }
 0x8cc   :  { %4612 = vmax.xlane.f32.xlu2 %v4611_v31  ;;  %4960 = vadd.xlane.f32.xlu0 %v4959_v6  ;;  %v4396_v31 = vsel %vm4268_vm5, %v4204_v41, %v4332_v14  ;;  %v4336_v40 = vmul.f32 0.2, %v4208_v10  ;;  %vm4272_vm8 = vcmp.ge.f32.partialorder %v4208_v10, 0.0 }
 0x8cd   :  { %5695 = vmatpush.msrb.mxu2 %v5236_v26  ;;  %v4913_v18 = vpop.xlane.xlu0 %4912  ;;  %v11408_v41 = vadd.f32 %v11405_v36, %v4396_v31  ;;  %v4213_v31 = vadd.f32 %v11193_v50, %v11329_v1 }
 0x8ce   :  { %8012 = vrcp.f32 %v4913_v18  ;;  %v4073_v18 = vpop.permute.xlu1 %4072 }
 0x8cf   :  { %5696 = vmatpush.msrb.mxu2 %v5235_v8  ;;  %8014 = vpow2.f32 %v4795_v55  ;;  %v4342_v55 = vmul.f32 0.2, %v4214_v61  ;;  %v8268_v8 = vld [vmem:[%s12358_s12 + $0x3] ss:$0 sm:$0xff]  ;;  %v4341_v1 = vmul.f32 0.2, %v4213_v31 }
 0x8d0   :  { %v5242_v5 = vmul.f32 %v8268_v8, %v10549_v46  ;;  %v5241_v14 = vmul.f32 %v8268_v8, %v10547_v11  ;;  %vm4277_vm10 = vcmp.ge.f32.partialorder %v4213_v31, 0.0 }
 0x8d3   :  { %4630 = vmax.xlane.f32.xlu1 %v4629_v30  ;;  %v4218_v30 = vadd.f32 %v11103_v20, %v4073_v18  ;;  %v5239_v20 = vmul.f32 %v8268_v8, %v10481_v29 }
 0x8d4   :  { %4918 = vadd.xlane.f32.xlu2 %v4917_v32  ;;  %4597 = vmax.xlane.f32.xlu0 %v4596_v21  ;;  %v8013_v26 = vpop.eup %8012  ;;  %v4590_v32 = vsel %vm1559_vm3, %v11408_v41, -inf  ;;  %v4406_v21 = vsel %vm4278_vm7, %v4214_v61, %v4342_v55 }
 0x8d5   :  { %v11395_v6 = vpop.eup %8014  ;;  %v5143_v33 = vmul.f32 %v8013_v26, %v11101_v24  ;;  %v4916_v62 = vpop.xlane.xlu0 %4915  ;;  %v11411_v24 = vadd.f32 %v11381_v19, %v4402_v12  ;;  %v5240_v12 = vmul.f32 %v8268_v8, %v10511_v52  ;;  %v4346_v61 = vmul.f32 0.2, %v4218_v30 }
 0x8d6   :  { %8016 = vrcp.f32 %v4916_v62  ;;  %v4947_v27 = vsel %vm1559_vm3, %v11395_v6, 0.0  ;;  %vm4282_vm9 = vcmp.ge.f32.partialorder %v4218_v30, 0.0  ;;  %v4699_v8 = vsub.f32 %v10876_v38, %v11005_v51  ;;  %v12553_v51 = vld [vmem:[#allocation36_spill] sm:$0xff] }
 0x8d7   :  { %12549 = vst [vmem:[#allocation20_spill] sm:$0xff] %v11411_v24  ;;  %7592 = vmatmul.msk.f32.vlgmr.msra.gmra.mxu3 %vm1559_vm3, %v5143_v33  ;;  %v4608_v26 = vsel %vm1559_vm3, %v11411_v24, -inf  ;;  %v4400_v33 = vsel %vm4272_vm8, %v4208_v10, %v4336_v40  ;;  %v4708_v10 = vsub.f32 %v11020_v15, %v11115_v49  ;;  %v4410_v18 = vsel %vm4282_vm9, %v4218_v30, %v4346_v61  ;;  %v12554_v61 = vld [vmem:[#allocation15_spill] sm:$0xff] }
 0x8d8   :  { %5734 = vmatpush.msra.mxu3 %v5242_v5  ;;  %v11427_v5 = vadd.f32 %v11381_v19, %v4406_v21  ;;  %v11431_v50 = vadd.f32 %v11405_v36, %v4400_v33  ;;  %v11445_v15 = vadd.f32 %v11381_v19, %v4410_v18 }
 0x8da   :  { %5735 = vmatpush.msra.mxu3 %v5241_v14  ;;  %12550 = vst [vmem:[#allocation24_spill] sm:$0xff] %v11427_v5  ;;  %v4620_v40 = vsel %vm1559_vm3, %v11427_v5, -inf  ;;  %v4405_v14 = vsel %vm4277_vm10, %v4213_v31, %v4341_v1  ;;  %v4632_v30 = vsel %vm1559_vm3, %v11445_v15, -inf }
 0x8db   :  { %4948 = vadd.xlane.f32.xlu1 %v4947_v27  ;;  %v4797_v27 = vmul.f32 1.442695, %v4708_v10  ;;  %12551 = vst [vmem:[#allocation25_spill] sm:$0xff] %v11445_v15  ;;  %v11450_v38 = vadd.f32 %v11371_v34, %v4405_v14 }
 0x8dc   :  { %4591 = vmax.xlane.f32.xlu2 %v4590_v32  ;;  %4609 = vmax.xlane.f32.xlu0 %v4608_v26  ;;  %v8017_v62 = vpop.eup %8016  ;;  %v4779_v32 = vmul.f32 1.442695, %v4699_v8 }
 0x8dd   :  { %5736 = vmatpush.msra.mxu3 %v5240_v12  ;;  %v5144_v55 = vmul.f32 %v8017_v62, %v11110_v28  ;;  %v4602_v28 = vsel %vm1559_vm3, %v11431_v50, -inf  ;;  %12552 = vst [vmem:[#allocation29_spill] sm:$0xff] %v11450_v38  ;;  %8018 = vpow2.f32 %v4797_v27  ;;  %v4703_v12 = vsub.f32 %v12553_v51, %v11010_v42  ;;  %v11478_v18 = vpop.xlane.xlu0 %4624 }
 0x8de   :  { %8020 = vpow2.f32 %v4779_v32  ;;  %v4617_v31 = vsel %vm1559_vm3, %v11450_v38, -inf  ;;  %v12556_v32 = vld [vmem:[#allocation12_spill] sm:$0xff] }
 0x8df   :  { %5737 = vmatpush.msra.mxu3 %v5239_v20  ;;  %v4787_v19 = vmul.f32 1.442695, %v4703_v12 }
 0x8e0   :  { %7593 = vmatmul.msk.f32.gmra.mxu3 %vm1559_vm3, %v5144_v55 }
 0x8e1   :  { %8022 = vpow2.f32 %v4787_v19  ;;  %v12558_v19 = vld [vmem:[#allocation10_spill] sm:$0xff] }
 0x8e3   :  { %4621 = vmax.xlane.f32.xlu1 %v4620_v40  ;;  %v11458_v33 = vpop.eup %8018  ;;  %v12555_v40 = vld [vmem:[#allocation19_spill] sm:$0xff] }
 0x8e4   :  { %4603 = vmax.xlane.f32.xlu2 %v4602_v28  ;;  %v11462_v20 = vpop.eup %8020  ;;  %v4950_v42 = vsel %vm1559_vm3, %v11458_v33, 0.0 }
 0x8e5   :  { %v4923_v55 = vsel %vm1559_vm3, %v11462_v20, 0.0  ;;  %v11485_v12 = vpop.xlane.xlu0 %4906 }
 0x8e6   :  { %v11442_v21 = vpop.xlane.xlu1 %4555 }
 0x8e7   :  { %v11447_v49 = vpop.xlane.xlu2 %4543  ;;  %v11473_v8 = vpop.eup %8022 }
 0x8e8   :  { %v4935_v28 = vsel %vm1559_vm3, %v11473_v8, 0.0 }
 0x8eb   :  { %4633 = vmax.xlane.f32.xlu1 %v4632_v30 }
 0x8ec   :  { %4618 = vmax.xlane.f32.xlu2 %v4617_v31  ;;  %v12557_v31 = vld [vmem:[#allocation42_spill] sm:$0xff] }
 0x8ee   :  { %v3786_v26 = vpop.xlane.xlu1 %3785 }
 0x8ef   :  { %v11460_v62 = vpop.xlane.xlu2 %4570 }
 0x8f0   :  { %4117 = vperm.xlu0 %7687, %v12554_v61  }
 0x8f3   :  { %4951 = vadd.xlane.f32.xlu1 %v4950_v42 }
 0x8f4   :  { %4924 = vadd.xlane.f32.xlu2 %v4923_v55 }
 0x8f6   :  { %v11469_v1 = vpop.xlane.xlu1 %4573 }
 0x8f7   :  { %v11471_v10 = vpop.xlane.xlu2 %4546 }
 0x8f8   :  { %4097 = vperm.xlu0 %7687, %v12555_v40   ;;  %v12559_v40 = vld [vmem:[#allocation34_spill] sm:$0xff] }
 0x8fc   :  { %4936 = vadd.xlane.f32.xlu2 %v4935_v28  ;;  %v12560_v28 = vld [vmem:[#allocation16_spill] sm:$0xff] }
 0x8fe   :  { %v11480_v14 = vpop.xlane.xlu1 %4549 }
 0x8ff   :  { %v11482_v27 = vpop.xlane.xlu2 %3817 }
 0x900   :  { %4082 = vperm.xlu0 %7687, %v12556_v32  }
 0x906   :  { %v4880_v51 = vpop.xlane.xlu1 %4879 }
 0x907   :  { %v11487_v30 = vpop.xlane.xlu2 %4558 }
 0x908   :  { %4147 = vperm.xlu0 %7687, %v12557_v31  }
 0x90c   :  { %4137 = vperm.xlu1 %7688, %v12558_v19   ;;  %v8270_v19 = vld [vmem:[%s12358_s12] ss:$0 sm:$0xff] }
 0x90d   :  { %v5227_v24 = vmul.f32 %v8270_v19, %v10481_v29 }
 0x90e   :  { %v4892_v61 = vpop.xlane.xlu1 %4891 }
 0x90f   :  { %v4877_v42 = vpop.xlane.xlu2 %4876  ;;  %v11491_v55 = vpop.xlane.xlu0 %4615 }
 0x910   :  { %8024 = vrcp.f32 %v4877_v42  ;;  %4092 = vperm.xlu0 %7687, %v3786_v26   ;;  %v5230_v42 = vmul.f32 %v8270_v19, %v10549_v46  ;;  %v5229_v26 = vmul.f32 %v8270_v19, %v10547_v11 }
 0x911   :  { %8026 = vrcp.f32 %v4880_v51  ;;  %v12561_v51 = vld [vmem:[#allocation38_spill] sm:$0xff] }
 0x914   :  { %4077 = vperm.xlu2 %7689, %v12559_v40   ;;  %4122 = vperm.xlu1 %7688, %v12560_v28   ;;  %v12562_v28 = vld [vmem:[#allocation21_spill] sm:$0xff] }
 0x916   :  { %v8025_v32 = vpop.eup %8024  ;;  %v11495_v15 = vpop.xlane.xlu1 %4588 }
 0x917   :  { %v5131_v35 = vmul.f32 %v8025_v32, %v11203_v60  ;;  %v3802_v5 = vpop.xlane.xlu2 %3801  ;;  %v11498_v31 = vpop.xlane.xlu0 %4627  ;;  %v5228_v60 = vmul.f32 %v8270_v19, %v10511_v52 }
 0x918   :  { %v8027_v40 = vpop.eup %8026 }
 0x919   :  { %7580 = vmatmul.msk.f32.vlgmr.msra.gmra.mxu0 %vm1559_vm3, %v5131_v35  ;;  %v5132_v35 = vmul.f32 %v8027_v40, %v11183_v22  ;;  %v8271_v22 = vld [vmem:[%s12358_s12 + $0x1] ss:$0 sm:$0xff] }
 0x91a   :  { %5611 = vmatpush.msra.mxu0 %v5230_v42  ;;  %v12563_v42 = vld [vmem:[#allocation39_spill] sm:$0xff]  ;;  %v5231_v58 = vmul.f32 %v8271_v22, %v10481_v29 }
 0x91b   :  { %v12565_v40 = vld [vmem:[#allocation11_spill] sm:$0xff] }
 0x91c   :  { %5612 = vmatpush.msra.mxu0 %v5229_v26  ;;  %4142 = vperm.xlu2 %7689, %v12561_v51  }
 0x91d   :  { %4127 = vperm.xlu1 %7688, %v12562_v28  }
 0x91e   :  { %5613 = vmatpush.msra.mxu0 %v5228_v60  ;;  %v11509_v32 = vpop.xlane.xlu1 %4600 }
 0x91f   :  { %v4889_v16 = vpop.xlane.xlu2 %4888  ;;  %v11512_v4 = vpop.xlane.xlu0 %4909 }
 0x920   :  { %8028 = vrcp.f32 %v4889_v16  ;;  %5614 = vmatpush.msra.mxu0 %v5227_v24  ;;  %v5234_v16 = vmul.f32 %v8271_v22, %v10549_v46  ;;  %v12564_v24 = vld [vmem:[#allocation22_spill] sm:$0xff] }
 0x921   :  { %7581 = vmatmul.msk.f32.gmra.mxu0 %vm1559_vm3, %v5132_v35  ;;  %8030 = vrcp.f32 %v4892_v61  ;;  %v4712_v28 = vsub.f32 %v12565_v40, %v12564_v24 }
 0x924   :  { %4102 = vperm.xlu2 %7689, %v12563_v42   ;;  %v5232_v42 = vmul.f32 %v8271_v22, %v10511_v52 }
 0x925   :  { %4152 = vperm.xlu1 %7688, %v11336_v25   ;;  %v5233_v25 = vmul.f32 %v8271_v22, %v10547_v11 }
 0x926   :  { %v8029_v26 = vpop.eup %8028  ;;  %v4883_v51 = vpop.xlane.xlu1 %4882 }
 0x927   :  { %v5135_v60 = vmul.f32 %v8029_v26, %v11250_v39  ;;  %8032 = vrcp.f32 %v4883_v51  ;;  %v11519_v19 = vpop.xlane.xlu2 %4585  ;;  %v4922_v35 = vpop.xlane.xlu0 %4921  ;;  %v12566_v39 = vld [vmem:[#allocation41_spill] sm:$0xff]  ;;  %v4805_v51 = vmul.f32 1.442695, %v4712_v28 }
 0x928   :  { %v8031_v61 = vpop.eup %8030 }
 0x929   :  { %7584 = vmatmul.msk.f32.vlgmr.msra.gmra.mxu1 %vm1559_vm3, %v5135_v60 }
 0x92a   :  { %5652 = vmatpush.msra.mxu1 %v5234_v16  ;;  %v5136_v16 = vmul.f32 %v8031_v61, %v11201_v17 }
 0x92c   :  { %5653 = vmatpush.msra.mxu1 %v5233_v25  ;;  %4087 = vperm.xlu2 %7689, %v12566_v39  }
 0x92d   :  { %v8033_v26 = vpop.eup %8032  ;;  %4112 = vperm.xlu1 %7688, %v3802_v5   ;;  %v12567_v5 = vld [vmem:[#allocation23_spill] sm:$0xff] }
 0x92e   :  { %5654 = vmatpush.msra.mxu1 %v5232_v42  ;;  %v4895_v38 = vpop.xlane.xlu1 %4894  ;;  %v5133_v24 = vmul.f32 %v8033_v26, %v11268_v37 }
 0x92f   :  { %8034 = vrcp.f32 %v4895_v38  ;;  %v11533_v60 = vpop.xlane.xlu2 %4561  ;;  %v11538_v40 = vpop.xlane.xlu0 %4594 }
 0x930   :  { %5655 = vmatpush.msra.mxu1 %v5231_v58  ;;  %7582 = vmatmul.msk.f32.gmra.mxu0 %vm1559_vm3, %v5133_v24  ;;  %8036 = vpow2.f32 %v4805_v51 }
 0x931   :  { %7585 = vmatmul.msk.f32.gmra.mxu1 %vm1559_vm3, %v5136_v16 }
 0x934   :  { %4107 = vperm.xlu2 %7689, %v12567_v5  }
 0x935   :  { %v8035_v28 = vpop.eup %8034 }
 0x936   :  { %v4886_v25 = vpop.xlane.xlu1 %4885  ;;  %v5137_v22 = vmul.f32 %v8035_v28, %v11288_v56  ;;  %v11542_v37 = vpop.eup %8036 }
 0x937   :  { %8038 = vrcp.f32 %v4886_v25  ;;  %v4904_v38 = vpop.xlane.xlu2 %4903  ;;  %v4962_v17 = vsel %vm1559_vm3, %v11542_v37, 0.0  ;;  %v11548_v61 = vpop.xlane.xlu0 %4606 }
 0x938   :  { %8040 = vrcp.f32 %v4904_v38 }
 0x939   :  { %7586 = vmatmul.msk.f32.gmra.mxu1 %vm1559_vm3, %v5137_v22  ;;  %8042 = vrcp.f32 %v11485_v12 }
 0x93a   :  { %4963 = vadd.xlane.f32.xlu0 %v4962_v17 }
 0x93c   :  { %4132 = vperm.xlu2 %7689, %v11482_v27  }
 0x93d   :  { %v8039_v58 = vpop.eup %8038 }
 0x93e   :  { %v8041_v39 = vpop.eup %8040  ;;  %v4898_v56 = vpop.xlane.xlu1 %4897  ;;  %v5134_v42 = vmul.f32 %v8039_v58, %v11312_v48 }
 0x93f   :  { %8044 = vrcp.f32 %v4898_v56  ;;  %v11552_v26 = vpop.xlane.xlu2 %4612  ;;  %v5140_v51 = vmul.f32 %v8041_v39, %v11317_v45  ;;  %v8043_v24 = vpop.eup %8042 }
 0x940   :  { %7583 = vmatmul.msk.f32.gmra.mxu0 %vm1559_vm3, %v5134_v42  ;;  %8046 = vrcp.f32 %v11512_v4  ;;  %v4961_v5 = vpop.xlane.xlu0 %4960  ;;  %v5141_v48 = vmul.f32 %v8043_v24, %v11128_v54  ;;  %v12568_v54 = vld [vmem:[#allocation26_spill] sm:$0xff]  ;;  %v8272_v24 = vld [vmem:[%s12358_s12 + $0x6] ss:$0 sm:$0xff] }
 0x941   :  { %7589 = vmatmul.msk.f32.gmra.mxu2 %vm1559_vm3, %v5140_v51  ;;  %v4700_v58 = vsub.f32 %v12568_v54, %v11447_v49  ;;  %v12569_v49 = vld [vmem:[#allocation30_spill] sm:$0xff] }
 0x943   :  { %v4781_v51 = vmul.f32 1.442695, %v4700_v58 }
 0x945   :  { %v8045_v27 = vpop.eup %8044 }
 0x946   :  { %v11558_v16 = vpop.xlane.xlu1 %4630  ;;  %v5138_v12 = vmul.f32 %v8045_v27, %v11333_v0  ;;  %v8047_v45 = vpop.eup %8046  ;;  %v5254_v27 = vmul.f32 %v8272_v24, %v10549_v46 }
 0x947   :  { %v4919_v28 = vpop.xlane.xlu2 %4918  ;;  %v5142_v4 = vmul.f32 %v8047_v45, %v11254_v57  ;;  %v5251_v45 = vmul.f32 %v8272_v24, %v10481_v29 }
 0x948   :  { %8048 = vrcp.f32 %v4919_v28  ;;  %7587 = vmatmul.msk.f32.gmra.mxu1 %vm1559_vm3, %v5138_v12  ;;  %v11568_v17 = vpop.xlane.xlu0 %4597  ;;  %v4704_v12 = vsub.f32 %v12569_v49, %v11442_v21  ;;  %v5252_v28 = vmul.f32 %v8272_v24, %v10511_v52  ;;  %v8273_v21 = vld [vmem:[%s12358_s12 + $0x7] ss:$0 sm:$0xff] }
 0x949   :  { %7590 = vmatmul.msk.f32.gmra.mxu2 %vm1559_vm3, %v5141_v48  ;;  %8050 = vrcp.f32 %v4922_v35  ;;  %v5258_v58 = vmul.f32 %v8273_v21, %v10549_v46 }
 0x94e   :  { %v8049_v25 = vpop.eup %8048  ;;  %v4949_v22 = vpop.xlane.xlu1 %4948 }
 0x94f   :  { %8052 = vrcp.f32 %v4949_v22  ;;  %v11564_v38 = vpop.xlane.xlu2 %4591  ;;  %v5145_v0 = vmul.f32 %v8049_v25, %v11376_v43  ;;  %v8051_v39 = vpop.eup %8050  ;;  %v4789_v25 = vmul.f32 1.442695, %v4704_v12 }
 0x950   :  { %8054 = vrcp.f32 %v4961_v5  ;;  %v5146_v43 = vmul.f32 %v8051_v39, %v11275_v9  ;;  %v11589_v5 = vpop.xlane.xlu0 %4609 }
 0x951   :  { %7591 = vmatmul.msk.f32.gmra.mxu2 %vm1559_vm3, %v5142_v4  ;;  %7594 = vmatmul.msk.f32.gmra.mxu3 %vm1559_vm3, %v5145_v0  ;;  %8056 = vpow2.f32 %v4781_v51  ;;  %v3532_v4 = vpop.f32.mrf.mxu2 }
 0x952   :  { %v11598_v54 = vperm.slane %v3532_v4, 0  ;;  %8058 = vpow2.f32 %v4789_v25 }
 0x955   :  { %v8053_v56 = vpop.eup %8052 }
 0x956   :  { %v5155_v35 = vmul.f32 %v8053_v56, %v11395_v6  ;;  %v11575_v42 = vpop.xlane.xlu1 %4621  ;;  %v5253_v6 = vmul.f32 %v8272_v24, %v10547_v11  ;;  %v8055_v9 = vpop.eup %8054  ;;  %v12570_v56 = vld [vmem:[#allocation40_spill] sm:$0xff] }
 0x957   :  { %v11577_v57 = vpop.xlane.xlu2 %4603  ;;  %v5159_v22 = vmul.f32 %v8055_v9, %v11350_v63  ;;  %v11604_v39 = vpop.eup %8056  ;;  %v5257_v63 = vmul.f32 %v8273_v21, %v10547_v11 }
 0x958   :  { %v4926_v24 = vsel %vm1559_vm3, %v11604_v39, 0.0 }
 0x959   :  { %7595 = vmatmul.msk.f32.gmra.mxu3 %vm1559_vm3, %v5146_v43  ;;  %7604 = vmatmul.msk.f32.vlgmr.msra.gmra.mxu2 %vm1559_vm3, %v5155_v35  ;;  %v4713_v35 = vsub.f32 %v12570_v56, %v11290_v7  ;;  %v5255_v7 = vmul.f32 %v8273_v21, %v10481_v29  ;;  %v3492_v56 = vpop.f32.mrf.mxu0 }
 0x95a   :  { %5857 = vmatpush.msra.mxu2 %v5254_v27  ;;  %v5256_v27 = vmul.f32 %v8273_v21, %v10511_v52 }
 0x95c   :  { %5858 = vmatpush.msra.mxu2 %v5253_v6  ;;  %v4807_v6 = vmul.f32 1.442695, %v4713_v35 }
 0x95e   :  { %5859 = vmatpush.msra.mxu2 %v5252_v28  ;;  %v11592_v48 = vpop.xlane.xlu1 %4633 }
 0x95f   :  { %v11596_v0 = vpop.xlane.xlu2 %4618 }
 0x960   :  { %5860 = vmatpush.msra.mxu2 %v5251_v45  ;;  %v11615_v45 = vpop.eup %8058 }
 0x961   :  { %7608 = vmatmul.msk.f32.vlgmr.msrb.gmra.mxu3 %vm1559_vm3, %v5159_v22 }
 0x962   :  { %5898 = vmatpush.msrb.mxu3 %v5258_v58  ;;  %v4118_v51 = vpop.permute.xlu0 %4117  ;;  %v4938_v58 = vsel %vm1559_vm3, %v11615_v45, 0.0 }
 0x963   :  { %v4227_v43 = vadd.f32 %v11598_v54, %v4118_v51 }
 0x964   :  { %5899 = vmatpush.msrb.mxu3 %v5257_v63 }
 0x965   :  { %4927 = vadd.xlane.f32.xlu2 %v4926_v24  ;;  %vm4291_vm11 = vcmp.ge.f32.partialorder %v4227_v43, 0.0  ;;  %v4355_v49 = vmul.f32 0.2, %v4227_v43 }
 0x966   :  { %5900 = vmatpush.msrb.mxu3 %v5256_v27  ;;  %v4952_v12 = vpop.xlane.xlu1 %4951  ;;  %v11628_v27 = vperm.slane %v3492_v56, 0 }
 0x967   :  { %8060 = vrcp.f32 %v4952_v12  ;;  %v4925_v9 = vpop.xlane.xlu2 %4924  ;;  %v4419_v28 = vsel %vm4291_vm11, %v4227_v43, %v4355_v49  ;;  %v3512_v12 = vpop.f32.mrf.mxu1 }
 0x968   :  { %8062 = vrcp.f32 %v4925_v9  ;;  %5901 = vmatpush.msrb.mxu3 %v5255_v7  ;;  %v11618_v25 = vadd.f32 %v11341_v47, %v4419_v28  ;;  %v11639_v9 = vperm.slane %v3512_v12, 0 }
 0x969   :  { %8064 = vpow2.f32 %v4807_v6  ;;  %v8274_v6 = vld [vmem:[%s12358_s12 + $0x4] ss:$0 sm:$0xff] }
 0x96a   :  { %v4098_v22 = vpop.permute.xlu0 %4097  ;;  %v4659_v4 = vsel %vm1559_vm3, %v11618_v25, -inf  ;;  %v5246_v49 = vmul.f32 %v8274_v6, %v10549_v46  ;;  %v5243_v56 = vmul.f32 %v8274_v6, %v10481_v29 }
 0x96b   :  { %4660 = vmax.xlane.f32.xlu1 %v4659_v4  ;;  %v5244_v4 = vmul.f32 %v8274_v6, %v10511_v52 }
 0x96d   :  { %v8061_v21 = vpop.eup %8060  ;;  %4939 = vadd.xlane.f32.xlu2 %v4938_v58 }
 0x96e   :  { %v8063_v35 = vpop.eup %8062  ;;  %v5156_v63 = vmul.f32 %v8061_v21, %v11458_v33  ;;  %v5245_v33 = vmul.f32 %v8274_v6, %v10547_v11 }
 0x96f   :  { %v5147_v51 = vmul.f32 %v8063_v35, %v11462_v20  ;;  %v4937_v43 = vpop.xlane.xlu2 %4936  ;;  %v11626_v24 = vpop.eup %8064 }
 0x970   :  { %8066 = vrcp.f32 %v4937_v43  ;;  %7605 = vmatmul.msk.f32.gmra.mxu2 %vm1559_vm3, %v5156_v63  ;;  %v4965_v7 = vsel %vm1559_vm3, %v11626_v24, 0.0 }
 0x971   :  { %7596 = vmatmul.msk.f32.vlgmr.msrb.gmra.mxu0 %vm1559_vm3, %v5147_v51  ;;  %v4223_v51 = vadd.f32 %v11639_v9, %v4098_v22 }
 0x972   :  { %5775 = vmatpush.msrb.mxu0 %v5246_v49  ;;  %v4083_v20 = vpop.permute.xlu0 %4082  ;;  %v8275_v49 = vld [vmem:[%s12358_s12 + $0x5] ss:$0 sm:$0xff]  ;;  %s7330_s12 = sshll.u32 %s12365_s19, 4  ;;  %s7331_s12 = int_to_ptr.hbm [resolvable:$true] %s7330_s12 }
 0x973   :  { %v4220_v28 = vadd.f32 %v11628_v27, %v4083_v20  ;;  %4966 = vadd.xlane.f32.xlu1 %v4965_v7  ;;  %v5250_v12 = vmul.f32 %v8275_v49, %v10549_v46  ;;  %v5249_v22 = vmul.f32 %v8275_v49, %v10547_v11  ;;  %v3552_v7 = vpop.f32.mrf.mxu3  ;;  %v5248_v46 = vmul.f32 %v8275_v49, %v10511_v52  ;;  %v12572_v11 = vld [vmem:[#allocation33_spill] sm:$0xff] }
 0x974   :  { %5776 = vmatpush.msrb.mxu0 %v5245_v33  ;;  %vm4287_vm14 = vcmp.ge.f32.partialorder %v4223_v51, 0.0 }
 0x975   :  { %vm4284_vm12 = vcmp.ge.f32.partialorder %v4220_v28, 0.0  ;;  %v4348_v21 = vmul.f32 0.2, %v4220_v28 }
 0x976   :  { %v8067_v58 = vpop.eup %8066  ;;  %5777 = vmatpush.msrb.mxu0 %v5244_v4  ;;  %v4351_v4 = vmul.f32 0.2, %v4223_v51 }
 0x977   :  { %v5151_v35 = vmul.f32 %v8067_v58, %v11473_v8  ;;  %v4078_v63 = vpop.permute.xlu2 %4077  ;;  %v4412_v33 = vsel %vm4284_vm12, %v4220_v28, %v4348_v21  ;;  %v12571_v58 = vld [vmem:[#allocation31_spill] sm:$0xff] }
 0x978   :  { %v4219_v43 = vadd.f32 %v11628_v27, %v4078_v63  ;;  %5778 = vmatpush.msrb.mxu0 %v5243_v56  ;;  %v11653_v20 = vadd.f32 %v11405_v36, %v4412_v33  ;;  %v4709_v21 = vsub.f32 %v12571_v58, %v11460_v62  ;;  %v11661_v56 = vperm.slane %v3552_v7, 0 }
 0x979   :  { %7600 = vmatmul.msk.f32.vlgmr.msrb.gmra.mxu1 %vm1559_vm3, %v5151_v35  ;;  %v4701_v63 = vsub.f32 %v12572_v11, %v11471_v10  ;;  %v5247_v33 = vmul.f32 %v8275_v49, %v10481_v29  ;;  %v4415_v62 = vsel %vm4287_vm14, %v4223_v51, %v4351_v4  ;;  %v12573_v29 = vld [vmem:[#allocation37_spill] sm:$0xff]  ;;  %v4706_v58 = vsub.f32 %v11293_v59, %v11533_v60 }
 0x97a   :  { %vm4283_vm13 = vcmp.ge.f32.partialorder %v4219_v43, 0.0  ;;  %v4347_v8 = vmul.f32 0.2, %v4219_v43  ;;  %5816 = vmatpush.msrb.mxu1 %v5250_v12  ;;  %v4638_v6 = vsel %vm1559_vm3, %v11653_v20, -inf  ;;  %v11673_v10 = vadd.f32 %v11341_v47, %v4415_v62  ;;  %v12574_v62 = vld [vmem:[#allocation27_spill] sm:$0xff] }
 0x97b   :  { %4639 = vmax.xlane.f32.xlu1 %v4638_v6  ;;  %v4783_v7 = vmul.f32 1.442695, %v4701_v63  ;;  %v4705_v49 = vsub.f32 %v12573_v29, %v11487_v30  ;;  %v4793_v30 = vmul.f32 1.442695, %v4706_v58  ;;  %vm6034_vm14 = vcmask 388098  }
 0x97c   :  { %5817 = vmatpush.msrb.mxu1 %v5249_v22  ;;  %v4411_v28 = vsel %vm4283_vm13, %v4219_v43, %v4347_v8  ;;  %v4799_v8 = vmul.f32 1.442695, %v4709_v21  ;;  %v4647_v11 = vsel %vm1559_vm3, %v11673_v10, -inf  ;;  %vm6007_vm13 = vcmask 386048  }
 0x97d   :  { %v11664_v35 = vadd.f32 %v11341_v47, %v4411_v28 }
 0x97e   :  { %5818 = vmatpush.msrb.mxu1 %v5248_v46  ;;  %v4138_v12 = vpop.permute.xlu1 %4137  ;;  %8068 = vpow2.f32 %v4799_v8  ;;  %v4727_v8 = vsub.f32 %v12574_v62, %v11478_v18 }
 0x97f   :  { %v4231_v22 = vadd.f32 %v11661_v56, %v4138_v12  ;;  %v4143_v52 = vpop.permute.xlu2 %4142  ;;  %v4635_v43 = vsel %vm1559_vm3, %v11664_v35, -inf  ;;  %8070 = vpow2.f32 %v4783_v7  ;;  %v4791_v12 = vmul.f32 1.442695, %v4705_v49  ;;  %v12575_v7 = vld [vmem:[#allocation32_spill] sm:$0xff] }
 0x980   :  { %5819 = vmatpush.msrb.mxu1 %v5247_v33  ;;  %4636 = vmax.xlane.f32.xlu2 %v4635_v43  ;;  %v4232_v49 = vadd.f32 %v11661_v56, %v4143_v52 }
 0x981   :  { %vm4295_vm15 = vcmp.ge.f32.partialorder %v4231_v22, 0.0  ;;  %v4359_v6 = vmul.f32 0.2, %v4231_v22  ;;  %8072 = vpow2.f32 %v4791_v12 }
 0x982   :  { %8074 = vpow2.f32 %v4793_v30  ;;  %vm4296_vm4 = vcmp.ge.f32.partialorder %v4232_v49, 0.0  ;;  %v12576_v30 = vld [vmem:[#allocation35_spill] sm:$0xff] }
 0x983   :  { %v4423_v28 = vsel %vm4295_vm15, %v4231_v22, %v4359_v6  ;;  %vm6153_vm15 = vcmask 390148  }
 0x984   :  { %v11676_v46 = vadd.f32 %v11341_v47, %v4423_v28  ;;  %v11688_v22 = vpop.eup %8068  ;;  %v4710_v28 = vsub.f32 %v12575_v7, %v11469_v1  ;;  %v4360_v1 = vmul.f32 0.2, %v4232_v49 }
 0x985   :  { %v11690_v59 = vpop.eup %8070  ;;  %v4953_v29 = vsel %vm1559_vm3, %v11688_v22, 0.0 }
 0x986   :  { %v4123_v51 = vpop.permute.xlu1 %4122  ;;  %v4671_v4 = vsel %vm1559_vm3, %v11676_v46, -inf  ;;  %v4929_v58 = vsel %vm1559_vm3, %v11690_v59, 0.0 }
 0x987   :  { %v4103_v21 = vpop.permute.xlu2 %4102  ;;  %4672 = vmax.xlane.f32.xlu0 %v4671_v4  ;;  %v4228_v47 = vadd.f32 %v11598_v54, %v4123_v51  ;;  %v4835_v4 = vmul.f32 1.442695, %v4727_v8  ;;  %v4424_v8 = vsel %vm4296_vm4, %v4232_v49, %v4360_v1  ;;  %v4723_v49 = vsub.f32 %v11344_v23, %v11552_v26 }
 0x988   :  { %v4224_v63 = vadd.f32 %v11639_v9, %v4103_v21  ;;  %4648 = vmax.xlane.f32.xlu2 %v4647_v11  ;;  %v4801_v21 = vmul.f32 1.442695, %v4710_v28  ;;  %v11706_v11 = vpop.eup %8072 }
 0x989   :  { %v4356_v60 = vmul.f32 0.2, %v4228_v47  ;;  %vm4292_vm2 = vcmp.ge.f32.partialorder %v4228_v47, 0.0  ;;  %v11711_v52 = vpop.eup %8074  ;;  %8076 = vpow2.f32 %v4835_v4  ;;  %v4827_v23 = vmul.f32 1.442695, %v4723_v49 }
 0x98a   :  { %vm4288_vm0 = vcmp.ge.f32.partialorder %v4224_v63, 0.0  ;;  %v4352_v33 = vmul.f32 0.2, %v4224_v63  ;;  %8078 = vpow2.f32 %v4801_v21  ;;  %v4944_v62 = vsel %vm1559_vm3, %v11711_v52, 0.0 }
 0x98b   :  { %v4420_v51 = vsel %vm4292_vm2, %v4228_v47, %v4356_v60  ;;  %v4714_v47 = vsub.f32 %v11273_v53, %v11519_v19  ;;  %v4941_v60 = vsel %vm1559_vm3, %v11706_v11, 0.0 }
 0x98c   :  { %v4416_v43 = vsel %vm4288_vm0, %v4224_v63, %v4352_v33  ;;  %v11709_v12 = vadd.f32 %v11405_v36, %v4420_v51  ;;  %v4702_v33 = vsub.f32 %v12576_v30, %v11480_v14  ;;  %vm6228_vm0 = vcmask 392198  }
 0x98d   :  { %v11695_v6 = vadd.f32 %v11405_v36, %v4416_v43  ;;  %v4809_v28 = vmul.f32 1.442695, %v4714_v47 }
 0x98e   :  { %v4662_v43 = vsel %vm1559_vm3, %v11709_v12, -inf  ;;  %v4785_v14 = vmul.f32 1.442695, %v4702_v33 }
 0x98f   :  { %4954 = vadd.xlane.f32.xlu0 %v4953_v29  ;;  %v4650_v18 = vsel %vm1559_vm3, %v11695_v6, -inf  ;;  %v4088_v63 = vpop.permute.xlu2 %4087  ;;  %v11725_v29 = vadd.f32 %v11405_v36, %v4424_v8  ;;  %v11727_v53 = vpop.eup %8076  ;;  %v4720_v8 = vsub.f32 %v11431_v50, %v11577_v57 }
 0x990   :  { %4930 = vadd.xlane.f32.xlu2 %v4929_v58  ;;  %4651 = vmax.xlane.f32.xlu1 %v4650_v18  ;;  %v4221_v7 = vadd.f32 %v11628_v27, %v4088_v63  ;;  %v11729_v19 = vpop.eup %8078  ;;  %v4715_v58 = vsub.f32 %v11225_v2, %v11495_v15  ;;  %v4148_v18 = vpop.permute.xlu0 %4147  ;;  %8080 = vpow2.f32 %v4785_v14  ;;  %v5007_v1 = vsel %vm1559_vm3, %v11727_v53, 0.0 }
 0x991   :  { %8082 = vpow2.f32 %v4809_v28  ;;  %v4674_v36 = vsel %vm1559_vm3, %v11725_v29, -inf  ;;  %v4956_v21 = vsel %vm1559_vm3, %v11729_v19, 0.0  ;;  %v4821_v57 = vmul.f32 1.442695, %v4720_v8 }
 0x992   :  { %v4349_v51 = vmul.f32 0.2, %v4221_v7  ;;  %vm4285_vm5 = vcmp.ge.f32.partialorder %v4221_v7, 0.0  ;;  %v4811_v2 = vmul.f32 1.442695, %v4715_v58 }
 0x994   :  { %v4413_v63 = vsel %vm4285_vm5, %v4221_v7, %v4349_v51  ;;  %8084 = vpow2.f32 %v4811_v2  ;;  %v4724_v2 = vsub.f32 %v11210_v3, %v11491_v55  ;;  %vm6064_vm5 = vcmask 1041409  }
 0x995   :  { %v11747_v33 = vadd.f32 %v11371_v34, %v4413_v63  ;;  %8086 = vpow2.f32 %v4827_v23 }
 0x996   :  { %v11742_v26 = vpop.eup %8080  ;;  %v11744_v30 = vpop.f32.mrf.mxu0  ;;  %v4829_v55 = vmul.f32 1.442695, %v4724_v2 }
 0x997   :  { %4942 = vadd.xlane.f32.xlu0 %v4941_v60  ;;  %v4108_v4 = vpop.permute.xlu2 %4107  ;;  %v11749_v47 = vpop.eup %8082  ;;  %v4932_v28 = vsel %vm1559_vm3, %v11742_v26, 0.0  ;;  %v4641_v51 = vsel %vm1559_vm3, %v11747_v33, -inf }
 0x998   :  { %4663 = vmax.xlane.f32.xlu2 %v4662_v43  ;;  %4945 = vadd.xlane.f32.xlu1 %v4944_v62  ;;  %v4225_v15 = vadd.f32 %v11639_v9, %v4108_v4  ;;  %v4719_v43 = vsub.f32 %v11248_v13, %v11509_v32  ;;  %v4128_v62 = vpop.permute.xlu1 %4127  ;;  %v4093_v7 = vpop.permute.xlu0 %4092  ;;  %v4968_v58 = vsel %vm1559_vm3, %v11749_v47, 0.0 }
 0x999   :  { %v4229_v13 = vadd.f32 %v11598_v54, %v4128_v62  ;;  %v4233_v62 = vadd.f32 %v11661_v56, %v4148_v18  ;;  %v4716_v18 = vsub.f32 %v11408_v41, %v11564_v38 }
 0x99a   :  { %v4353_v60 = vmul.f32 0.2, %v4225_v15  ;;  %vm4289_vm6 = vcmp.ge.f32.partialorder %v4225_v15, 0.0  ;;  %v4819_v49 = vmul.f32 1.442695, %v4719_v43  ;;  %v11764_v50 = vpop.eup %8084  ;;  %v4729_v43 = vsub.f32 %v11374_v44, %v11558_v16 }
 0x99b   :  { %v11766_v4 = vpop.eup %8086  ;;  %vm4293_vm7 = vcmp.ge.f32.partialorder %v4229_v13, 0.0  ;;  %vm4297_vm8 = vcmp.ge.f32.partialorder %v4233_v62, 0.0 }
 0x99c   :  { %v4417_v32 = vsel %vm4289_vm6, %v4225_v15, %v4353_v60  ;;  %8088 = vpow2.f32 %v4819_v49  ;;  %v4995_v23 = vsel %vm1559_vm3, %v11766_v4, 0.0  ;;  %v4971_v60 = vsel %vm1559_vm3, %v11764_v50, 0.0 }
 0x99d   :  { %8090 = vpow2.f32 %v4821_v57 }
 0x99f   :  { %4675 = vmax.xlane.f32.xlu0 %v4674_v36  ;;  %v11769_v36 = vadd.f32 %v11371_v34, %v4417_v32 }
 0x9a0   :  { %4957 = vadd.xlane.f32.xlu2 %v4956_v21  ;;  %5008 = vadd.xlane.f32.xlu1 %v5007_v1  ;;  %v4357_v21 = vmul.f32 0.2, %v4229_v13  ;;  %v11771_v1 = vpop.f32.mrf.mxu0  ;;  %v11791_v44 = vpop.permute.xlu1 %4152 }
 0x9a1   :  { %v4653_v8 = vsel %vm1559_vm3, %v11769_v36, -inf }
 0x9a2   :  { %v4421_v3 = vsel %vm4293_vm7, %v4229_v13, %v4357_v21  ;;  %v12577_v13 = vld [vmem:[#allocation8_spill] sm:$0xff] }
 0x9a3   :  { %v11787_v32 = vadd.f32 %v11371_v34, %v4421_v3  ;;  %v4728_v57 = vsub.f32 %v12577_v13, %v11498_v31  ;;  %v4813_v31 = vmul.f32 1.442695, %v4716_v18 }
 0x9a5   :  { %v4837_v38 = vmul.f32 1.442695, %v4728_v57 }
 0x9a6   :  { %v11755_v14 = vpop.f32.mrf.mxu1 }
 0x9a7   :  { %4933 = vadd.xlane.f32.xlu0 %v4932_v28  ;;  %v11784_v28 = vpop.eup %8088 }
 0x9a8   :  { %4969 = vadd.xlane.f32.xlu2 %v4968_v58  ;;  %4642 = vmax.xlane.f32.xlu1 %v4641_v51  ;;  %v4839_v58 = vmul.f32 1.442695, %v4729_v43  ;;  %v4361_v51 = vmul.f32 0.2, %v4233_v62  ;;  %v11789_v49 = vpop.eup %8090  ;;  %v4665_v43 = vsel %vm1559_vm3, %v11787_v32, -inf }
 0x9a9   :  { %v4986_v41 = vsel %vm1559_vm3, %v11789_v49, 0.0 }
 0x9ad   :  { %v4964_v63 = vpop.xlane.xlu0 %4963  ;;  %v5294_v21 = vpop.f32.mrf.mxu0 }
 0x9ae   :  { %v5332_v15 = vpop.f32.mrf.mxu1  ;;  %8092 = vrcp.f32 %v4964_v63 }
 0x9af   :  { %4996 = vadd.xlane.f32.xlu0 %v4995_v23  ;;  %8094 = vpow2.f32 %v4829_v55  ;;  %v4983_v23 = vsel %vm1559_vm3, %v11784_v28, 0.0 }
 0x9b0   :  { %4972 = vadd.xlane.f32.xlu2 %v4971_v60  ;;  %4654 = vmax.xlane.f32.xlu1 %v4653_v8  ;;  %8096 = vpow2.f32 %v4839_v58  ;;  %v4425_v8 = vsel %vm4297_vm8, %v4233_v62, %v4361_v51  ;;  %v11813_v58 = vpop.f32.mrf.mxu2  ;;  %v12578_v51 = vld [vmem:[#allocation29_spill] sm:$0xff] }
 0x9b1   :  { %v11809_v3 = vadd.f32 %v11371_v34, %v4425_v8  ;;  %8098 = vpow2.f32 %v4813_v31  ;;  %v4725_v13 = vsub.f32 %v12578_v51, %v11596_v0  ;;  %v4113_v34 = vpop.permute.xlu1 %4112  ;;  %v5916_v8 = vadd.f32 %v5332_v15, %v11771_v1  ;;  %v4133_v31 = vpop.permute.xlu2 %4132  ;;  %v11838_v51 = vld [vmem:[%s12436_s26 + $0x18] sm:$0xff] }
 0x9b2   :  { %8100 = vpow2.f32 %v4837_v38  ;;  %v4226_v0 = vadd.f32 %v11639_v9, %v4113_v34  ;;  %v12580_v9 = vld [vmem:[#allocation18_spill] sm:$0xff] }
 0x9b3   :  { %v4677_v57 = vsel %vm1559_vm3, %v11809_v3, -inf }
 0x9b4   :  { %v8093_v16 = vpop.eup %8092  ;;  %vm4290_vm10 = vcmp.ge.f32.partialorder %v4226_v0, 0.0 }
 0x9b5   :  { %v5160_v63 = vmul.f32 %v8093_v16, %v11542_v37  ;;  %v4222_v37 = vadd.f32 %v11628_v27, %v4093_v7  ;;  %v11811_v55 = vpop.eup %8094  ;;  %v11815_v16 = vpop.f32.mrf.mxu3  ;;  %v12579_v27 = vld [vmem:[#allocation14_spill] sm:$0xff] }
 0x9b6   :  { %v5335_v2 = vpop.f32.mrf.mxu1  ;;  %v11817_v62 = vpop.eup %8096  ;;  %v4717_v7 = vsub.f32 %v12579_v27, %v11538_v40 }
 0x9b7   :  { %v11800_v60 = vadd.f32 %v5335_v2, %v5294_v21  ;;  %4984 = vadd.xlane.f32.xlu0 %v4983_v23  ;;  %7609 = vmatmul.msk.f32.gmra.mxu3 %vm1559_vm3, %v5160_v63  ;;  %v4350_v18 = vmul.f32 0.2, %v4222_v37  ;;  %vm4286_vm9 = vcmp.ge.f32.partialorder %v4222_v37, 0.0  ;;  %v4998_v21 = vsel %vm1559_vm3, %v11811_v55, 0.0  ;;  %v11830_v40 = vpop.eup %8098 }
 0x9b8   :  { %4666 = vmax.xlane.f32.xlu2 %v4665_v43  ;;  %4987 = vadd.xlane.f32.xlu1 %v4986_v41  ;;  %v5013_v2 = vsel %vm1559_vm3, %v11817_v62, 0.0  ;;  %v4831_v63 = vmul.f32 1.442695, %v4725_v13  ;;  %v4815_v43 = vmul.f32 1.442695, %v4717_v7  ;;  %v11833_v41 = vpop.eup %8100 }
 0x9b9   :  { %v4414_v23 = vsel %vm4286_vm9, %v4222_v37, %v4350_v18  ;;  %v4721_v37 = vsub.f32 %v12580_v9, %v11548_v61  ;;  %v4354_v18 = vmul.f32 0.2, %v4226_v0 }
 0x9ba   :  { %v11841_v13 = vadd.f32 %v11838_v51, %v4414_v23  ;;  %8102 = vpow2.f32 %v4831_v63  ;;  %v5010_v23 = vsel %vm1559_vm3, %v11833_v41, 0.0  ;;  %v4230_v63 = vadd.f32 %v11598_v54, %v4133_v31  ;;  %v12582_v31 = vld [vmem:[#allocation24_spill] sm:$0xff] }
 0x9bb   :  { %8104 = vpow2.f32 %v4815_v43 }
 0x9bc   :  { %v4644_v43 = vsel %vm1559_vm3, %v11841_v13, -inf  ;;  %vm4294_vm11 = vcmp.ge.f32.partialorder %v4230_v63, 0.0 }
 0x9bd   :  { %v5297_v27 = vpop.f32.mrf.mxu0  ;;  %v5414_v15 = vpop.f32.mrf.mxu3 }
 0x9bf   :  { %4678 = vmax.xlane.f32.xlu0 %v4677_v57  ;;  %v4974_v57 = vsel %vm1559_vm3, %v11830_v40, 0.0 }
 0x9c0   :  { %4999 = vadd.xlane.f32.xlu2 %v4998_v21  ;;  %5014 = vadd.xlane.f32.xlu1 %v5013_v2  ;;  %v12581_v21 = vld [vmem:[#allocation20_spill] sm:$0xff]  ;;  %v11856_v9 = vpop.eup %8102 }
 0x9c1   :  { %v4722_v2 = vsub.f32 %v12581_v21, %v11589_v5  ;;  %v4358_v5 = vmul.f32 0.2, %v4230_v63 }
 0x9c4   :  { %v5373_v38 = vpop.f32.mrf.mxu2 }
 0x9c5   :  { %v5924_v7 = vadd.f32 %v5916_v8, %v5373_v38  ;;  %v5338_v1 = vpop.f32.mrf.mxu1  ;;  %v4823_v8 = vmul.f32 1.442695, %v4721_v37  ;;  %v4418_v38 = vsel %vm4290_vm10, %v4226_v0, %v4354_v18  ;;  %v5001_v0 = vsel %vm1559_vm3, %v11856_v9, 0.0 }
 0x9c6   :  { %v5918_v34 = vadd.f32 %v5338_v1, %v5297_v27  ;;  %v4825_v27 = vmul.f32 1.442695, %v4722_v2  ;;  %v11858_v1 = vpop.eup %8104  ;;  %v11861_v21 = vadd.f32 %v11838_v51, %v4418_v38  ;;  %v4234_v37 = vadd.f32 %v11661_v56, %v11791_v44  ;;  %v12583_v38 = vld [vmem:[#allocation17_spill] sm:$0xff] }
 0x9c7   :  { %4975 = vadd.xlane.f32.xlu0 %v4974_v57  ;;  %v11851_v61 = vadd.f32 %v5924_v7, %v5414_v15  ;;  %8106 = vpow2.f32 %v4823_v8  ;;  %v4726_v7 = vsub.f32 %v12582_v31, %v11575_v42  ;;  %v4977_v18 = vsel %vm1559_vm3, %v11858_v1, 0.0 }
 0x9c8   :  { %5011 = vadd.xlane.f32.xlu2 %v5010_v23  ;;  %4645 = vmax.xlane.f32.xlu1 %v4644_v43  ;;  %8108 = vpow2.f32 %v4825_v27  ;;  %v4656_v15 = vsel %vm1559_vm3, %v11861_v21, -inf  ;;  %v4422_v2 = vsel %vm4294_vm11, %v4230_v63, %v4358_v5  ;;  %v4362_v42 = vmul.f32 0.2, %v4234_v37  ;;  %v12584_v63 = vld [vmem:[#allocation25_spill] sm:$0xff] }
 0x9c9   :  { %v11877_v43 = vadd.f32 %v11838_v51, %v4422_v2  ;;  %vm4298_vm12 = vcmp.ge.f32.partialorder %v4234_v37, 0.0  ;;  %v4718_v27 = vsub.f32 %v12583_v38, %v11568_v17  ;;  %v4730_v5 = vsub.f32 %v12584_v63, %v11592_v48 }
 0x9ca   :  { %vm7309_vm11 = vcmask 17408  }
 0x9cc   :  { %v5376_v57 = vpop.f32.mrf.mxu2 }
 0x9cd   :  { %v5925_v54 = vadd.f32 %v11800_v60, %v5376_v57  ;;  %v4833_v60 = vmul.f32 1.442695, %v4726_v7  ;;  %v11874_v23 = vpop.eup %8106 }
 0x9ce   :  { %v11879_v44 = vpop.eup %8108  ;;  %v4989_v7 = vsel %vm1559_vm3, %v11874_v23, 0.0 }
 0x9cf   :  { %5002 = vadd.xlane.f32.xlu0 %v5001_v0  ;;  %8110 = vpow2.f32 %v4833_v60  ;;  %v4668_v0 = vsel %vm1559_vm3, %v11877_v43, -inf  ;;  %v4992_v17 = vsel %vm1559_vm3, %v11879_v44, 0.0 }
 0x9d0   :  { %4978 = vadd.xlane.f32.xlu2 %v4977_v18  ;;  %4657 = vmax.xlane.f32.xlu1 %v4656_v15  ;;  %v4426_v18 = vsel %vm4298_vm12, %v4234_v37, %v4362_v42 }
 0x9d1   :  { %v11894_v2 = vadd.f32 %v11838_v51, %v4426_v18 }
 0x9d3   :  { %v4680_v37 = vsel %vm1559_vm3, %v11894_v2, -inf }
 0x9d4   :  { %v5379_v8 = vpop.f32.mrf.mxu2  ;;  %v5417_v56 = vpop.f32.mrf.mxu3 }
 0x9d5   :  { %v5926_v57 = vadd.f32 %v5918_v34, %v5379_v8  ;;  %v11883_v31 = vadd.f32 %v5925_v54, %v5417_v56  ;;  %v4817_v34 = vmul.f32 1.442695, %v4718_v27  ;;  %v4841_v54 = vmul.f32 1.442695, %v4730_v5  ;;  %v11896_v48 = vpop.eup %8110 }
 0x9d6   :  { %v5004_v38 = vsel %vm1559_vm3, %v11896_v48, 0.0 }
 0x9d7   :  { %4990 = vadd.xlane.f32.xlu0 %v4989_v7 }
 0x9d8   :  { %v4928_v15 = vpop.xlane.xlu2 %4927  ;;  %4669 = vmax.xlane.f32.xlu2 %v4668_v0  ;;  %4993 = vadd.xlane.f32.xlu1 %v4992_v17  ;;  %v5915_v0 = vadd.f32 %v11755_v14, %v11744_v30 }
 0x9d9   :  { %8112 = vrcp.f32 %v4928_v15 }
 0x9da   :  { %8114 = vpow2.f32 %v4817_v34  ;;  %v5923_v34 = vadd.f32 %v5915_v0, %v11813_v58 }
 0x9db   :  { %8116 = vpow2.f32 %v4841_v54 }
 0x9dc   :  { %v5420_v60 = vpop.f32.mrf.mxu3  ;;  %v5931_v30 = vadd.f32 %v5923_v34, %v11815_v16 }
 0x9dd   :  { %v11898_v8 = vadd.f32 %v5926_v57, %v5420_v60 }
 0x9de   :  { %v4661_v56 = vpop.xlane.xlu1 %4660 }
 0x9df   :  { %v8113_v42 = vpop.eup %8112  ;;  %4681 = vmax.xlane.f32.xlu0 %v4680_v37  ;;  %v4739_v27 = vsub.f32 %v11618_v25, %v4661_v56 }
 0x9e0   :  { %v4940_v51 = vpop.xlane.xlu2 %4939  ;;  %5005 = vadd.xlane.f32.xlu2 %v5004_v38  ;;  %v5148_v63 = vmul.f32 %v8113_v42, %v11604_v39  ;;  %v11907_v57 = vpop.eup %8114 }
 0x9e1   :  { %8118 = vrcp.f32 %v4940_v51  ;;  %v4859_v5 = vmul.f32 1.442695, %v4739_v27  ;;  %v11909_v7 = vpop.eup %8116  ;;  %v4980_v18 = vsel %vm1559_vm3, %v11907_v57, 0.0 }
 0x9e2   :  { %7597 = vmatmul.msk.f32.gmra.mxu0 %vm1559_vm3, %v5148_v63  ;;  %v5016_v39 = vsel %vm1559_vm3, %v11909_v7, 0.0  ;;  %v5534_v63 = vpop.f32.mrf.mxu2 }
 0x9e3   :  { %8120 = vpow2.f32 %v4859_v5 }
 0x9e4   :  { %v5575_v16 = vpop.f32.mrf.mxu3 }
 0x9e6   :  { %v4967_v15 = vpop.xlane.xlu1 %4966 }
 0x9e7   :  { %v8119_v25 = vpop.eup %8118  ;;  %4981 = vadd.xlane.f32.xlu0 %v4980_v18  ;;  %8122 = vrcp.f32 %v4967_v15 }
 0x9e8   :  { %5017 = vadd.xlane.f32.xlu2 %v5016_v39  ;;  %v5152_v17 = vmul.f32 %v8119_v25, %v11615_v45 }
 0x9e9   :  { %v11920_v54 = vpop.eup %8120 }
 0x9ea   :  { %7601 = vmatmul.msk.f32.gmra.mxu1 %vm1559_vm3, %v5152_v17  ;;  %v5043_v37 = vsel %vm1559_vm3, %v11920_v54, 0.0 }
 0x9ed   :  { %v8123_v14 = vpop.eup %8122 }
 0x9ee   :  { %v5452_v60 = vpop.f32.mrf.mxu0  ;;  %v5161_v56 = vmul.f32 %v8123_v14, %v11626_v24  ;;  %v4640_v0 = vpop.xlane.xlu1 %4639 }
 0x9ef   :  { %v5939_v42 = vadd.f32 %v5931_v30, %v5452_v60  ;;  %5044 = vadd.xlane.f32.xlu0 %v5043_v37  ;;  %v4732_v17 = vsub.f32 %v11653_v20, %v4640_v0 }
 0x9f0   :  { %7610 = vmatmul.msk.f32.gmra.mxu3 %vm1559_vm3, %v5161_v56 }
 0x9f1   :  { %v4845_v60 = vmul.f32 1.442695, %v4732_v17 }
 0x9f3   :  { %v4637_v45 = vpop.xlane.xlu2 %4636 }
 0x9f4   :  { %v4731_v58 = vsub.f32 %v11664_v35, %v4637_v45 }
 0x9f6   :  { %v4843_v38 = vmul.f32 1.442695, %v4731_v58  ;;  %v5493_v27 = vpop.f32.mrf.mxu1 }
 0x9f7   :  { %v5947_v51 = vadd.f32 %v5939_v42, %v5493_v27 }
 0x9f8   :  { %8124 = vpow2.f32 %v4843_v38 }
 0x9f9   :  { %v5955_v5 = vadd.f32 %v5947_v51, %v5534_v63 }
 0x9fa   :  { %v4673_v18 = vpop.xlane.xlu0 %4672 }
 0x9fb   :  { %v11928_v25 = vadd.f32 %v5955_v5, %v5575_v16  ;;  %v4743_v15 = vsub.f32 %v11676_v46, %v4673_v18  ;;  %v4649_v39 = vpop.xlane.xlu2 %4648 }
 0x9fc   :  { %v4735_v24 = vsub.f32 %v11673_v10, %v4649_v39 }
 0x9fd   :  { %v4867_v34 = vmul.f32 1.442695, %v4743_v15 }
 0x9fe   :  { %v11933_v35 = vpop.eup %8124  ;;  %v4851_v30 = vmul.f32 1.442695, %v4735_v24 }
 0x9ff   :  { %8126 = vpow2.f32 %v4867_v34  ;;  %v5019_v14 = vsel %vm1559_vm3, %v11933_v35, 0.0 }
 0xa00   :  { %8128 = vpow2.f32 %v4851_v30  ;;  %5020 = vadd.xlane.f32.xlu2 %v5019_v14 }
 0xa02   :  { %v4955_v37 = vpop.xlane.xlu0 %4954 }
 0xa03   :  { %v4931_v42 = vpop.xlane.xlu2 %4930  ;;  %v4652_v56 = vpop.xlane.xlu1 %4651  ;;  %8130 = vrcp.f32 %v4955_v37 }
 0xa04   :  { %8132 = vpow2.f32 %v4845_v60  ;;  %v4736_v15 = vsub.f32 %v11695_v6, %v4652_v56 }
 0xa05   :  { %v11937_v46 = vpop.eup %8126  ;;  %8134 = vrcp.f32 %v4931_v42 }
 0xa06   :  { %v11939_v10 = vpop.eup %8128  ;;  %v5055_v20 = vsel %vm1559_vm3, %v11937_v46, 0.0 }
 0xa07   :  { %5056 = vadd.xlane.f32.xlu1 %v5055_v20  ;;  %v5031_v45 = vsel %vm1559_vm3, %v11939_v10, 0.0 }
 0xa08   :  { %5032 = vadd.xlane.f32.xlu0 %v5031_v45 }
 0xa09   :  { %v8131_v58 = vpop.eup %8130 }
 0xa0a   :  { %v4943_v38 = vpop.xlane.xlu0 %4942  ;;  %v11945_v27 = vpop.eup %8132  ;;  %v5157_v16 = vmul.f32 %v8131_v58, %v11688_v22  ;;  %v4853_v22 = vmul.f32 1.442695, %v4736_v15 }
 0xa0b   :  { %8136 = vrcp.f32 %v4943_v38  ;;  %v4664_v51 = vpop.xlane.xlu2 %4663  ;;  %v4946_v63 = vpop.xlane.xlu1 %4945  ;;  %v5022_v24 = vsel %vm1559_vm3, %v11945_v27, 0.0 }
 0xa0c   :  { %v8135_v5 = vpop.eup %8134  ;;  %v4740_v0 = vsub.f32 %v11709_v12, %v4664_v51  ;;  %7606 = vmatmul.msk.f32.gmra.mxu2 %vm1559_vm3, %v5157_v16 }
 0xa0d   :  { %v5149_v18 = vmul.f32 %v8135_v5, %v11690_v59 }
 0xa0e   :  { %v4861_v39 = vmul.f32 1.442695, %v4740_v0 }
 0xa0f   :  { %7598 = vmatmul.msk.f32.gmra.mxu0 %vm1559_vm3, %v5149_v18  ;;  %5023 = vadd.xlane.f32.xlu1 %v5022_v24 }
 0xa10   :  { %8138 = vpow2.f32 %v4861_v39 }
 0xa11   :  { %v8137_v17 = vpop.eup %8136  ;;  %8140 = vrcp.f32 %v4946_v63 }
 0xa12   :  { %v4676_v34 = vpop.xlane.xlu0 %4675  ;;  %v5153_v12 = vmul.f32 %v8137_v17, %v11706_v11 }
 0xa13   :  { %v4744_v30 = vsub.f32 %v11725_v29, %v4676_v34  ;;  %v4958_v14 = vpop.xlane.xlu2 %4957  ;;  %v5009_v59 = vpop.xlane.xlu1 %5008 }
 0xa14   :  { %8142 = vrcp.f32 %v4958_v14  ;;  %7602 = vmatmul.msk.f32.gmra.mxu1 %vm1559_vm3, %v5153_v12 }
 0xa15   :  { %v4869_v6 = vmul.f32 1.442695, %v4744_v30  ;;  %8144 = vpow2.f32 %v4853_v22 }
 0xa16   :  { %v11958_v60 = vpop.eup %8138 }
 0xa17   :  { %v8141_v37 = vpop.eup %8140  ;;  %8146 = vpow2.f32 %v4869_v6  ;;  %v5046_v42 = vsel %vm1559_vm3, %v11958_v60, 0.0 }
 0xa18   :  { %5047 = vadd.xlane.f32.xlu2 %v5046_v42  ;;  %v5154_v11 = vmul.f32 %v8141_v37, %v11711_v52 }
 0xa1a   :  { %v8143_v56 = vpop.eup %8142  ;;  %v4934_v20 = vpop.xlane.xlu0 %4933 }
 0xa1b   :  { %8148 = vrcp.f32 %v4934_v20  ;;  %v4970_v29 = vpop.xlane.xlu2 %4969  ;;  %v4643_v45 = vpop.xlane.xlu1 %4642  ;;  %v5158_v58 = vmul.f32 %v8143_v56, %v11729_v19 }
 0xa1c   :  { %v11964_v38 = vpop.eup %8144  ;;  %8150 = vrcp.f32 %v4970_v29  ;;  %v4733_v51 = vsub.f32 %v11747_v33, %v4643_v45  ;;  %7603 = vmatmul.msk.f32.gmra.mxu1 %vm1559_vm3, %v5154_v11 }
 0xa1d   :  { %v11968_v63 = vpop.eup %8146  ;;  %7607 = vmatmul.msk.f32.gmra.mxu2 %vm1559_vm3, %v5158_v58  ;;  %v5034_v5 = vsel %vm1559_vm3, %v11964_v38, 0.0 }
 0xa1e   :  { %v4847_v16 = vmul.f32 1.442695, %v4733_v51  ;;  %v5058_v52 = vsel %vm1559_vm3, %v11968_v63, 0.0 }
 0xa1f   :  { %5059 = vadd.xlane.f32.xlu0 %v5058_v52 }
 0xa20   :  { %8152 = vpow2.f32 %v4847_v16  ;;  %5035 = vadd.xlane.f32.xlu2 %v5034_v5 }
 0xa21   :  { %v8149_v19 = vpop.eup %8148  ;;  %8154 = vrcp.f32 %v5009_v59 }
 0xa22   :  { %v8151_v0 = vpop.eup %8150  ;;  %v4997_v33 = vpop.xlane.xlu0 %4996  ;;  %v5150_v18 = vmul.f32 %v8149_v19, %v11742_v26 }
 0xa23   :  { %8156 = vrcp.f32 %v4997_v33  ;;  %v4973_v15 = vpop.xlane.xlu2 %4972  ;;  %v4655_v39 = vpop.xlane.xlu1 %4654  ;;  %v5162_v24 = vmul.f32 %v8151_v0, %v11749_v47 }
 0xa24   :  { %8158 = vrcp.f32 %v4973_v15  ;;  %7599 = vmatmul.msk.f32.gmra.mxu0 %vm1559_vm3, %v5150_v18  ;;  %v4737_v56 = vsub.f32 %v11769_v36, %v4655_v39 }
 0xa25   :  { %7611 = vmatmul.msk.f32.gmra.mxu3 %vm1559_vm3, %v5162_v24 }
 0xa26   :  { %v11979_v17 = vpop.eup %8152 }
 0xa27   :  { %v5025_v22 = vsel %vm1559_vm3, %v11979_v17, 0.0  ;;  %v8155_v34 = vpop.eup %8154 }
 0xa28   :  { %5026 = vadd.xlane.f32.xlu0 %v5025_v22  ;;  %v5175_v59 = vmul.f32 %v8155_v34, %v11727_v53  ;;  %v4855_v53 = vmul.f32 1.442695, %v4737_v56 }
 0xa29   :  { %v8157_v12 = vpop.eup %8156 }
 0xa2a   :  { %v8159_v30 = vpop.eup %8158  ;;  %v5171_v26 = vmul.f32 %v8157_v12, %v11766_v4  ;;  %v4985_v14 = vpop.xlane.xlu0 %4984 }
 0xa2b   :  { %v5163_v47 = vmul.f32 %v8159_v30, %v11764_v50  ;;  %8160 = vrcp.f32 %v4985_v14  ;;  %v4667_v6 = vpop.xlane.xlu2 %4666  ;;  %v4988_v42 = vpop.xlane.xlu1 %4987 }
 0xa2c   :  { %v4741_v37 = vsub.f32 %v11787_v32, %v4667_v6  ;;  %7620 = vmatmul.msk.f32.vlgmr.msrb.gmra.mxu2 %vm1559_vm3, %v5171_v26 }
 0xa2d   :  { %7612 = vmatmul.msk.f32.vlgmr.msra.gmra.mxu0 %vm1559_vm3, %v5163_v47  ;;  %7624 = vmatmul.msk.f32.vlgmr.msra.gmra.mxu3 %vm1559_vm3, %v5175_v59 }
 0xa2e   :  { %v4863_v20 = vmul.f32 1.442695, %v4741_v37 }
 0xa30   :  { %8162 = vpow2.f32 %v4863_v20 }
 0xa31   :  { %v8161_v4 = vpop.eup %8160  ;;  %8164 = vrcp.f32 %v4988_v42 }
 0xa32   :  { %v5167_v50 = vmul.f32 %v8161_v4, %v11784_v28  ;;  %v4679_v11 = vpop.xlane.xlu0 %4678 }
 0xa33   :  { %v4745_v29 = vsub.f32 %v11809_v3, %v4679_v11  ;;  %v5000_v32 = vpop.xlane.xlu2 %4999  ;;  %v5015_v45 = vpop.xlane.xlu1 %5014 }
 0xa34   :  { %8166 = vrcp.f32 %v5000_v32  ;;  %7616 = vmatmul.msk.f32.vlgmr.msra.gmra.mxu1 %vm1559_vm3, %v5167_v50 }
 0xa35   :  { %v4871_v58 = vmul.f32 1.442695, %v4745_v29  ;;  %8168 = vpow2.f32 %v4855_v53 }
 0xa36   :  { %v11994_v51 = vpop.eup %8162 }
 0xa37   :  { %v8165_v36 = vpop.eup %8164  ;;  %8170 = vpow2.f32 %v4871_v58  ;;  %v5049_v16 = vsel %vm1559_vm3, %v11994_v51, 0.0 }
 0xa38   :  { %5050 = vadd.xlane.f32.xlu1 %v5049_v16  ;;  %v5168_v5 = vmul.f32 %v8165_v36, %v11789_v49 }
 0xa3a   :  { %v8167_v52 = vpop.eup %8166  ;;  %v4976_v28 = vpop.xlane.xlu0 %4975 }
 0xa3b   :  { %8172 = vrcp.f32 %v4976_v28  ;;  %v5012_v3 = vpop.xlane.xlu2 %5011  ;;  %v5172_v19 = vmul.f32 %v8167_v52, %v11811_v55  ;;  %v12000_v0 = vpop.eup %8168 }
 0xa3c   :  { %8174 = vrcp.f32 %v5012_v3  ;;  %v4646_v33 = vpop.xlane.xlu1 %4645  ;;  %7617 = vmatmul.msk.f32.gmra.mxu1 %vm1559_vm3, %v5168_v5  ;;  %v5037_v55 = vsel %vm1559_vm3, %v12000_v0, 0.0 }
 0xa3d   :  { %v12003_v18 = vpop.eup %8170  ;;  %v4734_v15 = vsub.f32 %v11841_v13, %v4646_v33  ;;  %7621 = vmatmul.msk.f32.gmra.mxu2 %vm1559_vm3, %v5172_v19 }
 0xa3e   :  { %v5061_v39 = vsel %vm1559_vm3, %v12003_v18, 0.0 }
 0xa3f   :  { %v4849_v49 = vmul.f32 1.442695, %v4734_v15  ;;  %5062 = vadd.xlane.f32.xlu2 %v5061_v39 }
 0xa40   :  { %5038 = vadd.xlane.f32.xlu1 %v5037_v55 }
 0xa41   :  { %v8173_v24 = vpop.eup %8172  ;;  %8176 = vpow2.f32 %v4849_v49 }
 0xa42   :  { %v8175_v22 = vpop.eup %8174  ;;  %8178 = vrcp.f32 %v5015_v45  ;;  %v5003_v34 = vpop.xlane.xlu0 %5002  ;;  %v5164_v12 = vmul.f32 %v8173_v24, %v11830_v40 }
 0xa43   :  { %8180 = vrcp.f32 %v5003_v34  ;;  %v4979_v13 = vpop.xlane.xlu2 %4978  ;;  %v5176_v30 = vmul.f32 %v8175_v22, %v11833_v41 }
 0xa44   :  { %8182 = vrcp.f32 %v4979_v13  ;;  %v4658_v26 = vpop.xlane.xlu1 %4657  ;;  %7613 = vmatmul.msk.f32.gmra.mxu0 %vm1559_vm3, %v5164_v12  ;;  %v5537_v13 = vpop.f32.mrf.mxu2 }
 0xa45   :  { %7625 = vmatmul.msk.f32.gmra.mxu3 %vm1559_vm3, %v5176_v30  ;;  %v4738_v53 = vsub.f32 %v11861_v21, %v4658_v26  ;;  %v5578_v26 = vpop.f32.mrf.mxu3 }
 0xa47   :  { %v12015_v14 = vpop.eup %8176  ;;  %v4857_v29 = vmul.f32 1.442695, %v4738_v53 }
 0xa48   :  { %v8179_v59 = vpop.eup %8178  ;;  %v5028_v47 = vsel %vm1559_vm3, %v12015_v14, 0.0 }
 0xa49   :  { %v8181_v6 = vpop.eup %8180  ;;  %5029 = vadd.xlane.f32.xlu2 %v5028_v47  ;;  %v5177_v20 = vmul.f32 %v8179_v59, %v11817_v62 }
 0xa4a   :  { %v8183_v37 = vpop.eup %8182  ;;  %v4991_v40 = vpop.xlane.xlu0 %4990  ;;  %v5173_v42 = vmul.f32 %v8181_v6, %v11856_v9 }
 0xa4b   :  { %8184 = vrcp.f32 %v4991_v40  ;;  %v4670_v41 = vpop.xlane.xlu2 %4669  ;;  %v5165_v56 = vmul.f32 %v8183_v37, %v11858_v1 }
 0xa4c   :  { %v4742_v4 = vsub.f32 %v11877_v43, %v4670_v41  ;;  %7622 = vmatmul.msk.f32.gmra.mxu2 %vm1559_vm3, %v5173_v42  ;;  %v4994_v11 = vpop.xlane.xlu1 %4993 }
 0xa4d   :  { %7614 = vmatmul.msk.f32.gmra.mxu0 %vm1559_vm3, %v5165_v56  ;;  %7626 = vmatmul.msk.f32.gmra.mxu3 %vm1559_vm3, %v5177_v20 }
 0xa4e   :  { %v4865_v50 = vmul.f32 1.442695, %v4742_v4 }
 0xa50   :  { %8186 = vpow2.f32 %v4865_v50 }
 0xa51   :  { %v8185_v9 = vpop.eup %8184  ;;  %8188 = vrcp.f32 %v4994_v11 }
 0xa52   :  { %v4682_v32 = vpop.xlane.xlu0 %4681  ;;  %v5169_v1 = vmul.f32 %v8185_v9, %v11874_v23 }
 0xa53   :  { %v4746_v62 = vsub.f32 %v11894_v2, %v4682_v32  ;;  %v5006_v43 = vpop.xlane.xlu2 %5005 }
 0xa54   :  { %8190 = vrcp.f32 %v5006_v43  ;;  %7618 = vmatmul.msk.f32.gmra.mxu1 %vm1559_vm3, %v5169_v1 }
 0xa55   :  { %v4873_v45 = vmul.f32 1.442695, %v4746_v62  ;;  %8192 = vpow2.f32 %v4857_v29 }
 0xa56   :  { %v12030_v58 = vpop.eup %8186 }
 0xa57   :  { %v8189_v21 = vpop.eup %8188  ;;  %8194 = vpow2.f32 %v4873_v45  ;;  %v5052_v36 = vsel %vm1559_vm3, %v12030_v58, 0.0 }
 0xa58   :  { %5053 = vadd.xlane.f32.xlu0 %v5052_v36  ;;  %v5170_v23 = vmul.f32 %v8189_v21, %v11879_v44 }
 0xa5a   :  { %v8191_v16 = vpop.eup %8190  ;;  %v4982_v52 = vpop.xlane.xlu0 %4981 }
 0xa5b   :  { %8196 = vrcp.f32 %v4982_v52  ;;  %v5018_v2 = vpop.xlane.xlu2 %5017  ;;  %v5174_v28 = vmul.f32 %v8191_v16, %v11896_v48  ;;  %v12036_v5 = vpop.eup %8192 }
 0xa5c   :  { %8198 = vrcp.f32 %v5018_v2  ;;  %7619 = vmatmul.msk.f32.gmra.mxu1 %vm1559_vm3, %v5170_v23  ;;  %v5040_v44 = vsel %vm1559_vm3, %v12036_v5, 0.0 }
 0xa5d   :  { %v12039_v3 = vpop.eup %8194  ;;  %7623 = vmatmul.msk.f32.gmra.mxu2 %vm1559_vm3, %v5174_v28 }
 0xa5e   :  { %v5064_v19 = vsel %vm1559_vm3, %v12039_v3, 0.0 }
 0xa5f   :  { %v5455_v33 = vpop.f32.mrf.mxu0  ;;  %5065 = vadd.xlane.f32.xlu1 %v5064_v19 }
 0xa60   :  { %v5940_v15 = vadd.f32 %v11851_v61, %v5455_v33  ;;  %5041 = vadd.xlane.f32.xlu0 %v5040_v44 }
 0xa61   :  { %v8197_v48 = vpop.eup %8196 }
 0xa62   :  { %v8199_v39 = vpop.eup %8198  ;;  %v5045_v49 = vpop.xlane.xlu0 %5044  ;;  %v5166_v55 = vmul.f32 %v8197_v48, %v11907_v57 }
 0xa63   :  { %8200 = vrcp.f32 %v5045_v49  ;;  %v5178_v24 = vmul.f32 %v8199_v39, %v11909_v7 }
 0xa64   :  { %7615 = vmatmul.msk.f32.gmra.mxu0 %vm1559_vm3, %v5166_v55 }
 0xa65   :  { %7627 = vmatmul.msk.f32.gmra.mxu3 %vm1559_vm3, %v5178_v24 }
 0xa67   :  { %v5496_v22 = vpop.f32.mrf.mxu1 }
 0xa68   :  { %v5948_v34 = vadd.f32 %v5940_v15, %v5496_v22 }
 0xa69   :  { %v8201_v12 = vpop.eup %8200 }
 0xa6a   :  { %v5187_v30 = vmul.f32 %v8201_v12, %v11920_v54  ;;  %v5956_v61 = vadd.f32 %v5948_v34, %v5537_v13 }
 0xa6c   :  { %v12052_v59 = vadd.f32 %v5956_v61, %v5578_v26  ;;  %7636 = vmatmul.msk.f32.vlgmr.msra.gmra.mxu2 %vm1559_vm3, %v5187_v30 }
 0xa73   :  { %v5021_v57 = vpop.xlane.xlu2 %5020  ;;  %v5581_v43 = vpop.f32.mrf.mxu3 }
 0xa74   :  { %8202 = vrcp.f32 %v5021_v57 }
 0xa7a   :  { %v5057_v47 = vpop.xlane.xlu1 %5056  ;;  %v8203_v7 = vpop.eup %8202 }
 0xa7b   :  { %8204 = vrcp.f32 %v5057_v47  ;;  %v5033_v6 = vpop.xlane.xlu0 %5032  ;;  %v5179_v37 = vmul.f32 %v8203_v7, %v11933_v35 }
 0xa7c   :  { %8206 = vrcp.f32 %v5033_v6 }
 0xa7d   :  { %7628 = vmatmul.msk.f32.vlgmr.msrb.gmra.mxu0 %vm1559_vm3, %v5179_v37 }
 0xa81   :  { %v8205_v40 = vpop.eup %8204 }
 0xa82   :  { %v8207_v42 = vpop.eup %8206  ;;  %v5191_v54 = vmul.f32 %v8205_v40, %v11937_v46  ;;  %v5024_v41 = vpop.xlane.xlu1 %5023 }
 0xa83   :  { %v5183_v56 = vmul.f32 %v8207_v42, %v11939_v10  ;;  %8208 = vrcp.f32 %v5024_v41 }
 0xa84   :  { %7640 = vmatmul.msk.f32.vlgmr.msrb.gmra.mxu3 %vm1559_vm3, %v5191_v54 }
 0xa85   :  { %7632 = vmatmul.msk.f32.vlgmr.msrb.gmra.mxu1 %vm1559_vm3, %v5183_v56 }
 0xa89   :  { %v8209_v20 = vpop.eup %8208 }
 0xa8a   :  { %v5180_v4 = vmul.f32 %v8209_v20, %v11945_v27 }
 0xa8b   :  { %v5048_v53 = vpop.xlane.xlu2 %5047 }
 0xa8c   :  { %v5458_v35 = vpop.f32.mrf.mxu0  ;;  %8210 = vrcp.f32 %v5048_v53  ;;  %7629 = vmatmul.msk.f32.gmra.mxu0 %vm1559_vm3, %v5180_v4 }
 0xa8d   :  { %v5941_v50 = vadd.f32 %v11883_v31, %v5458_v35 }
 0xa8f   :  { %v5540_v10 = vpop.f32.mrf.mxu2 }
 0xa91   :  { %v5499_v11 = vpop.f32.mrf.mxu1 }
 0xa92   :  { %v8211_v46 = vpop.eup %8210  ;;  %v5949_v9 = vadd.f32 %v5941_v50, %v5499_v11  ;;  %v5060_v29 = vpop.xlane.xlu0 %5059 }
 0xa93   :  { %8212 = vrcp.f32 %v5060_v29  ;;  %v5036_v32 = vpop.xlane.xlu2 %5035  ;;  %v5188_v1 = vmul.f32 %v8211_v46, %v11958_v60 }
 0xa94   :  { %v5957_v62 = vadd.f32 %v5949_v9, %v5540_v10  ;;  %8214 = vrcp.f32 %v5036_v32 }
 0xa95   :  { %7637 = vmatmul.msk.f32.gmra.mxu2 %vm1559_vm3, %v5188_v1 }
 0xa96   :  { %v12066_v27 = vadd.f32 %v5957_v62, %v5581_v43  ;;  %v12108_v43 = vld [vmem:[%s12357_s11] ss:$0 sm:$0xff] }
 0xa99   :  { %v8213_v45 = vpop.eup %8212  ;;  %v5502_v2 = vpop.f32.mrf.mxu1 }
 0xa9a   :  { %v8215_v21 = vpop.eup %8214  ;;  %v5192_v31 = vmul.f32 %v8213_v45, %v11968_v63  ;;  %v6058_v45 = vld [vmem:[#allocation2 + $0xa0] sm:$0xff] }
 0xa9b   :  { %v5027_v36 = vpop.xlane.xlu0 %5026  ;;  %v5184_v16 = vmul.f32 %v8215_v21, %v11964_v38 }
 0xa9c   :  { %8216 = vrcp.f32 %v5027_v36  ;;  %7641 = vmatmul.msk.f32.gmra.mxu3 %vm1559_vm3, %v5192_v31  ;;  %v6032_v31 = vld [vmem:[#allocation2 + $0x50] sm:$0xff] }
 0xa9d   :  { %7633 = vmatmul.msk.f32.gmra.mxu1 %vm1559_vm3, %v5184_v16  ;;  %v6056_v16 = vld [vmem:[#allocation2 + $0x90] sm:$0xff] }
 0xa9e   :  { %6123 = vmatpush.msra.mxu1 %v6032_v31 }
 0xaa0   :  { %v5543_v33 = vpop.f32.mrf.mxu2 }
 0xaa1   :  { %v5461_v60 = vpop.f32.mrf.mxu0 }
 0xaa2   :  { %v8217_v52 = vpop.eup %8216  ;;  %v5942_v23 = vadd.f32 %v11898_v8, %v5461_v60  ;;  %v6033_v60 = vld [vmem:[#allocation2 + $0x58] sm:$0xff] }
 0xaa3   :  { %v5181_v28 = vmul.f32 %v8217_v52, %v11979_v17  ;;  %v6030_v52 = vld [vmem:[#allocation2 + $0x40] sm:$0xff]  ;;  %6143 = vmatpush.msrb.mxu2 %v6033_v60 }
 0xaa4   :  { %v5950_v19 = vadd.f32 %v5942_v23, %v5502_v2  ;;  %v6031_v23 = vld [vmem:[#allocation2 + $0x48] sm:$0xff]  ;;  %v6179_v2 = vld [vmem:[#allocation2 + $0x110] sm:$0xff]  ;;  %6124 = vmatpush.msra.mxu1 %v6030_v52 }
 0xaa5   :  { %7630 = vmatmul.msk.f32.gmra.mxu0 %vm1559_vm3, %v5181_v28  ;;  %v6054_v28 = vld [vmem:[#allocation2 + $0x80] sm:$0xff]  ;;  %6196 = vmatpush.msra.mxu3 %v6179_v2 }
 0xaa6   :  { %v5958_v63 = vadd.f32 %v5950_v19, %v5543_v33  ;;  %v6028_v19 = vld [vmem:[#allocation2 + $0x30] sm:$0xff]  ;;  %6144 = vmatpush.msrb.mxu2 %v6031_v23 }
 0xaa7   :  { %6125 = vmatpush.msra.mxu1 %v6028_v19 }
 0xaa8   :  { %v5584_v44 = vpop.f32.mrf.mxu3 }
 0xaa9   :  { %v12075_v15 = vadd.f32 %v5958_v63, %v5584_v44  ;;  %v6177_v63 = vld [vmem:[#allocation2 + $0x100] sm:$0xff] }
 0xaaa   :  { %v5616_v12 = vpop.f32.mrf.mxu0  ;;  %v6026_v44 = vld [vmem:[#allocation2 + $0x20] sm:$0xff]  ;;  %6197 = vmatpush.msra.mxu3 %v6177_v63 }
 0xaab   :  { %v5051_v38 = vpop.xlane.xlu1 %5050  ;;  %6126 = vmatpush.msra.mxu1 %v6026_v44 }
 0xaac   :  { %8218 = vrcp.f32 %v5051_v38 }
 0xaaf   :  { %v5698_v30 = vpop.f32.mrf.mxu2 }
 0xab1   :  { %v5657_v13 = vpop.f32.mrf.mxu1 }
 0xab2   :  { %v8219_v48 = vpop.eup %8218  ;;  %v5063_v39 = vpop.xlane.xlu2 %5062  ;;  %v5919_v21 = vadd.f32 %v5657_v13, %v5616_v12 }
 0xab3   :  { %v5039_v49 = vpop.xlane.xlu1 %5038  ;;  %8220 = vrcp.f32 %v5063_v39  ;;  %v5189_v55 = vmul.f32 %v8219_v48, %v11994_v51  ;;  %v12083_v51 = vpop.f32.mrf.mxu3  ;;  %v6052_v48 = vld [vmem:[#allocation2 + $0x70] sm:$0xff]  ;;  %v6027_v39 = vld [vmem:[#allocation2 + $0x28] sm:$0xff] }
 0xab4   :  { %8222 = vrcp.f32 %v5039_v49  ;;  %v5927_v33 = vadd.f32 %v5919_v21, %v5698_v30  ;;  %v6175_v49 = vld [vmem:[#allocation2 + $0xf0] sm:$0xff]  ;;  %v6061_v30 = vld [vmem:[#allocation2 + $0xb8] sm:$0xff] }
 0xab5   :  { %7638 = vmatmul.msk.f32.gmra.mxu2 %vm1559_vm3, %v5189_v55  ;;  %v6024_v55 = vld [vmem:[#allocation2 + $0x10] sm:$0xff]  ;;  %6198 = vmatpush.msra.mxu3 %v6175_v49 }
 0xab6   :  { %v5935_v13 = vadd.f32 %v5927_v33, %v12083_v51  ;;  %6127 = vmatpush.msra.mxu1 %v6024_v55  ;;  %v6255_v51 = vld [vmem:[#allocation2 + $0x178] sm:$0xff] }
 0xab9   :  { %v8221_v8 = vpop.eup %8220  ;;  %v12089_v57 = vpop.f32.mrf.mxu1 }
 0xaba   :  { %v5193_v17 = vmul.f32 %v8221_v8, %v12003_v18  ;;  %v8223_v24 = vpop.eup %8222  ;;  %v6173_v8 = vld [vmem:[#allocation2 + $0xe0] sm:$0xff] }
 0xabb   :  { %v5185_v34 = vmul.f32 %v8223_v24, %v12000_v0  ;;  %v6050_v24 = vld [vmem:[#allocation2 + $0x60] sm:$0xff]  ;;  %6199 = vmatpush.msra.mxu3 %v6173_v8 }
 0xabc   :  { %v5030_v22 = vpop.xlane.xlu2 %5029  ;;  %7642 = vmatmul.msk.f32.gmra.mxu3 %vm1559_vm3, %v5193_v17 }
 0xabd   :  { %8224 = vrcp.f32 %v5030_v22  ;;  %7634 = vmatmul.msk.f32.gmra.mxu1 %vm1559_vm3, %v5185_v34  ;;  %v6025_v22 = vld [vmem:[#allocation2 + $0x18] sm:$0xff] }
 0xac0   :  { %v12091_v47 = vpop.f32.mrf.mxu2 }
 0xac1   :  { %v12087_v18 = vpop.f32.mrf.mxu0 }
 0xac3   :  { %v8225_v61 = vpop.eup %8224 }
 0xac4   :  { %v5182_v26 = vmul.f32 %v8225_v61, %v12015_v14  ;;  %v6022_v61 = vld [vmem:[#allocation2] sm:$0xff] }
 0xac5   :  { %6128 = vmatpush.msra.mxu1 %v6022_v61 }
 0xac6   :  { %7631 = vmatmul.msk.f32.gmra.mxu0 %vm1559_vm3, %v5182_v26  ;;  %v6023_v26 = vld [vmem:[#allocation2 + $0x8] sm:$0xff] }
 0xac8   :  { %v12093_v7 = vpop.f32.mrf.mxu3 }
 0xaca   :  { %v5622_v6 = vpop.f32.mrf.mxu0 }
 0xacb   :  { %v5054_v0 = vpop.xlane.xlu0 %5053 }
 0xacc   :  { %8226 = vrcp.f32 %v5054_v0  ;;  %v6171_v0 = vld [vmem:[#allocation2 + $0xd0] sm:$0xff] }
 0xacd   :  { %6200 = vmatpush.msra.mxu3 %v6171_v0  ;;  %v6245_v0 = vld [vmem:[#allocation2 + $0x128] sm:$0xff] }
 0xacf   :  { %v5704_v41 = vpop.f32.mrf.mxu2 }
 0xad0   :  { %v5745_v4 = vpop.f32.mrf.mxu3 }
 0xad1   :  { %v5663_v37 = vpop.f32.mrf.mxu1 }
 0xad2   :  { %v8227_v40 = vpop.eup %8226  ;;  %v5921_v42 = vadd.f32 %v5663_v37, %v5622_v6  ;;  %v5066_v54 = vpop.xlane.xlu1 %5065  ;;  %v6059_v37 = vld [vmem:[#allocation2 + $0xa8] sm:$0xff] }
 0xad3   :  { %8228 = vrcp.f32 %v5066_v54  ;;  %v5042_v14 = vpop.xlane.xlu0 %5041  ;;  %v5190_v56 = vmul.f32 %v8227_v40, %v12030_v58  ;;  %v6254_v40 = vld [vmem:[#allocation2 + $0x170] sm:$0xff] }
 0xad4   :  { %v5929_v20 = vadd.f32 %v5921_v42, %v5704_v41  ;;  %8230 = vrcp.f32 %v5042_v14  ;;  %6271 = vmatpush.msrb.mxu1 %v6254_v40 }
 0xad5   :  { %7639 = vmatmul.msk.f32.gmra.mxu2 %vm1559_vm3, %v5190_v56  ;;  %v6169_v56 = vld [vmem:[#allocation2 + $0xc0] sm:$0xff] }
 0xad6   :  { %v12097_v53 = vadd.f32 %v5929_v20, %v5745_v4  ;;  %v6057_v4 = vld [vmem:[#allocation2 + $0x98] sm:$0xff]  ;;  %6201 = vmatpush.msra.mxu3 %v6169_v56  ;;  %v6326_v56 = vld [vmem:[#allocation2 + $0x1c0] sm:$0xff] }
 0xad9   :  { %v8229_v35 = vpop.eup %8228  ;;  %v5666_v9 = vpop.f32.mrf.mxu1 }
 0xada   :  { %v8231_v50 = vpop.eup %8230  ;;  %v5194_v11 = vmul.f32 %v8229_v35, %v12039_v3  ;;  %v6060_v3 = vld [vmem:[#allocation2 + $0xb0] sm:$0xff]  ;;  %v6252_v35 = vld [vmem:[#allocation2 + $0x160] sm:$0xff] }
 0xadb   :  { %v5186_v46 = vmul.f32 %v8231_v50, %v12036_v5  ;;  %v5975_v5 = vadd.f32 %v12108_v43, %v11928_v25  ;;  %6078 = vmatpush.msra.mxu0 %v6060_v3  ;;  %v6029_v25 = vld [vmem:[#allocation2 + $0x38] sm:$0xff]  ;;  %6272 = vmatpush.msrb.mxu1 %v6252_v35 }
 0xadc   :  { %7643 = vmatmul.msk.f32.gmra.mxu3 %vm1559_vm3, %v5194_v11  ;;  %6145 = vmatpush.msrb.mxu2 %v6029_v25  ;;  %v6253_v11 = vld [vmem:[#allocation2 + $0x168] sm:$0xff] }
 0xadd   :  { %7635 = vmatmul.msk.f32.gmra.mxu1 %vm1559_vm3, %v5186_v46  ;;  %v5991_v36 = vmul.f32 0.01, %v5975_v5  ;;  %vm5983_vm3 = vcmp.ge.f32.partialorder %v5975_v5, 0.0  ;;  %6079 = vmatpush.msra.mxu0 %v6058_v45  ;;  %v6053_v45 = vld [vmem:[#allocation2 + $0x78] sm:$0xff] }
 0xade   :  { %6146 = vmatpush.msrb.mxu2 %v6027_v39 }
 0xadf   :  { %6080 = vmatpush.msra.mxu0 %v6056_v16  ;;  %v12112_v38 = vsel %vm5983_vm3, %v5975_v5, %v5991_v36  ;;  %v6051_v36 = vld [vmem:[#allocation2 + $0x68] sm:$0xff] }
 0xae0   :  { %v5707_v10 = vpop.f32.mrf.mxu2  ;;  %v6008_v34 = vsel %vm6007_vm13, %v12112_v38, -inf  ;;  %v6035_v12 = vsel %vm6034_vm14, %v12112_v38, -inf  ;;  %6147 = vmatpush.msrb.mxu2 %v6025_v22  ;;  %v6154_v41 = vsel %vm6153_vm15, %v12112_v38, -inf  ;;  %v6229_v5 = vsel %vm6228_vm0, %v12112_v38, -inf  ;;  %v6248_v38 = vld [vmem:[#allocation2 + $0x140] sm:$0xff] }
 0xae1   :  { %v5625_v29 = vpop.f32.mrf.mxu0  ;;  %6081 = vmatpush.msra.mxu0 %v6054_v28  ;;  %v6009_v42 = vrot.slane %v6008_v34, 4  ;;  %v6036_v54 = vrot.slane %v6035_v12, 4  ;;  %v6155_v46 = vrot.slane %v6154_v41, 4  ;;  %v6230_v16 = vrot.slane %v6229_v5, 4 }
 0xae2   :  { %v5922_v58 = vadd.f32 %v5666_v9, %v5625_v29  ;;  %6148 = vmatpush.msrb.mxu2 %v6023_v26  ;;  %v6055_v29 = vld [vmem:[#allocation2 + $0x88] sm:$0xff]  ;;  %v5976_v28 = vadd.f32 %v12108_v43, %v12052_v59  ;;  %v6244_v26 = vld [vmem:[#allocation2 + $0x120] sm:$0xff] }
 0xae3   :  { %6082 = vmatpush.msra.mxu0 %v6052_v48  ;;  %v6156_v31 = vmax.f32 %v6154_v41, %v6155_v46  ;;  %v6231_v25 = vmax.f32 %v6229_v5, %v6230_v16  ;;  %v6249_v48 = vld [vmem:[#allocation2 + $0x148] sm:$0xff] }
 0xae4   :  { %v5930_v32 = vadd.f32 %v5922_v58, %v5707_v10  ;;  %6291 = vmatpush.msra.mxu2 %v6255_v51  ;;  %v6250_v58 = vld [vmem:[#allocation2 + $0x150] sm:$0xff]  ;;  %v6010_v10 = vmax.f32 %v6008_v34, %v6009_v42  ;;  %vm5984_vm4 = vcmp.ge.f32.partialorder %v5976_v28, 0.0 }
 0xae5   :  { %6083 = vmatpush.msra.mxu0 %v6050_v24  ;;  %6273 = vmatpush.msrb.mxu1 %v6250_v58  ;;  %v6157_v19 = vrot.slane %v6156_v31, 2  ;;  %v6232_v51 = vrot.slane %v6231_v25, 2 }
 0xae6   :  { %6292 = vmatpush.msra.mxu2 %v6253_v11  ;;  %v6011_v23 = vrot.slane %v6010_v10, 2  ;;  %v6324_v11 = vld [vmem:[#allocation2 + $0x1b0] sm:$0xff] }
 0xae7   :  { %6098 = vmatpush.msrb.mxu0 %v6061_v30  ;;  %6274 = vmatpush.msrb.mxu1 %v6248_v38  ;;  %v5920_v30 = vadd.f32 %v12089_v57, %v12087_v18  ;;  %v6158_v61 = vmax.f32 %v6156_v31, %v6157_v19 }
 0xae8   :  { %v5748_v1 = vpop.f32.mrf.mxu3  ;;  %v6012_v44 = vmax.f32 %v6010_v10, %v6011_v23  ;;  %v6320_v23 = vld [vmem:[#allocation2 + $0x190] sm:$0xff] }
 0xae9   :  { %v12103_v62 = vadd.f32 %v5930_v32, %v5748_v1  ;;  %6099 = vmatpush.msrb.mxu0 %v6059_v37  ;;  %v6037_v32 = vmax.f32 %v6035_v12, %v6036_v54  ;;  %v6251_v1 = vld [vmem:[#allocation2 + $0x158] sm:$0xff]  ;;  %v6328_v54 = vld [vmem:[#allocation2 + $0x1d0] sm:$0xff]  ;;  %v5928_v35 = vadd.f32 %v5920_v30, %v12091_v47 }
 0xaea   :  { %6293 = vmatpush.msra.mxu2 %v6251_v1  ;;  %v6247_v12 = vld [vmem:[#allocation2 + $0x138] sm:$0xff]  ;;  %6345 = vmatpush.msrb.mxu3 %v6328_v54 }
 0xaeb   :  { %6100 = vmatpush.msrb.mxu0 %v6057_v4  ;;  %v6038_v52 = vrot.slane %v6037_v32, 2 }
 0xaec   :  { %6294 = vmatpush.msra.mxu2 %v6249_v48  ;;  %6346 = vmatpush.msrb.mxu3 %v6326_v56 }
 0xaed   :  { %6101 = vmatpush.msrb.mxu0 %v6055_v29  ;;  %v6039_v63 = vmax.f32 %v6037_v32, %v6038_v52  ;;  %v5936_v32 = vadd.f32 %v5928_v35, %v12093_v7 }
 0xaee   :  { %6295 = vmatpush.msra.mxu2 %v6247_v12  ;;  %6347 = vmatpush.msrb.mxu3 %v6324_v11 }
 0xaef   :  { %v5862_v50 = vpop.f32.mrf.mxu2  ;;  %6102 = vmatpush.msrb.mxu0 %v6053_v45  ;;  %v6040_v41 = vrot.slane %v6039_v63, 1  ;;  %v6322_v45 = vld [vmem:[#allocation2 + $0x1a0] sm:$0xff] }
 0xaf0   :  { %6296 = vmatpush.msra.mxu2 %v6245_v0  ;;  %6348 = vmatpush.msrb.mxu3 %v6322_v45  ;;  %v6476_v0 = vld [vmem:[#allocation2 + $0x290] sm:$0xff] }
 0xaf1   :  { %6103 = vmatpush.msrb.mxu0 %v6051_v36  ;;  %v6041_v1 = vmax.f32 %v6039_v63, %v6040_v41  ;;  %v6394_v45 = vld [vmem:[#allocation2 + $0x1f0] sm:$0xff] }
 0xaf2   :  { %6349 = vmatpush.msrb.mxu3 %v6320_v23 }
 0xafa   :  { %v5780_v17 = vpop.f32.mrf.mxu0 }
 0xafb   :  { %v5943_v6 = vadd.f32 %v5935_v13, %v5780_v17  ;;  %v6246_v17 = vld [vmem:[#allocation2 + $0x130] sm:$0xff]  ;;  %v5992_v13 = vmul.f32 0.01, %v5976_v28 }
 0xafc   :  { %6275 = vmatpush.msrb.mxu1 %v6246_v17 }
 0xafd   :  { %v12133_v46 = vsel %vm5984_vm4, %v5976_v28, %v5992_v13  ;;  %v6400_v13 = vld [vmem:[#allocation2 + $0x220] sm:$0xff] }
 0xafe   :  { %6276 = vmatpush.msrb.mxu1 %v6244_v26  ;;  %v6303_v47 = vsel %vm6007_vm13, %v12133_v46, -inf  ;;  %v6451_v30 = vsel %vm6153_vm15, %v12133_v46, -inf  ;;  %v6401_v26 = vld [vmem:[#allocation2 + $0x228] sm:$0xff] }
 0xaff   :  { %v6452_v56 = vrot.slane %v6451_v30, 4 }
 0xb02   :  { %v5821_v14 = vpop.f32.mrf.mxu1 }
 0xb03   :  { %v5951_v20 = vadd.f32 %v5943_v6, %v5821_v14  ;;  %v6013_v14 = vrot.slane %v6012_v44, 1 }
 0xb05   :  { %v5959_v9 = vadd.f32 %v5951_v20, %v5862_v50  ;;  %v6159_v50 = vrot.slane %v6158_v61, 1  ;;  %v6014_v5 = vmax.f32 %v6012_v44, %v6013_v14  ;;  %v6399_v14 = vld [vmem:[#allocation2 + $0x218] sm:$0xff] }
 0xb07   :  { %v5903_v3 = vpop.f32.mrf.mxu3  ;;  %v6160_v52 = vmax.f32 %v6158_v61, %v6159_v50  ;;  %v6172_v50 = vld [vmem:[#allocation2 + $0xd8] sm:$0xff] }
 0xb08   :  { %v5967_v21 = vadd.f32 %v5959_v9, %v5903_v3  ;;  %v6233_v3 = vmax.f32 %v6231_v25, %v6232_v51  ;;  %v6474_v51 = vld [vmem:[#allocation2 + $0x280] sm:$0xff] }
 0xb09   :  { %v5783_v10 = vpop.f32.mrf.mxu0 }
 0xb0a   :  { %v5979_v60 = vadd.f32 %v12108_v43, %v5967_v21  ;;  %v6234_v12 = vrot.slane %v6233_v3, 1 }
 0xb0c   :  { %vm5987_vm2 = vcmp.ge.f32.partialorder %v5979_v60, 0.0  ;;  %v5995_v2 = vmul.f32 0.01, %v5979_v60 }
 0xb0e   :  { %v6003_v33 = vsel %vm5987_vm2, %v5979_v60, %v5995_v2  ;;  %v5944_v60 = vadd.f32 %v5936_v32, %v5783_v10  ;;  %v6377_v2 = vsel %vm6034_vm14, %v12133_v46, -inf  ;;  %v6472_v32 = vld [vmem:[#allocation2 + $0x270] sm:$0xff] }
 0xb0f   :  { %v6015_v39 = vsel %vm6007_vm13, %v6003_v33, -inf  ;;  %v6042_v49 = vsel %vm6034_vm14, %v6003_v33, -inf  ;;  %v6161_v55 = vsel %vm6153_vm15, %v6003_v33, -inf  ;;  %v6236_v8 = vsel %vm6228_vm0, %v6003_v33, -inf }
 0xb10   :  { %v6016_v24 = vrot.slane %v6015_v39, 4  ;;  %v6043_v59 = vrot.slane %v6042_v49, 4  ;;  %v6162_v22 = vrot.slane %v6161_v55, 4  ;;  %v6237_v34 = vrot.slane %v6236_v8, 4 }
 0xb11   :  { %v6378_v17 = vrot.slane %v6377_v2, 4 }
 0xb12   :  { %v6017_v6 = vmax.f32 %v6015_v39, %v6016_v24  ;;  %v6044_v37 = vmax.f32 %v6042_v49, %v6043_v59  ;;  %v6163_v40 = vmax.f32 %v6161_v55, %v6162_v22  ;;  %v6238_v42 = vmax.f32 %v6236_v8, %v6237_v34  ;;  %v6180_v39 = vld [vmem:[#allocation2 + $0x118] sm:$0xff]  ;;  %v6402_v55 = vld [vmem:[#allocation2 + $0x230] sm:$0xff]  ;;  %v6318_v22 = vld [vmem:[#allocation2 + $0x180] sm:$0xff] }
 0xb13   :  { %v6304_v8 = vrot.slane %v6303_v47, 4  ;;  %v6403_v59 = vld [vmem:[#allocation2 + $0x238] sm:$0xff]  ;;  %v6178_v34 = vld [vmem:[#allocation2 + $0x108] sm:$0xff]  ;;  %6350 = vmatpush.msrb.mxu3 %v6318_v22  ;;  %v6379_v41 = vmax.f32 %v6377_v2, %v6378_v17  ;;  %v6470_v17 = vld [vmem:[#allocation2 + $0x260] sm:$0xff] }
 0xb14   :  { %v6018_v20 = vrot.slane %v6017_v6, 2  ;;  %v6045_v4 = vrot.slane %v6044_v37, 2  ;;  %v6164_v18 = vrot.slane %v6163_v40, 2  ;;  %v6239_v57 = vrot.slane %v6238_v42, 2 }
 0xb15   :  { %v6305_v54 = vmax.f32 %v6303_v47, %v6304_v8  ;;  %v6380_v10 = vrot.slane %v6379_v41, 2  ;;  %v6329_v47 = vld [vmem:[#allocation2 + $0x1d8] sm:$0xff]  ;;  %v6393_v8 = vld [vmem:[#allocation2 + $0x1e8] sm:$0xff] }
 0xb16   :  { %v6019_v9 = vmax.f32 %v6017_v6, %v6018_v20  ;;  %v6046_v29 = vmax.f32 %v6044_v37, %v6045_v4  ;;  %v6165_v58 = vmax.f32 %v6163_v40, %v6164_v18  ;;  %v6240_v21 = vmax.f32 %v6238_v42, %v6239_v57  ;;  %v6176_v37 = vld [vmem:[#allocation2 + $0xf8] sm:$0xff]  ;;  %v6398_v42 = vld [vmem:[#allocation2 + $0x210] sm:$0xff]  ;;  %v6174_v18 = vld [vmem:[#allocation2 + $0xe8] sm:$0xff] }
 0xb17   :  { %v6525_v20 = vsel %vm6228_vm0, %v12133_v46, -inf  ;;  %v6235_v57 = vmax.f32 %v6233_v3, %v6234_v12  ;;  %v6397_v46 = vld [vmem:[#allocation2 + $0x208] sm:$0xff] }
 0xb18   :  { %v6047_v31 = vrot.slane %v6046_v29, 1  ;;  %v6020_v36 = vrot.slane %v6019_v9, 1  ;;  %v6166_v16 = vrot.slane %v6165_v58, 1  ;;  %v5865_v63 = vpop.f32.mrf.mxu2  ;;  %v6241_v49 = vrot.slane %v6240_v21, 1  ;;  %v6170_v3 = vld [vmem:[#allocation2 + $0xc8] sm:$0xff] }
 0xb1a   :  { %v5824_v7 = vpop.f32.mrf.mxu1  ;;  %v6048_v28 = vmax.f32 %v6046_v29, %v6047_v31  ;;  %v6021_v19 = vmax.f32 %v6019_v9, %v6020_v36  ;;  %v6167_v25 = vmax.f32 %v6165_v58, %v6166_v16  ;;  %v6242_v40 = vmax.f32 %v6240_v21, %v6241_v49  ;;  %v6396_v9 = vld [vmem:[#allocation2 + $0x200] sm:$0xff] }
 0xb1b   :  { %v5952_v33 = vadd.f32 %v5944_v60, %v5824_v7  ;;  %v6526_v29 = vrot.slane %v6525_v20, 4  ;;  %v6306_v58 = vrot.slane %v6305_v54, 2  ;;  %v6395_v7 = vld [vmem:[#allocation2 + $0x1f8] sm:$0xff] }
 0xb1c   :  { %v12141_v44 = vsel %vm6064_vm5, %v6048_v28, %v6041_v1  ;;  %v6110_v38 = vsel %vm6064_vm5, %v6021_v19, %v6014_v5  ;;  %v12145_v48 = vsel %vm6064_vm5, %v6167_v25, %v6160_v52  ;;  %v6258_v11 = vsel %vm6064_vm5, %v6242_v40, %v6235_v57  ;;  %v6392_v28 = vld [vmem:[#allocation2 + $0x1e0] sm:$0xff]  ;;  %v6327_v25 = vld [vmem:[#allocation2 + $0x1c8] sm:$0xff] }
 0xb1d   :  { %7644 = vmatmul.msk.f32.vlgmr.msra.gmra.mxu0 %vm254_vm1, %v12141_v44  ;;  %7646 = vmatmul.msk.f32.vlgmr.msra.gmra.mxu1 %vm254_vm1, %v6110_v38  ;;  %v5960_v24 = vadd.f32 %v5952_v33, %v5865_v63  ;;  %v6453_v1 = vmax.f32 %v6451_v30, %v6452_v56  ;;  %v6527_v19 = vmax.f32 %v6525_v20, %v6526_v29  ;;  %v6550_v33 = vld [vmem:[#allocation2 + $0x2f0] sm:$0xff] }
 0xb1e   :  { %7647 = vmatmul.msk.f32.vlgmr.msrb.gmra.mxu2 %vm254_vm1, %v6110_v38  ;;  %7648 = vmatmul.msk.f32.vlgmr.msra.gmra.mxu3 %vm254_vm1, %v12145_v48  ;;  %v6307_v63 = vmax.f32 %v6305_v54, %v6306_v58  ;;  %v5977_v20 = vadd.f32 %v12108_v43, %v12066_v27  ;;  %v6477_v58 = vld [vmem:[#allocation2 + $0x298] sm:$0xff] }
 0xb1f   :  { %6216 = vmatpush.msra.mxu0 %v6180_v39  ;;  %v5906_v61 = vpop.f32.mrf.mxu3  ;;  %6419 = vmatpush.msra.mxu1 %v6402_v55 }
 0xb20   :  { %v5968_v6 = vadd.f32 %v5960_v24, %v5906_v61  ;;  %6439 = vmatpush.msrb.mxu2 %v6403_v59  ;;  %6493 = vmatpush.msra.mxu3 %v6476_v0  ;;  %v6325_v24 = vld [vmem:[#allocation2 + $0x1b8] sm:$0xff]  ;;  %v6454_v59 = vrot.slane %v6453_v1, 2  ;;  %v6323_v61 = vld [vmem:[#allocation2 + $0x1a8] sm:$0xff]  ;;  %v6308_v0 = vrot.slane %v6307_v63, 1  ;;  %v5993_v27 = vmul.f32 0.01, %v5977_v20 }
 0xb21   :  { %6217 = vmatpush.msra.mxu0 %v6178_v34  ;;  %6420 = vmatpush.msra.mxu1 %v6400_v13  ;;  %v6551_v13 = vld [vmem:[#allocation2 + $0x2f8] sm:$0xff]  ;;  %vm5985_vm7 = vcmp.ge.f32.partialorder %v5977_v20, 0.0 }
 0xb22   :  { %v5980_v4 = vadd.f32 %v12108_v43, %v5968_v6  ;;  %6440 = vmatpush.msrb.mxu2 %v6401_v26  ;;  %6494 = vmatpush.msra.mxu3 %v6474_v51  ;;  %v6548_v26 = vld [vmem:[#allocation2 + $0x2e0] sm:$0xff]  ;;  %v6528_v6 = vrot.slane %v6527_v19, 2  ;;  %v6546_v51 = vld [vmem:[#allocation2 + $0x2d0] sm:$0xff]  ;;  %v6455_v56 = vmax.f32 %v6453_v1, %v6454_v59  ;;  %v6309_v29 = vmax.f32 %v6307_v63, %v6308_v0  ;;  %v6467_v0 = vld [vmem:[#allocation2 + $0x248] sm:$0xff] }
 0xb23   :  { %6218 = vmatpush.msra.mxu0 %v6176_v37  ;;  %6421 = vmatpush.msra.mxu1 %v6398_v42  ;;  %v6549_v42 = vld [vmem:[#allocation2 + $0x2e8] sm:$0xff]  ;;  %v6698_v63 = vld [vmem:[#allocation2 + $0x3b0] sm:$0xff] }
 0xb24   :  { %vm5988_vm6 = vcmp.ge.f32.partialorder %v5980_v4, 0.0  ;;  %v5996_v35 = vmul.f32 0.01, %v5980_v4  ;;  %6441 = vmatpush.msrb.mxu2 %v6399_v14  ;;  %6495 = vmatpush.msra.mxu3 %v6472_v32  ;;  %v6321_v14 = vld [vmem:[#allocation2 + $0x198] sm:$0xff] }
 0xb25   :  { %6219 = vmatpush.msra.mxu0 %v6174_v18  ;;  %7650 = vmatmul.msk.f32.vlgmr.msrb.gmra.mxu1 %vm254_vm1, %v6258_v11 }
 0xb26   :  { %v6004_v5 = vsel %vm5988_vm6, %v5980_v4, %v5996_v35  ;;  %7645 = vmatmul.msk.f32.vlgmr.msrb.gmra.mxu0 %vm254_vm1, %v12141_v44  ;;  %7651 = vmatmul.msk.f32.vlgmr.msra.gmra.mxu2 %vm254_vm1, %v6258_v11  ;;  %v6381_v44 = vmax.f32 %v6379_v41, %v6380_v10  ;;  %v6468_v41 = vld [vmem:[#allocation2 + $0x250] sm:$0xff]  ;;  %v6547_v35 = vld [vmem:[#allocation2 + $0x2d8] sm:$0xff] }
 0xb27   :  { %v6310_v21 = vsel %vm6007_vm13, %v6004_v5, -inf  ;;  %v6384_v31 = vsel %vm6034_vm14, %v6004_v5, -inf  ;;  %v6458_v36 = vsel %vm6153_vm15, %v6004_v5, -inf  ;;  %v6532_v16 = vsel %vm6228_vm0, %v6004_v5, -inf  ;;  %6220 = vmatpush.msra.mxu0 %v6172_v50  ;;  %6422 = vmatpush.msra.mxu1 %v6396_v9  ;;  %v6466_v50 = vld [vmem:[#allocation2 + $0x240] sm:$0xff]  ;;  %v6319_v9 = vld [vmem:[#allocation2 + $0x188] sm:$0xff] }
 0xb28   :  { %v6311_v60 = vrot.slane %v6310_v21, 4  ;;  %v6385_v52 = vrot.slane %v6384_v31, 4  ;;  %v6459_v23 = vrot.slane %v6458_v36, 4  ;;  %v6533_v2 = vrot.slane %v6532_v16, 4  ;;  %6442 = vmatpush.msrb.mxu2 %v6397_v46  ;;  %6496 = vmatpush.msra.mxu3 %v6470_v17  ;;  %v6544_v46 = vld [vmem:[#allocation2 + $0x2c0] sm:$0xff] }
 0xb29   :  { %6221 = vmatpush.msra.mxu0 %v6170_v3  ;;  %6423 = vmatpush.msra.mxu1 %v6394_v45  ;;  %v6382_v54 = vrot.slane %v6381_v44, 1  ;;  %v6545_v45 = vld [vmem:[#allocation2 + $0x2c8] sm:$0xff] }
 0xb2a   :  { %v6312_v38 = vmax.f32 %v6310_v21, %v6311_v60  ;;  %v6386_v39 = vmax.f32 %v6384_v31, %v6385_v52  ;;  %v6460_v49 = vmax.f32 %v6458_v36, %v6459_v23  ;;  %v6534_v55 = vmax.f32 %v6532_v16, %v6533_v2  ;;  %6443 = vmatpush.msrb.mxu2 %v6395_v7  ;;  %v6475_v31 = vld [vmem:[#allocation2 + $0x288] sm:$0xff]  ;;  %v6542_v36 = vld [vmem:[#allocation2 + $0x2b0] sm:$0xff]  ;;  %v6473_v2 = vld [vmem:[#allocation2 + $0x278] sm:$0xff] }
 0xb2b   :  { %6365 = vmatpush.msrb.mxu0 %v6329_v47  ;;  %6424 = vmatpush.msra.mxu1 %v6392_v28  ;;  %v6383_v32 = vmax.f32 %v6381_v44, %v6382_v54  ;;  %v6543_v47 = vld [vmem:[#allocation2 + $0x2b8] sm:$0xff]  ;;  %v6456_v60 = vrot.slane %v6455_v56, 1  ;;  %v6624_v23 = vld [vmem:[#allocation2 + $0x350] sm:$0xff]  ;;  %v6540_v7 = vld [vmem:[#allocation2 + $0x2a0] sm:$0xff]  ;;  %v6001_v28 = vsel %vm5985_vm7, %v5977_v20, %v5993_v27 }
 0xb2c   :  { %v6313_v22 = vrot.slane %v6312_v38, 2  ;;  %v6387_v34 = vrot.slane %v6386_v39, 2  ;;  %v6461_v12 = vrot.slane %v6460_v49, 2  ;;  %v6535_v30 = vrot.slane %v6534_v55, 2  ;;  %6444 = vmatpush.msrb.mxu2 %v6393_v8  ;;  %6497 = vmatpush.msra.mxu3 %v6468_v41  ;;  %v6471_v44 = vld [vmem:[#allocation2 + $0x268] sm:$0xff]  ;;  %v6696_v8 = vld [vmem:[#allocation2 + $0x3a0] sm:$0xff] }
 0xb2d   :  { %6366 = vmatpush.msrb.mxu0 %v6327_v25  ;;  %6567 = vmatpush.msrb.mxu1 %v6550_v33  ;;  %v6541_v25 = vld [vmem:[#allocation2 + $0x2a8] sm:$0xff]  ;;  %v6599_v17 = vsel %vm6007_vm13, %v6001_v28, -inf  ;;  %v6747_v59 = vsel %vm6153_vm15, %v6001_v28, -inf  ;;  %v6620_v41 = vld [vmem:[#allocation2 + $0x330] sm:$0xff] }
 0xb2e   :  { %v6314_v37 = vmax.f32 %v6312_v38, %v6313_v22  ;;  %v6388_v40 = vmax.f32 %v6386_v39, %v6387_v34  ;;  %7649 = vmatmul.msk.f32.vlgmr.msra.gmra.mxu0 %vm254_vm1, %v12145_v48  ;;  %6587 = vmatpush.msra.mxu2 %v6551_v13  ;;  %v6462_v4 = vmax.f32 %v6460_v49, %v6461_v12  ;;  %v6699_v39 = vld [vmem:[#allocation2 + $0x3b8] sm:$0xff]  ;;  %v6821_v12 = vsel %vm6228_vm0, %v6001_v28, -inf  ;;  %v6694_v20 = vld [vmem:[#allocation2 + $0x390] sm:$0xff] }
 0xb2f   :  { %6367 = vmatpush.msrb.mxu0 %v6325_v24  ;;  %6568 = vmatpush.msrb.mxu1 %v6548_v26  ;;  %v6536_v11 = vmax.f32 %v6534_v55, %v6535_v30  ;;  %v6529_v48 = vmax.f32 %v6527_v19, %v6528_v6  ;;  %v5786_v19 = vpop.f32.mrf.mxu0  ;;  %v6457_v49 = vmax.f32 %v6455_v56, %v6456_v60  ;;  %v6673_v24 = vsel %vm6034_vm14, %v6001_v28, -inf  ;;  %v6469_v34 = vld [vmem:[#allocation2 + $0x258] sm:$0xff]  ;;  %v6690_v27 = vld [vmem:[#allocation2 + $0x370] sm:$0xff] }
 0xb30   :  { %v6315_v18 = vrot.slane %v6314_v37, 1  ;;  %v6389_v57 = vrot.slane %v6388_v40, 1  ;;  %6588 = vmatpush.msra.mxu2 %v6549_v42  ;;  %6498 = vmatpush.msra.mxu3 %v6466_v50  ;;  %v6463_v21 = vrot.slane %v6462_v4, 1  ;;  %v5945_v22 = vadd.f32 %v12097_v53, %v5786_v19  ;;  %v6625_v56 = vld [vmem:[#allocation2 + $0x358] sm:$0xff]  ;;  %v6623_v50 = vld [vmem:[#allocation2 + $0x348] sm:$0xff] }
 0xb31   :  { %6368 = vmatpush.msrb.mxu0 %v6323_v61  ;;  %6569 = vmatpush.msrb.mxu1 %v6546_v51  ;;  %v6537_v16 = vrot.slane %v6536_v11, 1  ;;  %v6530_v52 = vrot.slane %v6529_v48, 1  ;;  %v6622_v61 = vld [vmem:[#allocation2 + $0x340] sm:$0xff]  ;;  %v6600_v53 = vrot.slane %v6599_v17, 4  ;;  %v6748_v42 = vrot.slane %v6747_v59, 4 }
 0xb32   :  { %v6316_v10 = vmax.f32 %v6314_v37, %v6315_v18  ;;  %v6390_v1 = vmax.f32 %v6388_v40, %v6389_v57  ;;  %6589 = vmatpush.msra.mxu2 %v6547_v35  ;;  %v6464_v33 = vmax.f32 %v6462_v4, %v6463_v21  ;;  %v6697_v37 = vld [vmem:[#allocation2 + $0x3a8] sm:$0xff]  ;;  %v6674_v40 = vrot.slane %v6673_v24, 4  ;;  %v6695_v18 = vld [vmem:[#allocation2 + $0x398] sm:$0xff]  ;;  %v6618_v57 = vld [vmem:[#allocation2 + $0x320] sm:$0xff] }
 0xb33   :  { %6369 = vmatpush.msrb.mxu0 %v6321_v14  ;;  %6570 = vmatpush.msrb.mxu1 %v6544_v46  ;;  %v6538_v38 = vmax.f32 %v6536_v11, %v6537_v16  ;;  %v6531_v55 = vmax.f32 %v6529_v48, %v6530_v52  ;;  %v6822_v14 = vrot.slane %v6821_v12, 4  ;;  %v6692_v11 = vld [vmem:[#allocation2 + $0x380] sm:$0xff]  ;;  %v6749_v46 = vmax.f32 %v6747_v59, %v6748_v42  ;;  %v6693_v48 = vld [vmem:[#allocation2 + $0x388] sm:$0xff]  ;;  %v6772_v16 = vld [vmem:[#allocation2 + $0x410] sm:$0xff] }
 0xb34   :  { %v6332_v5 = vsel %vm6064_vm5, %v6316_v10, %v6309_v29  ;;  %v6406_v3 = vsel %vm6064_vm5, %v6390_v1, %v6383_v32  ;;  %6590 = vmatpush.msra.mxu2 %v6545_v45  ;;  %v6480_v30 = vsel %vm6064_vm5, %v6464_v33, %v6457_v49  ;;  %v6675_v29 = vmax.f32 %v6673_v24, %v6674_v40  ;;  %v6621_v1 = vld [vmem:[#allocation2 + $0x338] sm:$0xff]  ;;  %v6619_v21 = vld [vmem:[#allocation2 + $0x328] sm:$0xff]  ;;  %v6844_v59 = vld [vmem:[#allocation2 + $0x460] sm:$0xff] }
 0xb35   :  { %6370 = vmatpush.msrb.mxu0 %v6319_v9  ;;  %7652 = vmatmul.msk.f32.vlgmr.msrb.gmra.mxu3 %vm254_vm1, %v6332_v5  ;;  %v6554_v6 = vsel %vm6064_vm5, %v6538_v38, %v6531_v55  ;;  %v6601_v9 = vmax.f32 %v6599_v17, %v6600_v53  ;;  %v6823_v10 = vmax.f32 %v6821_v12, %v6822_v14  ;;  %v6750_v52 = vrot.slane %v6749_v46, 2  ;;  %v6770_v17 = vld [vmem:[#allocation2 + $0x400] sm:$0xff]  ;;  %v6773_v24 = vld [vmem:[#allocation2 + $0x418] sm:$0xff]  ;;  %v6842_v14 = vld [vmem:[#allocation2 + $0x450] sm:$0xff] }
 0xb36   :  { %7654 = vmatmul.msk.f32.vlgmr.msra.gmra.mxu1 %vm254_vm1, %v6406_v3  ;;  %7655 = vmatmul.msk.f32.vlgmr.msrb.gmra.mxu2 %vm254_vm1, %v6406_v3  ;;  %v6614_v3 = vld [vmem:[#allocation2 + $0x300] sm:$0xff]  ;;  %v6676_v60 = vrot.slane %v6675_v29, 2 }
 0xb37   :  { %6513 = vmatpush.msra.mxu0 %v6477_v58  ;;  %6571 = vmatpush.msrb.mxu1 %v6542_v36  ;;  %v6616_v58 = vld [vmem:[#allocation2 + $0x310] sm:$0xff]  ;;  %v6689_v36 = vld [vmem:[#allocation2 + $0x368] sm:$0xff]  ;;  %v6824_v28 = vrot.slane %v6823_v10, 2  ;;  %v6751_v12 = vmax.f32 %v6749_v46, %v6750_v52  ;;  %v6840_v46 = vld [vmem:[#allocation2 + $0x440] sm:$0xff] }
 0xb38   :  { %7653 = vmatmul.msk.f32.vlgmr.msrb.gmra.mxu0 %vm254_vm1, %v6332_v5  ;;  %6591 = vmatpush.msra.mxu2 %v6543_v47  ;;  %v5868_v54 = vpop.f32.mrf.mxu2  ;;  %v6691_v5 = vld [vmem:[#allocation2 + $0x378] sm:$0xff]  ;;  %v6602_v47 = vrot.slane %v6601_v9, 2 }
 0xb39   :  { %6514 = vmatpush.msra.mxu0 %v6475_v31  ;;  %6641 = vmatpush.msrb.mxu3 %v6624_v23  ;;  %v6688_v31 = vld [vmem:[#allocation2 + $0x360] sm:$0xff]  ;;  %v6825_v53 = vmax.f32 %v6823_v10, %v6824_v28  ;;  %v6764_v10 = vld [vmem:[#allocation2 + $0x3d0] sm:$0xff] }
 0xb3a   :  { %6572 = vmatpush.msrb.mxu1 %v6540_v7  ;;  %6592 = vmatpush.msra.mxu2 %v6541_v25  ;;  %v5827_v13 = vpop.f32.mrf.mxu1  ;;  %v6846_v7 = vld [vmem:[#allocation2 + $0x470] sm:$0xff] }
 0xb3b   :  { %6515 = vmatpush.msra.mxu0 %v6473_v2  ;;  %v5953_v26 = vadd.f32 %v5945_v22, %v5827_v13  ;;  %6642 = vmatpush.msrb.mxu3 %v6622_v61  ;;  %v6617_v2 = vld [vmem:[#allocation2 + $0x318] sm:$0xff]  ;;  %v6603_v22 = vmax.f32 %v6601_v9, %v6602_v47 }
 0xb3c   :  { %6715 = vmatpush.msra.mxu1 %v6698_v63  ;;  %6735 = vmatpush.msrb.mxu2 %v6699_v39 }
 0xb3d   :  { %6516 = vmatpush.msra.mxu0 %v6471_v44  ;;  %7656 = vmatmul.msk.f32.vlgmr.msra.gmra.mxu3 %vm254_vm1, %v6480_v30  ;;  %v5961_v51 = vadd.f32 %v5953_v26, %v5868_v54  ;;  %v6847_v44 = vld [vmem:[#allocation2 + $0x478] sm:$0xff] }
 0xb3e   :  { %6716 = vmatpush.msra.mxu1 %v6696_v8  ;;  %7659 = vmatmul.msk.f32.vlgmr.msra.gmra.mxu2 %vm254_vm1, %v6554_v6  ;;  %v6615_v8 = vld [vmem:[#allocation2 + $0x308] sm:$0xff] }
 0xb3f   :  { %6517 = vmatpush.msra.mxu0 %v6469_v34  ;;  %7658 = vmatmul.msk.f32.vlgmr.msrb.gmra.mxu1 %vm254_vm1, %v6554_v6  ;;  %v5909_v4 = vpop.f32.mrf.mxu3  ;;  %v6677_v34 = vmax.f32 %v6675_v29, %v6676_v60  ;;  %v6768_v6 = vld [vmem:[#allocation2 + $0x3f0] sm:$0xff] }
 0xb40   :  { %6736 = vmatpush.msrb.mxu2 %v6697_v37  ;;  %v5969_v35 = vadd.f32 %v5961_v51, %v5909_v4  ;;  %6643 = vmatpush.msrb.mxu3 %v6620_v41  ;;  %v6771_v37 = vld [vmem:[#allocation2 + $0x408] sm:$0xff]  ;;  %v6843_v51 = vld [vmem:[#allocation2 + $0x458] sm:$0xff] }
 0xb41   :  { %6518 = vmatpush.msra.mxu0 %v6467_v0  ;;  %6717 = vmatpush.msra.mxu1 %v6694_v20  ;;  %v6845_v0 = vld [vmem:[#allocation2 + $0x468] sm:$0xff]  ;;  %v6604_v20 = vrot.slane %v6603_v22, 1  ;;  %v6678_v4 = vrot.slane %v6677_v34, 1 }
 0xb42   :  { %7657 = vmatmul.msk.f32.vlgmr.msra.gmra.mxu0 %vm254_vm1, %v6480_v30  ;;  %v5981_v32 = vadd.f32 %v12108_v43, %v5969_v35  ;;  %6737 = vmatpush.msrb.mxu2 %v6695_v18  ;;  %v6769_v18 = vld [vmem:[#allocation2 + $0x3f8] sm:$0xff]  ;;  %v6752_v35 = vrot.slane %v6751_v12, 1 }
 0xb43   :  { %6661 = vmatpush.msrb.mxu0 %v6625_v56  ;;  %6644 = vmatpush.msrb.mxu3 %v6618_v57  ;;  %v5978_v56 = vadd.f32 %v12108_v43, %v12075_v15  ;;  %v6766_v57 = vld [vmem:[#allocation2 + $0x3e0] sm:$0xff] }
 0xb44   :  { %6718 = vmatpush.msra.mxu1 %v6692_v11  ;;  %vm5989_vm8 = vcmp.ge.f32.partialorder %v5981_v32, 0.0  ;;  %v5997_v45 = vmul.f32 0.01, %v5981_v32  ;;  %6738 = vmatpush.msrb.mxu2 %v6693_v48  ;;  %v6841_v48 = vld [vmem:[#allocation2 + $0x448] sm:$0xff] }
 0xb45   :  { %6662 = vmatpush.msrb.mxu0 %v6623_v50  ;;  %6645 = vmatpush.msrb.mxu3 %v6616_v58  ;;  %v6767_v58 = vld [vmem:[#allocation2 + $0x3e8] sm:$0xff]  ;;  %v5994_v47 = vmul.f32 0.01, %v5978_v56  ;;  %vm5986_vm9 = vcmp.ge.f32.partialorder %v5978_v56, 0.0 }
 0xb46   :  { %6719 = vmatpush.msra.mxu1 %v6690_v27  ;;  %v6005_v23 = vsel %vm5989_vm8, %v5981_v32, %v5997_v45  ;;  %6739 = vmatpush.msrb.mxu2 %v6691_v5  ;;  %v6826_v32 = vrot.slane %v6825_v53, 1  ;;  %v6839_v27 = vld [vmem:[#allocation2 + $0x438] sm:$0xff]  ;;  %v6605_v45 = vmax.f32 %v6603_v22, %v6604_v20 }
 0xb47   :  { %6663 = vmatpush.msrb.mxu0 %v6621_v1  ;;  %6646 = vmatpush.msrb.mxu3 %v6614_v3  ;;  %v6606_v19 = vsel %vm6007_vm13, %v6005_v23, -inf  ;;  %v6680_v25 = vsel %vm6034_vm14, %v6005_v23, -inf  ;;  %v6754_v33 = vsel %vm6153_vm15, %v6005_v23, -inf  ;;  %v6828_v63 = vsel %vm6228_vm0, %v6005_v23, -inf  ;;  %v6838_v1 = vld [vmem:[#allocation2 + $0x430] sm:$0xff]  ;;  %v6991_v20 = vld [vmem:[#allocation2 + $0x518] sm:$0xff] }
 0xb48   :  { %6720 = vmatpush.msra.mxu1 %v6688_v31  ;;  %v6607_v38 = vrot.slane %v6606_v19, 4  ;;  %v6681_v39 = vrot.slane %v6680_v25, 4  ;;  %v6755_v49 = vrot.slane %v6754_v33, 4  ;;  %v6829_v55 = vrot.slane %v6828_v63, 4  ;;  %6740 = vmatpush.msrb.mxu2 %v6689_v36  ;;  %v6765_v31 = vld [vmem:[#allocation2 + $0x3d8] sm:$0xff]  ;;  %v6762_v36 = vld [vmem:[#allocation2 + $0x3c0] sm:$0xff] }
 0xb49   :  { %6664 = vmatpush.msrb.mxu0 %v6619_v21  ;;  %6789 = vmatpush.msra.mxu3 %v6772_v16  ;;  %v6679_v21 = vmax.f32 %v6677_v34, %v6678_v4  ;;  %v6753_v16 = vmax.f32 %v6751_v12, %v6752_v35  ;;  %v6919_v34 = vld [vmem:[#allocation2 + $0x4c8] sm:$0xff]  ;;  %v6992_v12 = vld [vmem:[#allocation2 + $0x520] sm:$0xff] }
 0xb4a   :  { %6863 = vmatpush.msrb.mxu1 %v6846_v7  ;;  %v6608_v13 = vmax.f32 %v6606_v19, %v6607_v38  ;;  %v6682_v30 = vmax.f32 %v6680_v25, %v6681_v39  ;;  %v6756_v61 = vmax.f32 %v6754_v33, %v6755_v49  ;;  %v6830_v26 = vmax.f32 %v6828_v63, %v6829_v55  ;;  %v6763_v25 = vld [vmem:[#allocation2 + $0x3c8] sm:$0xff]  ;;  %v6836_v33 = vld [vmem:[#allocation2 + $0x420] sm:$0xff]  ;;  %v6920_v49 = vld [vmem:[#allocation2 + $0x4d0] sm:$0xff] }
 0xb4b   :  { %6665 = vmatpush.msrb.mxu0 %v6617_v2  ;;  %6883 = vmatpush.msra.mxu2 %v6847_v44  ;;  %v6827_v2 = vmax.f32 %v6825_v53, %v6826_v32  ;;  %v5789_v44 = vpop.f32.mrf.mxu0  ;;  %v6837_v38 = vld [vmem:[#allocation2 + $0x428] sm:$0xff]  ;;  %v6002_v55 = vsel %vm5986_vm9, %v5978_v56, %v5994_v47  ;;  %v6914_v4 = vld [vmem:[#allocation2 + $0x4a0] sm:$0xff] }
 0xb4c   :  { %6790 = vmatpush.msra.mxu3 %v6770_v17  ;;  %v6609_v40 = vrot.slane %v6608_v13, 2  ;;  %v6683_v42 = vrot.slane %v6682_v30, 2  ;;  %v6757_v54 = vrot.slane %v6756_v61, 2  ;;  %v6831_v41 = vrot.slane %v6830_v26, 2  ;;  %6864 = vmatpush.msrb.mxu1 %v6844_v59  ;;  %v6994_v17 = vld [vmem:[#allocation2 + $0x530] sm:$0xff]  ;;  %v6918_v59 = vld [vmem:[#allocation2 + $0x4c0] sm:$0xff] }
 0xb4d   :  { %6666 = vmatpush.msrb.mxu0 %v6615_v8  ;;  %6884 = vmatpush.msra.mxu2 %v6845_v0  ;;  %v6921_v8 = vld [vmem:[#allocation2 + $0x4d8] sm:$0xff]  ;;  %v5946_v22 = vadd.f32 %v12103_v62, %v5789_v44  ;;  %v6993_v0 = vld [vmem:[#allocation2 + $0x528] sm:$0xff]  ;;  %v6988_v35 = vld [vmem:[#allocation2 + $0x500] sm:$0xff] }
 0xb4e   :  { %6791 = vmatpush.msra.mxu3 %v6768_v6  ;;  %v6610_v50 = vmax.f32 %v6608_v13, %v6609_v40  ;;  %v6684_v11 = vmax.f32 %v6682_v30, %v6683_v42  ;;  %v6758_v9 = vmax.f32 %v6756_v61, %v6757_v54  ;;  %v6832_v29 = vmax.f32 %v6830_v26, %v6831_v41  ;;  %v6916_v6 = vld [vmem:[#allocation2 + $0x4b0] sm:$0xff]  ;;  %v7067_v44 = vld [vmem:[#allocation2 + $0x588] sm:$0xff] }
 0xb4f   :  { %6809 = vmatpush.msra.mxu0 %v6773_v24  ;;  %6865 = vmatpush.msrb.mxu1 %v6842_v14  ;;  %v6995_v24 = vld [vmem:[#allocation2 + $0x538] sm:$0xff]  ;;  %v6895_v13 = vsel %vm6007_vm13, %v6002_v55, -inf  ;;  %v6969_v30 = vsel %vm6034_vm14, %v6002_v55, -inf  ;;  %v7043_v61 = vsel %vm6153_vm15, %v6002_v55, -inf }
 0xb50   :  { %6885 = vmatpush.msra.mxu2 %v6843_v51  ;;  %v6611_v15 = vrot.slane %v6610_v50, 1  ;;  %v6685_v43 = vrot.slane %v6684_v11, 1  ;;  %6792 = vmatpush.msra.mxu3 %v6766_v57  ;;  %v6759_v5 = vrot.slane %v6758_v9, 1  ;;  %v6833_v3 = vrot.slane %v6832_v29, 1  ;;  %v6917_v14 = vld [vmem:[#allocation2 + $0x4b8] sm:$0xff]  ;;  %v6990_v51 = vld [vmem:[#allocation2 + $0x510] sm:$0xff] }
 0xb51   :  { %6810 = vmatpush.msra.mxu0 %v6771_v37  ;;  %6866 = vmatpush.msrb.mxu1 %v6840_v46  ;;  %v7117_v37 = vsel %vm6228_vm0, %v6002_v55, -inf  ;;  %v6896_v40 = vrot.slane %v6895_v13, 4  ;;  %v6970_v42 = vrot.slane %v6969_v30, 4  ;;  %v7044_v54 = vrot.slane %v7043_v61, 4  ;;  %v6915_v57 = vld [vmem:[#allocation2 + $0x4a8] sm:$0xff] }
 0xb52   :  { %6886 = vmatpush.msra.mxu2 %v6841_v48  ;;  %v6612_v60 = vmax.f32 %v6610_v50, %v6611_v15  ;;  %v6686_v52 = vmax.f32 %v6684_v11, %v6685_v43  ;;  %6793 = vmatpush.msra.mxu3 %v6764_v10  ;;  %v6760_v23 = vmax.f32 %v6758_v9, %v6759_v5  ;;  %v7118_v56 = vrot.slane %v7117_v37, 4  ;;  %v6989_v11 = vld [vmem:[#allocation2 + $0x508] sm:$0xff]  ;;  %v6912_v9 = vld [vmem:[#allocation2 + $0x490] sm:$0xff]  ;;  %v8277_v15 = vld [vmem:[%s12357_s11] ss:$0 sm:$0xff] }
 0xb53   :  { %6811 = vmatpush.msra.mxu0 %v6769_v18  ;;  %6867 = vmatpush.msrb.mxu1 %v6838_v1  ;;  %v6834_v7 = vmax.f32 %v6832_v29, %v6833_v3  ;;  %v6897_v29 = vmax.f32 %v6895_v13, %v6896_v40  ;;  %v6971_v46 = vmax.f32 %v6969_v30, %v6970_v42  ;;  %v6986_v10 = vld [vmem:[#allocation2 + $0x4f0] sm:$0xff]  ;;  %v6987_v1 = vld [vmem:[#allocation2 + $0x4f8] sm:$0xff]  ;;  %v6911_v5 = vld [vmem:[#allocation2 + $0x488] sm:$0xff] }
 0xb54   :  { %6887 = vmatpush.msra.mxu2 %v6839_v27  ;;  %v6628_v28 = vsel %vm6064_vm5, %v6612_v60, %v6605_v45  ;;  %v6702_v19 = vsel %vm6064_vm5, %v6686_v52, %v6679_v21  ;;  %6794 = vmatpush.msra.mxu3 %v6762_v36  ;;  %v6776_v63 = vsel %vm6064_vm5, %v6760_v23, %v6753_v16  ;;  %v6910_v27 = vld [vmem:[#allocation2 + $0x480] sm:$0xff]  ;;  %v6985_v21 = vld [vmem:[#allocation2 + $0x4e8] sm:$0xff]  ;;  %v7069_v60 = vld [vmem:[#allocation2 + $0x598] sm:$0xff] }
 0xb55   :  { %6812 = vmatpush.msra.mxu0 %v6767_v58  ;;  %7660 = vmatmul.msk.f32.vlgmr.msrb.gmra.mxu3 %vm254_vm1, %v6628_v28  ;;  %v6850_v39 = vsel %vm6064_vm5, %v6834_v7, %v6827_v2  ;;  %v7045_v48 = vmax.f32 %v7043_v61, %v7044_v54  ;;  %v6913_v58 = vld [vmem:[#allocation2 + $0x498] sm:$0xff]  ;;  %v7119_v32 = vmax.f32 %v7117_v37, %v7118_v56  ;;  %v6984_v3 = vld [vmem:[#allocation2 + $0x4e0] sm:$0xff]  ;;  %v6898_v36 = vrot.slane %v6897_v29, 2  ;;  %v7142_v52 = vld [vmem:[#allocation2 + $0x5f0] sm:$0xff] }
 0xb56   :  { %7661 = vmatmul.msk.f32.vlgmr.msrb.gmra.mxu0 %vm254_vm1, %v6628_v28  ;;  %7662 = vmatmul.msk.f32.vlgmr.msra.gmra.mxu1 %vm254_vm1, %v6702_v19  ;;  %v6972_v16 = vrot.slane %v6971_v46, 2  ;;  %v7143_v7 = vld [vmem:[#allocation2 + $0x5f8] sm:$0xff]  ;;  %v7066_v28 = vld [vmem:[#allocation2 + $0x580] sm:$0xff] }
 0xb57   :  { %6813 = vmatpush.msra.mxu0 %v6765_v31  ;;  %7663 = vmatmul.msk.f32.vlgmr.msrb.gmra.mxu2 %vm254_vm1, %v6702_v19  ;;  %v7068_v31 = vld [vmem:[#allocation2 + $0x590] sm:$0xff]  ;;  %v7046_v47 = vrot.slane %v7045_v48, 2  ;;  %v7120_v23 = vrot.slane %v7119_v32, 2 }
 0xb58   :  { %6868 = vmatpush.msrb.mxu1 %v6836_v33  ;;  %6888 = vmatpush.msra.mxu2 %v6837_v38  ;;  %v5871_v62 = vpop.f32.mrf.mxu2 }
 0xb59   :  { %6814 = vmatpush.msra.mxu0 %v6763_v25  ;;  %6937 = vmatpush.msrb.mxu3 %v6920_v49  ;;  %v7121_v37 = vmax.f32 %v7119_v32, %v7120_v23 }
 0xb5a   :  { %v5830_v26 = vpop.f32.mrf.mxu1  ;;  %7011 = vmatpush.msra.mxu1 %v6994_v17  ;;  %7031 = vmatpush.msrb.mxu2 %v6995_v24  ;;  %v7141_v17 = vld [vmem:[#allocation2 + $0x5e8] sm:$0xff]  ;;  %v6899_v24 = vmax.f32 %v6897_v29, %v6898_v36  ;;  %v7134_v29 = vld [vmem:[#allocation2 + $0x5b0] sm:$0xff] }
 0xb5b   :  { %6957 = vmatpush.msrb.mxu0 %v6921_v8  ;;  %v5954_v53 = vadd.f32 %v5946_v22, %v5830_v26  ;;  %6938 = vmatpush.msrb.mxu3 %v6918_v59  ;;  %v7140_v8 = vld [vmem:[#allocation2 + $0x5e0] sm:$0xff]  ;;  %v6973_v59 = vmax.f32 %v6971_v46, %v6972_v16  ;;  %v7047_v22 = vmax.f32 %v7045_v48, %v7046_v47  ;;  %v7135_v46 = vld [vmem:[#allocation2 + $0x5b8] sm:$0xff] }
 0xb5c   :  { %7012 = vmatpush.msra.mxu1 %v6992_v12  ;;  %7032 = vmatpush.msrb.mxu2 %v6993_v0  ;;  %v7065_v12 = vld [vmem:[#allocation2 + $0x578] sm:$0xff]  ;;  %v7138_v0 = vld [vmem:[#allocation2 + $0x5d0] sm:$0xff]  ;;  %v7058_v48 = vld [vmem:[#allocation2 + $0x540] sm:$0xff] }
 0xb5d   :  { %6958 = vmatpush.msrb.mxu0 %v6919_v34  ;;  %v5962_v41 = vadd.f32 %v5954_v53, %v5871_v62  ;;  %6939 = vmatpush.msrb.mxu3 %v6916_v6  ;;  %v7064_v34 = vld [vmem:[#allocation2 + $0x570] sm:$0xff]  ;;  %v7139_v6 = vld [vmem:[#allocation2 + $0x5d8] sm:$0xff]  ;;  %v7062_v53 = vld [vmem:[#allocation2 + $0x560] sm:$0xff]  ;;  %v6974_v56 = vrot.slane %v6973_v59, 1 }
 0xb5e   :  { %7664 = vmatmul.msk.f32.vlgmr.msra.gmra.mxu3 %vm254_vm1, %v6776_v63  ;;  %7665 = vmatmul.msk.f32.vlgmr.msra.gmra.mxu0 %vm254_vm1, %v6776_v63 }
 0xb5f   :  { %7666 = vmatmul.msk.f32.vlgmr.msrb.gmra.mxu1 %vm254_vm1, %v6850_v39  ;;  %7667 = vmatmul.msk.f32.vlgmr.msra.gmra.mxu2 %vm254_vm1, %v6850_v39  ;;  %v5912_v18 = vpop.f32.mrf.mxu3 }
 0xb60   :  { %v5970_v50 = vadd.f32 %v5962_v41, %v5912_v18  ;;  %6959 = vmatpush.msrb.mxu0 %v6917_v14  ;;  %7013 = vmatpush.msra.mxu1 %v6990_v51  ;;  %v7063_v41 = vld [vmem:[#allocation2 + $0x568] sm:$0xff]  ;;  %v7136_v14 = vld [vmem:[#allocation2 + $0x5c0] sm:$0xff]  ;;  %v6900_v51 = vrot.slane %v6899_v24, 1  ;;  %v7048_v18 = vrot.slane %v7047_v22, 1 }
 0xb61   :  { %7033 = vmatpush.msrb.mxu2 %v6991_v20  ;;  %6940 = vmatpush.msrb.mxu3 %v6914_v4  ;;  %v7137_v20 = vld [vmem:[#allocation2 + $0x5c8] sm:$0xff]  ;;  %v7060_v4 = vld [vmem:[#allocation2 + $0x550] sm:$0xff] }
 0xb62   :  { %v5982_v43 = vadd.f32 %v8277_v15, %v5970_v50  ;;  %6960 = vmatpush.msrb.mxu0 %v6915_v57  ;;  %7014 = vmatpush.msra.mxu1 %v6988_v35  ;;  %v7059_v15 = vld [vmem:[#allocation2 + $0x548] sm:$0xff] }
 0xb63   :  { %7034 = vmatpush.msrb.mxu2 %v6989_v11  ;;  %6941 = vmatpush.msrb.mxu3 %v6912_v9  ;;  %v7061_v9 = vld [vmem:[#allocation2 + $0x558] sm:$0xff] }
 0xb64   :  { %vm5990_vm10 = vcmp.ge.f32.partialorder %v5982_v43, 0.0  ;;  %v5998_v45 = vmul.f32 0.01, %v5982_v43  ;;  %6961 = vmatpush.msrb.mxu0 %v6913_v58  ;;  %7015 = vmatpush.msra.mxu1 %v6986_v10  ;;  %v7122_v58 = vrot.slane %v7121_v37, 1 }
 0xb65   :  { %7035 = vmatpush.msrb.mxu2 %v6987_v1  ;;  %6942 = vmatpush.msrb.mxu3 %v6910_v27 }
 0xb66   :  { %v6006_v2 = vsel %vm5990_vm10, %v5982_v43, %v5998_v45  ;;  %6962 = vmatpush.msrb.mxu0 %v6911_v5  ;;  %7016 = vmatpush.msra.mxu1 %v6984_v3  ;;  %v7132_v43 = vld [vmem:[#allocation2 + $0x5a0] sm:$0xff]  ;;  %v6901_v5 = vmax.f32 %v6899_v24, %v6900_v51  ;;  %v6975_v3 = vmax.f32 %v6973_v59, %v6974_v56  ;;  %v7133_v45 = vld [vmem:[#allocation2 + $0x5a8] sm:$0xff]  ;;  %v7212_v59 = vld [vmem:[%s12361_s15 + $0x58] sm:$0xff] }
 0xb67   :  { %v6902_v19 = vsel %vm6007_vm13, %v6006_v2, -inf  ;;  %v6976_v25 = vsel %vm6034_vm14, %v6006_v2, -inf  ;;  %v7050_v33 = vsel %vm6153_vm15, %v6006_v2, -inf  ;;  %v7124_v63 = vsel %vm6228_vm0, %v6006_v2, -inf  ;;  %7036 = vmatpush.msrb.mxu2 %v6985_v21  ;;  %7085 = vmatpush.msra.mxu3 %v7068_v31  ;;  %v7206_v51 = vld [vmem:[%s12361_s15 + $0x28] sm:$0xff]  ;;  %v7221_v56 = vld [vmem:[%s12361_s15 + $0xa0] sm:$0xff] }
 0xb68   :  { %v6903_v38 = vrot.slane %v6902_v19, 4  ;;  %v6977_v39 = vrot.slane %v6976_v25, 4  ;;  %v7051_v49 = vrot.slane %v7050_v33, 4  ;;  %v7125_v55 = vrot.slane %v7124_v63, 4  ;;  %7105 = vmatpush.msra.mxu0 %v7069_v60  ;;  %7159 = vmatpush.msrb.mxu1 %v7142_v52 }
 0xb69   :  { %7179 = vmatpush.msra.mxu2 %v7143_v7  ;;  %7086 = vmatpush.msra.mxu3 %v7066_v28  ;;  %v7049_v21 = vmax.f32 %v7047_v22, %v7048_v18  ;;  %v7123_v47 = vmax.f32 %v7121_v37, %v7122_v58  ;;  %v7211_v22 = vld [vmem:[%s12361_s15 + $0x50] sm:$0xff]  ;;  %v7208_v37 = vld [vmem:[%s12361_s15 + $0x38] sm:$0xff]  ;;  %v7205_v58 = vld [vmem:[%s12361_s15 + $0x20] sm:$0xff] }
 0xb6a   :  { %v6904_v13 = vmax.f32 %v6902_v19, %v6903_v38  ;;  %v6978_v30 = vmax.f32 %v6976_v25, %v6977_v39  ;;  %v7052_v61 = vmax.f32 %v7050_v33, %v7051_v49  ;;  %v7126_v26 = vmax.f32 %v7124_v63, %v7125_v55  ;;  %7106 = vmatpush.msra.mxu0 %v7067_v44  ;;  %v7216_v63 = vld [vmem:[%s12361_s15 + $0x78] sm:$0xff]  ;;  %v7215_v44 = vld [vmem:[%s12361_s15 + $0x70] sm:$0xff]  ;;  %v7214_v39 = vld [vmem:[%s12361_s15 + $0x68] sm:$0xff] }
 0xb6b   :  { %7160 = vmatpush.msrb.mxu1 %v7140_v8  ;;  %7180 = vmatpush.msra.mxu2 %v7141_v17  ;;  %v7213_v49 = vld [vmem:[%s12361_s15 + $0x60] sm:$0xff] }
 0xb6c   :  { %v6905_v62 = vrot.slane %v6904_v13, 2  ;;  %v6979_v40 = vrot.slane %v6978_v30, 2  ;;  %v7053_v42 = vrot.slane %v7052_v61, 2  ;;  %v7127_v54 = vrot.slane %v7126_v26, 2  ;;  %7087 = vmatpush.msra.mxu3 %v7064_v34  ;;  %7107 = vmatpush.msra.mxu0 %v7065_v12 }
 0xb6d   :  { %7161 = vmatpush.msrb.mxu1 %v7138_v0  ;;  %7181 = vmatpush.msra.mxu2 %v7139_v6  ;;  %v7224_v0 = vld [vmem:[%s12361_s15 + $0xb8] sm:$0xff] }
 0xb6e   :  { %v6906_v57 = vmax.f32 %v6904_v13, %v6905_v62  ;;  %v6980_v35 = vmax.f32 %v6978_v30, %v6979_v40  ;;  %v7054_v50 = vmax.f32 %v7052_v61, %v7053_v42  ;;  %v7128_v11 = vmax.f32 %v7126_v26, %v7127_v54  ;;  %7088 = vmatpush.msra.mxu3 %v7062_v53  ;;  %v7210_v30 = vld [vmem:[%s12361_s15 + $0x48] sm:$0xff]  ;;  %v7209_v26 = vld [vmem:[%s12361_s15 + $0x40] sm:$0xff]  ;;  %v7223_v53 = vld [vmem:[%s12361_s15 + $0xb0] sm:$0xff] }
 0xb6f   :  { %7108 = vmatpush.msra.mxu0 %v7063_v41  ;;  %7162 = vmatpush.msrb.mxu1 %v7136_v14  ;;  %v7207_v62 = vld [vmem:[%s12361_s15 + $0x30] sm:$0xff]  ;;  %v7222_v42 = vld [vmem:[%s12361_s15 + $0xa8] sm:$0xff] }
 0xb70   :  { %v6907_v10 = vrot.slane %v6906_v57, 1  ;;  %v6981_v32 = vrot.slane %v6980_v35, 1  ;;  %7182 = vmatpush.msra.mxu2 %v7137_v20  ;;  %7089 = vmatpush.msra.mxu3 %v7060_v4  ;;  %v7055_v1 = vrot.slane %v7054_v50, 1  ;;  %v7129_v27 = vrot.slane %v7128_v11, 1 }
 0xb71   :  { %7109 = vmatpush.msra.mxu0 %v7061_v9  ;;  %7163 = vmatpush.msrb.mxu1 %v7134_v29 }
 0xb72   :  { %v6908_v31 = vmax.f32 %v6906_v57, %v6907_v10  ;;  %v6982_v36 = vmax.f32 %v6980_v35, %v6981_v32  ;;  %7183 = vmatpush.msra.mxu2 %v7135_v46  ;;  %7090 = vmatpush.msra.mxu3 %v7058_v48  ;;  %v7056_v16 = vmax.f32 %v7054_v50, %v7055_v1  ;;  %v7220_v10 = vld [vmem:[%s12361_s15 + $0x98] sm:$0xff] }
 0xb73   :  { %7110 = vmatpush.msra.mxu0 %v7059_v15  ;;  %7164 = vmatpush.msrb.mxu1 %v7132_v43  ;;  %v7130_v60 = vmax.f32 %v7128_v11, %v7129_v27  ;;  %v7204_v32 = vld [vmem:[%s12361_s15 + $0x18] sm:$0xff]  ;;  %v7219_v43 = vld [vmem:[%s12361_s15 + $0x90] sm:$0xff] }
 0xb74   :  { %v6924_v52 = vsel %vm6064_vm5, %v6908_v31, %v6901_v5  ;;  %v6998_v23 = vsel %vm6064_vm5, %v6982_v36, %v6975_v3  ;;  %7184 = vmatpush.msra.mxu2 %v7133_v45  ;;  %v7072_v2 = vsel %vm6064_vm5, %v7056_v16, %v7049_v21  ;;  %v7203_v27 = vld [vmem:[%s12361_s15 + $0x10] sm:$0xff]  ;;  %v7218_v5 = vld [vmem:[%s12361_s15 + $0x88] sm:$0xff]  ;;  %v7217_v21 = vld [vmem:[%s12361_s15 + $0x80] sm:$0xff] }
 0xb75   :  { %7668 = vmatmul.msk.f32.vlgmr.msrb.gmra.mxu3 %vm254_vm1, %v6924_v52  ;;  %7669 = vmatmul.msk.f32.vlgmr.msrb.gmra.mxu0 %vm254_vm1, %v6924_v52  ;;  %v7146_v7 = vsel %vm6064_vm5, %v7130_v60, %v7123_v47  ;;  %v7202_v45 = vld [vmem:[%s12361_s15 + $0x8] sm:$0xff]  ;;  %v7201_v16 = vld [vmem:[%s12361_s15] sm:$0xff] }
 0xb76   :  { %7670 = vmatmul.msk.f32.vlgmr.msra.gmra.mxu1 %vm254_vm1, %v6998_v23  ;;  %7671 = vmatmul.msk.f32.vlgmr.msrb.gmra.mxu2 %vm254_vm1, %v6998_v23 }
 0xb77   :  { %7233 = vmatpush.msrb.mxu3 %v7216_v63  ;;  %7261 = vmatpush.msrb.mxu0 %v7224_v0 }
 0xb79   :  { %7234 = vmatpush.msrb.mxu3 %v7215_v44  ;;  %7262 = vmatpush.msrb.mxu0 %v7223_v53 }
 0xb7b   :  { %7235 = vmatpush.msrb.mxu3 %v7214_v39  ;;  %7263 = vmatpush.msrb.mxu0 %v7222_v42 }
 0xb7d   :  { %7672 = vmatmul.msk.f32.vlgmr.msra.gmra.mxu3 %vm254_vm1, %v7072_v2  ;;  %7673 = vmatmul.msk.f32.vlgmr.msra.gmra.mxu0 %vm254_vm1, %v7072_v2 }
 0xb7e   :  { %7674 = vmatmul.msk.f32.vlgmr.msrb.gmra.mxu1 %vm254_vm1, %v7146_v7  ;;  %7675 = vmatmul.msk.f32.vlgmr.msra.gmra.mxu2 %vm254_vm1, %v7146_v7  ;;  %vm7229_vm1 = vcmask 523264  }
 0xb7f   :  { %7236 = vmatpush.msrb.mxu3 %v7213_v49  ;;  %7264 = vmatpush.msrb.mxu0 %v7221_v56  ;;  %v7278_v56 = vld [vmem:[%s12363_s17 + $0x20] sm:$0xff] }
 0xb81   :  { %7237 = vmatpush.msrb.mxu3 %v7212_v59  ;;  %7265 = vmatpush.msrb.mxu0 %v7220_v10 }
 0xb83   :  { %7238 = vmatpush.msrb.mxu3 %v7211_v22  ;;  %7266 = vmatpush.msrb.mxu0 %v7219_v43  ;;  %v7191_v22 = vld [vmem:[%s12360_s14] sm:$0x3] }
 0xb85   :  { %7239 = vmatpush.msrb.mxu3 %v7210_v30  ;;  %7267 = vmatpush.msrb.mxu0 %v7218_v5  ;;  %v7194_v30 = vperm.slane %v7191_v22, 1 }
 0xb87   :  { %7240 = vmatpush.msrb.mxu3 %v7209_v26  ;;  %7268 = vmatpush.msrb.mxu0 %v7217_v21  ;;  %v7193_v26 = vperm.slane %v7191_v22, 0 }
 0xb89   :  { %7241 = vmatpush.msrb.mxu3 %v7208_v37 }
 0xb8b   :  { %7242 = vmatpush.msrb.mxu3 %v7207_v62 }
 0xb8d   :  { %7243 = vmatpush.msrb.mxu3 %v7206_v51  ;;  %v7279_v51 = vld [vmem:[%s12363_s17 + $0x28] sm:$0xff] }
 0xb8f   :  { %7244 = vmatpush.msrb.mxu3 %v7205_v58 }
 0xb91   :  { %7245 = vmatpush.msrb.mxu3 %v7204_v32 }
 0xb93   :  { %7246 = vmatpush.msrb.mxu3 %v7203_v27 }
 0xb95   :  { %7247 = vmatpush.msrb.mxu3 %v7202_v45 }
 0xb97   :  { %7248 = vmatpush.msrb.mxu3 %v7201_v16 }
 0xb9a   :  { %v6085_v28 = vpop.f32.mrf.mxu0  ;;  %v6130_v25 = vpop.f32.mrf.mxu1 }
 0xb9b   :  { %v6131_v6 = vadd.f32 %v6130_v25, %v6085_v28 }
 0xba1   :  { %v6150_v33 = vpop.f32.mrf.mxu2  ;;  %v6203_v55 = vpop.f32.mrf.mxu3 }
 0xba2   :  { %v6278_v8 = vpop.f32.mrf.mxu1  ;;  %v6226_v40 = vadd.f32 %v6203_v55, %v6131_v6 }
 0xba3   :  { %v6105_v19 = vpop.f32.mrf.mxu0 }
 0xba4   :  { %v6151_v54 = vadd.f32 %v6150_v33, %v6105_v19  ;;  %v6301_v18 = vadd.f32 %v6278_v8, %v6226_v40 }
 0xba9   :  { %v6298_v17 = vpop.f32.mrf.mxu2 }
 0xbab   :  { %v6223_v38 = vpop.f32.mrf.mxu0 }
 0xbac   :  { %v6227_v4 = vadd.f32 %v6223_v38, %v6151_v54 }
 0xbae   :  { %v6302_v50 = vadd.f32 %v6298_v17, %v6227_v4  ;;  %v7276_v4 = vld [vmem:[%s12363_s17 + $0x10] sm:$0xff] }
 0xbb3   :  { %v6426_v34 = vpop.f32.mrf.mxu1 }
 0xbb5   :  { %v6372_v24 = vpop.f32.mrf.mxu0 }
 0xbb6   :  { %v6376_v11 = vadd.f32 %v6372_v24, %v6302_v50 }
 0xbb8   :  { %v6352_v12 = vpop.f32.mrf.mxu3 }
 0xbb9   :  { %v6446_v13 = vpop.f32.mrf.mxu2  ;;  %v6375_v35 = vadd.f32 %v6352_v12, %v6301_v18  ;;  %v7275_v18 = vld [vmem:[%s12363_s17 + $0x8] sm:$0xff] }
 0xbba   :  { %v6450_v15 = vadd.f32 %v6446_v13, %v6376_v11 }
 0xbbb   :  { %v6449_v46 = vadd.f32 %v6426_v34, %v6375_v35  ;;  %v7718_v35 = vld [vmem:[%s12362_s16] ss:$0 sm:$0xff]  ;;  %s8334_s16 = smov [#allocation5]  }
 0xbbc   :  { %v6574_v41 = vpop.f32.mrf.mxu1 }
 0xbbf   :  { %v6520_v61 = vpop.f32.mrf.mxu0 }
 0xbc0   :  { %v6500_v14 = vpop.f32.mrf.mxu3  ;;  %v6524_v31 = vadd.f32 %v6520_v61, %v6450_v15 }
 0xbc1   :  { %v6594_v20 = vpop.f32.mrf.mxu2  ;;  %v6523_v1 = vadd.f32 %v6500_v14, %v6449_v46  ;;  %v7280_v14 = vld [vmem:[%s12363_s17 + $0x30] sm:$0xff] }
 0xbc2   :  { %v6598_v47 = vadd.f32 %v6594_v20, %v6524_v31  ;;  %v7277_v20 = vld [vmem:[%s12363_s17 + $0x18] sm:$0xff] }
 0xbc3   :  { %v6597_v36 = vadd.f32 %v6574_v41, %v6523_v1  ;;  %v7281_v41 = vld [vmem:[%s12363_s17 + $0x38] sm:$0xff] }
 0xbc4   :  { %7297 = vmatpush.msra.mxu1 %v7281_v41 }
 0xbc6   :  { %7298 = vmatpush.msra.mxu1 %v7280_v14 }
 0xbc8   :  { %7299 = vmatpush.msra.mxu1 %v7279_v51 }
 0xbca   :  { %7300 = vmatpush.msra.mxu1 %v7278_v56 }
 0xbcc   :  { %7301 = vmatpush.msra.mxu1 %v7277_v20 }
 0xbce   :  { %7302 = vmatpush.msra.mxu1 %v7276_v4 }
 0xbd0   :  { %7303 = vmatpush.msra.mxu1 %v7275_v18 }
 0xbd3   :  { %v6668_v57 = vpop.f32.mrf.mxu0  ;;  %v6722_v9 = vpop.f32.mrf.mxu1 }
 0xbd4   :  { %v6672_v52 = vadd.f32 %v6668_v57, %v6598_v47  ;;  %v7274_v57 = vld [vmem:[%s12363_s17] sm:$0xff]  ;;  %s7328_s17 = sshll.u32 %s8334_s16, 4  ;;  %s7329_s17 = int_to_ptr.vmem [resolvable:$true] %s7328_s17 }
 0xbd5   :  { %7304 = vmatpush.msra.mxu1 %v7274_v57 }
 0xbd8   :  { %v6648_v29 = vpop.f32.mrf.mxu3 }
 0xbd9   :  { %v6671_v60 = vadd.f32 %v6648_v29, %v6597_v36 }
 0xbda   :  { %v6742_v48 = vpop.f32.mrf.mxu2 }
 0xbdb   :  { %v6816_v3 = vpop.f32.mrf.mxu0  ;;  %v6746_v28 = vadd.f32 %v6742_v48, %v6672_v52  ;;  %v6745_v19 = vadd.f32 %v6722_v9, %v6671_v60  ;;  %v7719_v48 = vld [vmem:[%s12364_s18] ss:$0 sm:$0xff] }
 0xbdc   :  { %v6870_v23 = vpop.f32.mrf.mxu1 }
 0xbdd   :  { %v6820_v63 = vadd.f32 %v6816_v3, %v6746_v28 }
 0xbe1   :  { %v6796_v2 = vpop.f32.mrf.mxu3 }
 0xbe2   :  { %v6890_v7 = vpop.f32.mrf.mxu2  ;;  %v6819_v33 = vadd.f32 %v6796_v2, %v6745_v19 }
 0xbe3   :  { %v6894_v44 = vadd.f32 %v6890_v7, %v6820_v63 }
 0xbe4   :  { %v6893_v49 = vadd.f32 %v6870_v23, %v6819_v33 }
 0xbf2   :  { %v6964_v25 = vpop.f32.mrf.mxu0 }
 0xbf3   :  { %v7018_v38 = vpop.f32.mrf.mxu1  ;;  %v6968_v8 = vadd.f32 %v6964_v25, %v6894_v44 }
 0xbf8   :  { %v6944_v39 = vpop.f32.mrf.mxu3 }
 0xbf9   :  { %v7038_v55 = vpop.f32.mrf.mxu2  ;;  %v6967_v17 = vadd.f32 %v6944_v39, %v6893_v49 }
 0xbfa   :  { %v7042_v24 = vadd.f32 %v7038_v55, %v6968_v8  ;;  %v7112_v59 = vpop.f32.mrf.mxu0 }
 0xbfb   :  { %v7041_v34 = vadd.f32 %v7018_v38, %v6967_v17  ;;  %v7166_v6 = vpop.f32.mrf.mxu1 }
 0xbfc   :  { %v7116_v12 = vadd.f32 %v7112_v59, %v7042_v24 }
 0xc00   :  { %v7092_v13 = vpop.f32.mrf.mxu3 }
 0xc01   :  { %v7115_v61 = vadd.f32 %v7092_v13, %v7041_v34  ;;  %v7186_v0 = vpop.f32.mrf.mxu2 }
 0xc02   :  { %v7190_v37 = vadd.f32 %v7186_v0, %v7116_v12 }
 0xc03   :  { %v7189_v53 = vadd.f32 %v7166_v6, %v7115_v61 }
 0xc04   :  { %v7198_v62 = vadd.f32 %v7194_v30, %v7190_v37 }
 0xc05   :  { %v7197_v40 = vadd.f32 %v7193_v26, %v7189_v53 }
 0xc06   :  { %v7200_v42 = vmax.f32 %v7198_v62, 0.0 }
 0xc07   :  { %v7199_v54 = vmax.f32 %v7197_v40, 0.0 }
 0xc08   :  { %7676 = vmatmul.msk.f32.vlgmr.msrb.gmra.mxu0 %vm7229_vm1, %v7200_v42 }
 0xc09   :  { %7249 = vmatmul.f32.vlgmr.msrb.gmra.mxu3 %v7199_v54 }
 0xc85   :  { %v7270_v9 = vpop.f32.mrf.mxu0 }
 0xc8c   :  { %v7250_v50 = vpop.f32.mrf.mxu3 }
 0xc8d   :  { %v7251_v11 = vadd.f32 %v7718_v35, %v7250_v50 }
 0xc8f   :  { %v7271_v29 = vadd.f32 %v7270_v9, %v7251_v11 }
 0xc91   :  { %v7273_v46 = vmax.f32 %v7271_v29, 0.0 }
 0xc93   :  { %7677 = vmatmul.msk.f32.vlgmr.msra.gmra.mxu1 %vm7229_vm1, %v7273_v46 }
 0xd10   :  { %v7306_v58 = vpop.f32.mrf.mxu1 }
 0xd11   :  { %v7307_v10 = vadd.f32 %v7719_v48, %v7306_v58 }
 0xd13   :  { %v7310_v32 = vsel %vm7309_vm11, %v7307_v10, -inf }
 0xd14   :  { %7311 = vmax.xlane.f32.xlu2 %v7310_v32 }
 0xd87   :  { %v7312_v15 = vpop.xlane.xlu2 %7311 }
 0xd88   :  { %v7313_v43 = vsub.f32 %v7307_v10, %v7312_v15 }
 0xd8a   :  { %v7314_v1 = vmul.f32 1.442695, %v7313_v43 }
 0xd8c   :  { %8232 = vpow2.f32 %v7314_v1 }
 0xd92   :  { %v8233_v27 = vpop.eup %8232 }
 0xd93   :  { %v7316_v5 = vsel %vm7309_vm11, %v8233_v27, 0.0 }
 0xd94   :  { %7317 = vadd.xlane.f32.xlu1 %v7316_v5 }
 0xe07   :  { %v7318_v3 = vpop.xlane.xlu1 %7317 }
 0xe08   :  { %8234 = vlog2.f32 %v7318_v3 }
 0xe0e   :  { %v8235_v45 = vpop.eup %8234 }
 0xe0f   :  { %v7320_v21 = vmul.f32 0.6931472, %v8235_v45 }
 0xe11   :  { %v7321_v31 = vsub.f32 %v7313_v43, %v7320_v21 }
 0xe13   :  { %7322 = vst.msk [vmem:[#allocation5] sm:$0x3] %vm7309_vm11, %v7321_v31 }
 0xe14   :  { %7333 = dma.vmem_to_hbm [thread:$0]  %s7329_s17, 32, %s7331_s12, [#allocation4]  }
 0xe15   :  { %8328 = dma.done.wait [#allocation4], 32  }
 0xe16   :  { %8329 = vsyncadd [#allocation4], 4294967264 }
 0xe17   :  { %7338 = vsyncpa [#allocation3], 1 }
 0xe18   :  { %7339 = vsyncpa [#allocation4], 1 }

</bundles_post_ra>
